<compile_context>
chip_gen: v5e
topology: v5e:2x2
jax: 0.10.0
libtpu: 0.0.40
codegen_flags: <defaults>
</compile_context>

<pallas_src>
import functools

import numpy as np
import jax
import jax.numpy as jnp
from jax.experimental import pallas as pl
from jax.experimental.pallas import tpu as pltpu


# ----------------------------------------------------------------------------
# Fused kernel
# ----------------------------------------------------------------------------
def _cnn_fused_kernel(x_ref, w1_ref, b1_ref, w2_ref, b2_ref,
                      wf1_ref, bf1_ref, wf2_ref, bf2_ref,
                      o_ref, pad2_ref, *, bb):
    """Whole CNN forward for a block of `bb` images, resident in VMEM.

    x_ref:   [1, bb*32+8, 32]  zero-framed 28x28 images (32 rows/img: 2 junk +
                               1 halo + 28 real + 1 halo; cols: 1+28+3 zeros)
    w1_ref:  [96, 1024] bf16   conv1 Toeplitz RHS, lane = (w%2)*512+(1+w//2)*32+c
    b1_ref:  [1, 1024]  f32    conv1 bias in the same lane order (0 on dead lanes)
    w2_ref:  [1536, 1024] bf16 conv2 Toeplitz RHS, lane = (wo%2)*512+(wo//2)*64+c
    b2_ref:  [1, 1024]  f32
    wf1_ref: [4096, 128] bf16  fc1 weight, rows = h*512+w*64+c (zero rows at junk)
    bf1_ref: [1, 128]   f32
    wf2_ref: [128, 128] bf16   fc2 weight zero-padded to 128 output lanes
    bf2_ref: [1, 128]   f32
    o_ref:   [1, bb, 128]
    pad2_ref: VMEM [bb*16+8, 512] f32  conv2 padded input (16 rows / image)
    """
    f32, bf16 = jnp.float32, jnp.bfloat16
    r1 = bb * 32      # conv1 rows / block (per img: 2 junk + 28 real + 2 junk)
    r2 = bb * 16      # pooled / conv2-padded rows (per img: halo + 14 + halo)

    # ---- conv1 (3x3, 1->32, pad=1) + ReLU: banded Toeplitz matmul ----------
    a1 = jnp.concatenate([x_ref[0, k:k + r1, :] for k in range(3)],
                         axis=-1).astype(bf16)                      # [r1, 96]
    h1 = jnp.dot(a1, w1_ref[...], preferred_element_type=f32)       # [r1, 1024]
    h1 = jnp.maximum(h1 + b1_ref[...], 0.0)

    # ---- pool1: w-pool = lane-half max, h-pool = row-pair merge ------------
    wp1 = jnp.maximum(h1[:, :512], h1[:, 512:])                     # [r1, 512]
    m1 = wp1.reshape(r2, 1024)                                      # pair rows
    p1 = jnp.maximum(m1[:, :512], m1[:, 512:])                      # [r2, 512]
    # rows r%16 in {0,15} are conv2's h-halo and currently hold junk -> zero.
    ridx = jax.lax.broadcasted_iota(jnp.int32, (r2, 512), 0) % 16
    p1 = jnp.where((ridx > 0) & (ridx < 15), p1, 0.0)

    # ---- stage into padded scratch (w-halo lanes are already exact zeros) --
    pad2_ref[0:r2, :] = p1
    pad2_ref[r2:r2 + 8, :] = jnp.zeros((8, 512), f32)   # tail read by last img

    # ---- conv2 (3x3, 32->64, pad=1) + ReLU: banded Toeplitz matmul ---------
    a2 = jnp.concatenate([pad2_ref[k:k + r2, :] for k in range(3)],
                         axis=-1).astype(bf16)                      # [r2, 1536]
    h2 = jnp.dot(a2, w2_ref[...], preferred_element_type=f32)       # [r2, 1024]
    h2 = jnp.maximum(h2 + b2_ref[...], 0.0)

    # ---- pool2 (same lane-half / row-pair trick) ----------------------------
    wp2 = jnp.maximum(h2[:, :512], h2[:, 512:])                     # [r2, 512]
    m2 = wp2.reshape(bb * 8, 1024)
    p2 = jnp.maximum(m2[:, :512], m2[:, 512:])                      # [bb*8, 512]

    # ---- fc1 + ReLU + fc2 (junk rows / dead lanes hit zero weight rows) ----
    flat = p2.astype(bf16).reshape(bb, 8 * 512)                     # [bb, 4096]
    z = jnp.dot(flat, wf1_ref[...], preferred_element_type=f32) + bf1_ref[...]
    z = jnp.maximum(z, 0.0)                                         # [bb, 128]
    y = jnp.dot(z.astype(bf16), wf2_ref[...],
                preferred_element_type=f32) + bf2_ref[...]          # [bb, 128]
    o_ref[...] = y.reshape(1, bb, 128).astype(o_ref.dtype)


# ----------------------------------------------------------------------------
# Wrapper
# ----------------------------------------------------------------------------
def _config(n):
    """Batch block + VMEM cap; generation-aware, keeps nb >= 2 when n >= 2."""
    big_vmem = False
    try:
        big_vmem = pltpu.get_tpu_info().vmem_capacity_bytes >= 100 * 2**20
    except Exception:
        big_vmem = False
    target = 64 if big_vmem else 32            # v5e/v6e vs v7x-safe default
    vmem_cap = (96 if big_vmem else 48) * 2**20
    bb = 1 if n <= 1 else min(target, max(1, n // 2))
    return bb, vmem_cap


def cnn_forward(x_nchw, kp):
    """x_nchw: [N, 1, 28, 28] float32; kp: prepared params (prepare_params)."""
    n, c, h, w = x_nchw.shape
    assert (c, h, w) == (1, 28, 28)
    bb, vmem_cap = _config(n)
    nb = -(-n // bb)
    npad = nb * bb
    r1, r2 = bb * 32, bb * 16

    x = x_nchw.reshape(n, 28, 28).astype(jnp.float32)
    if npad != n:
        x = jnp.pad(x, ((0, npad - n), (0, 0), (0, 0)))
    # 32x32 zero frame per image: image at rows 3:31 (2 junk rows + conv halo
    # on top, halo + junk at the bottom via the next image / tail pad),
    # columns 1:29 (1 halo col left, 3 zero cols right).
    xp = jnp.zeros((npad, 32, 32), jnp.float32).at[:, 3:31, 1:29].set(x)
    xp = xp.reshape(nb, r1, 32)
    xp = jnp.pad(xp, ((0, 0), (0, 8), (0, 0)))   # tail rows for last image's bands

    kern = functools.partial(_cnn_fused_kernel, bb=bb)
    out = pl.pallas_call(
        kern,
        out_shape=jax.ShapeDtypeStruct((nb, bb, 128), jnp.float32),
        grid=(nb,),
        in_specs=[
            pl.BlockSpec((1, r1 + 8, 32), lambda i: (i, 0, 0)),
            pl.BlockSpec((96, 1024), lambda i: (0, 0)),
            pl.BlockSpec((1, 1024), lambda i: (0, 0)),
            pl.BlockSpec((1536, 1024), lambda i: (0, 0)),
            pl.BlockSpec((1, 1024), lambda i: (0, 0)),
            pl.BlockSpec((4096, 128), lambda i: (0, 0)),
            pl.BlockSpec((1, 128), lambda i: (0, 0)),
            pl.BlockSpec((128, 128), lambda i: (0, 0)),
            pl.BlockSpec((1, 128), lambda i: (0, 0)),
        ],
        out_specs=pl.BlockSpec((1, bb, 128), lambda i: (i, 0, 0)),
        scratch_shapes=[pltpu.VMEM((r2 + 8, 512), jnp.float32)],
        compiler_params=pltpu.CompilerParams(
            dimension_semantics=("parallel",),
            vmem_limit_bytes=vmem_cap,
        ),
    )(xp, kp["w1b"], kp["b1"], kp["w2b"], kp["b2"],
      kp["wf1"], kp["bf1"], kp["wf2"], kp["bf2"])

    return out.reshape(npad, 128)[:n, :10]


# ----------------------------------------------------------------------------
# Parameter init (mimics initialize_weights()) + one-time layout preparation
# ----------------------------------------------------------------------------
def init_params(key):
    k1, k2, k3, k4 = jax.random.split(key, 4)
    # Conv: kaiming_normal_(mode='fan_out', relu) -> std = sqrt(2/(Cout*kh*kw)).
    w1 = jax.random.normal(k1, (3, 3, 1, 32), jnp.float32) * np.sqrt(2.0 / (32 * 9))
    b1 = jnp.zeros((32,), jnp.float32)
    w2 = jax.random.normal(k2, (3, 3, 32, 64), jnp.float32) * np.sqrt(2.0 / (64 * 9))
    b2 = jnp.zeros((64,), jnp.float32)
    # Linear: xavier_normal_(gain=0.1). [in, out]; fc1 rows in torch NCHW order.
    f_in1, f_out1 = 64 * 7 * 7, 128
    wf1 = jax.random.normal(k3, (f_in1, f_out1), jnp.float32) * (
        0.1 * np.sqrt(2.0 / (f_in1 + f_out1)))
    bf1 = jnp.zeros((f_out1,), jnp.float32)
    wf2 = jax.random.normal(k4, (128, 10), jnp.float32) * (0.1 * np.sqrt(2.0 / 138))
    bf2 = jnp.zeros((10,), jnp.float32)
    return dict(w1=w1, b1=b1, w2=w2, b2=b2, wf1=wf1, bf1=bf1, wf2=wf2, bf2=bf2)


def prepare_params(p):
    """One-time conversion into the kernel's Toeplitz / lane-dense layouts."""
    bf16 = jnp.bfloat16
    w1 = np.asarray(p["w1"], np.float32)      # [3,3,1,32]  HWIO
    b1 = np.asarray(p["b1"], np.float32)
    w2 = np.asarray(p["w2"], np.float32)      # [3,3,32,64] HWIO
    b2 = np.asarray(p["b2"], np.float32)
    wf1 = np.asarray(p["wf1"], np.float32)    # [3136,128], torch NCHW row order
    bf1 = np.asarray(p["bf1"], np.float32)
    wf2 = np.asarray(p["wf2"], np.float32)    # [128,10]
    bf2 = np.asarray(p["bf2"], np.float32)

    # conv1 Toeplitz: row = ky*32 + v (framed-input column), col = lane(w, c)
    # with lane(w, c) = (w%2)*512 + (1 + w//2)*32 + c  (dead groups 0 and 15).
    w1b = np.zeros((96, 1024), np.float32)
    b1t = np.zeros((1, 1024), np.float32)
    for w in range(28):
        col = (w % 2) * 512 + (1 + w // 2) * 32
        b1t[0, col:col + 32] = b1
        for ky in range(3):
            for kx in range(3):
                w1b[ky * 32 + (w + kx), col:col + 32] = w1[ky, kx, 0, :]

    # conv2 Toeplitz: row = ky*512 + g*32 + cin (g = padded pooled-w group),
    #                 col = (wo%2)*512 + (wo//2)*64 + cout.
    w2b = np.zeros((1536, 1024), np.float32)
    b2t = np.zeros((1, 1024), np.float32)
    for wo in range(14):
        col = (wo % 2) * 512 + (wo // 2) * 64
        b2t[0, col:col + 64] = b2
        for ky in range(3):
            for kx in range(3):
                g = wo + kx
                w2b[ky * 512 + g * 32: ky * 512 + (g + 1) * 32, col:col + 64] = w2[ky, kx]

    # fc1: reorder torch NCHW rows (c*49 + h*7 + w) to kernel layout
    # (h*512 + w*64 + c); h=7 row block and w=7 lane blocks stay zero (junk).
    wf1x = np.zeros((8, 8, 64, 128), np.float32)
    wf1x[:7, :7, :, :] = wf1.reshape(64, 7, 7, 128).transpose(1, 2, 0, 3)
    wf1x = wf1x.reshape(4096, 128)

    # fc2 zero-padded to 128 lane-dense output columns.
    wf2p = np.zeros((128, 128), np.float32); wf2p[:, :10] = wf2
    bf2p = np.zeros((1, 128), np.float32);   bf2p[0, :10] = bf2

    return dict(
        w1b=jnp.asarray(w1b, bf16), b1=jnp.asarray(b1t),
        w2b=jnp.asarray(w2b, bf16), b2=jnp.asarray(b2t),
        wf1=jnp.asarray(wf1x, bf16), bf1=jnp.asarray(bf1.reshape(1, 128)),
        wf2=jnp.asarray(wf2p, bf16), bf2=jnp.asarray(bf2p),
    )


if __name__ == "__main__":
    key = jax.random.PRNGKey(0)
    kx, kp = jax.random.split(key)
    # Shapes implied by the module: 1-channel 28x28 input (28 -> 14 -> 7).
    x = jax.random.normal(kx, (2, 1, 28, 28), jnp.float32)
    params = prepare_params(init_params(kp))

    out = jax.jit(cnn_forward)(x, params)
    out = jax.block_until_ready(out)
    assert out.shape == (2, 10) and out.dtype == jnp.float32
    assert bool(jnp.all(jnp.isfinite(out)))
    print("KERNEL_OK")
</pallas_src>

<mosaic_0001>
module attributes {stable_mosaic.version = 11 : i64} {
  func.func @_cnn_fused_kernel(%arg0: i32, %arg1: memref<1x40x32xf32, #tpu.memory_space<vmem>>, %arg2: memref<96x1024xbf16, #tpu.memory_space<vmem>>, %arg3: memref<1x1024xf32, #tpu.memory_space<vmem>>, %arg4: memref<1536x1024xbf16, #tpu.memory_space<vmem>>, %arg5: memref<1x1024xf32, #tpu.memory_space<vmem>>, %arg6: memref<4096x128xbf16, #tpu.memory_space<vmem>>, %arg7: memref<1x128xf32, #tpu.memory_space<vmem>>, %arg8: memref<128x128xbf16, #tpu.memory_space<vmem>>, %arg9: memref<1x128xf32, #tpu.memory_space<vmem>>, %arg10: memref<1x1x128xf32, #tpu.memory_space<vmem>>, %arg11: memref<24x512xf32, #tpu.memory_space<vmem>>) attributes {dimension_semantics = [#tpu.dimension_semantics<parallel>], iteration_bounds = array<i64: 2>, scalar_prefetch = 0 : i64, scratch_operands = 1 : i64, tpu.core_type = #tpu.core_type<tc>, window_params = [{transform_indices = @transform_0, window_bounds = array<i64: 1, 40, 32>}, {pipeline_mode = #tpu.pipeline_mode<synchronous>, transform_indices = @transform_1, window_bounds = array<i64: 96, 1024>}, {pipeline_mode = #tpu.pipeline_mode<synchronous>, transform_indices = @transform_2, window_bounds = array<i64: 1, 1024>}, {pipeline_mode = #tpu.pipeline_mode<synchronous>, transform_indices = @transform_3, window_bounds = array<i64: 1536, 1024>}, {pipeline_mode = #tpu.pipeline_mode<synchronous>, transform_indices = @transform_4, window_bounds = array<i64: 1, 1024>}, {pipeline_mode = #tpu.pipeline_mode<synchronous>, transform_indices = @transform_5, window_bounds = array<i64: 4096, 128>}, {pipeline_mode = #tpu.pipeline_mode<synchronous>, transform_indices = @transform_6, window_bounds = array<i64: 1, 128>}, {pipeline_mode = #tpu.pipeline_mode<synchronous>, transform_indices = @transform_7, window_bounds = array<i64: 128, 128>}, {pipeline_mode = #tpu.pipeline_mode<synchronous>, transform_indices = @transform_8, window_bounds = array<i64: 1, 128>}, {transform_indices = @transform_9, window_bounds = array<i64: 1, 1, 128>}]} {
    %c0 = arith.constant 0 : index
    %c0_0 = arith.constant 0 : index
    %c0_1 = arith.constant 0 : index
    %0 = vector.load %arg1[%c0, %c0_0, %c0_1] : memref<1x40x32xf32, #tpu.memory_space<vmem>>, vector<1x32x32xf32>
    %1 = vector.shape_cast %0 : vector<1x32x32xf32> to vector<32x32xf32>
    %c0_2 = arith.constant 0 : index
    %c1 = arith.constant 1 : index
    %c0_3 = arith.constant 0 : index
    %2 = vector.load %arg1[%c0_2, %c1, %c0_3] : memref<1x40x32xf32, #tpu.memory_space<vmem>>, vector<1x32x32xf32>
    %3 = vector.shape_cast %2 : vector<1x32x32xf32> to vector<32x32xf32>
    %c0_4 = arith.constant 0 : index
    %c2 = arith.constant 2 : index
    %c0_5 = arith.constant 0 : index
    %4 = vector.load %arg1[%c0_4, %c2, %c0_5] : memref<1x40x32xf32, #tpu.memory_space<vmem>>, vector<1x32x32xf32>
    %5 = vector.shape_cast %4 : vector<1x32x32xf32> to vector<32x32xf32>
    %6 = tpu.concatenate %1, %3, %5 in 1 : vector<32x32xf32>, vector<32x32xf32>, vector<32x32xf32> -> vector<32x96xf32>
    %7 = arith.truncf %6 : vector<32x96xf32> to vector<32x96xbf16>
    %c0_6 = arith.constant 0 : index
    %c0_7 = arith.constant 0 : index
    %8 = vector.load %arg2[%c0_6, %c0_7] : memref<96x1024xbf16, #tpu.memory_space<vmem>>, vector<96x1024xbf16>
    %cst = arith.constant dense<0.000000e+00> : vector<32x1024xf32>
    %9 = tpu.matmul %7, %8, %cst {dimension_numbers = #tpu.dot_dimension_numbers<[1], [0], [0], [1], [0, 0, 1, 1], [], []>} : vector<32x96xbf16>, vector<96x1024xbf16>, vector<32x1024xf32> -> vector<32x1024xf32>
    %c0_8 = arith.constant 0 : index
    %c0_9 = arith.constant 0 : index
    %10 = vector.load %arg3[%c0_8, %c0_9] : memref<1x1024xf32, #tpu.memory_space<vmem>>, vector<1x1024xf32>
    %11 = vector.broadcast %10 : vector<1x1024xf32> to vector<32x1024xf32>
    %12 = arith.addf %9, %11 : vector<32x1024xf32>
    %cst_10 = arith.constant 0.000000e+00 : f32
    %13 = vector.broadcast %cst_10 : f32 to vector<32x1024xf32>
    %14 = arith.maximumf %12, %13 : vector<32x1024xf32>
    %15 = vector.extract_strided_slice %14 {offsets = [0, 0], sizes = [32, 512], strides = [1, 1]} : vector<32x1024xf32> to vector<32x512xf32>
    %16 = vector.extract_strided_slice %14 {offsets = [0, 512], sizes = [32, 512], strides = [1, 1]} : vector<32x1024xf32> to vector<32x512xf32>
    %17 = arith.maximumf %15, %16 : vector<32x512xf32>
    %18 = vector.shape_cast %17 : vector<32x512xf32> to vector<16x1024xf32>
    %19 = vector.extract_strided_slice %18 {offsets = [0, 0], sizes = [16, 512], strides = [1, 1]} : vector<16x1024xf32> to vector<16x512xf32>
    %20 = vector.extract_strided_slice %18 {offsets = [0, 512], sizes = [16, 512], strides = [1, 1]} : vector<16x1024xf32> to vector<16x512xf32>
    %21 = arith.maximumf %19, %20 : vector<16x512xf32>
    %22 = tpu.iota {dimensions = array<i32: 0>} : vector<16x512xi32>
    %c16_i32 = arith.constant 16 : i32
    %c0_i32 = arith.constant 0 : i32
    %23 = arith.cmpi eq, %c16_i32, %c0_i32 : i32
    %c1_i32 = arith.constant 1 : i32
    %24 = arith.select %23, %c1_i32, %c16_i32 : i32
    %25 = vector.broadcast %24 : i32 to vector<16x512xi32>
    %26 = arith.remsi %22, %25 : vector<16x512xi32>
    %c0_i32_11 = arith.constant 0 : i32
    %27 = vector.broadcast %c0_i32_11 : i32 to vector<16x512xi32>
    %28 = arith.cmpi ne, %26, %27 : vector<16x512xi32>
    %c0_i32_12 = arith.constant 0 : i32
    %29 = vector.broadcast %c0_i32_12 : i32 to vector<16x512xi32>
    %30 = arith.cmpi slt, %26, %29 : vector<16x512xi32>
    %c0_i32_13 = arith.constant 0 : i32
    %31 = arith.cmpi slt, %24, %c0_i32_13 : i32
    %32 = vector.broadcast %31 : i1 to vector<16x512xi1>
    %33 = vector.broadcast %32 : vector<16x512xi1> to vector<16x512xi1>
    %34 = arith.xori %30, %33 : vector<16x512xi1>
    %35 = arith.andi %34, %28 : vector<16x512xi1>
    %36 = vector.broadcast %24 : i32 to vector<16x512xi32>
    %37 = arith.addi %26, %36 : vector<16x512xi32>
    %38 = arith.select %35, %37, %26 : vector<16x512xi1>, vector<16x512xi32>
    %c0_i32_14 = arith.constant 0 : i32
    %39 = vector.broadcast %c0_i32_14 : i32 to vector<16x512xi32>
    %40 = arith.cmpi sgt, %38, %39 : vector<16x512xi32>
    %c15_i32 = arith.constant 15 : i32
    %41 = vector.broadcast %c15_i32 : i32 to vector<16x512xi32>
    %42 = arith.cmpi slt, %38, %41 : vector<16x512xi32>
    %43 = arith.andi %40, %42 : vector<16x512xi1>
    %cst_15 = arith.constant 0.000000e+00 : f32
    %44 = vector.broadcast %cst_15 : f32 to vector<16x512xf32>
    %45 = arith.select %43, %21, %44 : vector<16x512xi1>, vector<16x512xf32>
    %c0_16 = arith.constant 0 : index
    %c0_17 = arith.constant 0 : index
    %46 = vector.load %arg11[%c0_16, %c0_17] : memref<24x512xf32, #tpu.memory_space<vmem>>, vector<16x512xf32>
    tpu.vector_store %arg11[%c0_16, %c0_17], %45 {strides = array<i32>} : memref<24x512xf32, #tpu.memory_space<vmem>>, vector<16x512xf32>,
    %cst_18 = arith.constant 0.000000e+00 : f32
    %47 = vector.broadcast %cst_18 : f32 to vector<8x512xf32>
    %c16 = arith.constant 16 : index
    %c0_19 = arith.constant 0 : index
    %48 = vector.load %arg11[%c16, %c0_19] : memref<24x512xf32, #tpu.memory_space<vmem>>, vector<8x512xf32>
    tpu.vector_store %arg11[%c16, %c0_19], %47 {strides = array<i32>} : memref<24x512xf32, #tpu.memory_space<vmem>>, vector<8x512xf32>,
    %c0_20 = arith.constant 0 : index
    %c0_21 = arith.constant 0 : index
    %49 = vector.load %arg11[%c0_20, %c0_21] : memref<24x512xf32, #tpu.memory_space<vmem>>, vector<16x512xf32>
    %c1_22 = arith.constant 1 : index
    %c0_23 = arith.constant 0 : index
    %50 = vector.load %arg11[%c1_22, %c0_23] : memref<24x512xf32, #tpu.memory_space<vmem>>, vector<16x512xf32>
    %c2_24 = arith.constant 2 : index
    %c0_25 = arith.constant 0 : index
    %51 = vector.load %arg11[%c2_24, %c0_25] : memref<24x512xf32, #tpu.memory_space<vmem>>, vector<16x512xf32>
    %52 = tpu.concatenate %49, %50, %51 in 1 : vector<16x512xf32>, vector<16x512xf32>, vector<16x512xf32> -> vector<16x1536xf32>
    %53 = arith.truncf %52 : vector<16x1536xf32> to vector<16x1536xbf16>
    %c0_26 = arith.constant 0 : index
    %c0_27 = arith.constant 0 : index
    %54 = vector.load %arg4[%c0_26, %c0_27] : memref<1536x1024xbf16, #tpu.memory_space<vmem>>, vector<1536x1024xbf16>
    %cst_28 = arith.constant dense<0.000000e+00> : vector<16x1024xf32>
    %55 = tpu.matmul %53, %54, %cst_28 {dimension_numbers = #tpu.dot_dimension_numbers<[1], [0], [0], [1], [0, 0, 1, 1], [], []>} : vector<16x1536xbf16>, vector<1536x1024xbf16>, vector<16x1024xf32> -> vector<16x1024xf32>
    %c0_29 = arith.constant 0 : index
    %c0_30 = arith.constant 0 : index
    %56 = vector.load %arg5[%c0_29, %c0_30] : memref<1x1024xf32, #tpu.memory_space<vmem>>, vector<1x1024xf32>
    %57 = vector.broadcast %56 : vector<1x1024xf32> to vector<16x1024xf32>
    %58 = arith.addf %55, %57 : vector<16x1024xf32>
    %cst_31 = arith.constant 0.000000e+00 : f32
    %59 = vector.broadcast %cst_31 : f32 to vector<16x1024xf32>
    %60 = arith.maximumf %58, %59 : vector<16x1024xf32>
    %61 = vector.extract_strided_slice %60 {offsets = [0, 0], sizes = [16, 512], strides = [1, 1]} : vector<16x1024xf32> to vector<16x512xf32>
    %62 = vector.extract_strided_slice %60 {offsets = [0, 512], sizes = [16, 512], strides = [1, 1]} : vector<16x1024xf32> to vector<16x512xf32>
    %63 = arith.maximumf %61, %62 : vector<16x512xf32>
    %64 = vector.shape_cast %63 : vector<16x512xf32> to vector<8x1024xf32>
    %65 = vector.extract_strided_slice %64 {offsets = [0, 0], sizes = [8, 512], strides = [1, 1]} : vector<8x1024xf32> to vector<8x512xf32>
    %66 = vector.extract_strided_slice %64 {offsets = [0, 512], sizes = [8, 512], strides = [1, 1]} : vector<8x1024xf32> to vector<8x512xf32>
    %67 = arith.maximumf %65, %66 : vector<8x512xf32>
    %68 = arith.truncf %67 : vector<8x512xf32> to vector<8x512xbf16>
    %69 = vector.shape_cast %68 : vector<8x512xbf16> to vector<1x4096xbf16>
    %c0_32 = arith.constant 0 : index
    %c0_33 = arith.constant 0 : index
    %70 = vector.load %arg6[%c0_32, %c0_33] : memref<4096x128xbf16, #tpu.memory_space<vmem>>, vector<4096x128xbf16>
    %cst_34 = arith.constant dense<0.000000e+00> : vector<1x128xf32>
    %71 = tpu.matmul %69, %70, %cst_34 {dimension_numbers = #tpu.dot_dimension_numbers<[1], [0], [0], [1], [0, 0, 1, 1], [], []>} : vector<1x4096xbf16>, vector<4096x128xbf16>, vector<1x128xf32> -> vector<1x128xf32>
    %c0_35 = arith.constant 0 : index
    %c0_36 = arith.constant 0 : index
    %72 = vector.load %arg7[%c0_35, %c0_36] : memref<1x128xf32, #tpu.memory_space<vmem>>, vector<1x128xf32>
    %73 = arith.addf %71, %72 : vector<1x128xf32>
    %cst_37 = arith.constant 0.000000e+00 : f32
    %74 = vector.broadcast %cst_37 : f32 to vector<1x128xf32>
    %75 = arith.maximumf %73, %74 : vector<1x128xf32>
    %76 = arith.truncf %75 : vector<1x128xf32> to vector<1x128xbf16>
    %c0_38 = arith.constant 0 : index
    %c0_39 = arith.constant 0 : index
    %77 = vector.load %arg8[%c0_38, %c0_39] : memref<128x128xbf16, #tpu.memory_space<vmem>>, vector<128x128xbf16>
    %cst_40 = arith.constant dense<0.000000e+00> : vector<1x128xf32>
    %78 = tpu.matmul %76, %77, %cst_40 {dimension_numbers = #tpu.dot_dimension_numbers<[1], [0], [0], [1], [0, 0, 1, 1], [], []>} : vector<1x128xbf16>, vector<128x128xbf16>, vector<1x128xf32> -> vector<1x128xf32>
    %c0_41 = arith.constant 0 : index
    %c0_42 = arith.constant 0 : index
    %79 = vector.load %arg9[%c0_41, %c0_42] : memref<1x128xf32, #tpu.memory_space<vmem>>, vector<1x128xf32>
    %80 = arith.addf %78, %79 : vector<1x128xf32>
    %81 = vector.shape_cast %80 : vector<1x128xf32> to vector<1x1x128xf32>
    %c0_43 = arith.constant 0 : index
    %c0_44 = arith.constant 0 : index
    %c0_45 = arith.constant 0 : index
    %82 = vector.load %arg10[%c0_43, %c0_44, %c0_45] : memref<1x1x128xf32, #tpu.memory_space<vmem>>, vector<1x1x128xf32>
    tpu.vector_store %arg10[%c0_43, %c0_44, %c0_45], %81 {strides = array<i32>} : memref<1x1x128xf32, #tpu.memory_space<vmem>>, vector<1x1x128xf32>,
    return
  }
  func.func @transform_0(%arg0: i32) -> (i32, i32, i32) {
    %c0_i32 = arith.constant 0 : i32
    %c0_i32_0 = arith.constant 0 : i32
    %c0_i32_1 = arith.constant 0 : i32
    return %arg0, %c0_i32, %c0_i32_0 : i32, i32, i32
  }
  func.func @transform_1(%arg0: i32) -> (i32, i32) {
    %c0_i32 = arith.constant 0 : i32
    %c0_i32_0 = arith.constant 0 : i32
    %c0_i32_1 = arith.constant 0 : i32
    return %c0_i32, %c0_i32_0 : i32, i32
  }
  func.func @transform_2(%arg0: i32) -> (i32, i32) {
    %c0_i32 = arith.constant 0 : i32
    %c0_i32_0 = arith.constant 0 : i32
    %c0_i32_1 = arith.constant 0 : i32
    return %c0_i32, %c0_i32_0 : i32, i32
  }
  func.func @transform_3(%arg0: i32) -> (i32, i32) {
    %c0_i32 = arith.constant 0 : i32
    %c0_i32_0 = arith.constant 0 : i32
    %c0_i32_1 = arith.constant 0 : i32
    return %c0_i32, %c0_i32_0 : i32, i32
  }
  func.func @transform_4(%arg0: i32) -> (i32, i32) {
    %c0_i32 = arith.constant 0 : i32
    %c0_i32_0 = arith.constant 0 : i32
    %c0_i32_1 = arith.constant 0 : i32
    return %c0_i32, %c0_i32_0 : i32, i32
  }
  func.func @transform_5(%arg0: i32) -> (i32, i32) {
    %c0_i32 = arith.constant 0 : i32
    %c0_i32_0 = arith.constant 0 : i32
    %c0_i32_1 = arith.constant 0 : i32
    return %c0_i32, %c0_i32_0 : i32, i32
  }
  func.func @transform_6(%arg0: i32) -> (i32, i32) {
    %c0_i32 = arith.constant 0 : i32
    %c0_i32_0 = arith.constant 0 : i32
    %c0_i32_1 = arith.constant 0 : i32
    return %c0_i32, %c0_i32_0 : i32, i32
  }
  func.func @transform_7(%arg0: i32) -> (i32, i32) {
    %c0_i32 = arith.constant 0 : i32
    %c0_i32_0 = arith.constant 0 : i32
    %c0_i32_1 = arith.constant 0 : i32
    return %c0_i32, %c0_i32_0 : i32, i32
  }
  func.func @transform_8(%arg0: i32) -> (i32, i32) {
    %c0_i32 = arith.constant 0 : i32
    %c0_i32_0 = arith.constant 0 : i32
    %c0_i32_1 = arith.constant 0 : i32
    return %c0_i32, %c0_i32_0 : i32, i32
  }
  func.func @transform_9(%arg0: i32) -> (i32, i32, i32) {
    %c0_i32 = arith.constant 0 : i32
    %c0_i32_0 = arith.constant 0 : i32
    %c0_i32_1 = arith.constant 0 : i32
    return %arg0, %c0_i32, %c0_i32_0 : i32, i32, i32
  }
}

</mosaic_0001>

<bundles_post_ra>
// kernel: cnn_forward.1
= control target key start
LH: loop header
LB: loop body
LE: loop exit
PB: predicated region body
PF: predicated region fallthrough
CT: control target
= control target key end

     0   :  { %s17679_s0 = inlined_call_operand.vmem [shape: f32[2,40,32], index: 0, kind: input, shape index: {}]   ;;  %s17680_s1 = inlined_call_operand.hbm [shape: bf16[96,1024], index: 1, kind: input, shape index: {}]   ;;  %s17681_s2 = inlined_call_operand.hbm [shape: f32[1,1024], index: 2, kind: input, shape index: {}]   ;;  %s17682_s3 = inlined_call_operand.hbm [shape: bf16[1536,1024], index: 3, kind: input, shape index: {}]   ;;  %s17683_s4 = inlined_call_operand.hbm [shape: f32[1,1024], index: 4, kind: input, shape index: {}]   ;;  %s17684_s5 = inlined_call_operand.hbm [shape: bf16[4096,128], index: 5, kind: input, shape index: {}]   ;;  %s17685_s6 = inlined_call_operand.hbm [shape: f32[1,128], index: 6, kind: input, shape index: {}]   ;;  %s17686_s7 = inlined_call_operand.hbm [shape: bf16[128,128], index: 7, kind: input, shape index: {}]   ;;  %s17687_s8 = inlined_call_operand.hbm [shape: f32[1,128], index: 8, kind: input, shape index: {}]   ;;  %s17688_s9 = inlined_call_operand.hbm [shape: f32[2,1,128], index: 9, kind: output, shape index: {}]  }
   0x1   :  { %17697 = sst [smem:[#allocation80_spill]] %s17680_s1 }
   0x2   :  { %17698 = sst [smem:[#allocation81_spill]] %s17681_s2 }
   0x3   :  { %17699 = sst [smem:[#allocation82_spill]] %s17682_s3 }
   0x4   :  { %17700 = sst [smem:[#allocation83_spill]] %s17683_s4 }
   0x5   :  { %17701 = sst [smem:[#allocation84_spill]] %s17684_s5 }
   0x6   :  { %14 = vsyncpa [#allocation4], 0 }
   0x7   :  { %15 = vsyncpa [#allocation7], 0 }
   0x8   :  { %16 = vsyncpa [#allocation10], 0 }
   0x9   :  { %17 = vsyncpa [#allocation13], 0 }
   0xa   :  { %18 = vsyncpa [#allocation16], 0 }
   0xb   :  { %19 = vsyncpa [#allocation5], 0 }
   0xc   :  { %21 = vsyncpa [#allocation5 + $0x1], 0  ;;  %s16501_s30 = smov 0   ;;  %s16503_s10 = smov 0  }
   0xd   :  { %s16505_s11 = smov 0   ;;  %s16507_s12 = smov 0  }
   0xe LB: > { %s16522_s13 = sadd.s32 4294967295, %s16433_s12   ;;  %s10420_s14 = sadd.s32 4294967294, %s16433_s12   ;;  %s16433_s12 = sphi %s16507_s12, %s17839_s12   ;;  %s16429_s11 = sphi %s16505_s11, %s17838_s11   ;;  %s16425_s10 = sphi %s16503_s10, %s17837_s10   ;;  %s16421_s30 = sphi %s16501_s30, %s17836_s30  }
   0xf   : > { %s16526_s15 = sadd.s32 1, %s16433_s12   ;;  %s228_s16 = sadd.s32 1, %s16429_s11 }
  0x10   : > { %s225_s17 = ssub.s32 %s16433_s12, %s16526_s15  ;;  %p238_p0 = scmp.ne.s32.totalorder %s16429_s11, %s16425_s10 }
  0x11   : > { %p226_p1 = scmp.eq.s32.totalorder %s225_s17, 0  ;;  %p239_p2 = scmp.eq.s32.totalorder %s16522_s13, 1 }
  0x12   : > { %p244_p3 = scmp.ne.s32.totalorder %s16425_s10, %s16421_s30  ;;  %p245_p4 = scmp.eq.s32.totalorder %s10420_s14, 1 }
  0x13   : > { %s16537_s18 = scalar_select %p226_p1, %s16429_s11, %s228_s16  }
  0x14   : > { %p16539_p5 = por %p239_p2, %p238_p0  ;;  %p16543_p6 = por %p245_p4, %p244_p3 }
  0x15   : > { %17702 = sst [smem:[#allocation24_spill]] %s16537_s18  ;;  %p10421_p7 = scmp.ge.s32.totalorder %s16433_s12, 1 }
  0x16   : > { %p252_p8 = scmp.lt.s32.totalorder %s16433_s12, 3  ;;  %p15927_p9 = scmp.eq.s32.totalorder %s16522_s13, 0 }
  0x17   : > { %s17706_s2 = sld [smem:[#allocation81_spill]]  ;;  %s16435_s25 = smov [#allocation6]  }
  0x18   : > { %p16550_p10 = pnand %p10421_p7, %p252_p8  ;;  %s280_s26 = sshll.u32 %s16435_s25, 4  ;;  %s281_s26 = int_to_ptr.vmem [resolvable:$true] %s280_s26 }
  0x19   : > { %s17707_s4 = sld [smem:[#allocation83_spill]]  ;;  %s330_s22 = sshll.u32 %s17685_s6, 4  ;;  %s331_s22 = int_to_ptr.hbm [resolvable:$true] %s330_s22 }
  0x1a   : > { %p15898_p11 = pneg %p16550_p10  ;;  %s16436_s23 = smov [#allocation9]  }
  0x1b   : > { %s306_s25 = sshll.u32 %s16436_s23, 4  ;;  %s17709_s1 = sld [smem:[#allocation80_spill]]  ;;  %s307_s25 = int_to_ptr.vmem [resolvable:$true] %s306_s25 }
  0x1c   : > { %p16564_p12 = pnand %p15927_p9, %p15898_p11  ;;  %s16438_s16 = smov [#allocation3]  }
  0x1d   : > { %s278_s24 = sshll.u32 %s17706_s2, 4  ;;  %s265_s17 = sshll.u32 %s16438_s16, 4  ;;  %s279_s24 = int_to_ptr.hbm [resolvable:$true] %s278_s24  ;;  %s266_s17 = int_to_ptr.vmem [resolvable:$true] %s265_s17 }
  0x1e   : > { %15904 = dma.hbm_to_vmem [thread:$0]  (!%p16564_p12), %s279_s24, 128, %s281_s26, [#allocation7]  }
  0x1f   : > { %s304_s29 = sshll.u32 %s17707_s4, 4  ;;  %s16437_s4 = smov [#allocation12]   ;;  %s305_s29 = int_to_ptr.hbm [resolvable:$true] %s304_s29 }
  0x20   : > { %15910 = dma.hbm_to_vmem [thread:$0]  (!%p16564_p12), %s305_s29, 128, %s307_s25, [#allocation10]  }
  0x21   : > { %s263_s2 = sshll.u32 %s17709_s1, 4  ;;  %s332_s18 = sshll.u32 %s16437_s4, 4  ;;  %s264_s2 = int_to_ptr.hbm [resolvable:$true] %s263_s2  ;;  %s333_s18 = int_to_ptr.vmem [resolvable:$true] %s332_s18 }
  0x22   : > { %15916 = dma.hbm_to_vmem [thread:$0]  (!%p16564_p12), %s331_s22, 16, %s333_s18, [#allocation13]  }
  0x23   : > { %s16439_s23 = smov 512   ;;  %s16440_s24 = smov 32  }
  0x24   : > { %15901 = dma.hbm_to_vmem [thread:$0]  (!%p16564_p12), %s264_s2, 6144, %s266_s17, [#allocation4], %s16439_s23, %s16439_s23, %s16440_s24  }
  0x25   : > { %s17710_s3 = sld [smem:[#allocation82_spill]]  ;;  %s16441_s27 = smov [#allocation8]  }
  0x26   : > { %s291_s4 = sshll.u32 %s16441_s27, 4  ;;  %s17711_s5 = sld [smem:[#allocation84_spill]]  ;;  %s292_s4 = int_to_ptr.vmem [resolvable:$true] %s291_s4 }
  0x27   : > { %s16442_s22 = smov [#allocation11]   ;;  %s16443_s2 = smov 64  }
  0x28   : > { %s317_s16 = sshll.u32 %s16442_s22, 4  ;;  %s16444_s17 = smov 4   ;;  %s318_s16 = int_to_ptr.vmem [resolvable:$true] %s317_s16 }
  0x29   : > { %s341_s27 = sshll.u32 %s17686_s7, 4  ;;  %s342_s27 = int_to_ptr.hbm [resolvable:$true] %s341_s27 }
  0x2b   : > { %s289_s25 = sshll.u32 %s17710_s3, 4  ;;  %s16445_s3 = smov [#allocation14]   ;;  %s290_s25 = int_to_ptr.hbm [resolvable:$true] %s289_s25 }
  0x2c   : > { %s315_s18 = sshll.u32 %s17711_s5, 4  ;;  %s343_s1 = sshll.u32 %s16445_s3, 4  ;;  %s316_s18 = int_to_ptr.hbm [resolvable:$true] %s315_s18  ;;  %s344_s1 = int_to_ptr.vmem [resolvable:$true] %s343_s1 }
  0x2d   : > { %15907 = dma.hbm_to_vmem [thread:$0]  (!%p16564_p12), %s290_s25, 98304, %s292_s4, [#allocation7], %s16439_s23, %s16439_s23, %s16440_s24  }
  0x2e   : > { %15913 = dma.hbm_to_vmem [thread:$0]  (!%p16564_p12), %s316_s18, 32768, %s318_s16, [#allocation10], %s16443_s2, %s16443_s2, %s16444_s17  }
  0x2f   : > { %s356_s23 = sshll.u32 %s17687_s8, 4  ;;  %s16446_s24 = smov [#allocation15]   ;;  %s357_s23 = int_to_ptr.hbm [resolvable:$true] %s356_s23 }
  0x30   : > { %15919 = dma.hbm_to_vmem [thread:$0]  (!%p16564_p12), %s342_s27, 1024, %s344_s1, [#allocation13], %s16443_s2, %s16443_s2, %s16444_s17  }
  0x31   : > { %s358_s25 = sshll.u32 %s16446_s24, 4  ;;  %379 = sbr.rel (%p16550_p10) target bundleno = 2327 (0x917), region = 56  ;;  %s359_s25 = int_to_ptr.vmem [resolvable:$true] %s358_s25 }
  0x32   : > { %15922 = dma.hbm_to_vmem [thread:$0]  (!%p16564_p12), %s357_s23, 16, %s359_s25, [#allocation16]  }
  0x36   : > { %16396 = dma.done.wait (%p15927_p9), [#allocation4], 6144  }
  0x37   : > { %16398 = vsyncadd (%p15927_p9), [#allocation4], 4294961152 }
  0x38   : > { %16400 = dma.done.wait (%p15927_p9), [#allocation7], 98432  }
  0x39   : > { %16402 = vsyncadd (%p15927_p9), [#allocation7], 4294868864 }
  0x3a   : > { %16404 = dma.done.wait (%p15927_p9), [#allocation10], 32896  }
  0x3b   : > { %16406 = vsyncadd (%p15927_p9), [#allocation10], 4294934400 }
  0x3c   : > { %16408 = dma.done.wait (%p15927_p9), [#allocation13], 1040  }
  0x3d   : > { %16410 = vsyncadd (%p15927_p9), [#allocation13], 4294966256 }
  0x3e   : > { %16412 = dma.done.wait (%p15927_p9), [#allocation16], 16  }
  0x3f   : > { %16414 = vsyncadd (%p15927_p9), [#allocation16], 4294967280  ;;  %p450_p13 = scmp.lt.s32.totalorder %s16522_s13, 1  ;;  %v10603_v8 = vld [vmem:[#allocation3 + $0x140] sm:$0xf]  ;;  %s16447_s18 = smov 32  }
  0x40   : > { %v14827_v11 = vld [vmem:[#allocation3 + $0x15c] sm:$0xf0]  ;;  %v14823_v12 = vld [vmem:[#allocation3 + $0x144] sm:$0xf]  ;;  %v10611_v16 = vld [vmem:[#allocation3 + $0x148] sm:$0xf]  ;;  %s10282_s26 = scalar_lea.hbm %s17688_s9, %s16522_s13 }
  0x41   : > { %s451_s3 = scalar_select %p450_p13, %s16522_s13, 1  ;;  %v10605_v13 = vld [vmem:[#allocation3 + $0x160] sm:$0xf0]  ;;  %v10604_v14 = vor.u32 %v14827_v11, %v10603_v8  ;;  %v14828_v17 = vld [vmem:[#allocation3 + $0x164] sm:$0xf0]  ;;  %vm500_vm0 = vcmask 261120  }
  0x42   : > { %v10608_v15 = vor.u32 %v14823_v12, %v10605_v13  ;;  %v14824_v18 = vld [vmem:[#allocation3 + $0x14c] sm:$0xf]  ;;  %v10612_v19 = vor.u32 %v14828_v17, %v10611_v16  ;;  %v10571_v21 = vld [vmem:[#allocation3 + $0x100] sm:$0xf]  ;;  %v14815_v25 = vld [vmem:[#allocation3 + $0x104] sm:$0xf] }
  0x43   : > { %s15863_s5 = smul.u32 40, %s451_s3  ;;  %v10613_v20 = vld [vmem:[#allocation3 + $0x168] sm:$0xf0]  ;;  %v14819_v22 = vld [vmem:[#allocation3 + $0x11c] sm:$0xf0]  ;;  %827 = vmatpush.bf16.msra.mxu0 %v10604_v14  ;;  %s16448_s22 = smov 64  }
  0x44   : > { %846 = vmatpush.bf16.msra.mxu1 %v10608_v15  ;;  %v10616_v23 = vor.u32 %v14824_v18, %v10613_v20  ;;  %v10572_v24 = vor.u32 %v14819_v22, %v10571_v21  ;;  %v10573_v26 = vld [vmem:[#allocation3 + $0x120] sm:$0xf0]  ;;  %v10579_v27 = vld [vmem:[#allocation3 + $0x108] sm:$0xf]  ;;  %865 = vmatpush.bf16.msra.mxu2 %v10612_v19  ;;  %v14816_v31 = vld [vmem:[#allocation3 + $0x10c] sm:$0xf] }
  0x45   : > { %s16629_s4 = scalar_lea.vmem %s17679_s0, %s15863_s5  ;;  %v10576_v29 = vor.u32 %v14815_v25, %v10573_v26  ;;  %v14820_v30 = vld [vmem:[#allocation3 + $0x124] sm:$0xf0]  ;;  %v10581_v32 = vld [vmem:[#allocation3 + $0x128] sm:$0xf0]  ;;  %v10539_v36 = vld [vmem:[#allocation3 + $0xc0] sm:$0xf] }
  0x46   : > { %v460_v0 = vld [vmem:[%s16629_s4 + $0x1] sm:$0xff]  ;;  %v461_v1 = vld [vmem:[%s16629_s4 + $0x9] sm:$0xff]  ;;  %v462_v3 = vld [vmem:[%s16629_s4 + $0x11] sm:$0xff]  ;;  %884 = vmatpush.bf16.msra.mxu3 %v10616_v23  ;;  %v10580_v34 = vor.u32 %v14820_v30, %v10579_v27  ;;  %v10584_v35 = vor.u32 %v14816_v31, %v10581_v32  ;;  %vm505_vm1 = vcmask 523264   ;;  %vm818_vm2 = vcmask 785408   ;;  %s448_s16 = sand.u32 1, %s16425_s10  }
  0x47   : > { %v15992_v2 = vpack.i.bf16 %v461_v1, %v460_v0  ;;  %v463_v4 = vld [vmem:[%s16629_s4 + $0x19] sm:$0xff]  ;;  %v464_v5 = vld [vmem:[%s16629_s4 + $0x2] sm:$0xff]  ;;  %v465_v6 = vld [vmem:[%s16629_s4 + $0xa] sm:$0xff]  ;;  %828 = vmatpush.bf16.msra.mxu0 %v10572_v24  ;;  %vm1053_vm3 = vcmask 1041408   ;;  %vm1055_vm4 = vcmask 1045508   ;;  %vm1059_vm5 = vcmask 1043458  }
  0x48   : > { %v16002_v7 = vpack.i.bf16 %v463_v4, %v462_v3  ;;  %v466_v9 = vld [vmem:[%s16629_s4 + $0x12] sm:$0xff]  ;;  %v467_v10 = vld [vmem:[%s16629_s4 + $0x1a] sm:$0xff]  ;;  %v15997_v28 = vpack.i.bf16 %v465_v6, %v464_v5  ;;  %v14811_v37 = vld [vmem:[#allocation3 + $0xdc] sm:$0xf0]  ;;  %847 = vmatpush.bf16.msra.mxu1 %v10576_v29  ;;  %866 = vmatpush.bf16.msra.mxu2 %v10580_v34  ;;  %vm1061_vm6 = vcmask 1045504   ;;  %vm1057_vm7 = vcmask 1043456  }
  0x49   : > { %15993 = vrot.lane.b32.xlu0 %v15992_v2, %s16447_s18  ;;  %v16007_v33 = vpack.i.bf16 %v467_v10, %v466_v9  ;;  %v14807_v38 = vld [vmem:[#allocation3 + $0xc4] sm:$0xf]  ;;  %v10547_v40 = vld [vmem:[#allocation3 + $0xc8] sm:$0xf]  ;;  %v10540_v42 = vor.u32 %v14811_v37, %v10539_v36  ;;  %v14808_v44 = vld [vmem:[#allocation3 + $0xcc] sm:$0xf] }
  0x4a   : > { %16003 = vrot.lane.b32.xlu1 %v16002_v7, %s16447_s18  ;;  %v10541_v39 = vld [vmem:[#allocation3 + $0xe0] sm:$0xf0]  ;;  %v14812_v41 = vld [vmem:[#allocation3 + $0xe4] sm:$0xf0]  ;;  %v10549_v45 = vld [vmem:[#allocation3 + $0xe8] sm:$0xf0]  ;;  %885 = vmatpush.bf16.msra.mxu3 %v10584_v35 }
  0x4b   : > { %v10544_v43 = vor.u32 %v14807_v38, %v10541_v39  ;;  %v10548_v46 = vor.u32 %v14812_v41, %v10547_v40  ;;  %v10552_v47 = vor.u32 %v14808_v44, %v10549_v45  ;;  %829 = vmatpush.bf16.msra.mxu0 %v10540_v42  ;;  %v10507_v48 = vld [vmem:[#allocation3 + $0x80] sm:$0xf]  ;;  %v14799_v50 = vld [vmem:[#allocation3 + $0x84] sm:$0xf]  ;;  %v10515_v54 = vld [vmem:[#allocation3 + $0x88] sm:$0xf] }
  0x4c   : > { %v14803_v49 = vld [vmem:[#allocation3 + $0x9c] sm:$0xf0]  ;;  %v10509_v52 = vld [vmem:[#allocation3 + $0xa0] sm:$0xf0]  ;;  %v14804_v55 = vld [vmem:[#allocation3 + $0xa4] sm:$0xf0] }
  0x4d   : > { %848 = vmatpush.bf16.msra.mxu1 %v10544_v43  ;;  %867 = vmatpush.bf16.msra.mxu2 %v10548_v46  ;;  %v10508_v51 = vor.u32 %v14803_v49, %v10507_v48  ;;  %v10512_v53 = vor.u32 %v14799_v50, %v10509_v52  ;;  %v14800_v56 = vld [vmem:[#allocation3 + $0x8c] sm:$0xf]  ;;  %v10516_v57 = vor.u32 %v14804_v55, %v10515_v54  ;;  %v10475_v59 = vld [vmem:[#allocation3 + $0x40] sm:$0xf]  ;;  %v14791_v63 = vld [vmem:[#allocation3 + $0x44] sm:$0xf] }
  0x4e   : > { %886 = vmatpush.bf16.msra.mxu3 %v10552_v47  ;;  %v10517_v58 = vld [vmem:[#allocation3 + $0xa8] sm:$0xf0]  ;;  %v14795_v60 = vld [vmem:[#allocation3 + $0x5c] sm:$0xf0]  ;;  %v10477_v0 = vld [vmem:[#allocation3 + $0x60] sm:$0xf0] }
  0x4f   : > { %830 = vmatpush.bf16.msra.mxu0 %v10508_v51  ;;  %v10520_v61 = vor.u32 %v14800_v56, %v10517_v58  ;;  %v10476_v62 = vor.u32 %v14795_v60, %v10475_v59  ;;  %v10483_v1 = vld [vmem:[#allocation3 + $0x48] sm:$0xf]  ;;  %v10480_v2 = vor.u32 %v14791_v63, %v10477_v0  ;;  %v14792_v4 = vld [vmem:[#allocation3 + $0x4c] sm:$0xf]  ;;  %v10443_v8 = vld [vmem:[#allocation3] sm:$0xf] }
  0x50   : > { %v14796_v3 = vld [vmem:[#allocation3 + $0x64] sm:$0xf0]  ;;  %v10485_v5 = vld [vmem:[#allocation3 + $0x68] sm:$0xf0]  ;;  %v14787_v9 = vld [vmem:[#allocation3 + $0x1c] sm:$0xf0] }
  0x51   : > { %15998 = vrot.lane.b32.xlu0 %v15997_v28, %s16448_s22  ;;  %849 = vmatpush.bf16.msra.mxu1 %v10512_v53  ;;  %v10484_v6 = vor.u32 %v14796_v3, %v10483_v1  ;;  %v10488_v7 = vor.u32 %v14792_v4, %v10485_v5  ;;  %v14783_v10 = vld [vmem:[#allocation3 + $0x4] sm:$0xf]  ;;  %v10444_v11 = vor.u32 %v14787_v9, %v10443_v8  ;;  %v10451_v13 = vld [vmem:[#allocation3 + $0x8] sm:$0xf]  ;;  %v14784_v17 = vld [vmem:[#allocation3 + $0xc] sm:$0xf] }
  0x52   : > { %16008 = vrot.lane.b32.xlu1 %v16007_v33, %s16448_s22  ;;  %868 = vmatpush.bf16.msra.mxu2 %v10516_v57  ;;  %v10445_v12 = vld [vmem:[#allocation3 + $0x20] sm:$0xf0]  ;;  %v14788_v14 = vld [vmem:[#allocation3 + $0x24] sm:$0xf0]  ;;  %v10453_v18 = vld [vmem:[#allocation3 + $0x28] sm:$0xf0] }
  0x53   : > { %887 = vmatpush.bf16.msra.mxu3 %v10520_v61  ;;  %831 = vmatpush.bf16.msra.mxu0 %v10476_v62  ;;  %v10448_v15 = vor.u32 %v14783_v10, %v10445_v12  ;;  %v10452_v16 = vor.u32 %v14788_v14, %v10451_v13  ;;  %v10456_v19 = vor.u32 %v14784_v17, %v10453_v18  ;;  %v10619_v20 = vld [vmem:[#allocation3 + $0x150] sm:$0xf]  ;;  %v14825_v22 = vld [vmem:[#allocation3 + $0x154] sm:$0xf]  ;;  %v10627_v25 = vld [vmem:[#allocation3 + $0x158] sm:$0xf] }
  0x54   : > { %v14829_v21 = vld [vmem:[#allocation3 + $0x16c] sm:$0xf0]  ;;  %v10621_v24 = vld [vmem:[#allocation3 + $0x170] sm:$0xf0]  ;;  %v14830_v26 = vld [vmem:[#allocation3 + $0x174] sm:$0xf0] }
  0x55   : > { %850 = vmatpush.bf16.msra.mxu1 %v10480_v2  ;;  %v10620_v23 = vor.u32 %v14829_v21, %v10619_v20  ;;  %v10624_v27 = vor.u32 %v14825_v22, %v10621_v24  ;;  %v10628_v28 = vor.u32 %v14830_v26, %v10627_v25  ;;  %v14826_v29 = vld [vmem:[#allocation3 + $0x15c] sm:$0xf]  ;;  %v10587_v31 = vld [vmem:[#allocation3 + $0x110] sm:$0xf]  ;;  %v14817_v34 = vld [vmem:[#allocation3 + $0x114] sm:$0xf] }
  0x56   : > { %869 = vmatpush.bf16.msra.mxu2 %v10484_v6  ;;  %v10629_v30 = vld [vmem:[#allocation3 + $0x178] sm:$0xf0]  ;;  %v14821_v33 = vld [vmem:[#allocation3 + $0x12c] sm:$0xf0]  ;;  %v10589_v35 = vld [vmem:[#allocation3 + $0x130] sm:$0xf0] }
  0x57   : > { %888 = vmatpush.bf16.msra.mxu3 %v10488_v7  ;;  %832 = vmatpush.bf16.msra.mxu0 %v10444_v11  ;;  %v10632_v32 = vor.u32 %v14826_v29, %v10629_v30  ;;  %v10588_v36 = vor.u32 %v14821_v33, %v10587_v31  ;;  %v10592_v37 = vor.u32 %v14817_v34, %v10589_v35  ;;  %v10595_v38 = vld [vmem:[#allocation3 + $0x118] sm:$0xf]  ;;  %v14818_v40 = vld [vmem:[#allocation3 + $0x11c] sm:$0xf]  ;;  %v10555_v44 = vld [vmem:[#allocation3 + $0xd0] sm:$0xf] }
  0x58   : > { %v14822_v39 = vld [vmem:[#allocation3 + $0x134] sm:$0xf0]  ;;  %v10597_v42 = vld [vmem:[#allocation3 + $0x138] sm:$0xf0]  ;;  %v14813_v45 = vld [vmem:[#allocation3 + $0xec] sm:$0xf0] }
  0x59   : > { %851 = vmatpush.bf16.msra.mxu1 %v10448_v15  ;;  %v10596_v41 = vor.u32 %v14822_v39, %v10595_v38  ;;  %v10600_v43 = vor.u32 %v14818_v40, %v10597_v42  ;;  %v14809_v46 = vld [vmem:[#allocation3 + $0xd4] sm:$0xf]  ;;  %v10556_v47 = vor.u32 %v14813_v45, %v10555_v44  ;;  %v10563_v49 = vld [vmem:[#allocation3 + $0xd8] sm:$0xf]  ;;  %v14810_v53 = vld [vmem:[#allocation3 + $0xdc] sm:$0xf] }
  0x5a   : > { %870 = vmatpush.bf16.msra.mxu2 %v10452_v16  ;;  %v10557_v48 = vld [vmem:[#allocation3 + $0xf0] sm:$0xf0]  ;;  %v14814_v50 = vld [vmem:[#allocation3 + $0xf4] sm:$0xf0]  ;;  %v10565_v54 = vld [vmem:[#allocation3 + $0xf8] sm:$0xf0] }
  0x5b   : > { %889 = vmatpush.bf16.msra.mxu3 %v10456_v19  ;;  %903 = vmatpush.bf16.msrb.mxu0 %v10620_v23  ;;  %v10560_v51 = vor.u32 %v14809_v46, %v10557_v48  ;;  %v10564_v52 = vor.u32 %v14814_v50, %v10563_v49  ;;  %v10523_v55 = vld [vmem:[#allocation3 + $0x90] sm:$0xf]  ;;  %v10568_v57 = vor.u32 %v14810_v53, %v10565_v54  ;;  %v14801_v59 = vld [vmem:[#allocation3 + $0x94] sm:$0xf]  ;;  %v10531_v63 = vld [vmem:[#allocation3 + $0x98] sm:$0xf] }
  0x5c   : > { %v14805_v58 = vld [vmem:[#allocation3 + $0xac] sm:$0xf0]  ;;  %v10525_v60 = vld [vmem:[#allocation3 + $0xb0] sm:$0xf0]  ;;  %v14806_v0 = vld [vmem:[#allocation3 + $0xb4] sm:$0xf0] }
  0x5d   : > { %922 = vmatpush.bf16.msrb.mxu1 %v10624_v27  ;;  %v10524_v61 = vor.u32 %v14805_v58, %v10523_v55  ;;  %v10528_v62 = vor.u32 %v14801_v59, %v10525_v60  ;;  %v14802_v1 = vld [vmem:[#allocation3 + $0x9c] sm:$0xf]  ;;  %v10532_v2 = vor.u32 %v14806_v0, %v10531_v63  ;;  %v10491_v4 = vld [vmem:[#allocation3 + $0x50] sm:$0xf]  ;;  %v14793_v7 = vld [vmem:[#allocation3 + $0x54] sm:$0xf] }
  0x5e   : > { %941 = vmatpush.bf16.msrb.mxu2 %v10628_v28  ;;  %v10533_v3 = vld [vmem:[#allocation3 + $0xb8] sm:$0xf0]  ;;  %v14797_v5 = vld [vmem:[#allocation3 + $0x6c] sm:$0xf0]  ;;  %v10493_v8 = vld [vmem:[#allocation3 + $0x70] sm:$0xf0] }
  0x5f   : > { %960 = vmatpush.bf16.msrb.mxu3 %v10632_v32  ;;  %904 = vmatpush.bf16.msrb.mxu0 %v10588_v36  ;;  %v10536_v6 = vor.u32 %v14802_v1, %v10533_v3  ;;  %v10499_v9 = vld [vmem:[#allocation3 + $0x58] sm:$0xf]  ;;  %v10492_v10 = vor.u32 %v14797_v5, %v10491_v4  ;;  %v14794_v12 = vld [vmem:[#allocation3 + $0x5c] sm:$0xf]  ;;  %v10496_v14 = vor.u32 %v14793_v7, %v10493_v8  ;;  %v10459_v16 = vld [vmem:[#allocation3 + $0x10] sm:$0xf] }
  0x60   : > { %v14798_v11 = vld [vmem:[#allocation3 + $0x74] sm:$0xf0]  ;;  %v10501_v13 = vld [vmem:[#allocation3 + $0x78] sm:$0xf0]  ;;  %v14789_v17 = vld [vmem:[#allocation3 + $0x2c] sm:$0xf0] }
  0x61   : > { %923 = vmatpush.bf16.msrb.mxu1 %v10592_v37  ;;  %v10500_v15 = vor.u32 %v14798_v11, %v10499_v9  ;;  %v14785_v18 = vld [vmem:[#allocation3 + $0x14] sm:$0xf]  ;;  %v10504_v21 = vor.u32 %v14794_v12, %v10501_v13  ;;  %v10467_v23 = vld [vmem:[#allocation3 + $0x18] sm:$0xf]  ;;  %v457_v26 = vld [vmem:[%s16629_s4 + $0x8] sm:$0xff]  ;;  %v10460_v29 = vor.u32 %v14789_v17, %v10459_v16  ;;  %vm1063_vm8 = vcmask 1045506  }
  0x62   : > { %942 = vmatpush.bf16.msrb.mxu2 %v10596_v41  ;;  %v10461_v22 = vld [vmem:[#allocation3 + $0x30] sm:$0xf0]  ;;  %v14790_v24 = vld [vmem:[#allocation3 + $0x34] sm:$0xf0]  ;;  %v14786_v34 = vld [vmem:[#allocation3 + $0x1c] sm:$0xf] }
  0x63   : > { %961 = vmatpush.bf16.msrb.mxu3 %v10600_v43  ;;  %905 = vmatpush.bf16.msrb.mxu0 %v10556_v47  ;;  %v456_v25 = vld [vmem:[%s16629_s4] sm:$0xff]  ;;  %v10464_v32 = vor.u32 %v14785_v18, %v10461_v22  ;;  %v10468_v33 = vor.u32 %v14790_v24, %v10467_v23  ;;  %v458_v45 = vld [vmem:[%s16629_s4 + $0x10] sm:$0xff]  ;;  %v459_v46 = vld [vmem:[%s16629_s4 + $0x18] sm:$0xff]  ;;  %vm1411_vm12 = vcmask 1046528   ;;  %s449_s29 = scalar_lea.vmem [#allocation17], %s448_s16  ;;  %s10286_s1 = sshll.u32 %s10282_s26, 4  ;;  %s10287_s1 = int_to_ptr.hbm [resolvable:$true] %s10286_s1 }
  0x64   : > { %v10469_v35 = vld [vmem:[#allocation3 + $0x38] sm:$0xf0]  ;;  %v11131_v59 = vld [vmem:[#allocation8 + $0x3c0] sm:$0xf]  ;;  %s10284_s27 = sshll.u32 %s449_s29, 4  ;;  %s10274_s28 = scalar_lea.sflag [#allocation5], %s448_s16  ;;  %s10285_s27 = int_to_ptr.vmem [resolvable:$true] %s10284_s27 }
  0x65   : > { %924 = vmatpush.bf16.msrb.mxu1 %v10560_v51  ;;  %v10472_v41 = vor.u32 %v14786_v34, %v10469_v35  ;;  %v14955_v60 = vld [vmem:[#allocation8 + $0x3dc] sm:$0xf0]  ;;  %s16365_s23 = sshra.s32 %s10287_s1, 4  ;;  %s16371_s13 = scalar_lea.hbm %s17688_s9, 2  ;;  %s16366_s23 = int_to_ptr.hbm [resolvable:$true] %s16365_s23 }
  0x66   : > { %943 = vmatpush.bf16.msrb.mxu2 %v10564_v52  ;;  %v15019_v63 = vld [vmem:[#allocation8 + $0x5dc] sm:$0xf0]  ;;  %s16367_s24 = scalar_lea.hbm %s16366_s23, 1  ;;  %p16372_p3 = scmp.lt.s32.totalorder %s16366_s23, %s17688_s9 }
  0x67   : > { %962 = vmatpush.bf16.msrb.mxu3 %v10568_v57  ;;  %906 = vmatpush.bf16.msrb.mxu0 %v10524_v61  ;;  %v14891_v57 = vld [vmem:[#allocation8 + $0x1dc] sm:$0xf0]  ;;  %p16368_p0 = scmp.ne.s32.totalorder %s16366_s23, %s16367_s24  ;;  %p16373_p4 = scmp.lt.s32.totalorder %s16371_s13, %s16367_s24 }
  0x68   : > { %v11387_v61 = vld [vmem:[#allocation8 + $0x5c0] sm:$0xf] }
  0x69   : > { %925 = vmatpush.bf16.msrb.mxu1 %v10528_v62  ;;  %v11132_v62 = vor.u32 %v14955_v60, %v11131_v59  ;;  %v11643_v0 = vld [vmem:[#allocation8 + $0x7c0] sm:$0xf]  ;;  %p16369_p1 = pnand %p16368_p0, %p16539_p5  ;;  %p16374_p7 = por %p16373_p4, %p16372_p3 }
  0x6a   : > { %944 = vmatpush.bf16.msrb.mxu2 %v10532_v2  ;;  %v15083_v1 = vld [vmem:[#allocation8 + $0x7dc] sm:$0xf0]  ;;  %v11388_v2 = vor.u32 %v15019_v63, %v11387_v61 }
  0x6b   : > { %963 = vmatpush.bf16.msrb.mxu3 %v10536_v6  ;;  %907 = vmatpush.bf16.msrb.mxu0 %v10492_v10  ;;  %v11644_v3 = vor.u32 %v15083_v1, %v11643_v0  ;;  %v560_v6 = vld [vmem:[#allocation6] sm:$0xff]  ;;  %v10843_v11 = vld [vmem:[#allocation8 + $0x180] sm:$0xf]  ;;  %p16370_p2 = pneg %p16369_p1 }
  0x6c   : > { %v16667_v9 = vperm.slane %v560_v6, 0  ;;  %v16669_v10 = vperm.slane %v560_v6, 1  ;;  %v14883_v12 = vld [vmem:[#allocation8 + $0x19c] sm:$0xf0] }
  0x6d   : > { %926 = vmatpush.bf16.msrb.mxu1 %v10496_v14  ;;  %v11099_v13 = vld [vmem:[#allocation8 + $0x380] sm:$0xf]  ;;  %v16671_v14 = vperm.slane %v560_v6, 2  ;;  %v10844_v16 = vor.u32 %v14883_v12, %v10843_v11  ;;  %p16375_p8 = pnand %p16374_p7, %p16370_p2 }
  0x6e   : > { %945 = vmatpush.bf16.msrb.mxu2 %v10500_v15  ;;  %v16673_v15 = vperm.slane %v560_v6, 3  ;;  %v14947_v17 = vld [vmem:[#allocation8 + $0x39c] sm:$0xf0] }
  0x6f   : > { %964 = vmatpush.bf16.msrb.mxu3 %v10504_v21  ;;  %908 = vmatpush.bf16.msrb.mxu0 %v10460_v29  ;;  %v11355_v18 = vld [vmem:[#allocation8 + $0x580] sm:$0xf] }
  0x70   : > { %v11611_v21 = vld [vmem:[#allocation8 + $0x780] sm:$0xf] }
  0x71   : > { %927 = vmatpush.bf16.msrb.mxu1 %v10464_v32  ;;  %v15075_v22 = vld [vmem:[#allocation8 + $0x79c] sm:$0xf0] }
  0x72   : > { %946 = vmatpush.bf16.msrb.mxu2 %v10468_v33  ;;  %v10811_v29 = vld [vmem:[#allocation8 + $0x140] sm:$0xf] }
  0x73   : > { %965 = vmatpush.bf16.msrb.mxu3 %v10472_v41  ;;  %v11067_v34 = vld [vmem:[#allocation8 + $0x340] sm:$0xf] }
  0x74   : > { %v14939_v35 = vld [vmem:[#allocation8 + $0x35c] sm:$0xf0] }
  0x75   : > { %v11579_v41 = vld [vmem:[#allocation8 + $0x740] sm:$0xf] }
  0x76   : > { %v14867_v59 = vld [vmem:[#allocation8 + $0x11c] sm:$0xf0] }
  0x77   : > { %v11035_v60 = vld [vmem:[#allocation8 + $0x300] sm:$0xf] }
  0x78   : > { %v14931_v0 = vld [vmem:[#allocation8 + $0x31c] sm:$0xf0] }
  0x79   : > { %v11291_v1 = vld [vmem:[#allocation8 + $0x500] sm:$0xf] }
  0xbb   : > { %v15994_v56 = vpop.permute.xlu0 %15993 }
  0xbc   : > { %v15996_v19 = vunpack.i.h.bf16 %v15994_v56  ;;  %v15995_v20 = vunpack.i.l.bf16 %v15994_v56  ;;  %v16004_v28 = vpop.permute.xlu1 %16003  ;;  %v10875_v56 = vld [vmem:[#allocation8 + $0x1c0] sm:$0xf] }
  0xbd   : > { %v16006_v42 = vunpack.i.h.bf16 %v16004_v28  ;;  %v16005_v43 = vunpack.i.l.bf16 %v16004_v28  ;;  %v10876_v58 = vor.u32 %v14891_v57, %v10875_v56 }
  0xbe   : > { %v501_v36 = vsel %vm500_vm0, %v456_v25, %v15995_v20  ;;  %v502_v37 = vsel %vm500_vm0, %v457_v26, %v15996_v19  ;;  %v11100_v19 = vor.u32 %v14947_v17, %v11099_v13  ;;  %v15011_v20 = vld [vmem:[#allocation8 + $0x59c] sm:$0xf0]  ;;  %v11612_v26 = vor.u32 %v15075_v22, %v11611_v21 }
  0xbf   : > { %v503_v49 = vsel %vm500_vm0, %v458_v45, %v16005_v43  ;;  %v504_v50 = vsel %vm500_vm0, %v459_v46, %v16006_v42  ;;  %v11356_v25 = vor.u32 %v15011_v20, %v11355_v18  ;;  %v15067_v43 = vld [vmem:[#allocation8 + $0x75c] sm:$0xf0]  ;;  %v16689_v45 = vperm.slane %v560_v6, 5 }
  0xc0   : > { %v11580_v46 = vor.u32 %v15067_v43, %v11579_v41  ;;  %v10747_v20 = vld [vmem:[#allocation8 + $0xc0] sm:$0xf] }
  0xc1   : > { %v14859_v21 = vld [vmem:[#allocation8 + $0xdc] sm:$0xf0] }
  0xc2   : > { %v10748_v22 = vor.u32 %v14859_v21, %v10747_v20  ;;  %v15043_v20 = vld [vmem:[#allocation8 + $0x69c] sm:$0xf0] }
  0xc3   : > { %v15999_v27 = vpop.permute.xlu0 %15998 }
  0xc4   : > { %v16001_v30 = vunpack.i.h.bf16 %v15999_v27  ;;  %v16000_v31 = vunpack.i.l.bf16 %v15999_v27  ;;  %v16009_v44 = vpop.permute.xlu1 %16008 }
  0xc5   : > { %v16011_v47 = vunpack.i.h.bf16 %v16009_v44  ;;  %v16010_v48 = vunpack.i.l.bf16 %v16009_v44  ;;  %v16687_v44 = vperm.slane %v560_v6, 4 }
  0xc6   : > { %v506_v38 = vsel %vm505_vm1, %v501_v36, %v16000_v31  ;;  %v507_v39 = vsel %vm505_vm1, %v502_v37, %v16001_v30  ;;  %v14875_v30 = vld [vmem:[#allocation8 + $0x15c] sm:$0xf0] }
  0xc7   : > { %v510_v40 = vpack.c.bf16 %v507_v39, %v506_v38  ;;  %v508_v51 = vsel %vm505_vm1, %v503_v49, %v16010_v48  ;;  %v509_v52 = vsel %vm505_vm1, %v504_v50, %v16011_v47  ;;  %v10812_v33 = vor.u32 %v14875_v30, %v10811_v29  ;;  %v11323_v36 = vld [vmem:[#allocation8 + $0x540] sm:$0xf] }
  0xc8   : > { %v511_v53 = vpack.c.bf16 %v509_v52, %v508_v51  ;;  %v11068_v39 = vor.u32 %v14939_v35, %v11067_v34  ;;  %v11515_v29 = vld [vmem:[#allocation8 + $0x6c0] sm:$0xf] }
  0xc9   : > { %10633 = vmatmul.msk.bf16.vlgmr.msra.gmra.mxu0 %vm818_vm2, %v510_v40  ;;  %10635 = vmatmul.msk.bf16.vlgmr.msra.gmra.mxu1 %vm818_vm2, %v510_v40 }
  0xca   : > { %10637 = vmatmul.msk.bf16.vlgmr.msra.gmra.mxu2 %vm818_vm2, %v510_v40  ;;  %10639 = vmatmul.msk.bf16.vlgmr.msra.gmra.mxu3 %vm818_vm2, %v510_v40 }
  0xcb   : > { %6114 = vmatpush.bf16.msra.mxu0 %v10876_v58  ;;  %6128 = vmatpush.bf16.msra.mxu1 %v11132_v62  ;;  %v10779_v58 = vld [vmem:[#allocation8 + $0x100] sm:$0xf] }
  0xcc   : > { %6142 = vmatpush.bf16.msra.mxu2 %v11388_v2  ;;  %6156 = vmatpush.bf16.msra.mxu3 %v11644_v3  ;;  %v10780_v63 = vor.u32 %v14867_v59, %v10779_v58  ;;  %v14995_v2 = vld [vmem:[#allocation8 + $0x51c] sm:$0xf0] }
  0xcd   : > { %v10971_v58 = vld [vmem:[#allocation8 + $0x280] sm:$0xf] }
  0xcf   : > { %6115 = vmatpush.bf16.msra.mxu0 %v10844_v16  ;;  %6129 = vmatpush.bf16.msra.mxu1 %v11100_v19 }
  0xd0   : > { %6143 = vmatpush.bf16.msra.mxu2 %v11356_v25  ;;  %6157 = vmatpush.bf16.msra.mxu3 %v11612_v26  ;;  %v11259_v25 = vld [vmem:[#allocation8 + $0x4c0] sm:$0xf] }
  0xd3   : > { %6116 = vmatpush.bf16.msra.mxu0 %v10812_v33  ;;  %6130 = vmatpush.bf16.msra.mxu1 %v11068_v39 }
  0xd4   : > { %6158 = vmatpush.bf16.msra.mxu3 %v11580_v46 }
  0xd7   : > { %6117 = vmatpush.bf16.msra.mxu0 %v10780_v63 }
  0xd9   : > { %10634 = vmatmul.msk.bf16.gmra.mxu0 %vm818_vm2, %v511_v53  ;;  %10636 = vmatmul.msk.bf16.gmra.mxu1 %vm818_vm2, %v511_v53 }
  0xda   : > { %10638 = vmatmul.msk.bf16.gmra.mxu2 %vm818_vm2, %v511_v53  ;;  %10640 = vmatmul.msk.bf16.gmra.mxu3 %vm818_vm2, %v511_v53 }
  0xdb   : > { %6118 = vmatpush.bf16.msra.mxu0 %v10748_v22 }
  0xe9   : > { %10641 = vmatmul.msk.bf16.vlgmr.msrb.gmra.mxu0 %vm818_vm2, %v510_v40  ;;  %10643 = vmatmul.msk.bf16.vlgmr.msrb.gmra.mxu1 %vm818_vm2, %v510_v40 }
  0xea   : > { %10645 = vmatmul.msk.bf16.vlgmr.msrb.gmra.mxu2 %vm818_vm2, %v510_v40  ;;  %10647 = vmatmul.msk.bf16.vlgmr.msrb.gmra.mxu3 %vm818_vm2, %v510_v40  ;;  %v15003_v40 = vld [vmem:[#allocation8 + $0x55c] sm:$0xf0] }
  0xeb   : > { %v11324_v42 = vor.u32 %v15003_v40, %v11323_v36 }
  0xed   : > { %6144 = vmatpush.bf16.msra.mxu2 %v11324_v42 }
  0xf9   : > { %10642 = vmatmul.msk.bf16.gmra.mxu0 %vm818_vm2, %v511_v53  ;;  %10644 = vmatmul.msk.bf16.gmra.mxu1 %vm818_vm2, %v511_v53 }
  0xfa   : > { %10646 = vmatmul.msk.bf16.gmra.mxu2 %vm818_vm2, %v511_v53  ;;  %10648 = vmatmul.msk.bf16.gmra.mxu3 %vm818_vm2, %v511_v53  ;;  %v16701_v53 = vperm.slane %v560_v6, 6 }
 0x146   : > { %v834_v54 = vpop.f32.mrf.mxu0  ;;  %v853_v55 = vpop.f32.mrf.mxu1 }
 0x147   : > { %v16676_v31 = vadd.f32 %v834_v54, %v16667_v9  ;;  %v16679_v32 = vadd.f32 %v853_v55, %v16669_v10  ;;  %v16703_v54 = vperm.slane %v560_v6, 7  ;;  %v11292_v6 = vor.u32 %v14995_v2, %v11291_v1  ;;  %v11227_v1 = vld [vmem:[#allocation8 + $0x480] sm:$0xf] }
 0x148   : > { %v14979_v2 = vld [vmem:[#allocation8 + $0x49c] sm:$0xf0] }
 0x149   : > { %v977_v47 = vmax.f32 %v16676_v31, 0.0  ;;  %v978_v48 = vmax.f32 %v16679_v32, 0.0  ;;  %6145 = vmatpush.bf16.msra.mxu2 %v11292_v6 }
 0x14d   : > { %v872_v4 = vpop.f32.mrf.mxu2  ;;  %v891_v5 = vpop.f32.mrf.mxu3 }
 0x14e   : > { %v836_v7 = vpop.f32.mrf.mxu0  ;;  %v855_v8 = vpop.f32.mrf.mxu1  ;;  %v16682_v37 = vadd.f32 %v872_v4, %v16671_v14  ;;  %v16685_v38 = vadd.f32 %v891_v5, %v16673_v15  ;;  %v11036_v5 = vor.u32 %v14931_v0, %v11035_v60  ;;  %v14915_v0 = vld [vmem:[#allocation8 + $0x29c] sm:$0xf0] }
 0x14f   : > { %v16694_v49 = vadd.f32 %v836_v7, %v16667_v9  ;;  %v16697_v50 = vadd.f32 %v855_v8, %v16669_v10  ;;  %v11547_v7 = vld [vmem:[#allocation8 + $0x700] sm:$0xf] }
 0x150   : > { %v979_v51 = vmax.f32 %v16682_v37, 0.0  ;;  %v980_v52 = vmax.f32 %v16685_v38, 0.0  ;;  %v15059_v8 = vld [vmem:[#allocation8 + $0x71c] sm:$0xf0]  ;;  %6131 = vmatpush.bf16.msra.mxu1 %v11036_v5 }
 0x151   : > { %v985_v3 = vmax.f32 %v16694_v49, 0.0  ;;  %v986_v4 = vmax.f32 %v16697_v50, 0.0  ;;  %v11548_v13 = vor.u32 %v15059_v8, %v11547_v7  ;;  %v10972_v7 = vor.u32 %v14915_v0, %v10971_v58 }
 0x152   : > { %v11228_v8 = vor.u32 %v14979_v2, %v11227_v1  ;;  %v10651_v1 = vld [vmem:[#allocation8] sm:$0xf] }
 0x153   : > { %6159 = vmatpush.bf16.msra.mxu3 %v11548_v13  ;;  %v11483_v13 = vld [vmem:[#allocation8 + $0x680] sm:$0xf] }
 0x154   : > { %v11484_v22 = vor.u32 %v15043_v20, %v11483_v13  ;;  %v14835_v2 = vld [vmem:[#allocation8 + $0x1c] sm:$0xf0]  ;;  %v16449_v13 = vmov 1966171168  }
 0x155   : > { %v874_v23 = vpop.f32.mrf.mxu2  ;;  %v893_v24 = vpop.f32.mrf.mxu3  ;;  %v1136_v20 = vunpack.c.l.s4 %v16449_v13  ;;  %v12411_v13 = vld [vmem:[#allocation8 + $0xdc0] sm:$0xf] }
 0x156   : > { %v839_v27 = vpop.f32.mrf.mxu0  ;;  %v858_v28 = vpop.f32.mrf.mxu1  ;;  %v16706_v55 = vadd.f32 %v874_v23, %v16671_v14  ;;  %v16711_v11 = vadd.f32 %v893_v24, %v16673_v15  ;;  %v11003_v23 = vld [vmem:[#allocation8 + $0x2c0] sm:$0xf] }
 0x157   : > { %v16714_v12 = vadd.f32 %v839_v27, %v16667_v9  ;;  %v16718_v17 = vadd.f32 %v858_v28, %v16669_v10  ;;  %v14923_v24 = vld [vmem:[#allocation8 + $0x2dc] sm:$0xf0] }
 0x158   : > { %v987_v16 = vmax.f32 %v16706_v55, 0.0  ;;  %v11004_v26 = vor.u32 %v14923_v24, %v11003_v23  ;;  %v14987_v27 = vld [vmem:[#allocation8 + $0x4dc] sm:$0xf0]  ;;  %v988_v30 = vmax.f32 %v16711_v11, 0.0 }
 0x159   : > { %v15051_v28 = vld [vmem:[#allocation8 + $0x6dc] sm:$0xf0]  ;;  %v11260_v34 = vor.u32 %v14987_v27, %v11259_v25  ;;  %v993_v36 = vmax.f32 %v16714_v12, 0.0  ;;  %v994_v39 = vmax.f32 %v16718_v17, 0.0 }
 0x15a   : > { %v11516_v35 = vor.u32 %v15051_v28, %v11515_v29  ;;  %6132 = vmatpush.bf16.msra.mxu1 %v11004_v26  ;;  %v10683_v23 = vld [vmem:[#allocation8 + $0x40] sm:$0xf] }
 0x15b   : > { %6146 = vmatpush.bf16.msra.mxu2 %v11260_v34  ;;  %v14843_v24 = vld [vmem:[#allocation8 + $0x5c] sm:$0xf0] }
 0x15c   : > { %6160 = vmatpush.bf16.msra.mxu3 %v11516_v35  ;;  %v10939_v25 = vld [vmem:[#allocation8 + $0x240] sm:$0xf]  ;;  %v10684_v26 = vor.u32 %v14843_v24, %v10683_v23 }
 0x15d   : > { %v877_v56 = vpop.f32.mrf.mxu2  ;;  %v896_v57 = vpop.f32.mrf.mxu3  ;;  %v14907_v27 = vld [vmem:[#allocation8 + $0x25c] sm:$0xf0] }
 0x15e   : > { %v841_v61 = vpop.f32.mrf.mxu0  ;;  %v860_v62 = vpop.f32.mrf.mxu1  ;;  %v16721_v18 = vadd.f32 %v877_v56, %v16671_v14  ;;  %v16724_v19 = vadd.f32 %v896_v57, %v16673_v15  ;;  %v10715_v56 = vld [vmem:[#allocation8 + $0x80] sm:$0xf]  ;;  %6133 = vmatpush.bf16.msra.mxu1 %v10972_v7  ;;  %v10940_v35 = vor.u32 %v14907_v27, %v10939_v25 }
 0x15f   : > { %v16728_v33 = vadd.f32 %v841_v61, %v16667_v9  ;;  %v14851_v57 = vld [vmem:[#allocation8 + $0x9c] sm:$0xf0]  ;;  %v16735_v59 = vadd.f32 %v860_v62, %v16669_v10  ;;  %6147 = vmatpush.bf16.msra.mxu2 %v11228_v8 }
 0x160   : > { %v995_v40 = vmax.f32 %v16721_v18, 0.0  ;;  %v996_v41 = vmax.f32 %v16724_v19, 0.0  ;;  %v10716_v63 = vor.u32 %v14851_v57, %v10715_v56  ;;  %6161 = vmatpush.bf16.msra.mxu3 %v11484_v22  ;;  %v11195_v29 = vld [vmem:[#allocation8 + $0x440] sm:$0xf] }
 0x161   : > { %v1001_v5 = vmax.f32 %v16728_v33, 0.0  ;;  %v14971_v28 = vld [vmem:[#allocation8 + $0x45c] sm:$0xf0] }
 0x162   : > { %6119 = vmatpush.bf16.msra.mxu0 %v10716_v63  ;;  %6134 = vmatpush.bf16.msra.mxu1 %v10940_v35  ;;  %v10907_v7 = vld [vmem:[#allocation8 + $0x200] sm:$0xf] }
 0x163   : > { %v14963_v22 = vld [vmem:[#allocation8 + $0x41c] sm:$0xf0] }
 0x164   : > { %v15027_v27 = vld [vmem:[#allocation8 + $0x61c] sm:$0xf0] }
 0x165   : > { %v879_v42 = vpop.f32.mrf.mxu2  ;;  %v898_v43 = vpop.f32.mrf.mxu3  ;;  %v12379_v33 = vld [vmem:[#allocation8 + $0xd80] sm:$0xf] }
 0x166   : > { %v910_v46 = vpop.f32.mrf.mxu0  ;;  %v929_v9 = vpop.f32.mrf.mxu1  ;;  %v16741_v6 = vadd.f32 %v879_v42, %v16671_v14  ;;  %v16744_v10 = vadd.f32 %v898_v43, %v16673_v15  ;;  %v1002_v15 = vmax.f32 %v16735_v59, 0.0  ;;  %v11196_v42 = vor.u32 %v14971_v28, %v11195_v29  ;;  %v11451_v43 = vld [vmem:[#allocation8 + $0x640] sm:$0xf]  ;;  %6120 = vmatpush.bf16.msra.mxu0 %v10684_v26 }
 0x167   : > { %v911_v60 = vadd.f32 %v910_v46, %v16687_v44  ;;  %v930_v61 = vadd.f32 %v929_v9, %v16689_v45  ;;  %v15035_v46 = vld [vmem:[#allocation8 + $0x65c] sm:$0xf0]  ;;  %v10652_v29 = vor.u32 %v14835_v2, %v10651_v1  ;;  %v16765_v9 = vunpack.c.0.s8 %v1136_v20 }
 0x168   : > { %v1003_v34 = vmax.f32 %v16741_v6, 0.0  ;;  %v11452_v58 = vor.u32 %v15035_v46, %v11451_v43  ;;  %6148 = vmatpush.bf16.msra.mxu2 %v11196_v42  ;;  %v11419_v26 = vld [vmem:[#allocation8 + $0x600] sm:$0xf] }
 0x169   : > { %v981_v62 = vmax.f32 %v911_v60, 0.0  ;;  %v982_v21 = vmax.f32 %v930_v61, 0.0  ;;  %v11420_v42 = vor.u32 %v15027_v27, %v11419_v26  ;;  %v11899_v43 = vld [vmem:[#allocation8 + $0x9c0] sm:$0xf]  ;;  %17712 = vst [vmem:[#allocation25_spill] sm:$0xff] %v16765_v9 }
 0x16a   : > { %6162 = vmatpush.bf16.msra.mxu3 %v11452_v58  ;;  %v15147_v46 = vld [vmem:[#allocation8 + $0x9dc] sm:$0xf0]  ;;  %6121 = vmatpush.bf16.msra.mxu0 %v10652_v29 }
 0x16b   : > { %v1010_v14 = vmax.f32 %v978_v48, %v982_v21  ;;  %v1009_v32 = vmax.f32 %v977_v47, %v981_v62  ;;  %v14899_v62 = vld [vmem:[#allocation8 + $0x21c] sm:$0xf0]  ;;  %v11900_v1 = vor.u32 %v15147_v46, %v11899_v43 }
 0x16c   : > { %v11163_v21 = vld [vmem:[#allocation8 + $0x400] sm:$0xf]  ;;  %v10908_v28 = vor.u32 %v14899_v62, %v10907_v7 }
 0x16d   : > { %v1041_v48 = vrot.slane %v1010_v14, 6  ;;  %v948_v56 = vpop.f32.mrf.mxu2  ;;  %v967_v57 = vpop.f32.mrf.mxu3  ;;  %v11164_v35 = vor.u32 %v14963_v22, %v11163_v21  ;;  %v15275_v7 = vld [vmem:[#allocation8 + $0xddc] sm:$0xf0] }
 0x16e   : > { %v949_v60 = vadd.f32 %v948_v56, %v16701_v53  ;;  %v968_v61 = vadd.f32 %v967_v57, %v16703_v54  ;;  %v912_v63 = vpop.f32.mrf.mxu0  ;;  %v931_v0 = vpop.f32.mrf.mxu1  ;;  %v12155_v56 = vld [vmem:[#allocation8 + $0xbc0] sm:$0xf]  ;;  %6135 = vmatpush.bf16.msra.mxu1 %v10908_v28  ;;  %6163 = vmatpush.bf16.msra.mxu3 %v11420_v42 }
 0x16f   : > { %v1054_v8 = vsel %vm1053_vm3, %v1009_v32, %v1041_v48  ;;  %v1060_v31 = vsel %vm1059_vm5, %v1009_v32, %v1041_v48  ;;  %v1066_v47 = vsel %vm1055_vm4, %v1009_v32, %v1041_v48  ;;  %v913_v25 = vadd.f32 %v912_v63, %v16687_v44  ;;  %v15211_v63 = vld [vmem:[#allocation8 + $0xbdc] sm:$0xf0]  ;;  %6149 = vmatpush.bf16.msra.mxu2 %v11164_v35 }
 0x170   : > { %v983_v23 = vmax.f32 %v949_v60, 0.0  ;;  %v984_v24 = vmax.f32 %v968_v61, 0.0  ;;  %v932_v14 = vadd.f32 %v931_v0, %v16689_v45  ;;  %v1070_v0 = vsel %vm1061_vm6, %v1041_v48, %v1009_v32  ;;  %v12667_v62 = vld [vmem:[#allocation8 + $0xfc0] sm:$0xf]  ;;  %6170 = vmatpush.bf16.msrb.mxu0 %v11900_v1 }
 0x171   : > { %v989_v60 = vmax.f32 %v913_v25, 0.0  ;;  %v12156_v2 = vor.u32 %v15211_v63, %v12155_v56  ;;  %v15339_v21 = vld [vmem:[#allocation8 + $0xfdc] sm:$0xf0] }
 0x172   : > { %v1011_v57 = vmax.f32 %v979_v51, %v983_v23  ;;  %v1012_v58 = vmax.f32 %v980_v52, %v984_v24  ;;  %v990_v61 = vmax.f32 %v932_v14, 0.0  ;;  %v11867_v32 = vld [vmem:[#allocation8 + $0x980] sm:$0xf]  ;;  %v12412_v23 = vor.u32 %v15275_v7, %v12411_v13 }
 0x173   : > { %v1013_v38 = vmax.f32 %v985_v3, %v989_v60  ;;  %v15139_v48 = vld [vmem:[#allocation8 + $0x99c] sm:$0xf0]  ;;  %6184 = vmatpush.bf16.msrb.mxu1 %v12156_v2  ;;  %v12668_v24 = vor.u32 %v15339_v21, %v12667_v62  ;;  %v1263_v14 = vlaneseq }
 0x174   : > { %v1042_v37 = vrot.slane %v1011_v57, 4  ;;  %v1043_v51 = vrot.slane %v1012_v58, 2  ;;  %v1014_v52 = vmax.f32 %v986_v4, %v990_v61  ;;  %v11868_v25 = vor.u32 %v15139_v48, %v11867_v32  ;;  %6198 = vmatpush.bf16.msrb.mxu2 %v12412_v23  ;;  %v15331_v59 = vld [vmem:[#allocation8 + $0xf9c] sm:$0xf0] }
 0x175   : > { %v950_v20 = vpop.f32.mrf.mxu2  ;;  %v969_v22 = vpop.f32.mrf.mxu3  ;;  %6212 = vmatpush.bf16.msrb.mxu3 %v12668_v24 }
 0x176   : > { %v1056_v26 = vsel %vm1055_vm4, %v1042_v37, %v1043_v51  ;;  %v1062_v49 = vsel %vm1061_vm6, %v1043_v51, %v1042_v37  ;;  %v1067_v3 = vsel %vm1053_vm3, %v1042_v37, %v1043_v51  ;;  %v1071_v50 = vsel %vm1059_vm5, %v1042_v37, %v1043_v51  ;;  %v915_v4 = vpop.f32.mrf.mxu0  ;;  %v934_v27 = vpop.f32.mrf.mxu1  ;;  %6171 = vmatpush.bf16.msrb.mxu0 %v11868_v25 }
 0x177   : > { %v1058_v29 = vsel %vm1057_vm7, %v1054_v8, %v1056_v26  ;;  %v1064_v28 = vsel %vm1063_vm8, %v1060_v31, %v1062_v49  ;;  %v1068_v35 = vsel %vm1057_vm7, %v1067_v3, %v1066_v47  ;;  %v1072_v42 = vsel %vm1063_vm8, %v1071_v50, %v1070_v0 }
 0x178   : > { %v1065_v43 = vrot.slane %v1064_v28, 2  ;;  %v1069_v46 = vrot.slane %v1068_v35, 4  ;;  %v1073_v56 = vrot.slane %v1072_v42, 6  ;;  %v1138_v57 = vperm.slane %v1058_v29, %v16765_v9 }
 0x179   : > { %v1044_v58 = vrot.slane %v1014_v52, 6  ;;  %v951_v60 = vadd.f32 %v950_v20, %v16701_v53  ;;  %v970_v61 = vadd.f32 %v969_v22, %v16703_v54  ;;  %v916_v8 = vadd.f32 %v915_v4, %v16687_v44  ;;  %v15203_v4 = vld [vmem:[#allocation8 + $0xb9c] sm:$0xf0] }
 0x17a   : > { %v1142_v31 = vperm.slane %v1065_v43, %v16765_v9  ;;  %v1146_v47 = vperm.slane %v1069_v46, %v16765_v9  ;;  %v1150_v63 = vperm.slane %v1073_v56, %v16765_v9  ;;  %v1215_v13 = vrot.slane %v1138_v57, 4 }
 0x17b   : > { %v1074_v0 = vsel %vm1053_vm3, %v1013_v38, %v1044_v58  ;;  %v1077_v1 = vsel %vm1059_vm5, %v1013_v38, %v1044_v58  ;;  %v1081_v2 = vsel %vm1055_vm4, %v1013_v38, %v1044_v58  ;;  %v1085_v7 = vsel %vm1061_vm6, %v1044_v58, %v1013_v38  ;;  %v12123_v38 = vld [vmem:[#allocation8 + $0xb80] sm:$0xf] }
 0x17c   : > { %v1216_v62 = vrot.slane %v1142_v31, 4  ;;  %v1217_v21 = vrot.slane %v1146_v47, 4  ;;  %v1218_v37 = vrot.slane %v1150_v63, 4  ;;  %v1247_v51 = vmax.f32 %v1138_v57, %v1215_v13 }
 0x17d   : > { %v991_v52 = vmax.f32 %v951_v60, 0.0  ;;  %v992_v32 = vmax.f32 %v970_v61, 0.0  ;;  %v997_v48 = vmax.f32 %v916_v8, 0.0  ;;  %v935_v20 = vadd.f32 %v934_v27, %v16689_v45  ;;  %v953_v22 = vpop.f32.mrf.mxu2  ;;  %v972_v23 = vpop.f32.mrf.mxu3 }
 0x17e   : > { %v1248_v24 = vmax.f32 %v1142_v31, %v1216_v62  ;;  %v1249_v25 = vmax.f32 %v1146_v47, %v1217_v21  ;;  %v1250_v26 = vmax.f32 %v1150_v63, %v1218_v37  ;;  %1312 = vst [vmem:[#allocation1] ss:$9 sm:$0xff] %v1247_v51  ;;  %v954_v49 = vadd.f32 %v953_v22, %v16701_v53  ;;  %v917_v3 = vpop.f32.mrf.mxu0  ;;  %v936_v50 = vpop.f32.mrf.mxu1 }
 0x17f   : > { %v1015_v29 = vmax.f32 %v987_v16, %v991_v52  ;;  %v1016_v28 = vmax.f32 %v988_v30, %v992_v32  ;;  %v1017_v27 = vmax.f32 %v993_v36, %v997_v48  ;;  %v998_v35 = vmax.f32 %v935_v20, 0.0 }
 0x180   : > { %1314 = vst [vmem:[#allocation1 + $0x1] ss:$9 sm:$0xff] %v1248_v24  ;;  %v999_v42 = vmax.f32 %v954_v49, 0.0  ;;  %v973_v43 = vadd.f32 %v972_v23, %v16703_v54  ;;  %v918_v46 = vadd.f32 %v917_v3, %v16687_v44  ;;  %v937_v56 = vadd.f32 %v936_v50, %v16689_v45 }
 0x181   : > { %1316 = vst [vmem:[#allocation1 + $0x2] ss:$9 sm:$0xff] %v1249_v25  ;;  %v1045_v57 = vrot.slane %v1015_v29, 4  ;;  %v1046_v58 = vrot.slane %v1016_v28, 2  ;;  %v1018_v55 = vmax.f32 %v994_v39, %v998_v35  ;;  %v12124_v11 = vor.u32 %v15203_v4, %v12123_v38 }
 0x182   : > { %1318 = vst [vmem:[#allocation1 + $0x3] ss:$9 sm:$0xff] %v1250_v26  ;;  %v1019_v12 = vmax.f32 %v995_v40, %v999_v42  ;;  %v1000_v16 = vmax.f32 %v973_v43, 0.0  ;;  %v1005_v30 = vmax.f32 %v918_v46, 0.0  ;;  %v1006_v36 = vmax.f32 %v937_v56, 0.0 }
 0x183   : > { %v1075_v60 = vsel %vm1055_vm4, %v1045_v57, %v1046_v58  ;;  %v1078_v44 = vsel %vm1061_vm6, %v1046_v58, %v1045_v57  ;;  %v1082_v45 = vsel %vm1053_vm3, %v1045_v57, %v1046_v58  ;;  %v1086_v61 = vsel %vm1059_vm5, %v1045_v57, %v1046_v58  ;;  %6185 = vmatpush.bf16.msrb.mxu1 %v12124_v11  ;;  %v12635_v43 = vld [vmem:[#allocation8 + $0xf80] sm:$0xf] }
 0x184   : > { %v1076_v17 = vsel %vm1057_vm7, %v1074_v0, %v1075_v60  ;;  %v1079_v39 = vsel %vm1063_vm8, %v1077_v1, %v1078_v44  ;;  %v1083_v8 = vsel %vm1057_vm7, %v1082_v45, %v1081_v2  ;;  %v1087_v18 = vsel %vm1063_vm8, %v1086_v61, %v1085_v7  ;;  %v11835_v11 = vld [vmem:[#allocation8 + $0x940] sm:$0xf] }
 0x185   : > { %v1080_v40 = vrot.slane %v1079_v39, 2  ;;  %v1084_v31 = vrot.slane %v1083_v8, 4  ;;  %v1088_v47 = vrot.slane %v1087_v18, 6  ;;  %v1154_v63 = vperm.slane %v1076_v17, %v16765_v9  ;;  %v955_v51 = vpop.f32.mrf.mxu2  ;;  %v974_v52 = vpop.f32.mrf.mxu3  ;;  %v12347_v61 = vld [vmem:[#allocation8 + $0xd40] sm:$0xf] }
 0x186   : > { %v1047_v13 = vrot.slane %v1018_v55, 6  ;;  %v1048_v62 = vrot.slane %v1019_v12, 4  ;;  %v1020_v21 = vmax.f32 %v996_v41, %v1000_v16  ;;  %v16818_v37 = vmax.f32 %v1001_v5, %v1005_v30  ;;  %v15267_v5 = vld [vmem:[#allocation8 + $0xd9c] sm:$0xf0] }
 0x187   : > { %v1158_v0 = vperm.slane %v1080_v40, %v16765_v9  ;;  %v1162_v1 = vperm.slane %v1084_v31, %v16765_v9  ;;  %v1166_v2 = vperm.slane %v1088_v47, %v16765_v9  ;;  %v1219_v7 = vrot.slane %v1154_v63, 4  ;;  %v15131_v12 = vld [vmem:[#allocation8 + $0x95c] sm:$0xf0] }
 0x188   : > { %v1089_v32 = vsel %vm1053_vm3, %v1017_v27, %v1047_v13  ;;  %v1092_v48 = vsel %vm1059_vm5, %v1017_v27, %v1047_v13  ;;  %v1096_v19 = vsel %vm1055_vm4, %v1017_v27, %v1047_v13  ;;  %v1100_v41 = vsel %vm1061_vm6, %v1047_v13, %v1017_v27  ;;  %v12091_v16 = vld [vmem:[#allocation8 + $0xb40] sm:$0xf] }
 0x189   : > { %v1220_v20 = vrot.slane %v1158_v0, 4  ;;  %v1221_v22 = vrot.slane %v1162_v1, 4  ;;  %v1222_v23 = vrot.slane %v1166_v2, 4  ;;  %v1251_v24 = vmax.f32 %v1154_v63, %v1219_v7  ;;  %v15195_v30 = vld [vmem:[#allocation8 + $0xb5c] sm:$0xf0] }
 0x18a   : > { %v1049_v25 = vrot.slane %v1020_v21, 2  ;;  %v1022_v26 = vmax.f32 %v1002_v15, %v1006_v36  ;;  %v956_v49 = vadd.f32 %v955_v51, %v16701_v53  ;;  %v975_v3 = vadd.f32 %v974_v52, %v16703_v54  ;;  %v15259_v17 = vld [vmem:[#allocation8 + $0xd5c] sm:$0xf0] }
 0x18b   : > { %v1252_v50 = vmax.f32 %v1158_v0, %v1220_v20  ;;  %v1253_v38 = vmax.f32 %v1162_v1, %v1221_v22  ;;  %v1254_v4 = vmax.f32 %v1166_v2, %v1222_v23  ;;  %1320 = vst [vmem:[#allocation1 + $0x4] ss:$9 sm:$0xff] %v1251_v24  ;;  %v12380_v29 = vor.u32 %v15267_v5, %v12379_v33  ;;  %v12603_v31 = vld [vmem:[#allocation8 + $0xf40] sm:$0xf] }
 0x18c   : > { %v1090_v28 = vsel %vm1055_vm4, %v1048_v62, %v1049_v25  ;;  %v1093_v27 = vsel %vm1061_vm6, %v1049_v25, %v1048_v62  ;;  %v1097_v35 = vsel %vm1053_vm3, %v1048_v62, %v1049_v25  ;;  %v1101_v42 = vsel %vm1059_vm5, %v1048_v62, %v1049_v25  ;;  %v15323_v47 = vld [vmem:[#allocation8 + $0xf5c] sm:$0xf0] }
 0x18d   : > { %1322 = vst [vmem:[#allocation1 + $0x5] ss:$9 sm:$0xff] %v1252_v50  ;;  %v1091_v53 = vsel %vm1057_vm7, %v1089_v32, %v1090_v28  ;;  %v1094_v54 = vsel %vm1063_vm8, %v1092_v48, %v1093_v27  ;;  %v1098_v15 = vsel %vm1057_vm7, %v1097_v35, %v1096_v19  ;;  %v1102_v46 = vsel %vm1063_vm8, %v1101_v42, %v1100_v41  ;;  %v16843_v63 = vld [vmem:[#allocation8 + $0x900] sm:$0xf] }
 0x18e   : > { %1324 = vst [vmem:[#allocation1 + $0x6] ss:$9 sm:$0xff] %v1253_v38  ;;  %v1095_v56 = vrot.slane %v1094_v54, 2  ;;  %v1099_v57 = vrot.slane %v1098_v15, 4  ;;  %v1103_v58 = vrot.slane %v1102_v46, 6  ;;  %v1170_v55 = vperm.slane %v1091_v53, %v16765_v9  ;;  %6199 = vmatpush.bf16.msrb.mxu2 %v12380_v29 }
 0x18f   : > { %1326 = vst [vmem:[#allocation1 + $0x7] ss:$9 sm:$0xff] %v1254_v4  ;;  %v1050_v36 = vrot.slane %v1022_v26, 6  ;;  %v1007_v60 = vmax.f32 %v956_v49, 0.0  ;;  %v1008_v44 = vmax.f32 %v975_v3, 0.0  ;;  %v12636_v45 = vor.u32 %v15331_v59, %v12635_v43 }
 0x190   : > { %v1174_v39 = vperm.slane %v1095_v56, %v16765_v9  ;;  %v1178_v8 = vperm.slane %v1099_v57, %v16765_v9  ;;  %v1182_v18 = vperm.slane %v1103_v58, %v16765_v9  ;;  %v1223_v40 = vrot.slane %v1170_v55, 4  ;;  %v16845_v13 = vld [vmem:[#allocation8 + $0x91c] sm:$0xf0] }
 0x191   : > { %v1104_v62 = vsel %vm1053_vm3, %v16818_v37, %v1050_v36  ;;  %v1107_v21 = vsel %vm1059_vm5, %v16818_v37, %v1050_v36  ;;  %v1111_v0 = vsel %vm1055_vm4, %v16818_v37, %v1050_v36  ;;  %v1115_v1 = vsel %vm1061_vm6, %v1050_v36, %v16818_v37  ;;  %6213 = vmatpush.bf16.msrb.mxu3 %v12636_v45  ;;  %v12059_v2 = vld [vmem:[#allocation8 + $0xb00] sm:$0xf] }
 0x192   : > { %v15187_v7 = vld [vmem:[#allocation8 + $0xb1c] sm:$0xf0]  ;;  %v1224_v32 = vrot.slane %v1174_v39, 4  ;;  %v1225_v48 = vrot.slane %v1178_v8, 4  ;;  %v1226_v19 = vrot.slane %v1182_v18, 4  ;;  %v1255_v41 = vmax.f32 %v1170_v55, %v1223_v40 }
 0x193   : > { %v12315_v51 = vld [vmem:[#allocation8 + $0xd00] sm:$0xf]  ;;  %v1023_v5 = vmax.f32 %v1003_v34, %v1007_v60  ;;  %v17713_v20 = vmax.f32 %v16744_v10, 0.0  ;;  %v11836_v23 = vor.u32 %v15131_v12, %v11835_v11  ;;  %v12092_v24 = vor.u32 %v15195_v30, %v12091_v16 }
 0x194   : > { %v15251_v52 = vld [vmem:[#allocation8 + $0xd1c] sm:$0xf0]  ;;  %v1256_v49 = vmax.f32 %v1174_v39, %v1224_v32  ;;  %v1257_v3 = vmax.f32 %v1178_v8, %v1225_v48  ;;  %v1258_v50 = vmax.f32 %v1182_v18, %v1226_v19  ;;  %v12348_v38 = vor.u32 %v15259_v17, %v12347_v61 }
 0x195   : > { %v16855_v33 = vld [vmem:[#allocation8 + $0xf00] sm:$0xf]  ;;  %v1024_v22 = vmax.f32 %v17713_v20, %v1008_v44  ;;  %v1051_v4 = vrot.slane %v1023_v5, 4  ;;  %6172 = vmatpush.bf16.msrb.mxu0 %v11836_v23  ;;  %6186 = vmatpush.bf16.msrb.mxu1 %v12092_v24  ;;  %v12604_v6 = vor.u32 %v15323_v47, %v12603_v31  ;;  %v11804_v10 = vor.u32 %v16845_v13, %v16843_v63 }
 0x196   : > { %v15315_v37 = vld [vmem:[#allocation8 + $0xf1c] sm:$0xf0]  ;;  %v16871_v59 = vld [vmem:[#allocation1] sm:$0xff]  ;;  %6200 = vmatpush.bf16.msrb.mxu2 %v12348_v38  ;;  %v12060_v15 = vor.u32 %v15187_v7, %v12059_v2  ;;  %v12316_v46 = vor.u32 %v15251_v52, %v12315_v51 }
 0x197   : > { %v16861_v25 = vld [vmem:[#allocation8 + $0x8c0] sm:$0xf]  ;;  %v1052_v29 = vrot.slane %v1024_v22, 2  ;;  %v12572_v56 = vor.u32 %v15315_v37, %v16855_v33  ;;  %v16880_v58 = vld [vmem:[#allocation1 + $0x1b] sm:$0xff]  ;;  %6214 = vmatpush.bf16.msrb.mxu3 %v12604_v6  ;;  %v1264_v33 = vshrl.u32 %v1263_v14, 7 }
 0x198   : > { %v16863_v26 = vld [vmem:[#allocation8 + $0x8dc] sm:$0xf0] }
 0x199   : > { %v12027_v34 = vld [vmem:[#allocation8 + $0xac0] sm:$0xf]  ;;  %v11772_v57 = vor.u32 %v16863_v26, %v16861_v25  ;;  %v1105_v55 = vsel %vm1055_vm4, %v1051_v4, %v1052_v29  ;;  %v1108_v11 = vsel %vm1061_vm6, %v1052_v29, %v1051_v4  ;;  %v1112_v12 = vsel %vm1053_vm3, %v1051_v4, %v1052_v29  ;;  %6173 = vmatpush.bf16.msrb.mxu0 %v11804_v10 }
 0x19a   : > { %v15179_v28 = vld [vmem:[#allocation8 + $0xadc] sm:$0xf0]  ;;  %v1116_v16 = vsel %vm1059_vm5, %v1051_v4, %v1052_v29  ;;  %v1106_v60 = vsel %vm1057_vm7, %v1104_v62, %v1105_v55  ;;  %v1109_v44 = vsel %vm1063_vm8, %v1107_v21, %v1108_v11  ;;  %v1113_v45 = vsel %vm1057_vm7, %v1112_v12, %v1111_v0  ;;  %6187 = vmatpush.bf16.msrb.mxu1 %v12060_v15 }
 0x19b   : > { %v12283_v27 = vld [vmem:[#allocation8 + $0xcc0] sm:$0xf]  ;;  %v1117_v61 = vsel %vm1063_vm8, %v1116_v16, %v1115_v1  ;;  %v1110_v8 = vrot.slane %v1109_v44, 2  ;;  %v1114_v18 = vrot.slane %v1113_v45, 4  ;;  %v1186_v31 = vperm.slane %v1106_v60, %v16765_v9  ;;  %6201 = vmatpush.bf16.msrb.mxu2 %v12316_v46  ;;  %6215 = vmatpush.bf16.msrb.mxu3 %v12572_v56 }
 0x19c   : > { %v15243_v35 = vld [vmem:[#allocation8 + $0xcdc] sm:$0xf0]  ;;  %v1118_v40 = vrot.slane %v1117_v61, 6  ;;  %v12028_v63 = vor.u32 %v15179_v28, %v12027_v34  ;;  %v1265_v28 = vadd.s32 8, %v1264_v33 }
 0x19d   : > { %v16867_v42 = vld [vmem:[#allocation8 + $0xec0] sm:$0xf]  ;;  %v12284_v13 = vor.u32 %v15243_v35, %v12283_v27  ;;  %v1190_v1 = vperm.slane %v1110_v8, %v16765_v9  ;;  %v1194_v2 = vperm.slane %v1114_v18, %v16765_v9  ;;  %v1227_v51 = vrot.slane %v1186_v31, 4  ;;  %6174 = vmatpush.bf16.msrb.mxu0 %v11772_v57 }
 0x19e   : > { %v16869_v43 = vld [vmem:[#allocation8 + $0xedc] sm:$0xf0]  ;;  %v1198_v7 = vperm.slane %v1118_v40, %v16765_v9  ;;  %6188 = vmatpush.bf16.msrb.mxu1 %v12028_v63  ;;  %v1277_v16 = vand.u32 15, %v1265_v28  ;;  %v12133_v9 = vld [vmem:[#allocation8 + $0xba8] sm:$0xf0] }
 0x19f   : > { %v16873_v53 = vld [vmem:[#allocation1 + $0x9] sm:$0xff]  ;;  %v16875_v54 = vld [vmem:[#allocation1 + $0x12] sm:$0xff]  ;;  %v12540_v62 = vor.u32 %v16869_v43, %v16867_v42  ;;  %v1228_v5 = vrot.slane %v1190_v1, 4  ;;  %v1229_v20 = vrot.slane %v1194_v2, 4  ;;  %v1259_v23 = vmax.f32 %v1186_v31, %v1227_v51  ;;  %6202 = vmatpush.bf16.msrb.mxu2 %v12284_v13 }
 0x1a0   : > { %v11739_v30 = vld [vmem:[#allocation8 + $0x880] sm:$0xf]  ;;  %1331 = vst [vmem:[#allocation1] ss:$9 sm:$0xff] %v1255_v41  ;;  %v1230_v22 = vrot.slane %v1198_v7, 4  ;;  %v1270_v43 = vand.u32 15, %v1264_v33 }
 0x1a1   : > { %v15107_v36 = vld [vmem:[#allocation8 + $0x89c] sm:$0xf0]  ;;  %1332 = vst [vmem:[#allocation1 + $0x1] ss:$9 sm:$0xff] %v1256_v49  ;;  %v1261_v38 = vmax.f32 %v1194_v2, %v1229_v20  ;;  %6216 = vmatpush.bf16.msrb.mxu3 %v12540_v62  ;;  %vm16913_vm10 = vcmp.lt.s32.totalorder %v1277_v16, 15 }
 0x1a2   : > { %v11995_v17 = vld [vmem:[#allocation8 + $0xa80] sm:$0xf]  ;;  %1333 = vst [vmem:[#allocation1 + $0x2] ss:$9 sm:$0xff] %v1257_v3  ;;  %v11740_v32 = vor.u32 %v15107_v36, %v11739_v30  ;;  %v1262_v4 = vmax.f32 %v1198_v7, %v1230_v22  ;;  %vm16897_vm9 = vcmp.gt.s32.totalorder %v1270_v43, 0 }
 0x1a3   : > { %v15171_v39 = vld [vmem:[#allocation8 + $0xa9c] sm:$0xf0]  ;;  %1334 = vst [vmem:[#allocation1 + $0x3] ss:$9 sm:$0xff] %v1258_v50  ;;  %v1260_v50 = vmax.f32 %v1190_v1, %v1228_v5  ;;  %v1351_v30 = vsel %vm16897_vm9, %v16871_v59, 0.0  ;;  %v1352_v36 = vsel %vm16897_vm9, %v16873_v53, 0.0  ;;  %vm16937_vm11 = vmpackc.low %vm16913_vm10, %vm16897_vm9 }
 0x1a4   : > { %v12251_v47 = vld [vmem:[#allocation8 + $0xc80] sm:$0xf]  ;;  %v11996_v48 = vor.u32 %v15171_v39, %v11995_v17  ;;  %1335 = vst [vmem:[#allocation1 + $0x4] ss:$9 sm:$0xff] %v1259_v23  ;;  %6175 = vmatpush.bf16.msrb.mxu0 %v11740_v32  ;;  %v1353_v60 = vsel %vm16897_vm9, %v16875_v54, 0.0  ;;  %v1354_v61 = vsel %vm16897_vm9, %v16880_v58, 0.0 }
 0x1a5   : > { %v15235_v21 = vld [vmem:[#allocation8 + $0xc9c] sm:$0xf0]  ;;  %1336 = vst [vmem:[#allocation1 + $0x5] ss:$9 sm:$0xff] %v1260_v50 }
 0x1a6   : > { %v12507_v0 = vld [vmem:[#allocation8 + $0xe80] sm:$0xf]  ;;  %v12252_v37 = vor.u32 %v15235_v21, %v12251_v47  ;;  %6189 = vmatpush.bf16.msrb.mxu1 %v11996_v48  ;;  %1337 = vst [vmem:[#allocation1 + $0x6] ss:$9 sm:$0xff] %v1261_v38 }
 0x1a7   : > { %v15299_v52 = vld [vmem:[#allocation8 + $0xe9c] sm:$0xf0]  ;;  %1338 = vst [vmem:[#allocation1 + $0x7] ss:$9 sm:$0xff] %v1262_v4 }
 0x1a8   : > { %v11707_v19 = vld [vmem:[#allocation8 + $0x840] sm:$0xf]  ;;  %v12508_v25 = vor.u32 %v15299_v52, %v12507_v0  ;;  %6203 = vmatpush.bf16.msrb.mxu2 %v12252_v37  ;;  %1359 = vst [vmem:[#allocation2 + $0x30] sm:$0xff] %v1351_v30  ;;  %v16450_v0 = vmov 0.0  }
 0x1a9   : > { %v15099_v41 = vld [vmem:[#allocation8 + $0x85c] sm:$0xf0]  ;;  %1360 = vst [vmem:[#allocation2] sm:$0xff] %v1352_v36 }
 0x1aa   : > { %v11963_v24 = vld [vmem:[#allocation8 + $0xa40] sm:$0xf]  ;;  %v11708_v27 = vor.u32 %v15099_v41, %v11707_v19  ;;  %6217 = vmatpush.bf16.msrb.mxu3 %v12508_v25  ;;  %1361 = vst [vmem:[#allocation2 + $0x58] sm:$0xff] %v1353_v60 }
 0x1ab   : > { %v15163_v26 = vld [vmem:[#allocation8 + $0xa5c] sm:$0xf0]  ;;  %1362 = vst [vmem:[#allocation2 + $0x18] sm:$0xff] %v1354_v61 }
 0x1ac   : > { %v12219_v49 = vld [vmem:[#allocation8 + $0xc40] sm:$0xf]  ;;  %v11964_v35 = vor.u32 %v15163_v26, %v11963_v24  ;;  %6176 = vmatpush.bf16.msrb.mxu0 %v11708_v27  ;;  %1367 = vst [vmem:[#allocation2 + $0x28] sm:$0xff] %v16450_v0 }
 0x1ad   : > { %v15227_v3 = vld [vmem:[#allocation8 + $0xc5c] sm:$0xf0]  ;;  %1368 = vst [vmem:[#allocation2 + $0x48] sm:$0xff] %v16450_v0 }
 0x1ae   : > { %v12475_v29 = vld [vmem:[#allocation8 + $0xe40] sm:$0xf]  ;;  %v12220_v15 = vor.u32 %v15227_v3, %v12219_v49  ;;  %6190 = vmatpush.bf16.msrb.mxu1 %v11964_v35  ;;  %v1339_v1 = vld [vmem:[#allocation1] sm:$0xff]  ;;  %1369 = vst [vmem:[#allocation2 + $0x10] sm:$0xff] %v16450_v0 }
 0x1af   : > { %v15291_v14 = vld [vmem:[#allocation8 + $0xe5c] sm:$0xf0]  ;;  %v1342_v52 = vld [vmem:[#allocation1 + $0x1b] sm:$0xff]  ;;  %v16919_v32 = vsel %vm16913_vm10, %v1339_v1, 0.0  ;;  %v16942_v38 = vpack.c.bf16 %v1339_v1, %v16871_v59  ;;  %1370 = vst [vmem:[#allocation2 + $0x40] sm:$0xff] %v16450_v0 }
 0x1b0   : > { %v11675_v6 = vld [vmem:[#allocation8 + $0x800] sm:$0xf]  ;;  %v12476_v57 = vor.u32 %v15291_v14, %v12475_v29  ;;  %6204 = vmatpush.bf16.msrb.mxu2 %v12220_v15  ;;  %v16931_v23 = vsel %vm16913_vm10, %v1342_v52, 0.0  ;;  %v16960_v59 = vpack.c.bf16 %v1342_v52, %v16880_v58 }
 0x1b1   : > { %v15091_v10 = vld [vmem:[#allocation8 + $0x81c] sm:$0xf0]  ;;  %16017 = vmatmul.msk.bf16.vlgmr.msra.gmra.mxu0 %vm16937_vm11, %v16942_v38 }
 0x1b2   : > { %v11931_v34 = vld [vmem:[#allocation8 + $0xa00] sm:$0xf]  ;;  %v11676_v44 = vor.u32 %v15091_v10, %v11675_v6  ;;  %6218 = vmatpush.bf16.msrb.mxu3 %v12476_v57 }
 0x1b3   : > { %v15155_v42 = vld [vmem:[#allocation8 + $0xa1c] sm:$0xf0]  ;;  %16026 = vmatmul.msk.bf16.vlgmr.msra.gmra.mxu3 %vm16937_vm11, %v16960_v59 }
 0x1b4   : > { %v12187_v46 = vld [vmem:[#allocation8 + $0xc00] sm:$0xf]  ;;  %v11932_v45 = vor.u32 %v15155_v42, %v11931_v34  ;;  %6177 = vmatpush.bf16.msrb.mxu0 %v11676_v44 }
 0x1b5   : > { %v15219_v56 = vld [vmem:[#allocation8 + $0xc1c] sm:$0xf0]  ;;  %v1389_v61 = vld [vmem:[#allocation2 + $0x10] sm:$0x1] }
 0x1b6   : > { %v12443_v55 = vld [vmem:[#allocation8 + $0xe00] sm:$0xf]  ;;  %v12188_v17 = vor.u32 %v15219_v56, %v12187_v46  ;;  %6191 = vmatpush.bf16.msrb.mxu1 %v11932_v45  ;;  %v1379_v45 = vld [vmem:[#allocation2 + $0x30] sm:$0xfe]  ;;  %v1428_v1 = vrot.slane %v1389_v61, 1 }
 0x1b7   : > { %v15283_v12 = vld [vmem:[#allocation8 + $0xe1c] sm:$0xf0] }
 0x1b8   : > { %v12923_v39 = vld [vmem:[#allocation8 + $0x11c0] sm:$0xf]  ;;  %v12444_v18 = vor.u32 %v15283_v12, %v12443_v55  ;;  %6205 = vmatpush.bf16.msrb.mxu2 %v12188_v17 }
 0x1b9   : > { %v15403_v8 = vld [vmem:[#allocation8 + $0x11dc] sm:$0xf0] }
 0x1ba   : > { %v13179_v40 = vld [vmem:[#allocation8 + $0x13c0] sm:$0xf]  ;;  %v12924_v51 = vor.u32 %v15403_v8, %v12923_v39  ;;  %6219 = vmatpush.bf16.msrb.mxu3 %v12444_v18  ;;  %v1413_v39 = vrot.slane %v16919_v32, 1  ;;  %v1380_v8 = vld [vmem:[#allocation2] sm:$0xfe] }
 0x1bb   : > { %v15467_v31 = vld [vmem:[#allocation8 + $0x13dc] sm:$0xf0] }
 0x1bc   : > { %v13435_v63 = vld [vmem:[#allocation8 + $0x15c0] sm:$0xf]  ;;  %v13180_v41 = vor.u32 %v15467_v31, %v13179_v40  ;;  %6226 = vmatpush.bf16.msra.mxu0 %v12924_v51 }
 0x1bd   : > { %v15531_v13 = vld [vmem:[#allocation8 + $0x15dc] sm:$0xf0] }
 0x1be   : > { %v13691_v62 = vld [vmem:[#allocation8 + $0x17c0] sm:$0xf]  ;;  %v13436_v25 = vor.u32 %v15531_v13, %v13435_v63  ;;  %v1381_v13 = vld [vmem:[#allocation2 + $0x58] sm:$0xfe] }
 0x1bf   : > { %v15595_v21 = vld [vmem:[#allocation8 + $0x17dc] sm:$0xf0] }
 0x1c0   : > { %v1340_v2 = vld [vmem:[#allocation1 + $0x9] sm:$0xff]  ;;  %v1341_v7 = vld [vmem:[#allocation1 + $0x12] sm:$0xff]  ;;  %v13692_v26 = vor.u32 %v15595_v21, %v13691_v62  ;;  %v1382_v62 = vld [vmem:[#allocation2 + $0x18] sm:$0xfe]  ;;  %v1412_v21 = vrot.slane %v1379_v45, 1 }
 0x1c1   : > { %v16923_v48 = vsel %vm16913_vm10, %v1340_v2, 0.0  ;;  %v16927_v19 = vsel %vm16913_vm10, %v1341_v7, 0.0  ;;  %v12891_v33 = vld [vmem:[#allocation8 + $0x1180] sm:$0xf]  ;;  %v16948_v4 = vpack.c.bf16 %v1340_v2, %v16873_v53  ;;  %v16954_v10 = vpack.c.bf16 %v1341_v7, %v16875_v54 }
 0x1c2   : > { %v15395_v5 = vld [vmem:[#allocation8 + $0x119c] sm:$0xf0]  ;;  %6268 = vmatpush.bf16.msra.mxu3 %v13692_v26  ;;  %v1416_v18 = vrot.slane %v16923_v48, 1  ;;  %v1419_v0 = vrot.slane %v16927_v19, 1  ;;  %v1422_v2 = vrot.slane %v16931_v23, 1 }
 0x1c3   : > { %v13147_v20 = vld [vmem:[#allocation8 + $0x1380] sm:$0xf]  ;;  %16020 = vmatmul.msk.bf16.vlgmr.msra.gmra.mxu1 %vm16937_vm11, %v16948_v4  ;;  %16023 = vmatmul.msk.bf16.vlgmr.msra.gmra.mxu2 %vm16937_vm11, %v16954_v10  ;;  %v12892_v28 = vor.u32 %v15395_v5, %v12891_v33  ;;  %v1415_v5 = vrot.slane %v1380_v8, 1  ;;  %v1449_v8 = vrot.slane %v16919_v32, 2  ;;  %v14943_v32 = vld [vmem:[#allocation8 + $0x384] sm:$0xf] }
 0x1c4   : > { %v15459_v22 = vld [vmem:[#allocation8 + $0x139c] sm:$0xf0]  ;;  %6240 = vmatpush.bf16.msra.mxu1 %v13180_v41  ;;  %6254 = vmatpush.bf16.msra.mxu2 %v13436_v25  ;;  %v1421_v25 = vrot.slane %v1382_v62, 1 }
 0x1c5   : > { %v13403_v24 = vld [vmem:[#allocation8 + $0x1580] sm:$0xf]  ;;  %v13148_v27 = vor.u32 %v15459_v22, %v13147_v20  ;;  %6227 = vmatpush.bf16.msra.mxu0 %v12892_v28  ;;  %v1390_v20 = vld [vmem:[#allocation2 + $0x40] sm:$0x1]  ;;  %v1429_v28 = vsel %vm1411_vm12, %v1419_v0, %v1428_v1 }
 0x1c6   : > { %v15523_v37 = vld [vmem:[#allocation8 + $0x159c] sm:$0xf0]  ;;  %v1430_v26 = vrot.slane %v1390_v20, 1 }
 0x1c7   : > { %v13659_v49 = vld [vmem:[#allocation8 + $0x1780] sm:$0xf]  ;;  %v13404_v42 = vor.u32 %v15523_v37, %v13403_v24  ;;  %v1414_v24 = vsel %vm1411_vm12, %v1412_v21, %v1413_v39  ;;  %v1418_v37 = vrot.slane %v1381_v13, 1 }
 0x1c8   : > { %v15587_v3 = vld [vmem:[#allocation8 + $0x179c] sm:$0xf0]  ;;  %6241 = vmatpush.bf16.msra.mxu1 %v13148_v27  ;;  %v1423_v27 = vsel %vm1411_vm12, %v1421_v25, %v1422_v2 }
 0x1c9   : > { %v12859_v29 = vld [vmem:[#allocation8 + $0x1140] sm:$0xf]  ;;  %v13660_v43 = vor.u32 %v15587_v3, %v13659_v49  ;;  %6255 = vmatpush.bf16.msra.mxu2 %v13404_v42 }
 0x1ca   : > { %v15387_v14 = vld [vmem:[#allocation8 + $0x115c] sm:$0xf0] }
 0x1cb   : > { %v13115_v6 = vld [vmem:[#allocation8 + $0x1340] sm:$0xf]  ;;  %v12860_v36 = vor.u32 %v15387_v14, %v12859_v29  ;;  %6269 = vmatpush.bf16.msra.mxu3 %v13660_v43  ;;  %v1417_v29 = vsel %vm1411_vm12, %v1415_v5, %v1416_v18  ;;  %v1458_v5 = vrot.slane %v16931_v23, 2 }
 0x1cc   : > { %v15451_v53 = vld [vmem:[#allocation8 + $0x135c] sm:$0xf0] }
 0x1cd   : > { %v13371_v34 = vld [vmem:[#allocation8 + $0x1540] sm:$0xf]  ;;  %v13116_v60 = vor.u32 %v15451_v53, %v13115_v6  ;;  %6228 = vmatpush.bf16.msra.mxu0 %v12860_v36 }
 0x1ce   : > { %v15515_v35 = vld [vmem:[#allocation8 + $0x155c] sm:$0xf0] }
 0x1cf   : > { %v13627_v54 = vld [vmem:[#allocation8 + $0x1740] sm:$0xf]  ;;  %v13372_v17 = vor.u32 %v15515_v35, %v13371_v34  ;;  %6242 = vmatpush.bf16.msra.mxu1 %v13116_v60  ;;  %v1420_v34 = vsel %vm1411_vm12, %v1418_v37, %v1419_v0  ;;  %v1431_v35 = vsel %vm1411_vm12, %v1422_v2, %v1430_v26 }
 0x1d0   : > { %v15579_v15 = vld [vmem:[#allocation8 + $0x175c] sm:$0xf0] }
 0x1d1   : > { %v16965_v58 = vld [vmem:[#allocation8 + $0x1100] sm:$0xf]  ;;  %v13628_v40 = vor.u32 %v15579_v15, %v13627_v54  ;;  %6256 = vmatpush.bf16.msra.mxu2 %v13372_v17 }
 0x1d2   : > { %v15379_v46 = vld [vmem:[#allocation8 + $0x111c] sm:$0xf0] }
 0x1d3   : > { %v13083_v56 = vld [vmem:[#allocation8 + $0x1300] sm:$0xf]  ;;  %v12828_v31 = vor.u32 %v15379_v46, %v16965_v58  ;;  %6270 = vmatpush.bf16.msra.mxu3 %v13628_v40 }
 0x1d4   : > { %v15443_v57 = vld [vmem:[#allocation8 + $0x131c] sm:$0xf0] }
 0x1d5   : > { %v16967_v55 = vld [vmem:[#allocation8 + $0x1500] sm:$0xf]  ;;  %v13084_v52 = vor.u32 %v15443_v57, %v13083_v56  ;;  %6229 = vmatpush.bf16.msra.mxu0 %v12828_v31 }
 0x1d6   : > { %v16969_v11 = vld [vmem:[#allocation8 + $0x151c] sm:$0xf0] }
 0x1d7   : > { %v16971_v12 = vld [vmem:[#allocation8 + $0x1700] sm:$0xf]  ;;  %v13340_v41 = vor.u32 %v16969_v11, %v16967_v55  ;;  %6243 = vmatpush.bf16.msra.mxu1 %v13084_v52  ;;  %v16993_v11 = vpack.c.bf16 %v1429_v28, %v1420_v34 }
 0x1d8   : > { %v1387_v16 = vld [vmem:[#allocation2 + $0x28] sm:$0x1] }
 0x1d9   : > { %v1388_v30 = vld [vmem:[#allocation2 + $0x48] sm:$0x1]  ;;  %v1424_v47 = vrot.slane %v1387_v16, 1  ;;  %6257 = vmatpush.bf16.msra.mxu2 %v13340_v41 }
 0x1da   : > { %v15571_v44 = vld [vmem:[#allocation8 + $0x171c] sm:$0xf0]  ;;  %v1426_v63 = vrot.slane %v1388_v30, 1  ;;  %6206 = vmatmul.bf16.vlgmr.msrb.gmra.mxu2 %v16993_v11 }
 0x1db   : > { %v12795_v7 = vld [vmem:[#allocation8 + $0x10c0] sm:$0xf]  ;;  %v13596_v33 = vor.u32 %v15571_v44, %v16971_v12  ;;  %v1425_v3 = vsel %vm1411_vm12, %v1413_v39, %v1424_v47  ;;  %v16995_v12 = vpack.c.bf16 %v1431_v35, %v1423_v27  ;;  %v11133_v27 = vld [vmem:[#allocation8 + $0x3e0] sm:$0xf0]  ;;  %v1392_v35 = vld [vmem:[#allocation2] sm:$0xfc] }
 0x1dc   : > { %v15371_v51 = vld [vmem:[#allocation8 + $0x10dc] sm:$0xf0]  ;;  %v1427_v14 = vsel %vm1411_vm12, %v1416_v18, %v1426_v63  ;;  %v16989_v58 = vpack.c.bf16 %v1425_v3, %v1414_v24  ;;  %v1452_v18 = vrot.slane %v16923_v48, 2 }
 0x1dd   : > { %v13051_v22 = vld [vmem:[#allocation8 + $0x12c0] sm:$0xf]  ;;  %v12796_v43 = vor.u32 %v15371_v51, %v12795_v7  ;;  %v16991_v46 = vpack.c.bf16 %v1427_v14, %v1417_v29  ;;  %6271 = vmatpush.bf16.msra.mxu3 %v13596_v33  ;;  %v1455_v33 = vrot.slane %v16927_v19, 2  ;;  %v14887_v29 = vld [vmem:[#allocation8 + $0x1c4] sm:$0xf] }
 0x1de   : > { %v15435_v49 = vld [vmem:[#allocation8 + $0x12dc] sm:$0xf0]  ;;  %6178 = vmatmul.bf16.vlgmr.msrb.gmra.mxu0 %v16989_v58  ;;  %6220 = vmatmul.bf16.vlgmr.msrb.gmra.mxu3 %v16995_v12  ;;  %v10877_v14 = vld [vmem:[#allocation8 + $0x1e0] sm:$0xf0]  ;;  %v1391_v19 = vld [vmem:[#allocation2 + $0x30] sm:$0xfc] }
 0x1df   : > { %v13307_v6 = vld [vmem:[#allocation8 + $0x14c0] sm:$0xf]  ;;  %v13052_v15 = vor.u32 %v15435_v49, %v13051_v22  ;;  %6192 = vmatmul.bf16.vlgmr.msrb.gmra.mxu1 %v16991_v46  ;;  %6230 = vmatpush.bf16.msra.mxu0 %v12796_v43 }
 0x1e0   : > { %v15499_v53 = vld [vmem:[#allocation8 + $0x14dc] sm:$0xf0] }
 0x1e1   : > { %v13563_v54 = vld [vmem:[#allocation8 + $0x16c0] sm:$0xf]  ;;  %v13308_v56 = vor.u32 %v15499_v53, %v13307_v6  ;;  %6244 = vmatpush.bf16.msra.mxu1 %v13052_v15  ;;  %v14951_v6 = vld [vmem:[#allocation8 + $0x3c4] sm:$0xf]  ;;  %v1397_v53 = vld [vmem:[#allocation2 + $0x10] sm:$0x3] }
 0x1e2   : > { %v15563_v42 = vld [vmem:[#allocation8 + $0x16dc] sm:$0xf0] }
 0x1e3   : > { %v12763_v57 = vld [vmem:[#allocation8 + $0x1080] sm:$0xf]  ;;  %v13564_v16 = vor.u32 %v15563_v42, %v13563_v54  ;;  %6258 = vmatpush.bf16.msra.mxu2 %v13308_v56  ;;  %v1398_v54 = vld [vmem:[#allocation2 + $0x40] sm:$0x3]  ;;  %v15015_v42 = vld [vmem:[#allocation8 + $0x5c4] sm:$0xf] }
 0x1e4   : > { %v15363_v55 = vld [vmem:[#allocation8 + $0x109c] sm:$0xf0]  ;;  %v1393_v56 = vld [vmem:[#allocation2 + $0x58] sm:$0xfc] }
 0x1e5   : > { %v13019_v30 = vld [vmem:[#allocation8 + $0x1280] sm:$0xf]  ;;  %v12764_v40 = vor.u32 %v15363_v55, %v12763_v57  ;;  %6272 = vmatpush.bf16.msra.mxu3 %v13564_v16  ;;  %v11389_v16 = vld [vmem:[#allocation8 + $0x5e0] sm:$0xf0] }
 0x1e6   : > { %v15427_v36 = vld [vmem:[#allocation8 + $0x129c] sm:$0xf0] }
 0x1e7   : > { %v13275_v60 = vld [vmem:[#allocation8 + $0x1480] sm:$0xf]  ;;  %v13020_v31 = vor.u32 %v15427_v36, %v13019_v30  ;;  %6231 = vmatpush.bf16.msra.mxu0 %v12764_v40  ;;  %v1448_v30 = vrot.slane %v1391_v19, 2  ;;  %v1464_v36 = vrot.slane %v1397_v53, 2  ;;  %v1466_v40 = vrot.slane %v1398_v54, 2 }
 0x1e8   : > { %v15491_v44 = vld [vmem:[#allocation8 + $0x149c] sm:$0xf0]  ;;  %v14935_v53 = vld [vmem:[#allocation8 + $0x344] sm:$0xf] }
 0x1e9   : > { %v13531_v45 = vld [vmem:[#allocation8 + $0x1680] sm:$0xf]  ;;  %v13276_v62 = vor.u32 %v15491_v44, %v13275_v60  ;;  %6245 = vmatpush.bf16.msra.mxu1 %v13020_v31  ;;  %v1394_v60 = vld [vmem:[#allocation2 + $0x18] sm:$0xfc]  ;;  %v10880_v31 = vor.u32 %v14887_v29, %v10877_v14  ;;  %v14871_v14 = vld [vmem:[#allocation8 + $0x144] sm:$0xf] }
 0x1ea   : > { %v15555_v61 = vld [vmem:[#allocation8 + $0x169c] sm:$0xf0]  ;;  %v11581_v54 = vld [vmem:[#allocation8 + $0x760] sm:$0xf0] }
 0x1eb   : > { %v12731_v17 = vld [vmem:[#allocation8 + $0x1040] sm:$0xf]  ;;  %v13532_v21 = vor.u32 %v15555_v61, %v13531_v45  ;;  %6259 = vmatpush.bf16.msra.mxu2 %v13276_v62  ;;  %v15079_v61 = vld [vmem:[#allocation8 + $0x7c4] sm:$0xf] }
 0x1ec   : > { %v15355_v39 = vld [vmem:[#allocation8 + $0x105c] sm:$0xf0] }
 0x1ed   : > { %v12987_v47 = vld [vmem:[#allocation8 + $0x1240] sm:$0xf]  ;;  %v12732_v49 = vor.u32 %v15355_v39, %v12731_v17  ;;  %6273 = vmatpush.bf16.msra.mxu3 %v13532_v21  ;;  %v11645_v17 = vld [vmem:[#allocation8 + $0x7e0] sm:$0xf0]  ;;  %v1451_v39 = vrot.slane %v1392_v35, 2 }
 0x1ee   : > { %v15419_v63 = vld [vmem:[#allocation8 + $0x125c] sm:$0xf0]  ;;  %v15063_v35 = vld [vmem:[#allocation8 + $0x744] sm:$0xf] }
 0x1ef   : > { %v13243_v13 = vld [vmem:[#allocation8 + $0x1440] sm:$0xf]  ;;  %v12988_v3 = vor.u32 %v15419_v63, %v12987_v47  ;;  %6232 = vmatpush.bf16.msra.mxu0 %v12732_v49  ;;  %v11136_v47 = vor.u32 %v14951_v6, %v11133_v27  ;;  %v1450_v63 = vsel %vm1061_vm6, %v1448_v30, %v1449_v8  ;;  %v1453_v21 = vsel %vm1061_vm6, %v1451_v39, %v1452_v18  ;;  %v10813_v6 = vld [vmem:[#allocation8 + $0x160] sm:$0xf0] }
 0x1f0   : > { %v15483_v0 = vld [vmem:[#allocation8 + $0x145c] sm:$0xf0]  ;;  %v11325_v27 = vld [vmem:[#allocation8 + $0x560] sm:$0xf0] }
 0x1f1   : > { %v13499_v1 = vld [vmem:[#allocation8 + $0x1640] sm:$0xf]  ;;  %v13244_v34 = vor.u32 %v15483_v0, %v13243_v13  ;;  %6246 = vmatpush.bf16.msra.mxu1 %v12988_v3  ;;  %v1454_v13 = vrot.slane %v1393_v56, 2  ;;  %v10781_v56 = vld [vmem:[#allocation8 + $0x120] sm:$0xf0] }
 0x1f2   : > { %v15547_v2 = vld [vmem:[#allocation8 + $0x165c] sm:$0xf0]  ;;  %v11037_v30 = vld [vmem:[#allocation8 + $0x320] sm:$0xf0] }
 0x1f3   : > { %v17003_v7 = vld [vmem:[#allocation8 + $0x1000] sm:$0xf]  ;;  %v13500_v28 = vor.u32 %v15547_v2, %v13499_v1  ;;  %6260 = vmatpush.bf16.msra.mxu2 %v13244_v34  ;;  %v1457_v1 = vrot.slane %v1394_v60, 2  ;;  %v14879_v2 = vld [vmem:[#allocation8 + $0x184] sm:$0xf] }
 0x1f4   : > { %v17005_v51 = vld [vmem:[#allocation8 + $0x101c] sm:$0xf0]  ;;  %v11069_v34 = vld [vmem:[#allocation8 + $0x360] sm:$0xf0] }
 0x1f5   : > { %v17007_v52 = vld [vmem:[#allocation8 + $0x1200] sm:$0xf]  ;;  %v12700_v57 = vor.u32 %v17005_v51, %v17003_v7  ;;  %6274 = vmatpush.bf16.msra.mxu3 %v13500_v28  ;;  %v10845_v7 = vld [vmem:[#allocation8 + $0x1a0] sm:$0xf0]  ;;  %v11392_v51 = vor.u32 %v15015_v42, %v11389_v16  ;;  %v1459_v48 = vsel %vm1061_vm6, %v1457_v1, %v1458_v5  ;;  %v10816_v42 = vor.u32 %v14871_v14, %v10813_v6 }
 0x1f6   : > { %v17009_v41 = vld [vmem:[#allocation8 + $0x121c] sm:$0xf0]  ;;  %v10848_v3 = vor.u32 %v14879_v2, %v10845_v7  ;;  %v14999_v28 = vld [vmem:[#allocation8 + $0x544] sm:$0xf] }
 0x1f7   : > { %v17013_v20 = vld [vmem:[#allocation8 + $0x1400] sm:$0xf]  ;;  %v12956_v55 = vor.u32 %v17009_v41, %v17007_v52  ;;  %v11648_v52 = vor.u32 %v15079_v61, %v11645_v17  ;;  %v1456_v41 = vsel %vm1061_vm6, %v1454_v13, %v1455_v33  ;;  %6233 = vmatpush.bf16.msra.mxu0 %v12700_v57  ;;  %v11328_v57 = vor.u32 %v14999_v28, %v11325_v27  ;;  %v14927_v16 = vld [vmem:[#allocation8 + $0x304] sm:$0xf] }
 0x1f8   : > { %v17015_v22 = vld [vmem:[#allocation8 + $0x141c] sm:$0xf0]  ;;  %v11293_v60 = vld [vmem:[#allocation8 + $0x520] sm:$0xf0]  ;;  %v11040_v17 = vor.u32 %v14927_v16, %v11037_v30 }
 0x1f9   : > { %v17017_v24 = vld [vmem:[#allocation8 + $0x1600] sm:$0xf]  ;;  %v13212_v44 = vor.u32 %v17015_v22, %v17013_v20  ;;  %v1465_v20 = vsel %vm1061_vm6, %v1455_v33, %v1464_v36  ;;  %v11101_v22 = vld [vmem:[#allocation8 + $0x3a0] sm:$0xf0]  ;;  %6247 = vmatpush.bf16.msra.mxu1 %v12956_v55  ;;  %v11584_v55 = vor.u32 %v15063_v35, %v11581_v54 }
 0x1fa   : > { %v17019_v37 = vld [vmem:[#allocation8 + $0x161c] sm:$0xf0]  ;;  %v17053_v49 = vpack.c.bf16 %v1465_v20, %v1456_v41  ;;  %v11104_v29 = vor.u32 %v14943_v32, %v11101_v22  ;;  %v14991_v36 = vld [vmem:[#allocation8 + $0x504] sm:$0xf] }
 0x1fb   : > { %v1395_v25 = vld [vmem:[#allocation2 + $0x28] sm:$0x3]  ;;  %v13468_v45 = vor.u32 %v17019_v37, %v17017_v24  ;;  %v11357_v24 = vld [vmem:[#allocation8 + $0x5a0] sm:$0xf0]  ;;  %6261 = vmatpush.bf16.msra.mxu2 %v13212_v44  ;;  %6282 = vmatpush.bf16.msrb.mxu0 %v10880_v31  ;;  %v11296_v31 = vor.u32 %v14991_v36, %v11293_v60 }
 0x1fc   : > { %v1396_v26 = vld [vmem:[#allocation2 + $0x48] sm:$0x3]  ;;  %v1460_v43 = vrot.slane %v1395_v25, 2  ;;  %v15071_v37 = vld [vmem:[#allocation8 + $0x784] sm:$0xf] }
 0x1fd   : > { %v1462_v15 = vrot.slane %v1396_v26, 2  ;;  %v11613_v25 = vld [vmem:[#allocation8 + $0x7a0] sm:$0xf0]  ;;  %6275 = vmatpush.bf16.msra.mxu3 %v13468_v45  ;;  %6296 = vmatpush.bf16.msrb.mxu1 %v11136_v47 }
 0x1fe   : > { %v1461_v62 = vsel %vm1061_vm6, %v1449_v8, %v1460_v43  ;;  %v15007_v8 = vld [vmem:[#allocation8 + $0x584] sm:$0xf]  ;;  %v11616_v19 = vor.u32 %v15071_v37, %v11613_v25  ;;  %6262 = vmatmul.bf16.vlgmr.msra.gmra.mxu2 %v17053_v49  ;;  %v11072_v43 = vor.u32 %v14935_v53, %v11069_v34 }
 0x1ff   : > { %v1463_v0 = vsel %vm1061_vm6, %v1452_v18, %v1462_v15  ;;  %v1467_v18 = vsel %vm1061_vm6, %v1458_v5, %v1466_v40  ;;  %v17049_v26 = vpack.c.bf16 %v1461_v62, %v1450_v63  ;;  %6310 = vmatpush.bf16.msrb.mxu2 %v11392_v51  ;;  %v11360_v5 = vor.u32 %v15007_v8, %v11357_v24  ;;  %v14863_v15 = vld [vmem:[#allocation8 + $0x104] sm:$0xf] }
 0x200   : > { %v17051_v33 = vpack.c.bf16 %v1463_v0, %v1453_v21  ;;  %v17055_v23 = vpack.c.bf16 %v1467_v18, %v1459_v48  ;;  %6283 = vmatpush.bf16.msrb.mxu0 %v10848_v3  ;;  %v15055_v44 = vld [vmem:[#allocation8 + $0x704] sm:$0xf]  ;;  %v10784_v61 = vor.u32 %v14863_v15, %v10781_v56 }
 0x201   : > { %6324 = vmatpush.bf16.msrb.mxu3 %v11648_v52  ;;  %6234 = vmatmul.bf16.vlgmr.msra.gmra.mxu0 %v17049_v26  ;;  %v11549_v45 = vld [vmem:[#allocation8 + $0x720] sm:$0xf0] }
 0x202   : > { %6248 = vmatmul.bf16.vlgmr.msra.gmra.mxu1 %v17051_v33  ;;  %6276 = vmatmul.bf16.vlgmr.msra.gmra.mxu3 %v17055_v23  ;;  %v14855_v39 = vld [vmem:[#allocation8 + $0xc4] sm:$0xf]  ;;  %v11552_v47 = vor.u32 %v15055_v44, %v11549_v45 }
 0x203   : > { %6297 = vmatpush.bf16.msrb.mxu1 %v11104_v29  ;;  %6311 = vmatpush.bf16.msrb.mxu2 %v11360_v5  ;;  %v10749_v40 = vld [vmem:[#allocation8 + $0xe0] sm:$0xf0] }
 0x204   : > { %6284 = vmatpush.bf16.msrb.mxu0 %v10816_v42  ;;  %v14919_v63 = vld [vmem:[#allocation8 + $0x2c4] sm:$0xf]  ;;  %v10752_v2 = vor.u32 %v14855_v39, %v10749_v40 }
 0x205   : > { %6325 = vmatpush.bf16.msrb.mxu3 %v11616_v19  ;;  %v11005_v13 = vld [vmem:[#allocation8 + $0x2e0] sm:$0xf0] }
 0x206   : > { %v14983_v62 = vld [vmem:[#allocation8 + $0x4c4] sm:$0xf]  ;;  %v11008_v7 = vor.u32 %v14919_v63, %v11005_v13 }
 0x207   : > { %6298 = vmatpush.bf16.msrb.mxu1 %v11072_v43  ;;  %6312 = vmatpush.bf16.msrb.mxu2 %v11328_v57  ;;  %v11261_v21 = vld [vmem:[#allocation8 + $0x4e0] sm:$0xf0] }
 0x208   : > { %v15047_v0 = vld [vmem:[#allocation8 + $0x6c4] sm:$0xf]  ;;  %6285 = vmatpush.bf16.msrb.mxu0 %v10784_v61  ;;  %v11264_v41 = vor.u32 %v14983_v62, %v11261_v21 }
 0x209   : > { %6326 = vmatpush.bf16.msrb.mxu3 %v11584_v55  ;;  %v11517_v1 = vld [vmem:[#allocation8 + $0x6e0] sm:$0xf0] }
 0x20a   : > { %v14847_v51 = vld [vmem:[#allocation8 + $0x84] sm:$0xf]  ;;  %v11520_v20 = vor.u32 %v15047_v0, %v11517_v1 }
 0x20b   : > { %6299 = vmatpush.bf16.msrb.mxu1 %v11040_v17  ;;  %v10717_v52 = vld [vmem:[#allocation8 + $0xa0] sm:$0xf0]  ;;  %6313 = vmatpush.bf16.msrb.mxu2 %v11296_v31 }
 0x20c   : > { %v14911_v32 = vld [vmem:[#allocation8 + $0x284] sm:$0xf]  ;;  %6286 = vmatpush.bf16.msrb.mxu0 %v10752_v2  ;;  %v10720_v37 = vor.u32 %v14847_v51, %v10717_v52 }
 0x20d   : > { %6327 = vmatpush.bf16.msrb.mxu3 %v11552_v47  ;;  %v10973_v22 = vld [vmem:[#allocation8 + $0x2a0] sm:$0xf0] }
 0x20e   : > { %v14975_v8 = vld [vmem:[#allocation8 + $0x484] sm:$0xf]  ;;  %v10976_v25 = vor.u32 %v14911_v32, %v10973_v22 }
 0x20f   : > { %v11229_v48 = vld [vmem:[#allocation8 + $0x4a0] sm:$0xf0]  ;;  %6300 = vmatpush.bf16.msrb.mxu1 %v11008_v7  ;;  %6314 = vmatpush.bf16.msrb.mxu2 %v11264_v41 }
 0x210   : > { %v15039_v18 = vld [vmem:[#allocation8 + $0x684] sm:$0xf]  ;;  %v11232_v14 = vor.u32 %v14975_v8, %v11229_v48  ;;  %6287 = vmatpush.bf16.msrb.mxu0 %v10720_v37 }
 0x211   : > { %v11485_v24 = vld [vmem:[#allocation8 + $0x6a0] sm:$0xf0]  ;;  %6328 = vmatpush.bf16.msrb.mxu3 %v11520_v20 }
 0x212   : > { %v14839_v3 = vld [vmem:[#allocation8 + $0x44] sm:$0xf]  ;;  %v11488_v6 = vor.u32 %v15039_v18, %v11485_v24 }
 0x213   : > { %v10685_v29 = vld [vmem:[#allocation8 + $0x60] sm:$0xf0]  ;;  %6301 = vmatpush.bf16.msrb.mxu1 %v10976_v25  ;;  %6315 = vmatpush.bf16.msrb.mxu2 %v11232_v14 }
 0x214   : > { %v14903_v5 = vld [vmem:[#allocation8 + $0x244] sm:$0xf]  ;;  %v10688_v54 = vor.u32 %v14839_v3, %v10685_v29 }
 0x215   : > { %v10941_v19 = vld [vmem:[#allocation8 + $0x260] sm:$0xf0]  ;;  %6329 = vmatpush.bf16.msrb.mxu3 %v11488_v6 }
 0x216   : > { %v14967_v53 = vld [vmem:[#allocation8 + $0x444] sm:$0xf]  ;;  %v10944_v42 = vor.u32 %v14903_v5, %v10941_v19  ;;  %6288 = vmatpush.bf16.msrb.mxu0 %v10688_v54 }
 0x217   : > { %v11197_v34 = vld [vmem:[#allocation8 + $0x460] sm:$0xf0] }
 0x218   : > { %v15031_v28 = vld [vmem:[#allocation8 + $0x644] sm:$0xf]  ;;  %v11200_v57 = vor.u32 %v14967_v53, %v11197_v34  ;;  %6302 = vmatpush.bf16.msrb.mxu1 %v10944_v42 }
 0x219   : > { %v11453_v27 = vld [vmem:[#allocation8 + $0x660] sm:$0xf0] }
 0x21a   : > { %v14831_v35 = vld [vmem:[#allocation8 + $0x4] sm:$0xf]  ;;  %v11456_v55 = vor.u32 %v15031_v28, %v11453_v27  ;;  %6316 = vmatpush.bf16.msrb.mxu2 %v11200_v57 }
 0x21b   : > { %v10653_v43 = vld [vmem:[#allocation8 + $0x20] sm:$0xf0] }
 0x21c   : > { %v14895_v15 = vld [vmem:[#allocation8 + $0x204] sm:$0xf]  ;;  %v10656_v40 = vor.u32 %v14831_v35, %v10653_v43  ;;  %6330 = vmatpush.bf16.msrb.mxu3 %v11456_v55 }
 0x21d   : > { %v10909_v56 = vld [vmem:[#allocation8 + $0x220] sm:$0xf0] }
 0x21e   : > { %v14959_v16 = vld [vmem:[#allocation8 + $0x404] sm:$0xf]  ;;  %v10912_v31 = vor.u32 %v14895_v15, %v10909_v56  ;;  %6289 = vmatpush.bf16.msrb.mxu0 %v10656_v40 }
 0x21f   : > { %v11165_v30 = vld [vmem:[#allocation8 + $0x420] sm:$0xf0] }
 0x220   : > { %v15023_v36 = vld [vmem:[#allocation8 + $0x604] sm:$0xf]  ;;  %v11168_v62 = vor.u32 %v14959_v16, %v11165_v30  ;;  %6303 = vmatpush.bf16.msrb.mxu1 %v10912_v31 }
 0x221   : > { %v11421_v60 = vld [vmem:[#allocation8 + $0x620] sm:$0xf0]  ;;  %16029 = vmatmul.msk.bf16.vlgmr.msrb.gmra.mxu0 %vm16937_vm11, %v16942_v38 }
 0x222   : > { %v15143_v44 = vld [vmem:[#allocation8 + $0x9c4] sm:$0xf]  ;;  %v11424_v21 = vor.u32 %v15023_v36, %v11421_v60  ;;  %6317 = vmatpush.bf16.msrb.mxu2 %v11168_v62 }
 0x223   : > { %v11901_v45 = vld [vmem:[#allocation8 + $0x9e0] sm:$0xf0]  ;;  %16032 = vmatmul.msk.bf16.vlgmr.msrb.gmra.mxu1 %vm16937_vm11, %v16948_v4 }
 0x224   : > { %v15207_v61 = vld [vmem:[#allocation8 + $0xbc4] sm:$0xf]  ;;  %v11904_v0 = vor.u32 %v15143_v44, %v11901_v45  ;;  %6331 = vmatpush.bf16.msrb.mxu3 %v11424_v21 }
 0x225   : > { %v12157_v17 = vld [vmem:[#allocation8 + $0xbe0] sm:$0xf0]  ;;  %16035 = vmatmul.msk.bf16.vlgmr.msrb.gmra.mxu2 %vm16937_vm11, %v16954_v10 }
 0x226   : > { %v15271_v39 = vld [vmem:[#allocation8 + $0xdc4] sm:$0xf]  ;;  %v12160_v1 = vor.u32 %v15207_v61, %v12157_v17  ;;  %6338 = vmatpush.bf16.msra.mxu0 %v11904_v0 }
 0x227   : > { %v12413_v47 = vld [vmem:[#allocation8 + $0xde0] sm:$0xf0]  ;;  %16038 = vmatmul.msk.bf16.vlgmr.msrb.gmra.mxu3 %vm16937_vm11, %v16960_v59 }
 0x228   : > { %v15335_v63 = vld [vmem:[#allocation8 + $0xfc4] sm:$0xf]  ;;  %v12416_v51 = vor.u32 %v15271_v39, %v12413_v47  ;;  %6352 = vmatpush.bf16.msra.mxu1 %v12160_v1 }
 0x229   : > { %v12669_v13 = vld [vmem:[#allocation8 + $0xfe0] sm:$0xf0] }
 0x22a   : > { %v15135_v2 = vld [vmem:[#allocation8 + $0x984] sm:$0xf]  ;;  %v12672_v52 = vor.u32 %v15335_v63, %v12669_v13  ;;  %6366 = vmatpush.bf16.msra.mxu2 %v12416_v51 }
 0x22b   : > { %v11869_v7 = vld [vmem:[#allocation8 + $0x9a0] sm:$0xf0] }
 0x22c   : > { %v15199_v41 = vld [vmem:[#allocation8 + $0xb84] sm:$0xf]  ;;  %v11872_v18 = vor.u32 %v15135_v2, %v11869_v7  ;;  %6380 = vmatpush.bf16.msra.mxu3 %v12672_v52 }
 0x22d   : > { %v12125_v20 = vld [vmem:[#allocation8 + $0xba0] sm:$0xf0] }
 0x22e   : > { %v15263_v32 = vld [vmem:[#allocation8 + $0xd84] sm:$0xf]  ;;  %v12128_v24 = vor.u32 %v15199_v41, %v12125_v20  ;;  %6339 = vmatpush.bf16.msra.mxu0 %v11872_v18 }
 0x22f   : > { %v12381_v22 = vld [vmem:[#allocation8 + $0xda0] sm:$0xf0] }
 0x230   : > { %v15327_v8 = vld [vmem:[#allocation8 + $0xf84] sm:$0xf]  ;;  %v12384_v3 = vor.u32 %v15263_v32, %v12381_v22  ;;  %6353 = vmatpush.bf16.msra.mxu1 %v12128_v24 }
 0x231   : > { %v12637_v48 = vld [vmem:[#allocation8 + $0xfa0] sm:$0xf0] }
 0x232   : > { %v15127_v37 = vld [vmem:[#allocation8 + $0x944] sm:$0xf]  ;;  %v12640_v29 = vor.u32 %v15327_v8, %v12637_v48  ;;  %6367 = vmatpush.bf16.msra.mxu2 %v12384_v3 }
 0x233   : > { %v11837_v25 = vld [vmem:[#allocation8 + $0x960] sm:$0xf0] }
 0x234   : > { %v15191_v14 = vld [vmem:[#allocation8 + $0xb44] sm:$0xf]  ;;  %v11840_v28 = vor.u32 %v15127_v37, %v11837_v25  ;;  %6381 = vmatpush.bf16.msra.mxu3 %v12640_v29 }
 0x235   : > { %v12093_v6 = vld [vmem:[#allocation8 + $0xb60] sm:$0xf0] }
 0x236   : > { %v15255_v5 = vld [vmem:[#allocation8 + $0xd44] sm:$0xf]  ;;  %v12096_v27 = vor.u32 %v15191_v14, %v12093_v6  ;;  %6340 = vmatpush.bf16.msra.mxu0 %v11840_v28 }
 0x237   : > { %v12349_v19 = vld [vmem:[#allocation8 + $0xd60] sm:$0xf0] }
 0x238   : > { %v15319_v53 = vld [vmem:[#allocation8 + $0xf44] sm:$0xf]  ;;  %v12352_v42 = vor.u32 %v15255_v5, %v12349_v19  ;;  %6354 = vmatpush.bf16.msra.mxu1 %v12096_v27 }
 0x239   : > { %v12605_v34 = vld [vmem:[#allocation8 + $0xf60] sm:$0xf0] }
 0x23a   : > { %v15119_v35 = vld [vmem:[#allocation8 + $0x904] sm:$0xf]  ;;  %v12608_v43 = vor.u32 %v15319_v53, %v12605_v34  ;;  %6368 = vmatpush.bf16.msra.mxu2 %v12352_v42 }
 0x23b   : > { %v11805_v54 = vld [vmem:[#allocation8 + $0x920] sm:$0xf0] }
 0x23c   : > { %v15183_v15 = vld [vmem:[#allocation8 + $0xb04] sm:$0xf]  ;;  %v11808_v36 = vor.u32 %v15119_v35, %v11805_v54  ;;  %6382 = vmatpush.bf16.msra.mxu3 %v12608_v43 }
 0x23d   : > { %v12061_v56 = vld [vmem:[#allocation8 + $0xb20] sm:$0xf0] }
 0x23e   : > { %v15247_v57 = vld [vmem:[#allocation8 + $0xd04] sm:$0xf]  ;;  %v12064_v60 = vor.u32 %v15183_v15, %v12061_v56  ;;  %6341 = vmatpush.bf16.msra.mxu0 %v11808_v36 }
 0x23f   : > { %v12317_v55 = vld [vmem:[#allocation8 + $0xd20] sm:$0xf0] }
 0x240   : > { %v15311_v16 = vld [vmem:[#allocation8 + $0xf04] sm:$0xf]  ;;  %v12320_v61 = vor.u32 %v15247_v57, %v12317_v55  ;;  %6355 = vmatpush.bf16.msra.mxu1 %v12064_v60 }
 0x241   : > { %v12573_v30 = vld [vmem:[#allocation8 + $0xf20] sm:$0xf0] }
 0x242   : > { %v15111_v44 = vld [vmem:[#allocation8 + $0x8c4] sm:$0xf]  ;;  %v12576_v17 = vor.u32 %v15311_v16, %v12573_v30  ;;  %6369 = vmatpush.bf16.msra.mxu2 %v12320_v61 }
 0x243   : > { %v11773_v45 = vld [vmem:[#allocation8 + $0x8e0] sm:$0xf0] }
 0x244   : > { %v15175_v39 = vld [vmem:[#allocation8 + $0xac4] sm:$0xf]  ;;  %v11776_v62 = vor.u32 %v15111_v44, %v11773_v45  ;;  %6383 = vmatpush.bf16.msra.mxu3 %v12576_v17 }
 0x245   : > { %v12029_v40 = vld [vmem:[#allocation8 + $0xae0] sm:$0xf0] }
 0x246   : > { %v15239_v31 = vld [vmem:[#allocation8 + $0xcc4] sm:$0xf]  ;;  %v12032_v21 = vor.u32 %v15175_v39, %v12029_v40  ;;  %6342 = vmatpush.bf16.msra.mxu0 %v11776_v62 }
 0x247   : > { %v12285_v47 = vld [vmem:[#allocation8 + $0xce0] sm:$0xf0] }
 0x248   : > { %v15303_v63 = vld [vmem:[#allocation8 + $0xec4] sm:$0xf]  ;;  %v12288_v2 = vor.u32 %v15239_v31, %v12285_v47  ;;  %6356 = vmatpush.bf16.msra.mxu1 %v12032_v21 }
 0x249   : > { %v12541_v13 = vld [vmem:[#allocation8 + $0xee0] sm:$0xf0] }
 0x24a   : > { %v15103_v0 = vld [vmem:[#allocation8 + $0x884] sm:$0xf]  ;;  %v12544_v7 = vor.u32 %v15303_v63, %v12541_v13  ;;  %6370 = vmatpush.bf16.msra.mxu2 %v12288_v2 }
 0x24b   : > { %v11741_v1 = vld [vmem:[#allocation8 + $0x8a0] sm:$0xf0] }
 0x24c   : > { %v15167_v51 = vld [vmem:[#allocation8 + $0xa84] sm:$0xf]  ;;  %v11744_v8 = vor.u32 %v15103_v0, %v11741_v1  ;;  %6384 = vmatpush.bf16.msra.mxu3 %v12544_v7 }
 0x24d   : > { %v11997_v52 = vld [vmem:[#allocation8 + $0xaa0] sm:$0xf0] }
 0x24e   : > { %v15231_v41 = vld [vmem:[#allocation8 + $0xc84] sm:$0xf]  ;;  %v12000_v48 = vor.u32 %v15167_v51, %v11997_v52  ;;  %6343 = vmatpush.bf16.msra.mxu0 %v11744_v8 }
 0x24f   : > { %v12253_v20 = vld [vmem:[#allocation8 + $0xca0] sm:$0xf0] }
 0x250   : > { %v15295_v32 = vld [vmem:[#allocation8 + $0xe84] sm:$0xf]  ;;  %v12256_v37 = vor.u32 %v15231_v41, %v12253_v20  ;;  %6357 = vmatpush.bf16.msra.mxu1 %v12000_v48 }
 0x251   : > { %v12509_v22 = vld [vmem:[#allocation8 + $0xea0] sm:$0xf0] }
 0x252   : > { %v15095_v18 = vld [vmem:[#allocation8 + $0x844] sm:$0xf]  ;;  %v12512_v25 = vor.u32 %v15295_v32, %v12509_v22  ;;  %6371 = vmatpush.bf16.msra.mxu2 %v12256_v37 }
 0x253   : > { %v11709_v24 = vld [vmem:[#allocation8 + $0x860] sm:$0xf0] }
 0x254   : > { %v15159_v3 = vld [vmem:[#allocation8 + $0xa44] sm:$0xf]  ;;  %v11712_v34 = vor.u32 %v15095_v18, %v11709_v24  ;;  %6385 = vmatpush.bf16.msra.mxu3 %v12512_v25 }
 0x255   : > { %v11965_v29 = vld [vmem:[#allocation8 + $0xa60] sm:$0xf0] }
 0x256   : > { %v15223_v14 = vld [vmem:[#allocation8 + $0xc44] sm:$0xf]  ;;  %v11968_v28 = vor.u32 %v15159_v3, %v11965_v29  ;;  %6344 = vmatpush.bf16.msra.mxu0 %v11712_v34 }
 0x257   : > { %v12221_v6 = vld [vmem:[#allocation8 + $0xc60] sm:$0xf0] }
 0x258   : > { %v15287_v5 = vld [vmem:[#allocation8 + $0xe44] sm:$0xf]  ;;  %v12224_v42 = vor.u32 %v15223_v14, %v12221_v6  ;;  %6358 = vmatpush.bf16.msra.mxu1 %v11968_v28 }
 0x259   : > { %v12477_v19 = vld [vmem:[#allocation8 + $0xe60] sm:$0xf0] }
 0x25a   : > { %v15087_v53 = vld [vmem:[#allocation8 + $0x804] sm:$0xf]  ;;  %v12480_v43 = vor.u32 %v15287_v5, %v12477_v19  ;;  %6372 = vmatpush.bf16.msra.mxu2 %v12224_v42 }
 0x25b   : > { %v11677_v27 = vld [vmem:[#allocation8 + $0x820] sm:$0xf0] }
 0x25c   : > { %v15151_v35 = vld [vmem:[#allocation8 + $0xa04] sm:$0xf]  ;;  %v11680_v45 = vor.u32 %v15087_v53, %v11677_v27  ;;  %6386 = vmatpush.bf16.msra.mxu3 %v12480_v43 }
 0x25d   : > { %v11933_v54 = vld [vmem:[#allocation8 + $0xa20] sm:$0xf0] }
 0x25e   : > { %v15215_v15 = vld [vmem:[#allocation8 + $0xc04] sm:$0xf]  ;;  %v11936_v61 = vor.u32 %v15151_v35, %v11933_v54  ;;  %6345 = vmatpush.bf16.msra.mxu0 %v11680_v45 }
 0x25f   : > { %v12189_v56 = vld [vmem:[#allocation8 + $0xc20] sm:$0xf0] }
 0x260   : > { %v15279_v57 = vld [vmem:[#allocation8 + $0xe04] sm:$0xf]  ;;  %v12192_v31 = vor.u32 %v15215_v15, %v12189_v56  ;;  %6359 = vmatpush.bf16.msra.mxu1 %v11936_v61 }
 0x261   : > { %v12445_v55 = vld [vmem:[#allocation8 + $0xe20] sm:$0xf0]  ;;  %6346 = vmatmul.bf16.vlgmr.msra.gmra.mxu0 %v16989_v58 }
 0x262   : > { %v15399_v16 = vld [vmem:[#allocation8 + $0x11c4] sm:$0xf]  ;;  %v12448_v47 = vor.u32 %v15279_v57, %v12445_v55  ;;  %6373 = vmatpush.bf16.msra.mxu2 %v12192_v31 }
 0x263   : > { %v12925_v30 = vld [vmem:[#allocation8 + $0x11e0] sm:$0xf0]  ;;  %6360 = vmatmul.bf16.vlgmr.msra.gmra.mxu1 %v16991_v46 }
 0x264   : > { %v15463_v36 = vld [vmem:[#allocation8 + $0x13c4] sm:$0xf]  ;;  %v12928_v63 = vor.u32 %v15399_v16, %v12925_v30  ;;  %6387 = vmatpush.bf16.msra.mxu3 %v12448_v47 }
 0x265   : > { %v13181_v60 = vld [vmem:[#allocation8 + $0x13e0] sm:$0xf0]  ;;  %6374 = vmatmul.bf16.vlgmr.msra.gmra.mxu2 %v16993_v11 }
 0x266   : > { %v15527_v44 = vld [vmem:[#allocation8 + $0x15c4] sm:$0xf]  ;;  %v13184_v13 = vor.u32 %v15463_v36, %v13181_v60  ;;  %6394 = vmatpush.bf16.msrb.mxu0 %v12928_v63 }
 0x267   : > { %v13437_v17 = vld [vmem:[#allocation8 + $0x15e0] sm:$0xf0]  ;;  %6388 = vmatmul.bf16.vlgmr.msra.gmra.mxu3 %v16995_v12 }
 0x268   : > { %v15591_v39 = vld [vmem:[#allocation8 + $0x17c4] sm:$0xf]  ;;  %v13440_v0 = vor.u32 %v15527_v44, %v13437_v17  ;;  %6408 = vmatpush.bf16.msrb.mxu1 %v13184_v13 }
 0x269   : > { %v13693_v40 = vld [vmem:[#allocation8 + $0x17e0] sm:$0xf0] }
 0x26a   : > { %v15391_v62 = vld [vmem:[#allocation8 + $0x1184] sm:$0xf]  ;;  %v13696_v1 = vor.u32 %v15591_v39, %v13693_v40  ;;  %6422 = vmatpush.bf16.msrb.mxu2 %v13440_v0 }
 0x26b   : > { %v12893_v21 = vld [vmem:[#allocation8 + $0x11a0] sm:$0xf0] }
 0x26c   : > { %v15455_v2 = vld [vmem:[#allocation8 + $0x1384] sm:$0xf]  ;;  %v12896_v32 = vor.u32 %v15391_v62, %v12893_v21  ;;  %6436 = vmatpush.bf16.msrb.mxu3 %v13696_v1 }
 0x26d   : > { %v13149_v7 = vld [vmem:[#allocation8 + $0x13a0] sm:$0xf0] }
 0x26e   : > { %v15519_v51 = vld [vmem:[#allocation8 + $0x1584] sm:$0xf]  ;;  %v13152_v22 = vor.u32 %v15455_v2, %v13149_v7  ;;  %6395 = vmatpush.bf16.msrb.mxu0 %v12896_v32 }
 0x26f   : > { %v13405_v52 = vld [vmem:[#allocation8 + $0x15a0] sm:$0xf0] }
 0x270   : > { %v15583_v41 = vld [vmem:[#allocation8 + $0x1784] sm:$0xf]  ;;  %v13408_v18 = vor.u32 %v15519_v51, %v13405_v52  ;;  %6409 = vmatpush.bf16.msrb.mxu1 %v13152_v22 }
 0x271   : > { %v13661_v20 = vld [vmem:[#allocation8 + $0x17a0] sm:$0xf0] }
 0x272   : > { %v15383_v8 = vld [vmem:[#allocation8 + $0x1144] sm:$0xf]  ;;  %v13664_v24 = vor.u32 %v15583_v41, %v13661_v20  ;;  %6423 = vmatpush.bf16.msrb.mxu2 %v13408_v18 }
 0x273   : > { %v12861_v48 = vld [vmem:[#allocation8 + $0x1160] sm:$0xf0] }
 0x274   : > { %v15447_v37 = vld [vmem:[#allocation8 + $0x1344] sm:$0xf]  ;;  %v12864_v5 = vor.u32 %v15383_v8, %v12861_v48  ;;  %6437 = vmatpush.bf16.msrb.mxu3 %v13664_v24 }
 0x275   : > { %v13117_v25 = vld [vmem:[#allocation8 + $0x1360] sm:$0xf0] }
 0x276   : > { %v15511_v3 = vld [vmem:[#allocation8 + $0x1544] sm:$0xf]  ;;  %v13120_v19 = vor.u32 %v15447_v37, %v13117_v25  ;;  %6396 = vmatpush.bf16.msrb.mxu0 %v12864_v5 }
 0x277   : > { %v13373_v29 = vld [vmem:[#allocation8 + $0x1560] sm:$0xf0] }
 0x278   : > { %v15575_v14 = vld [vmem:[#allocation8 + $0x1744] sm:$0xf]  ;;  %v13376_v28 = vor.u32 %v15511_v3, %v13373_v29  ;;  %6410 = vmatpush.bf16.msrb.mxu1 %v13120_v19 }
 0x279   : > { %v13629_v6 = vld [vmem:[#allocation8 + $0x1760] sm:$0xf0] }
 0x27a   : > { %v15375_v53 = vld [vmem:[#allocation8 + $0x1104] sm:$0xf]  ;;  %v13632_v27 = vor.u32 %v15575_v14, %v13629_v6  ;;  %6424 = vmatpush.bf16.msrb.mxu2 %v13376_v28 }
 0x27b   : > { %v12829_v34 = vld [vmem:[#allocation8 + $0x1120] sm:$0xf0] }
 0x27c   : > { %v15439_v35 = vld [vmem:[#allocation8 + $0x1304] sm:$0xf]  ;;  %v12832_v57 = vor.u32 %v15375_v53, %v12829_v34  ;;  %6438 = vmatpush.bf16.msrb.mxu3 %v13632_v27 }
 0x27d   : > { %v13085_v54 = vld [vmem:[#allocation8 + $0x1320] sm:$0xf0] }
 0x27e   : > { %v15503_v42 = vld [vmem:[#allocation8 + $0x1504] sm:$0xf]  ;;  %v13088_v55 = vor.u32 %v15439_v35, %v13085_v54  ;;  %6397 = vmatpush.bf16.msrb.mxu0 %v12832_v57  ;;  %v11139_v57 = vld [vmem:[#allocation8 + $0x3c8] sm:$0xf] }
 0x27f   : > { %v13341_v43 = vld [vmem:[#allocation8 + $0x1520] sm:$0xf0] }
 0x280   : > { %v15567_v15 = vld [vmem:[#allocation8 + $0x1704] sm:$0xf]  ;;  %v13344_v36 = vor.u32 %v15503_v42, %v13341_v43  ;;  %6411 = vmatpush.bf16.msrb.mxu1 %v13088_v55  ;;  %v14956_v55 = vld [vmem:[#allocation8 + $0x3e4] sm:$0xf0] }
 0x281   : > { %v13597_v56 = vld [vmem:[#allocation8 + $0x1720] sm:$0xf0] }
 0x282   : > { %v15367_v16 = vld [vmem:[#allocation8 + $0x10c4] sm:$0xf]  ;;  %v13600_v60 = vor.u32 %v15567_v15, %v13597_v56  ;;  %6425 = vmatpush.bf16.msrb.mxu2 %v13344_v36  ;;  %v10883_v15 = vld [vmem:[#allocation8 + $0x1c8] sm:$0xf] }
 0x283   : > { %v12797_v30 = vld [vmem:[#allocation8 + $0x10e0] sm:$0xf0]  ;;  %v14892_v56 = vld [vmem:[#allocation8 + $0x1e4] sm:$0xf0] }
 0x284   : > { %v15431_v44 = vld [vmem:[#allocation8 + $0x12c4] sm:$0xf]  ;;  %v12800_v31 = vor.u32 %v15367_v16, %v12797_v30  ;;  %6439 = vmatpush.bf16.msrb.mxu3 %v13600_v60  ;;  %v11395_v16 = vld [vmem:[#allocation8 + $0x5c8] sm:$0xf] }
 0x285   : > { %v13053_v45 = vld [vmem:[#allocation8 + $0x12e0] sm:$0xf0]  ;;  %v15020_v60 = vld [vmem:[#allocation8 + $0x5e4] sm:$0xf0] }
 0x286   : > { %v15495_v61 = vld [vmem:[#allocation8 + $0x14c4] sm:$0xf]  ;;  %v13056_v47 = vor.u32 %v15431_v44, %v13053_v45  ;;  %6398 = vmatpush.bf16.msrb.mxu0 %v12800_v31  ;;  %v11651_v44 = vld [vmem:[#allocation8 + $0x7c8] sm:$0xf] }
 0x287   : > { %v13309_v17 = vld [vmem:[#allocation8 + $0x14e0] sm:$0xf0]  ;;  %v15084_v45 = vld [vmem:[#allocation8 + $0x7e4] sm:$0xf0] }
 0x288   : > { %v15559_v39 = vld [vmem:[#allocation8 + $0x16c4] sm:$0xf]  ;;  %v13312_v62 = vor.u32 %v15495_v61, %v13309_v17  ;;  %6412 = vmatpush.bf16.msrb.mxu1 %v13056_v47  ;;  %v10851_v31 = vld [vmem:[#allocation8 + $0x188] sm:$0xf] }
 0x289   : > { %v13565_v40 = vld [vmem:[#allocation8 + $0x16e0] sm:$0xf0]  ;;  %v14884_v47 = vld [vmem:[#allocation8 + $0x1a4] sm:$0xf0] }
 0x28a   : > { %v15359_v63 = vld [vmem:[#allocation8 + $0x1084] sm:$0xf]  ;;  %v13568_v21 = vor.u32 %v15559_v39, %v13565_v40  ;;  %6426 = vmatpush.bf16.msrb.mxu2 %v13312_v62  ;;  %v10884_v39 = vor.u32 %v14892_v56, %v10883_v15  ;;  %v11140_v40 = vor.u32 %v14956_v55, %v11139_v57  ;;  %v11652_v62 = vor.u32 %v15084_v45, %v11651_v44  ;;  %v14996_v56 = vld [vmem:[#allocation8 + $0x524] sm:$0xf0] }
 0x28b   : > { %v12765_v13 = vld [vmem:[#allocation8 + $0x10a0] sm:$0xf0]  ;;  %v11555_v57 = vld [vmem:[#allocation8 + $0x708] sm:$0xf] }
 0x28c   : > { %v15423_v0 = vld [vmem:[#allocation8 + $0x1284] sm:$0xf]  ;;  %v12768_v41 = vor.u32 %v15359_v63, %v12765_v13  ;;  %6440 = vmatpush.bf16.msrb.mxu3 %v13568_v21  ;;  %v11107_v63 = vld [vmem:[#allocation8 + $0x388] sm:$0xf]  ;;  %v11396_v13 = vor.u32 %v15020_v60, %v11395_v16 }
 0x28d   : > { %v13021_v1 = vld [vmem:[#allocation8 + $0x12a0] sm:$0xf0]  ;;  %v14948_v21 = vld [vmem:[#allocation8 + $0x3a4] sm:$0xf0] }
 0x28e   : > { %v15487_v2 = vld [vmem:[#allocation8 + $0x1484] sm:$0xf]  ;;  %v13024_v20 = vor.u32 %v15423_v0, %v13021_v1  ;;  %6399 = vmatpush.bf16.msrb.mxu0 %v12768_v41  ;;  %v11363_v0 = vld [vmem:[#allocation8 + $0x588] sm:$0xf]  ;;  %v11108_v41 = vor.u32 %v14948_v21, %v11107_v63 }
 0x28f   : > { %v13277_v7 = vld [vmem:[#allocation8 + $0x14a0] sm:$0xf0]  ;;  %v15060_v55 = vld [vmem:[#allocation8 + $0x724] sm:$0xf0] }
 0x290   : > { %v15551_v51 = vld [vmem:[#allocation8 + $0x1684] sm:$0xf]  ;;  %v13280_v8 = vor.u32 %v15487_v2, %v13277_v7  ;;  %6413 = vmatpush.bf16.msrb.mxu1 %v13024_v20  ;;  %v15012_v2 = vld [vmem:[#allocation8 + $0x5a4] sm:$0xf0]  ;;  %v11556_v45 = vor.u32 %v15060_v55, %v11555_v57 }
 0x291   : > { %v13533_v52 = vld [vmem:[#allocation8 + $0x16a0] sm:$0xf0]  ;;  %v11619_v7 = vld [vmem:[#allocation8 + $0x788] sm:$0xf] }
 0x292   : > { %v15351_v32 = vld [vmem:[#allocation8 + $0x1044] sm:$0xf]  ;;  %v13536_v48 = vor.u32 %v15551_v51, %v13533_v52  ;;  %6427 = vmatpush.bf16.msrb.mxu2 %v13280_v8  ;;  %v15076_v51 = vld [vmem:[#allocation8 + $0x7a4] sm:$0xf0]  ;;  %v10852_v52 = vor.u32 %v14884_v47, %v10851_v31  ;;  %v11364_v8 = vor.u32 %v15012_v2, %v11363_v0  ;;  %v6165_v31 = vpop.f32.mrf.mxu3 }
 0x293   : > { %v12733_v22 = vld [vmem:[#allocation8 + $0x1060] sm:$0xf0]  ;;  %v10819_v20 = vld [vmem:[#allocation8 + $0x148] sm:$0xf] }
 0x294   : > { %v15415_v18 = vld [vmem:[#allocation8 + $0x1244] sm:$0xf]  ;;  %v12736_v6 = vor.u32 %v15351_v32, %v12733_v22  ;;  %6441 = vmatpush.bf16.msrb.mxu3 %v13536_v48  ;;  %v14876_v32 = vld [vmem:[#allocation8 + $0x164] sm:$0xf0]  ;;  %v11620_v48 = vor.u32 %v15076_v51, %v11619_v7 }
 0x295   : > { %v12989_v24 = vld [vmem:[#allocation8 + $0x1260] sm:$0xf0]  ;;  %v14860_v60 = vld [vmem:[#allocation8 + $0xe4] sm:$0xf0] }
 0x296   : > { %v15479_v37 = vld [vmem:[#allocation8 + $0x1444] sm:$0xf]  ;;  %v12992_v5 = vor.u32 %v15415_v18, %v12989_v24  ;;  %6400 = vmatpush.bf16.msrb.mxu0 %v12736_v6  ;;  %v11075_v18 = vld [vmem:[#allocation8 + $0x348] sm:$0xf]  ;;  %v6137_v6 = vpop.f32.mrf.mxu1 }
 0x297   : > { %v13245_v25 = vld [vmem:[#allocation8 + $0x1460] sm:$0xf0]  ;;  %v14940_v24 = vld [vmem:[#allocation8 + $0x364] sm:$0xf0] }
 0x298   : > { %v15543_v3 = vld [vmem:[#allocation8 + $0x1644] sm:$0xf]  ;;  %v13248_v28 = vor.u32 %v15479_v37, %v13245_v25  ;;  %6414 = vmatpush.bf16.msrb.mxu1 %v12992_v5  ;;  %v11331_v37 = vld [vmem:[#allocation8 + $0x548] sm:$0xf]  ;;  %v10820_v5 = vor.u32 %v14876_v32, %v10819_v20 }
 0x299   : > { %v13501_v29 = vld [vmem:[#allocation8 + $0x1660] sm:$0xf0]  ;;  %v15004_v25 = vld [vmem:[#allocation8 + $0x564] sm:$0xf0] }
 0x29a   : > { %v15343_v14 = vld [vmem:[#allocation8 + $0x1004] sm:$0xf]  ;;  %v13504_v27 = vor.u32 %v15543_v3, %v13501_v29  ;;  %6428 = vmatpush.bf16.msrb.mxu2 %v13248_v28  ;;  %v11587_v3 = vld [vmem:[#allocation8 + $0x748] sm:$0xf] }
 0x29b   : > { %v12701_v19 = vld [vmem:[#allocation8 + $0x1020] sm:$0xf0]  ;;  %v15068_v29 = vld [vmem:[#allocation8 + $0x764] sm:$0xf0] }
 0x29c   : > { %v15407_v53 = vld [vmem:[#allocation8 + $0x1204] sm:$0xf]  ;;  %v12704_v30 = vor.u32 %v15343_v14, %v12701_v19  ;;  %6442 = vmatpush.bf16.msrb.mxu3 %v13504_v27  ;;  %v6123_v14 = vpop.f32.mrf.mxu0  ;;  %v11076_v19 = vor.u32 %v14940_v24, %v11075_v18  ;;  %v14868_v28 = vld [vmem:[#allocation8 + $0x124] sm:$0xf0]  ;;  %v11332_v27 = vor.u32 %v15004_v25, %v11331_v37 }
 0x29d   : > { %v12957_v34 = vld [vmem:[#allocation8 + $0x1220] sm:$0xf0]  ;;  %v14988_v47 = vld [vmem:[#allocation8 + $0x4e4] sm:$0xf0] }
 0x29e   : > { %v15471_v35 = vld [vmem:[#allocation8 + $0x1404] sm:$0xf]  ;;  %v12960_v36 = vor.u32 %v15407_v53, %v12957_v34  ;;  %6401 = vmatpush.bf16.msrb.mxu0 %v12704_v30  ;;  %v10787_v34 = vld [vmem:[#allocation8 + $0x108] sm:$0xf]  ;;  %v17088_v0 = vpop.f32.mrf.mxu1 }
 0x29f   : > { %v13213_v54 = vld [vmem:[#allocation8 + $0x1420] sm:$0xf0]  ;;  %v10788_v16 = vor.u32 %v14868_v28, %v10787_v34  ;;  %v11523_v63 = vld [vmem:[#allocation8 + $0x6c8] sm:$0xf] }
 0x2a0   : > { %v15535_v42 = vld [vmem:[#allocation8 + $0x1604] sm:$0xf]  ;;  %v13216_v61 = vor.u32 %v15471_v35, %v13213_v54  ;;  %6415 = vmatpush.bf16.msrb.mxu1 %v12960_v36  ;;  %v11588_v35 = vor.u32 %v15068_v29, %v11587_v3  ;;  %v11043_v54 = vld [vmem:[#allocation8 + $0x308] sm:$0xf] }
 0x2a1   : > { %v13469_v43 = vld [vmem:[#allocation8 + $0x1620] sm:$0xf0]  ;;  %6402 = vmatmul.bf16.vlgmr.msrb.gmra.mxu0 %v17049_v26  ;;  %v10755_v36 = vld [vmem:[#allocation8 + $0xc8] sm:$0xf] }
 0x2a2   : > { %v13472_v17 = vor.u32 %v15535_v42, %v13469_v43  ;;  %v17077_v1 = vld [vmem:[#allocation9] sm:$0xff]  ;;  %6429 = vmatpush.bf16.msrb.mxu2 %v13216_v61  ;;  %6450 = vmatpush.bf16.msra.mxu0 %v10884_v39  ;;  %v14932_v42 = vld [vmem:[#allocation8 + $0x324] sm:$0xf0]  ;;  %v10756_v2 = vor.u32 %v14860_v60, %v10755_v36 }
 0x2a3   : > { %v17689_v22 = vperm.slane %v17077_v1, 0  ;;  %6416 = vmatmul.bf16.vlgmr.msrb.gmra.mxu1 %v17051_v33  ;;  %v11299_v43 = vld [vmem:[#allocation8 + $0x508] sm:$0xf]  ;;  %v11044_v30 = vor.u32 %v14932_v42, %v11043_v54 }
 0x2a4   : > { %6443 = vmatpush.bf16.msrb.mxu3 %v13472_v17  ;;  %6464 = vmatpush.bf16.msra.mxu1 %v11140_v40  ;;  %v11300_v44 = vor.u32 %v14996_v56, %v11299_v43  ;;  %v11011_v61 = vld [vmem:[#allocation8 + $0x2c8] sm:$0xf]  ;;  %v6151_v40 = vpop.f32.mrf.mxu2  ;;  %v17086_v21 = vpop.f32.mrf.mxu0 }
 0x2a5   : > { %6430 = vmatmul.bf16.vlgmr.msrb.gmra.mxu2 %v17053_v49  ;;  %v6124_v53 = vadd.f32 %v6123_v14, %v17689_v22  ;;  %v14924_v17 = vld [vmem:[#allocation8 + $0x2e4] sm:$0xf0] }
 0x2a6   : > { %6478 = vmatpush.bf16.msra.mxu2 %v11396_v13  ;;  %6451 = vmatpush.bf16.msra.mxu0 %v10852_v52  ;;  %v11267_v39 = vld [vmem:[#allocation8 + $0x4c8] sm:$0xf]  ;;  %v11012_v7 = vor.u32 %v14924_v17, %v11011_v61  ;;  %v6193_v56 = vpop.f32.mrf.mxu1 }
 0x2a7   : > { %6444 = vmatmul.bf16.vlgmr.msrb.gmra.mxu3 %v17055_v23  ;;  %v6138_v15 = vadd.f32 %v6137_v6, %v6124_v53  ;;  %v15052_v13 = vld [vmem:[#allocation8 + $0x6e4] sm:$0xf0]  ;;  %v11268_v20 = vor.u32 %v14988_v47, %v11267_v39 }
 0x2a8   : > { %6492 = vmatpush.bf16.msra.mxu3 %v11652_v62  ;;  %6465 = vmatpush.bf16.msra.mxu1 %v11108_v41  ;;  %v10723_v51 = vld [vmem:[#allocation8 + $0x88] sm:$0xf]  ;;  %v11524_v32 = vor.u32 %v15052_v13, %v11523_v63 }
 0x2a9   : > { %v6152_v62 = vadd.f32 %v6151_v40, %v6138_v15  ;;  %v14852_v52 = vld [vmem:[#allocation8 + $0xa4] sm:$0xf0] }
 0x2aa   : > { %6479 = vmatpush.bf16.msra.mxu2 %v11364_v8  ;;  %6452 = vmatpush.bf16.msra.mxu0 %v10820_v5  ;;  %v10979_v8 = vld [vmem:[#allocation8 + $0x288] sm:$0xf]  ;;  %v10724_v3 = vor.u32 %v14852_v52, %v10723_v51 }
 0x2ab   : > { %v6166_v41 = vadd.f32 %v6165_v31, %v6152_v62  ;;  %v11235_v18 = vld [vmem:[#allocation8 + $0x488] sm:$0xf] }
 0x2ac   : > { %6493 = vmatpush.bf16.msra.mxu3 %v11620_v48  ;;  %6466 = vmatpush.bf16.msra.mxu1 %v11076_v19  ;;  %v14916_v48 = vld [vmem:[#allocation8 + $0x2a4] sm:$0xf0]  ;;  %v6179_v15 = vpop.f32.mrf.mxu0 }
 0x2ad   : > { %v14980_v24 = vld [vmem:[#allocation8 + $0x4a4] sm:$0xf0]  ;;  %v10980_v29 = vor.u32 %v14916_v48, %v10979_v8 }
 0x2ae   : > { %6480 = vmatpush.bf16.msra.mxu2 %v11332_v27  ;;  %6453 = vmatpush.bf16.msra.mxu0 %v10788_v16  ;;  %v11491_v37 = vld [vmem:[#allocation8 + $0x688] sm:$0xf]  ;;  %v11236_v5 = vor.u32 %v14980_v24, %v11235_v18  ;;  %v17090_v27 = vpop.f32.mrf.mxu2 }
 0x2af   : > { %v15044_v25 = vld [vmem:[#allocation8 + $0x6a4] sm:$0xf0]  ;;  %17720 = vst [vmem:[#allocation26_spill] sm:$0xff] %v17090_v27  ;;  %v12149_v27 = vld [vmem:[#allocation8 + $0xbb8] sm:$0xf0] }
 0x2b0   : > { %6494 = vmatpush.bf16.msra.mxu3 %v11588_v35  ;;  %6467 = vmatpush.bf16.msra.mxu1 %v11044_v30  ;;  %v10691_v14 = vld [vmem:[#allocation8 + $0x48] sm:$0xf]  ;;  %v11492_v19 = vor.u32 %v15044_v25, %v11491_v37  ;;  %v17092_v35 = vpop.f32.mrf.mxu3  ;;  %v6180_v30 = vadd.f32 %v6179_v15, %v6166_v41 }
 0x2b1   : > { %v14844_v6 = vld [vmem:[#allocation8 + $0x64] sm:$0xf0]  ;;  %17721 = vst [vmem:[#allocation27_spill] sm:$0xff] %v17092_v35  ;;  %v15201_v35 = vld [vmem:[#allocation8 + $0xb94] sm:$0xf] }
 0x2b2   : > { %6481 = vmatpush.bf16.msra.mxu2 %v11300_v44  ;;  %6454 = vmatpush.bf16.msra.mxu0 %v10756_v2  ;;  %v10947_v53 = vld [vmem:[#allocation8 + $0x248] sm:$0xf]  ;;  %v10692_v55 = vor.u32 %v14844_v6, %v10691_v14  ;;  %v6194_v31 = vadd.f32 %v6193_v56, %v6180_v30  ;;  %v17096_v56 = vpop.f32.mrf.mxu1 }
 0x2b3   : > { %v14908_v34 = vld [vmem:[#allocation8 + $0x264] sm:$0xf0]  ;;  %17723 = vst [vmem:[#allocation29_spill] sm:$0xff] %v17096_v56 }
 0x2b4   : > { %6495 = vmatpush.bf16.msra.mxu3 %v11556_v45  ;;  %6468 = vmatpush.bf16.msra.mxu1 %v11012_v7  ;;  %v11203_v28 = vld [vmem:[#allocation8 + $0x448] sm:$0xf]  ;;  %v10948_v16 = vor.u32 %v14908_v34, %v10947_v53 }
 0x2b5   : > { %v14972_v54 = vld [vmem:[#allocation8 + $0x464] sm:$0xf0] }
 0x2b6   : > { %6482 = vmatpush.bf16.msra.mxu2 %v11268_v20  ;;  %v11459_v42 = vld [vmem:[#allocation8 + $0x648] sm:$0xf]  ;;  %6455 = vmatpush.bf16.msra.mxu0 %v10724_v3  ;;  %v11204_v45 = vor.u32 %v14972_v54, %v11203_v28  ;;  %v6207_v37 = vpop.f32.mrf.mxu2 }
 0x2b7   : > { %v15036_v43 = vld [vmem:[#allocation8 + $0x664] sm:$0xf0] }
 0x2b8   : > { %6496 = vmatpush.bf16.msra.mxu3 %v11524_v32  ;;  %v10659_v57 = vld [vmem:[#allocation8 + $0x8] sm:$0xf]  ;;  %6469 = vmatpush.bf16.msra.mxu1 %v10980_v29  ;;  %v11460_v61 = vor.u32 %v15036_v43, %v11459_v42  ;;  %v6221_v25 = vpop.f32.mrf.mxu3 }
 0x2b9   : > { %v14836_v36 = vld [vmem:[#allocation8 + $0x24] sm:$0xf0] }
 0x2ba   : > { %v10915_v60 = vld [vmem:[#allocation8 + $0x208] sm:$0xf]  ;;  %6483 = vmatpush.bf16.msra.mxu2 %v11236_v5  ;;  %6456 = vmatpush.bf16.msra.mxu0 %v10692_v55  ;;  %v10660_v51 = vor.u32 %v14836_v36, %v10659_v57  ;;  %v6208_v5 = vadd.f32 %v6207_v37, %v6194_v31 }
 0x2bb   : > { %v14900_v44 = vld [vmem:[#allocation8 + $0x224] sm:$0xf0] }
 0x2bc   : > { %6497 = vmatpush.bf16.msra.mxu3 %v11492_v19  ;;  %v11171_v17 = vld [vmem:[#allocation8 + $0x408] sm:$0xf]  ;;  %6470 = vmatpush.bf16.msra.mxu1 %v10948_v16  ;;  %v10916_v52 = vor.u32 %v14900_v44, %v10915_v60  ;;  %v17094_v19 = vpop.f32.mrf.mxu0  ;;  %v6222_v15 = vadd.f32 %v6221_v25, %v6208_v5 }
 0x2bd   : > { %v14964_v39 = vld [vmem:[#allocation8 + $0x424] sm:$0xf0]  ;;  %17722 = vst [vmem:[#allocation28_spill] sm:$0xff] %v17094_v19  ;;  %v15009_v19 = vld [vmem:[#allocation8 + $0x594] sm:$0xf] }
 0x2be   : > { %v11427_v40 = vld [vmem:[#allocation8 + $0x608] sm:$0xf]  ;;  %6484 = vmatpush.bf16.msra.mxu2 %v11204_v45  ;;  %v11172_v8 = vor.u32 %v14964_v39, %v11171_v17  ;;  %6457 = vmatpush.bf16.msra.mxu0 %v10660_v51 }
 0x2bf   : > { %v15028_v47 = vld [vmem:[#allocation8 + $0x624] sm:$0xf0] }
 0x2c0   : > { %v11907_v63 = vld [vmem:[#allocation8 + $0x9c8] sm:$0xf]  ;;  %6498 = vmatpush.bf16.msra.mxu3 %v11460_v61  ;;  %v11428_v48 = vor.u32 %v15028_v47, %v11427_v40  ;;  %6471 = vmatpush.bf16.msra.mxu1 %v10916_v52 }
 0x2c1   : > { %v15148_v13 = vld [vmem:[#allocation8 + $0x9e4] sm:$0xf0]  ;;  %16041 = vmatmul.msk.bf16.vlgmr.msra.gmra.mxu0 %vm16937_vm11, %v16942_v38 }
 0x2c2   : > { %v12163_v62 = vld [vmem:[#allocation8 + $0xbc8] sm:$0xf]  ;;  %v11908_v18 = vor.u32 %v15148_v13, %v11907_v63  ;;  %6485 = vmatpush.bf16.msra.mxu2 %v11172_v8  ;;  %v17110_v63 = vpop.f32.mrf.mxu2 }
 0x2c3   : > { %v15212_v2 = vld [vmem:[#allocation8 + $0xbe4] sm:$0xf0]  ;;  %16044 = vmatmul.msk.bf16.vlgmr.msra.gmra.mxu1 %vm16937_vm11, %v16948_v4  ;;  %17724 = vst [vmem:[#allocation30_spill] sm:$0xff] %v17110_v63  ;;  %v11371_v63 = vld [vmem:[#allocation8 + $0x590] sm:$0xf] }
 0x2c4   : > { %v12419_v7 = vld [vmem:[#allocation8 + $0xdc8] sm:$0xf]  ;;  %v12164_v24 = vor.u32 %v15212_v2, %v12163_v62  ;;  %6499 = vmatpush.bf16.msra.mxu3 %v11428_v48  ;;  %6506 = vmatpush.bf16.msrb.mxu0 %v11908_v18  ;;  %v6235_v18 = vpop.f32.mrf.mxu0 }
 0x2c5   : > { %v15276_v41 = vld [vmem:[#allocation8 + $0xde4] sm:$0xf0]  ;;  %16047 = vmatmul.msk.bf16.vlgmr.msra.gmra.mxu2 %vm16937_vm11, %v16954_v10 }
 0x2c6   : > { %v12675_v20 = vld [vmem:[#allocation8 + $0xfc8] sm:$0xf]  ;;  %v12420_v14 = vor.u32 %v15276_v41, %v12419_v7  ;;  %6520 = vmatpush.bf16.msrb.mxu1 %v12164_v24  ;;  %v6236_v24 = vadd.f32 %v6235_v18, %v6222_v15 }
 0x2c7   : > { %v15340_v32 = vld [vmem:[#allocation8 + $0xfe4] sm:$0xf0]  ;;  %16050 = vmatmul.msk.bf16.vlgmr.msra.gmra.mxu3 %vm16937_vm11, %v16960_v59 }
 0x2c8   : > { %v11875_v3 = vld [vmem:[#allocation8 + $0x988] sm:$0xf]  ;;  %v12676_v6 = vor.u32 %v15340_v32, %v12675_v20  ;;  %6534 = vmatpush.bf16.msrb.mxu2 %v12420_v14  ;;  %v17112_v20 = vpop.f32.mrf.mxu3  ;;  %v6249_v14 = vpop.f32.mrf.mxu1 }
 0x2c9   : > { %v15140_v29 = vld [vmem:[#allocation8 + $0x9a4] sm:$0xf0]  ;;  %17725 = vst [vmem:[#allocation31_spill] sm:$0xff] %v17112_v20  ;;  %v15520_v20 = vld [vmem:[#allocation8 + $0x158c] sm:$0xf] }
 0x2ca   : > { %v12131_v53 = vld [vmem:[#allocation8 + $0xb88] sm:$0xf]  ;;  %v11876_v57 = vor.u32 %v15140_v29, %v11875_v3  ;;  %6548 = vmatpush.bf16.msrb.mxu3 %v12676_v6 }
 0x2cb   : > { %v15204_v34 = vld [vmem:[#allocation8 + $0xba4] sm:$0xf0] }
 0x2cc   : > { %v12387_v28 = vld [vmem:[#allocation8 + $0xd88] sm:$0xf]  ;;  %v12132_v55 = vor.u32 %v15204_v34, %v12131_v53  ;;  %6507 = vmatpush.bf16.msrb.mxu0 %v11876_v57 }
 0x2cd   : > { %v15268_v54 = vld [vmem:[#allocation8 + $0xda4] sm:$0xf0] }
 0x2ce   : > { %v12643_v42 = vld [vmem:[#allocation8 + $0xf88] sm:$0xf]  ;;  %v12388_v36 = vor.u32 %v15268_v54, %v12387_v28  ;;  %6521 = vmatpush.bf16.msrb.mxu1 %v12132_v55  ;;  %v6250_v54 = vadd.f32 %v6249_v14, %v6236_v24 }
 0x2cf   : > { %v15332_v43 = vld [vmem:[#allocation8 + $0xfa4] sm:$0xf0] }
 0x2d0   : > { %v11843_v16 = vld [vmem:[#allocation8 + $0x948] sm:$0xf]  ;;  %v12644_v60 = vor.u32 %v15332_v43, %v12643_v42  ;;  %6535 = vmatpush.bf16.msrb.mxu2 %v12388_v36 }
 0x2d1   : > { %v15132_v30 = vld [vmem:[#allocation8 + $0x964] sm:$0xf0] }
 0x2d2   : > { %v12099_v44 = vld [vmem:[#allocation8 + $0xb48] sm:$0xf]  ;;  %v11844_v31 = vor.u32 %v15132_v30, %v11843_v16  ;;  %6549 = vmatpush.bf16.msrb.mxu3 %v12644_v60 }
 0x2d3   : > { %v15196_v45 = vld [vmem:[#allocation8 + $0xb64] sm:$0xf0] }
 0x2d4   : > { %v12355_v61 = vld [vmem:[#allocation8 + $0xd48] sm:$0xf]  ;;  %v12100_v47 = vor.u32 %v15196_v45, %v12099_v44  ;;  %6508 = vmatpush.bf16.msrb.mxu0 %v11844_v31 }
 0x2d5   : > { %v15260_v17 = vld [vmem:[#allocation8 + $0xd64] sm:$0xf0] }
 0x2d6   : > { %v12611_v39 = vld [vmem:[#allocation8 + $0xf48] sm:$0xf]  ;;  %v12356_v2 = vor.u32 %v15260_v17, %v12355_v61  ;;  %6522 = vmatpush.bf16.msrb.mxu1 %v12100_v47  ;;  %v6263_v17 = vpop.f32.mrf.mxu2 }
 0x2d7   : > { %v15324_v40 = vld [vmem:[#allocation8 + $0xf64] sm:$0xf0]  ;;  %v6264_v47 = vadd.f32 %v6263_v17, %v6250_v54 }
 0x2d8   : > { %v11811_v13 = vld [vmem:[#allocation8 + $0x908] sm:$0xf]  ;;  %v12612_v7 = vor.u32 %v15324_v40, %v12611_v39  ;;  %6536 = vmatpush.bf16.msrb.mxu2 %v12356_v2 }
 0x2d9   : > { %v15124_v62 = vld [vmem:[#allocation8 + $0x924] sm:$0xf0] }
 0x2da   : > { %v12067_v51 = vld [vmem:[#allocation8 + $0xb08] sm:$0xf]  ;;  %v11812_v37 = vor.u32 %v15124_v62, %v11811_v13  ;;  %6550 = vmatpush.bf16.msrb.mxu3 %v12612_v7  ;;  %v6277_v13 = vpop.f32.mrf.mxu3 }
 0x2db   : > { %v15188_v52 = vld [vmem:[#allocation8 + $0xb24] sm:$0xf0] }
 0x2dc   : > { %v12323_v41 = vld [vmem:[#allocation8 + $0xd08] sm:$0xf]  ;;  %v12068_v25 = vor.u32 %v15188_v52, %v12067_v51  ;;  %6509 = vmatpush.bf16.msrb.mxu0 %v11812_v37  ;;  %v17114_v52 = vadd.f32 %v6277_v13, %v6264_v47 }
 0x2dd   : > { %v15252_v32 = vld [vmem:[#allocation8 + $0xd24] sm:$0xf0] }
 0x2de   : > { %v12579_v8 = vld [vmem:[#allocation8 + $0xf08] sm:$0xf]  ;;  %v12324_v6 = vor.u32 %v15252_v32, %v12323_v41  ;;  %6523 = vmatpush.bf16.msrb.mxu1 %v12068_v25 }
 0x2df   : > { %v15316_v48 = vld [vmem:[#allocation8 + $0xf24] sm:$0xf0] }
 0x2e0   : > { %v11779_v3 = vld [vmem:[#allocation8 + $0x8c8] sm:$0xf]  ;;  %v12580_v5 = vor.u32 %v15316_v48, %v12579_v8  ;;  %6537 = vmatpush.bf16.msrb.mxu2 %v12324_v6 }
 0x2e1   : > { %v15116_v29 = vld [vmem:[#allocation8 + $0x8e4] sm:$0xf0] }
 0x2e2   : > { %v12035_v53 = vld [vmem:[#allocation8 + $0xac8] sm:$0xf]  ;;  %v11780_v55 = vor.u32 %v15116_v29, %v11779_v3  ;;  %6551 = vmatpush.bf16.msrb.mxu3 %v12580_v5 }
 0x2e3   : > { %v15180_v34 = vld [vmem:[#allocation8 + $0xae4] sm:$0xf0] }
 0x2e4   : > { %v12291_v28 = vld [vmem:[#allocation8 + $0xcc8] sm:$0xf]  ;;  %v12036_v15 = vor.u32 %v15180_v34, %v12035_v53  ;;  %6510 = vmatpush.bf16.msrb.mxu0 %v11780_v55 }
 0x2e5   : > { %v15244_v42 = vld [vmem:[#allocation8 + $0xce4] sm:$0xf0] }
 0x2e6   : > { %v12547_v43 = vld [vmem:[#allocation8 + $0xec8] sm:$0xf]  ;;  %v12292_v36 = vor.u32 %v15244_v42, %v12291_v28  ;;  %6524 = vmatpush.bf16.msrb.mxu1 %v12036_v15 }
 0x2e7   : > { %v15308_v57 = vld [vmem:[#allocation8 + $0xee4] sm:$0xf0] }
 0x2e8   : > { %v11747_v16 = vld [vmem:[#allocation8 + $0x888] sm:$0xf]  ;;  %v12548_v60 = vor.u32 %v15308_v57, %v12547_v43  ;;  %6538 = vmatpush.bf16.msrb.mxu2 %v12292_v36 }
 0x2e9   : > { %v15108_v30 = vld [vmem:[#allocation8 + $0x8a4] sm:$0xf0] }
 0x2ea   : > { %v12003_v44 = vld [vmem:[#allocation8 + $0xa88] sm:$0xf]  ;;  %v11748_v62 = vor.u32 %v15108_v30, %v11747_v16  ;;  %6552 = vmatpush.bf16.msrb.mxu3 %v12548_v60 }
 0x2eb   : > { %v15172_v45 = vld [vmem:[#allocation8 + $0xaa4] sm:$0xf0] }
 0x2ec   : > { %v12259_v61 = vld [vmem:[#allocation8 + $0xc88] sm:$0xf]  ;;  %v12004_v2 = vor.u32 %v15172_v45, %v12003_v44  ;;  %6511 = vmatpush.bf16.msrb.mxu0 %v11748_v62 }
 0x2ed   : > { %v15236_v39 = vld [vmem:[#allocation8 + $0xca4] sm:$0xf0] }
 0x2ee   : > { %v12515_v40 = vld [vmem:[#allocation8 + $0xe88] sm:$0xf]  ;;  %v12260_v41 = vor.u32 %v15236_v39, %v12259_v61  ;;  %6525 = vmatpush.bf16.msrb.mxu1 %v12004_v2 }
 0x2ef   : > { %v15300_v31 = vld [vmem:[#allocation8 + $0xea4] sm:$0xf0] }
 0x2f0   : > { %v11715_v7 = vld [vmem:[#allocation8 + $0x848] sm:$0xf]  ;;  %v12516_v32 = vor.u32 %v15300_v31, %v12515_v40  ;;  %6539 = vmatpush.bf16.msrb.mxu2 %v12260_v41 }
 0x2f1   : > { %v15100_v51 = vld [vmem:[#allocation8 + $0x864] sm:$0xf0] }
 0x2f2   : > { %v11971_v8 = vld [vmem:[#allocation8 + $0xa48] sm:$0xf]  ;;  %v11716_v29 = vor.u32 %v15100_v51, %v11715_v7  ;;  %6553 = vmatpush.bf16.msrb.mxu3 %v12516_v32 }
 0x2f3   : > { %v15164_v48 = vld [vmem:[#allocation8 + $0xa64] sm:$0xf0] }
 0x2f4   : > { %v12227_v18 = vld [vmem:[#allocation8 + $0xc48] sm:$0xf]  ;;  %v11972_v14 = vor.u32 %v15164_v48, %v11971_v8  ;;  %6512 = vmatpush.bf16.msrb.mxu0 %v11716_v29 }
 0x2f5   : > { %v15228_v24 = vld [vmem:[#allocation8 + $0xc64] sm:$0xf0] }
 0x2f6   : > { %v12483_v37 = vld [vmem:[#allocation8 + $0xe48] sm:$0xf]  ;;  %v12228_v34 = vor.u32 %v15228_v24, %v12227_v18  ;;  %6526 = vmatpush.bf16.msrb.mxu1 %v11972_v14  ;;  %v17116_v24 = vpop.f32.mrf.mxu0  ;;  %v17118_v14 = vpop.f32.mrf.mxu1 }
 0x2f7   : > { %v15292_v25 = vld [vmem:[#allocation8 + $0xe64] sm:$0xf0]  ;;  %17726 = vst [vmem:[#allocation32_spill] sm:$0xff] %v17116_v24  ;;  %v13157_v24 = vld [vmem:[#allocation8 + $0x13a8] sm:$0xf0] }
 0x2f8   : > { %v11683_v3 = vld [vmem:[#allocation8 + $0x808] sm:$0xf]  ;;  %v12484_v28 = vor.u32 %v15292_v25, %v12483_v37  ;;  %6540 = vmatpush.bf16.msrb.mxu2 %v12228_v34  ;;  %17727 = vst [vmem:[#allocation33_spill] sm:$0xff] %v17118_v14  ;;  %v15456_v14 = vld [vmem:[#allocation8 + $0x138c] sm:$0xf] }
 0x2f9   : > { %v15092_v6 = vld [vmem:[#allocation8 + $0x824] sm:$0xf0] }
 0x2fa   : > { %v11939_v5 = vld [vmem:[#allocation8 + $0xa08] sm:$0xf]  ;;  %v11684_v60 = vor.u32 %v15092_v6, %v11683_v3  ;;  %6554 = vmatpush.bf16.msrb.mxu3 %v12484_v28 }
 0x2fb   : > { %v15156_v53 = vld [vmem:[#allocation8 + $0xa24] sm:$0xf0] }
 0x2fc   : > { %v12195_v54 = vld [vmem:[#allocation8 + $0xc08] sm:$0xf]  ;;  %v11940_v44 = vor.u32 %v15156_v53, %v11939_v5  ;;  %6513 = vmatpush.bf16.msrb.mxu0 %v11684_v60 }
 0x2fd   : > { %v15220_v42 = vld [vmem:[#allocation8 + $0xc24] sm:$0xf0] }
 0x2fe   : > { %v12451_v43 = vld [vmem:[#allocation8 + $0xe08] sm:$0xf]  ;;  %v12196_v39 = vor.u32 %v15220_v42, %v12195_v54  ;;  %6527 = vmatpush.bf16.msrb.mxu1 %v11940_v44 }
 0x2ff   : > { %v15284_v57 = vld [vmem:[#allocation8 + $0xe24] sm:$0xf0]  ;;  %6514 = vmatmul.bf16.vlgmr.msrb.gmra.mxu0 %v16989_v58 }
 0x300   : > { %v12931_v55 = vld [vmem:[#allocation8 + $0x11c8] sm:$0xf]  ;;  %v12452_v40 = vor.u32 %v15284_v57, %v12451_v43  ;;  %6541 = vmatpush.bf16.msrb.mxu2 %v12196_v39 }
 0x301   : > { %v15404_v15 = vld [vmem:[#allocation8 + $0x11e4] sm:$0xf0]  ;;  %6528 = vmatmul.bf16.vlgmr.msrb.gmra.mxu1 %v16991_v46 }
 0x302   : > { %v13187_v16 = vld [vmem:[#allocation8 + $0x13c8] sm:$0xf]  ;;  %v12932_v31 = vor.u32 %v15404_v15, %v12931_v55  ;;  %6555 = vmatpush.bf16.msrb.mxu3 %v12452_v40  ;;  %v17690_v15 = vperm.slane %v17077_v1, 1 }
 0x303   : > { %v15468_v30 = vld [vmem:[#allocation8 + $0x13e4] sm:$0xf0]  ;;  %6542 = vmatmul.bf16.vlgmr.msrb.gmra.mxu2 %v16993_v11 }
 0x304   : > { %v13443_v36 = vld [vmem:[#allocation8 + $0x15c8] sm:$0xf]  ;;  %v13188_v47 = vor.u32 %v15468_v30, %v13187_v16  ;;  %6562 = vmatpush.bf16.msra.mxu0 %v12932_v31 }
 0x305   : > { %v15532_v45 = vld [vmem:[#allocation8 + $0x15e4] sm:$0xf0]  ;;  %6556 = vmatmul.bf16.vlgmr.msrb.gmra.mxu3 %v16995_v12 }
 0x306   : > { %v13699_v61 = vld [vmem:[#allocation8 + $0x17c8] sm:$0xf]  ;;  %v13444_v2 = vor.u32 %v15532_v45, %v13443_v36  ;;  %6576 = vmatpush.bf16.msra.mxu1 %v13188_v47  ;;  %v6291_v47 = vpop.f32.mrf.mxu0 }
 0x307   : > { %v15596_v17 = vld [vmem:[#allocation8 + $0x17e4] sm:$0xf0] }
 0x308   : > { %v12899_v13 = vld [vmem:[#allocation8 + $0x1188] sm:$0xf]  ;;  %v13700_v7 = vor.u32 %v15596_v17, %v13699_v61  ;;  %6590 = vmatpush.bf16.msra.mxu2 %v13444_v2  ;;  %v17125_v17 = vpop.f32.mrf.mxu2 }
 0x309   : > { %v15396_v62 = vld [vmem:[#allocation8 + $0x11a4] sm:$0xf0]  ;;  %17728 = vst [vmem:[#allocation34_spill] sm:$0xff] %v17125_v17 }
 0x30a   : > { %v13155_v51 = vld [vmem:[#allocation8 + $0x1388] sm:$0xf]  ;;  %v12900_v37 = vor.u32 %v15396_v62, %v12899_v13  ;;  %6604 = vmatpush.bf16.msra.mxu3 %v13700_v7  ;;  %v17127_v13 = vpop.f32.mrf.mxu3  ;;  %v6292_v62 = vadd.f32 %v6291_v47, %v17690_v15  ;;  %v15200_v15 = vld [vmem:[#allocation8 + $0xb8c] sm:$0xf] }
 0x30b   : > { %v15460_v41 = vld [vmem:[#allocation8 + $0x13a4] sm:$0xf0]  ;;  %17729 = vst [vmem:[#allocation35_spill] sm:$0xff] %v17127_v13  ;;  %v15264_v13 = vld [vmem:[#allocation8 + $0xd8c] sm:$0xf] }
 0x30c   : > { %v13411_v32 = vld [vmem:[#allocation8 + $0x1588] sm:$0xf]  ;;  %v13156_v25 = vor.u32 %v15460_v41, %v13155_v51  ;;  %6563 = vmatpush.bf16.msra.mxu0 %v12900_v37 }
 0x30d   : > { %v15524_v8 = vld [vmem:[#allocation8 + $0x15a4] sm:$0xf0] }
 0x30e   : > { %v13667_v48 = vld [vmem:[#allocation8 + $0x1788] sm:$0xf]  ;;  %v13412_v6 = vor.u32 %v15524_v8, %v13411_v32  ;;  %6577 = vmatpush.bf16.msra.mxu1 %v13156_v25  ;;  %v6305_v32 = vpop.f32.mrf.mxu1 }
 0x30f   : > { %v15588_v18 = vld [vmem:[#allocation8 + $0x17a4] sm:$0xf0] }
 0x310   : > { %v12867_v3 = vld [vmem:[#allocation8 + $0x1148] sm:$0xf]  ;;  %v13668_v5 = vor.u32 %v15588_v18, %v13667_v48  ;;  %6591 = vmatpush.bf16.msra.mxu2 %v13412_v6 }
 0x311   : > { %v15388_v29 = vld [vmem:[#allocation8 + $0x1164] sm:$0xf0] }
 0x312   : > { %v13123_v53 = vld [vmem:[#allocation8 + $0x1348] sm:$0xf]  ;;  %v12868_v57 = vor.u32 %v15388_v29, %v12867_v3  ;;  %6605 = vmatpush.bf16.msra.mxu3 %v13668_v5  ;;  %v6306_v3 = vadd.f32 %v6305_v32, %v6292_v62 }
 0x313   : > { %v15452_v34 = vld [vmem:[#allocation8 + $0x1364] sm:$0xf0] }
 0x314   : > { %v13379_v28 = vld [vmem:[#allocation8 + $0x1548] sm:$0xf]  ;;  %v13124_v55 = vor.u32 %v15452_v34, %v13123_v53  ;;  %6564 = vmatpush.bf16.msra.mxu0 %v12868_v57 }
 0x315   : > { %v15516_v54 = vld [vmem:[#allocation8 + $0x1564] sm:$0xf0] }
 0x316   : > { %v13635_v42 = vld [vmem:[#allocation8 + $0x1748] sm:$0xf]  ;;  %v13380_v36 = vor.u32 %v15516_v54, %v13379_v28  ;;  %6578 = vmatpush.bf16.msra.mxu1 %v13124_v55 }
 0x317   : > { %v15580_v43 = vld [vmem:[#allocation8 + $0x1764] sm:$0xf0] }
 0x318   : > { %v12835_v16 = vld [vmem:[#allocation8 + $0x1108] sm:$0xf]  ;;  %v13636_v60 = vor.u32 %v15580_v43, %v13635_v42  ;;  %6592 = vmatpush.bf16.msra.mxu2 %v13380_v36 }
 0x319   : > { %v15380_v30 = vld [vmem:[#allocation8 + $0x1124] sm:$0xf0] }
 0x31a   : > { %v13091_v44 = vld [vmem:[#allocation8 + $0x1308] sm:$0xf]  ;;  %v12836_v2 = vor.u32 %v15380_v30, %v12835_v16  ;;  %6606 = vmatpush.bf16.msra.mxu3 %v13636_v60  ;;  %v6319_v30 = vpop.f32.mrf.mxu2 }
 0x31b   : > { %v15444_v45 = vld [vmem:[#allocation8 + $0x1324] sm:$0xf0] }
 0x31c   : > { %v13347_v61 = vld [vmem:[#allocation8 + $0x1508] sm:$0xf]  ;;  %v13092_v7 = vor.u32 %v15444_v45, %v13091_v44  ;;  %6565 = vmatpush.bf16.msra.mxu0 %v12836_v2  ;;  %v6320_v45 = vadd.f32 %v6319_v30, %v6306_v3  ;;  %v11141_v30 = vld [vmem:[#allocation8 + $0x3e8] sm:$0xf0] }
 0x31d   : > { %v15508_v39 = vld [vmem:[#allocation8 + $0x1524] sm:$0xf0] }
 0x31e   : > { %v13603_v40 = vld [vmem:[#allocation8 + $0x1708] sm:$0xf]  ;;  %v13348_v8 = vor.u32 %v15508_v39, %v13347_v61  ;;  %6579 = vmatpush.bf16.msra.mxu1 %v13092_v7  ;;  %v6333_v61 = vpop.f32.mrf.mxu3 }
 0x31f   : > { %v15572_v31 = vld [vmem:[#allocation8 + $0x1724] sm:$0xf0]  ;;  %v17131_v62 = vadd.f32 %v6333_v61, %v6320_v45  ;;  %v11397_v45 = vld [vmem:[#allocation8 + $0x5e8] sm:$0xf0] }
 0x320   : > { %v12803_v51 = vld [vmem:[#allocation8 + $0x10c8] sm:$0xf]  ;;  %v13604_v48 = vor.u32 %v15572_v31, %v13603_v40  ;;  %6593 = vmatpush.bf16.msra.mxu2 %v13348_v8  ;;  %v15080_v61 = vld [vmem:[#allocation8 + $0x7cc] sm:$0xf] }
 0x321   : > { %v15372_v41 = vld [vmem:[#allocation8 + $0x10e4] sm:$0xf0] }
 0x322   : > { %v13059_v18 = vld [vmem:[#allocation8 + $0x12c8] sm:$0xf]  ;;  %v12804_v53 = vor.u32 %v15372_v41, %v12803_v51  ;;  %6607 = vmatpush.bf16.msra.mxu3 %v13604_v48 }
 0x323   : > { %v15436_v37 = vld [vmem:[#allocation8 + $0x12e4] sm:$0xf0] }
 0x324   : > { %v13315_v25 = vld [vmem:[#allocation8 + $0x14c8] sm:$0xf]  ;;  %v13060_v34 = vor.u32 %v15436_v37, %v13059_v18  ;;  %6566 = vmatpush.bf16.msra.mxu0 %v12804_v53 }
 0x325   : > { %v15500_v29 = vld [vmem:[#allocation8 + $0x14e4] sm:$0xf0] }
 0x326   : > { %v13571_v6 = vld [vmem:[#allocation8 + $0x16c8] sm:$0xf]  ;;  %v13316_v42 = vor.u32 %v15500_v29, %v13315_v25  ;;  %6580 = vmatpush.bf16.msra.mxu1 %v13060_v34 }
 0x327   : > { %v15564_v5 = vld [vmem:[#allocation8 + $0x16e4] sm:$0xf0] }
 0x328   : > { %v12771_v28 = vld [vmem:[#allocation8 + $0x1088] sm:$0xf]  ;;  %v13572_v43 = vor.u32 %v15564_v5, %v13571_v6  ;;  %6594 = vmatpush.bf16.msra.mxu2 %v13316_v42 }
 0x329   : > { %v15364_v54 = vld [vmem:[#allocation8 + $0x10a4] sm:$0xf0] }
 0x32a   : > { %v13027_v57 = vld [vmem:[#allocation8 + $0x1288] sm:$0xf]  ;;  %v12772_v39 = vor.u32 %v15364_v54, %v12771_v28  ;;  %6608 = vmatpush.bf16.msra.mxu3 %v13572_v43 }
 0x32b   : > { %v15428_v55 = vld [vmem:[#allocation8 + $0x12a4] sm:$0xf0] }
 0x32c   : > { %v13283_v16 = vld [vmem:[#allocation8 + $0x1488] sm:$0xf]  ;;  %v13028_v40 = vor.u32 %v15428_v55, %v13027_v57  ;;  %6567 = vmatpush.bf16.msra.mxu0 %v12772_v39  ;;  %v14888_v57 = vld [vmem:[#allocation8 + $0x1cc] sm:$0xf] }
 0x32d   : > { %v15492_v36 = vld [vmem:[#allocation8 + $0x14a4] sm:$0xf0]  ;;  %v10885_v55 = vld [vmem:[#allocation8 + $0x1e8] sm:$0xf0] }
 0x32e   : > { %v13539_v60 = vld [vmem:[#allocation8 + $0x1688] sm:$0xf]  ;;  %v13284_v2 = vor.u32 %v15492_v36, %v13283_v16  ;;  %6581 = vmatpush.bf16.msra.mxu1 %v13028_v40  ;;  %v14952_v16 = vld [vmem:[#allocation8 + $0x3cc] sm:$0xf] }
 0x32f   : > { %v15556_v44 = vld [vmem:[#allocation8 + $0x16a4] sm:$0xf0]  ;;  %v15016_v36 = vld [vmem:[#allocation8 + $0x5cc] sm:$0xf] }
 0x330   : > { %v12739_v31 = vld [vmem:[#allocation8 + $0x1048] sm:$0xf]  ;;  %v13540_v7 = vor.u32 %v15556_v44, %v13539_v60  ;;  %6595 = vmatpush.bf16.msra.mxu2 %v13284_v2  ;;  %v11653_v39 = vld [vmem:[#allocation8 + $0x7e8] sm:$0xf0]  ;;  %v11144_v2 = vor.u32 %v14952_v16, %v11141_v30 }
 0x331   : > { %v15356_v47 = vld [vmem:[#allocation8 + $0x1064] sm:$0xf0]  ;;  %v11333_v16 = vld [vmem:[#allocation8 + $0x568] sm:$0xf0] }
 0x332   : > { %v12995_v51 = vld [vmem:[#allocation8 + $0x1248] sm:$0xf]  ;;  %v12740_v25 = vor.u32 %v15356_v47, %v12739_v31  ;;  %6609 = vmatpush.bf16.msra.mxu3 %v13540_v7  ;;  %v10888_v47 = vor.u32 %v14888_v57, %v10885_v55  ;;  %v14880_v7 = vld [vmem:[#allocation8 + $0x18c] sm:$0xf] }
 0x333   : > { %v15420_v41 = vld [vmem:[#allocation8 + $0x1264] sm:$0xf0]  ;;  %v11077_v57 = vld [vmem:[#allocation8 + $0x368] sm:$0xf0] }
 0x334   : > { %v13251_v32 = vld [vmem:[#allocation8 + $0x1448] sm:$0xf]  ;;  %v12996_v3 = vor.u32 %v15420_v41, %v12995_v51  ;;  %6568 = vmatpush.bf16.msra.mxu0 %v12740_v25  ;;  %v10853_v51 = vld [vmem:[#allocation8 + $0x1a8] sm:$0xf0]  ;;  %v11400_v41 = vor.u32 %v15016_v36, %v11397_v45 }
 0x335   : > { %v15484_v8 = vld [vmem:[#allocation8 + $0x1464] sm:$0xf0]  ;;  %v15072_v25 = vld [vmem:[#allocation8 + $0x78c] sm:$0xf] }
 0x336   : > { %v13507_v48 = vld [vmem:[#allocation8 + $0x1648] sm:$0xf]  ;;  %v13252_v53 = vor.u32 %v15484_v8, %v13251_v32  ;;  %6582 = vmatpush.bf16.msra.mxu1 %v12996_v3  ;;  %v11656_v32 = vor.u32 %v15080_v61, %v11653_v39  ;;  %v14944_v8 = vld [vmem:[#allocation8 + $0x38c] sm:$0xf] }
 0x337   : > { %v15548_v18 = vld [vmem:[#allocation8 + $0x1664] sm:$0xf0]  ;;  %v11621_v3 = vld [vmem:[#allocation8 + $0x7a8] sm:$0xf0] }
 0x338   : > { %v12707_v37 = vld [vmem:[#allocation8 + $0x1008] sm:$0xf]  ;;  %v13508_v34 = vor.u32 %v15548_v18, %v13507_v48  ;;  %6596 = vmatpush.bf16.msra.mxu2 %v13252_v53  ;;  %v11109_v48 = vld [vmem:[#allocation8 + $0x3a8] sm:$0xf0] }
 0x339   : > { %v15348_v29 = vld [vmem:[#allocation8 + $0x1024] sm:$0xf0]  ;;  %v15008_v18 = vld [vmem:[#allocation8 + $0x58c] sm:$0xf] }
 0x33a   : > { %v12963_v6 = vld [vmem:[#allocation8 + $0x1208] sm:$0xf]  ;;  %v12708_v60 = vor.u32 %v15348_v29, %v12707_v37  ;;  %6610 = vmatpush.bf16.msra.mxu3 %v13508_v34  ;;  %v11365_v37 = vld [vmem:[#allocation8 + $0x5a8] sm:$0xf0]  ;;  %v17133_v29 = vpop.f32.mrf.mxu0 }
 0x33b   : > { %v15412_v5 = vld [vmem:[#allocation8 + $0x1224] sm:$0xf0]  ;;  %v14872_v53 = vld [vmem:[#allocation8 + $0x14c] sm:$0xf] }
 0x33c   : > { %v13219_v28 = vld [vmem:[#allocation8 + $0x1408] sm:$0xf]  ;;  %v12964_v44 = vor.u32 %v15412_v5, %v12963_v6  ;;  %6569 = vmatpush.bf16.msra.mxu0 %v12708_v60  ;;  %v10856_v6 = vor.u32 %v14880_v7, %v10853_v51  ;;  %v11112_v5 = vor.u32 %v14944_v8, %v11109_v48  ;;  %v10821_v34 = vld [vmem:[#allocation8 + $0x168] sm:$0xf0]  ;;  %v17141_v7 = vpop.f32.mrf.mxu2  ;;  %v17143_v48 = vpop.f32.mrf.mxu3 }
 0x33d   : > { %v15476_v54 = vld [vmem:[#allocation8 + $0x1424] sm:$0xf0]  ;;  %v15000_v55 = vld [vmem:[#allocation8 + $0x54c] sm:$0xf]  ;;  %v10824_v60 = vor.u32 %v14872_v53, %v10821_v34  ;;  %17730 = vst [vmem:[#allocation36_spill] sm:$0xff] %v17143_v48 }
 0x33e   : > { %v13475_v42 = vld [vmem:[#allocation8 + $0x1608] sm:$0xf]  ;;  %v13220_v40 = vor.u32 %v15476_v54, %v13219_v28  ;;  %6583 = vmatpush.bf16.msra.mxu1 %v12964_v44  ;;  %v17135_v28 = vpop.f32.mrf.mxu1  ;;  %v11368_v54 = vor.u32 %v15008_v18, %v11365_v37  ;;  %v15064_v30 = vld [vmem:[#allocation8 + $0x74c] sm:$0xf]  ;;  %v11336_v39 = vor.u32 %v15000_v55, %v11333_v16  ;;  %v15202_v48 = vld [vmem:[#allocation8 + $0xb9c] sm:$0xf] }
 0x33f   : > { %v15540_v43 = vld [vmem:[#allocation8 + $0x1624] sm:$0xf0]  ;;  %6570 = vmatmul.bf16.vlgmr.msra.gmra.mxu0 %v17049_v26  ;;  %v11589_v36 = vld [vmem:[#allocation8 + $0x768] sm:$0xf0] }
 0x340   : > { %v13476_v31 = vor.u32 %v15540_v43, %v13475_v42  ;;  %6597 = vmatpush.bf16.msra.mxu2 %v13220_v40  ;;  %6618 = vmatpush.bf16.msrb.mxu0 %v10888_v47  ;;  %v11624_v42 = vor.u32 %v15072_v25, %v11621_v3  ;;  %v14936_v43 = vld [vmem:[#allocation8 + $0x34c] sm:$0xf]  ;;  %v11592_v40 = vor.u32 %v15064_v30, %v11589_v36 }
 0x341   : > { %6584 = vmatmul.bf16.vlgmr.msra.gmra.mxu1 %v17051_v33  ;;  %v11080_v44 = vor.u32 %v14936_v43, %v11077_v57  ;;  %v14864_v45 = vld [vmem:[#allocation8 + $0x10c] sm:$0xf] }
 0x342   : > { %6611 = vmatpush.bf16.msra.mxu3 %v13476_v31  ;;  %6632 = vmatpush.bf16.msrb.mxu1 %v11144_v2  ;;  %v10789_v61 = vld [vmem:[#allocation8 + $0x128] sm:$0xf0]  ;;  %v6347_v8 = vpop.f32.mrf.mxu0 }
 0x343   : > { %6598 = vmatmul.bf16.vlgmr.msra.gmra.mxu2 %v17053_v49  ;;  %v14928_v31 = vld [vmem:[#allocation8 + $0x30c] sm:$0xf]  ;;  %v6348_v18 = vadd.f32 %v6347_v8, %v17131_v62  ;;  %v10792_v37 = vor.u32 %v14864_v45, %v10789_v61 }
 0x344   : > { %6646 = vmatpush.bf16.msrb.mxu2 %v11400_v41  ;;  %6619 = vmatpush.bf16.msrb.mxu0 %v10856_v6  ;;  %v11045_v47 = vld [vmem:[#allocation8 + $0x328] sm:$0xf0]  ;;  %v6389_v8 = vpop.f32.mrf.mxu3 }
 0x345   : > { %6612 = vmatmul.bf16.vlgmr.msra.gmra.mxu3 %v17055_v23  ;;  %v14992_v2 = vld [vmem:[#allocation8 + $0x50c] sm:$0xf]  ;;  %v11048_v25 = vor.u32 %v14928_v31, %v11045_v47  ;;  %v6375_v47 = vpop.f32.mrf.mxu2 }
 0x346   : > { %6660 = vmatpush.bf16.msrb.mxu3 %v11656_v32  ;;  %6633 = vmatpush.bf16.msrb.mxu1 %v11112_v5  ;;  %v11301_v51 = vld [vmem:[#allocation8 + $0x528] sm:$0xf0]  ;;  %v6361_v5 = vpop.f32.mrf.mxu1 }
 0x347   : > { %v15056_v41 = vld [vmem:[#allocation8 + $0x70c] sm:$0xf]  ;;  %v11304_v53 = vor.u32 %v14992_v2, %v11301_v51  ;;  %v6362_v57 = vadd.f32 %v6361_v5, %v6348_v18 }
 0x348   : > { %6647 = vmatpush.bf16.msrb.mxu2 %v11368_v54  ;;  %v11557_v32 = vld [vmem:[#allocation8 + $0x728] sm:$0xf0]  ;;  %6620 = vmatpush.bf16.msrb.mxu0 %v10824_v60 }
 0x349   : > { %v14856_v3 = vld [vmem:[#allocation8 + $0xcc] sm:$0xf]  ;;  %v11560_v34 = vor.u32 %v15056_v41, %v11557_v32  ;;  %v6376_v32 = vadd.f32 %v6375_v47, %v6362_v57 }
 0x34a   : > { %6661 = vmatpush.bf16.msrb.mxu3 %v11624_v42  ;;  %6634 = vmatpush.bf16.msrb.mxu1 %v11080_v44  ;;  %v10757_v6 = vld [vmem:[#allocation8 + $0xe8] sm:$0xf0] }
 0x34b   : > { %v14920_v54 = vld [vmem:[#allocation8 + $0x2cc] sm:$0xf]  ;;  %v10760_v36 = vor.u32 %v14856_v3, %v10757_v6  ;;  %v17146_v6 = vadd.f32 %v6389_v8, %v6376_v32 }
 0x34c   : > { %6648 = vmatpush.bf16.msrb.mxu2 %v11336_v39  ;;  %v11013_v42 = vld [vmem:[#allocation8 + $0x2e8] sm:$0xf0]  ;;  %6621 = vmatpush.bf16.msrb.mxu0 %v10792_v37 }
 0x34d   : > { %v14984_v43 = vld [vmem:[#allocation8 + $0x4cc] sm:$0xf]  ;;  %v11016_v62 = vor.u32 %v14920_v54, %v11013_v42 }
 0x34e   : > { %6662 = vmatpush.bf16.msrb.mxu3 %v11592_v40  ;;  %v11269_v55 = vld [vmem:[#allocation8 + $0x4e8] sm:$0xf0]  ;;  %6635 = vmatpush.bf16.msrb.mxu1 %v11048_v25 }
 0x34f   : > { %v15048_v16 = vld [vmem:[#allocation8 + $0x6cc] sm:$0xf]  ;;  %v11272_v45 = vor.u32 %v14984_v43, %v11269_v55 }
 0x350   : > { %v11525_v30 = vld [vmem:[#allocation8 + $0x6e8] sm:$0xf0]  ;;  %6649 = vmatpush.bf16.msrb.mxu2 %v11304_v53  ;;  %6622 = vmatpush.bf16.msrb.mxu0 %v10760_v36 }
 0x351   : > { %v14848_v60 = vld [vmem:[#allocation8 + $0x8c] sm:$0xf]  ;;  %v11528_v61 = vor.u32 %v15048_v16, %v11525_v30 }
 0x352   : > { %v10725_v44 = vld [vmem:[#allocation8 + $0xa8] sm:$0xf0]  ;;  %6663 = vmatpush.bf16.msrb.mxu3 %v11560_v34  ;;  %6636 = vmatpush.bf16.msrb.mxu1 %v11016_v62 }
 0x353   : > { %v14912_v39 = vld [vmem:[#allocation8 + $0x28c] sm:$0xf]  ;;  %v10728_v18 = vor.u32 %v14848_v60, %v10725_v44 }
 0x354   : > { %v10981_v40 = vld [vmem:[#allocation8 + $0x2a8] sm:$0xf0]  ;;  %6650 = vmatpush.bf16.msrb.mxu2 %v11272_v45 }
 0x355   : > { %v14976_v31 = vld [vmem:[#allocation8 + $0x48c] sm:$0xf]  ;;  %v10984_v37 = vor.u32 %v14912_v39, %v10981_v40  ;;  %6623 = vmatpush.bf16.msrb.mxu0 %v10728_v18 }
 0x356   : > { %v11237_v2 = vld [vmem:[#allocation8 + $0x4a8] sm:$0xf0]  ;;  %6664 = vmatpush.bf16.msrb.mxu3 %v11528_v61 }
 0x357   : > { %v15040_v51 = vld [vmem:[#allocation8 + $0x68c] sm:$0xf]  ;;  %v11240_v5 = vor.u32 %v14976_v31, %v11237_v2  ;;  %6637 = vmatpush.bf16.msrb.mxu1 %v10984_v37 }
 0x358   : > { %v11493_v41 = vld [vmem:[#allocation8 + $0x6a8] sm:$0xf0] }
 0x359   : > { %v14840_v25 = vld [vmem:[#allocation8 + $0x4c] sm:$0xf]  ;;  %v11496_v53 = vor.u32 %v15040_v51, %v11493_v41  ;;  %6651 = vmatpush.bf16.msrb.mxu2 %v11240_v5 }
 0x35a   : > { %v10693_v3 = vld [vmem:[#allocation8 + $0x68] sm:$0xf0] }
 0x35b   : > { %v14904_v34 = vld [vmem:[#allocation8 + $0x24c] sm:$0xf]  ;;  %v10696_v30 = vor.u32 %v14840_v25, %v10693_v3  ;;  %6665 = vmatpush.bf16.msrb.mxu3 %v11496_v53 }
 0x35c   : > { %v10949_v54 = vld [vmem:[#allocation8 + $0x268] sm:$0xf0] }
 0x35d   : > { %v14968_v42 = vld [vmem:[#allocation8 + $0x44c] sm:$0xf]  ;;  %v10952_v36 = vor.u32 %v14904_v34, %v10949_v54  ;;  %6624 = vmatpush.bf16.msrb.mxu0 %v10696_v30 }
 0x35e   : > { %v11205_v43 = vld [vmem:[#allocation8 + $0x468] sm:$0xf0] }
 0x35f   : > { %v15032_v55 = vld [vmem:[#allocation8 + $0x64c] sm:$0xf]  ;;  %v11208_v45 = vor.u32 %v14968_v42, %v11205_v43  ;;  %6638 = vmatpush.bf16.msrb.mxu1 %v10952_v36 }
 0x360   : > { %v11461_v16 = vld [vmem:[#allocation8 + $0x668] sm:$0xf0] }
 0x361   : > { %v14832_v57 = vld [vmem:[#allocation8 + $0xc] sm:$0xf]  ;;  %v11464_v61 = vor.u32 %v15032_v55, %v11461_v16  ;;  %6652 = vmatpush.bf16.msrb.mxu2 %v11208_v45 }
 0x362   : > { %v10661_v62 = vld [vmem:[#allocation8 + $0x28] sm:$0xf0] }
 0x363   : > { %v14896_v60 = vld [vmem:[#allocation8 + $0x20c] sm:$0xf]  ;;  %v10664_v18 = vor.u32 %v14832_v57, %v10661_v62  ;;  %6666 = vmatpush.bf16.msrb.mxu3 %v11464_v61  ;;  %v17148_v62 = vpop.f32.mrf.mxu0 }
 0x364   : > { %v10917_v44 = vld [vmem:[#allocation8 + $0x228] sm:$0xf0]  ;;  %17731 = vst [vmem:[#allocation37_spill] sm:$0xff] %v17148_v62  ;;  %v11379_v62 = vld [vmem:[#allocation8 + $0x598] sm:$0xf] }
 0x365   : > { %v14960_v39 = vld [vmem:[#allocation8 + $0x40c] sm:$0xf]  ;;  %v10920_v37 = vor.u32 %v14896_v60, %v10917_v44  ;;  %6625 = vmatpush.bf16.msrb.mxu0 %v10664_v18  ;;  %v12136_v44 = vor.u32 %v15200_v15, %v12133_v9 }
 0x366   : > { %v11173_v40 = vld [vmem:[#allocation8 + $0x428] sm:$0xf0] }
 0x367   : > { %v15024_v31 = vld [vmem:[#allocation8 + $0x60c] sm:$0xf]  ;;  %v11176_v5 = vor.u32 %v14960_v39, %v11173_v40  ;;  %6639 = vmatpush.bf16.msrb.mxu1 %v10920_v37  ;;  %v17150_v39 = vpop.f32.mrf.mxu1 }
 0x368   : > { %v11429_v47 = vld [vmem:[#allocation8 + $0x628] sm:$0xf0]  ;;  %17732 = vst [vmem:[#allocation38_spill] sm:$0xff] %v17150_v39  ;;  %16053 = vmatmul.msk.bf16.vlgmr.msrb.gmra.mxu0 %vm16937_vm11, %v16942_v38  ;;  %v12395_v39 = vld [vmem:[#allocation8 + $0xd90] sm:$0xf] }
 0x369   : > { %v15144_v2 = vld [vmem:[#allocation8 + $0x9cc] sm:$0xf]  ;;  %v11432_v53 = vor.u32 %v15024_v31, %v11429_v47  ;;  %6653 = vmatpush.bf16.msrb.mxu2 %v11176_v5  ;;  %v17164_v5 = vpop.f32.mrf.mxu2 }
 0x36a   : > { %v11909_v51 = vld [vmem:[#allocation8 + $0x9e8] sm:$0xf0]  ;;  %16056 = vmatmul.msk.bf16.vlgmr.msrb.gmra.mxu1 %vm16937_vm11, %v16948_v4  ;;  %17733 = vst [vmem:[#allocation39_spill] sm:$0xff] %v17164_v5  ;;  %v12139_v5 = vld [vmem:[#allocation8 + $0xb90] sm:$0xf] }
 0x36b   : > { %v15208_v41 = vld [vmem:[#allocation8 + $0xbcc] sm:$0xf]  ;;  %v11912_v54 = vor.u32 %v15144_v2, %v11909_v51  ;;  %6667 = vmatpush.bf16.msrb.mxu3 %v11432_v53 }
 0x36c   : > { %v12165_v32 = vld [vmem:[#allocation8 + $0xbe8] sm:$0xf0]  ;;  %16059 = vmatmul.msk.bf16.vlgmr.msrb.gmra.mxu2 %vm16937_vm11, %v16954_v10 }
 0x36d   : > { %v15272_v8 = vld [vmem:[#allocation8 + $0xdcc] sm:$0xf]  ;;  %v12168_v42 = vor.u32 %v15208_v41, %v12165_v32  ;;  %6674 = vmatpush.bf16.msra.mxu0 %v11912_v54 }
 0x36e   : > { %v12421_v25 = vld [vmem:[#allocation8 + $0xde8] sm:$0xf0]  ;;  %16062 = vmatmul.msk.bf16.vlgmr.msrb.gmra.mxu3 %vm16937_vm11, %v16960_v59 }
 0x36f   : > { %v15336_v3 = vld [vmem:[#allocation8 + $0xfcc] sm:$0xf]  ;;  %v12424_v16 = vor.u32 %v15272_v8, %v12421_v25  ;;  %6688 = vmatpush.bf16.msra.mxu1 %v12168_v42 }
 0x370   : > { %v12677_v34 = vld [vmem:[#allocation8 + $0xfe8] sm:$0xf0] }
 0x371   : > { %v15136_v43 = vld [vmem:[#allocation8 + $0x98c] sm:$0xf]  ;;  %v12680_v22 = vor.u32 %v15336_v3, %v12677_v34  ;;  %6702 = vmatpush.bf16.msra.mxu2 %v12424_v16 }
 0x372   : > { %v11877_v55 = vld [vmem:[#allocation8 + $0x9a8] sm:$0xf0] }
 0x373   : > { %v12389_v57 = vld [vmem:[#allocation8 + $0xda8] sm:$0xf0]  ;;  %v11880_v60 = vor.u32 %v15136_v43, %v11877_v55  ;;  %6716 = vmatpush.bf16.msra.mxu3 %v12680_v22  ;;  %6689 = vmatpush.bf16.msra.mxu1 %v12136_v44  ;;  %v6403_v43 = vpop.f32.mrf.mxu0  ;;  %v17166_v55 = vpop.f32.mrf.mxu3 }
 0x374   : > { %v15328_v30 = vld [vmem:[#allocation8 + $0xf8c] sm:$0xf]  ;;  %v12392_v40 = vor.u32 %v15264_v13, %v12389_v57  ;;  %17734 = vst [vmem:[#allocation40_spill] sm:$0xff] %v17166_v55  ;;  %v6404_v16 = vadd.f32 %v6403_v43, %v17146_v6  ;;  %v6417_v44 = vpop.f32.mrf.mxu1  ;;  %v14949_v55 = vld [vmem:[#allocation8 + $0x3ac] sm:$0xf0] }
 0x375   : > { %v12645_v36 = vld [vmem:[#allocation8 + $0xfa8] sm:$0xf0]  ;;  %6675 = vmatpush.bf16.msra.mxu0 %v11880_v60 }
 0x376   : > { %v15128_v45 = vld [vmem:[#allocation8 + $0x94c] sm:$0xf]  ;;  %v12648_v31 = vor.u32 %v15328_v30, %v12645_v36  ;;  %6703 = vmatpush.bf16.msra.mxu2 %v12392_v40 }
 0x377   : > { %v11845_v61 = vld [vmem:[#allocation8 + $0x968] sm:$0xf0] }
 0x378   : > { %v15192_v47 = vld [vmem:[#allocation8 + $0xb4c] sm:$0xf]  ;;  %v11848_v22 = vor.u32 %v15128_v45, %v11845_v61  ;;  %6717 = vmatpush.bf16.msra.mxu3 %v12648_v31 }
 0x379   : > { %v12101_v2 = vld [vmem:[#allocation8 + $0xb68] sm:$0xf0] }
 0x37a   : > { %v15256_v51 = vld [vmem:[#allocation8 + $0xd4c] sm:$0xf]  ;;  %v12104_v13 = vor.u32 %v15192_v47, %v12101_v2  ;;  %6676 = vmatpush.bf16.msra.mxu0 %v11848_v22  ;;  %v6418_v2 = vadd.f32 %v6417_v44, %v6404_v16 }
 0x37b   : > { %v12357_v9 = vld [vmem:[#allocation8 + $0xd68] sm:$0xf0]  ;;  %v6445_v43 = vpop.f32.mrf.mxu3 }
 0x37c   : > { %v15320_v15 = vld [vmem:[#allocation8 + $0xf4c] sm:$0xf]  ;;  %v12360_v18 = vor.u32 %v15256_v51, %v12357_v9  ;;  %6690 = vmatpush.bf16.msra.mxu1 %v12104_v13 }
 0x37d   : > { %v12613_v41 = vld [vmem:[#allocation8 + $0xf68] sm:$0xf0] }
 0x37e   : > { %v15120_v32 = vld [vmem:[#allocation8 + $0x90c] sm:$0xf]  ;;  %v12616_v37 = vor.u32 %v15320_v15, %v12613_v41  ;;  %6704 = vmatpush.bf16.msra.mxu2 %v12360_v18 }
 0x37f   : > { %v11813_v8 = vld [vmem:[#allocation8 + $0x928] sm:$0xf0] }
 0x380   : > { %v15184_v25 = vld [vmem:[#allocation8 + $0xb0c] sm:$0xf]  ;;  %v11816_v57 = vor.u32 %v15120_v32, %v11813_v8  ;;  %6718 = vmatpush.bf16.msra.mxu3 %v12616_v37 }
 0x381   : > { %v12069_v3 = vld [vmem:[#allocation8 + $0xb28] sm:$0xf0] }
 0x382   : > { %v15248_v34 = vld [vmem:[#allocation8 + $0xd0c] sm:$0xf]  ;;  %v12072_v30 = vor.u32 %v15184_v25, %v12069_v3  ;;  %6677 = vmatpush.bf16.msra.mxu0 %v11816_v57  ;;  %v6431_v3 = vpop.f32.mrf.mxu2 }
 0x383   : > { %v12325_v53 = vld [vmem:[#allocation8 + $0xd28] sm:$0xf0] }
 0x384   : > { %v15312_v54 = vld [vmem:[#allocation8 + $0xf0c] sm:$0xf]  ;;  %v12328_v45 = vor.u32 %v15248_v34, %v12325_v53  ;;  %6691 = vmatpush.bf16.msra.mxu1 %v12072_v30 }
 0x385   : > { %v12581_v42 = vld [vmem:[#allocation8 + $0xf28] sm:$0xf0] }
 0x386   : > { %v15112_v36 = vld [vmem:[#allocation8 + $0x8cc] sm:$0xf]  ;;  %v12584_v61 = vor.u32 %v15312_v54, %v12581_v42  ;;  %6705 = vmatpush.bf16.msra.mxu2 %v12328_v45  ;;  %v6432_v42 = vadd.f32 %v6431_v3, %v6418_v2 }
 0x387   : > { %v11781_v60 = vld [vmem:[#allocation8 + $0x8e8] sm:$0xf0] }
 0x388   : > { %v15176_v40 = vld [vmem:[#allocation8 + $0xacc] sm:$0xf]  ;;  %v11784_v41 = vor.u32 %v15112_v36, %v11781_v60  ;;  %6719 = vmatpush.bf16.msra.mxu3 %v12584_v61  ;;  %v17169_v60 = vadd.f32 %v6445_v43, %v6432_v42 }
 0x389   : > { %v12037_v31 = vld [vmem:[#allocation8 + $0xae8] sm:$0xf0] }
 0x38a   : > { %v15240_v47 = vld [vmem:[#allocation8 + $0xccc] sm:$0xf]  ;;  %v12040_v6 = vor.u32 %v15176_v40, %v12037_v31  ;;  %6678 = vmatpush.bf16.msra.mxu0 %v11784_v41 }
 0x38b   : > { %v12293_v51 = vld [vmem:[#allocation8 + $0xce8] sm:$0xf0] }
 0x38c   : > { %v15304_v9 = vld [vmem:[#allocation8 + $0xecc] sm:$0xf]  ;;  %v12296_v32 = vor.u32 %v15240_v47, %v12293_v51  ;;  %6692 = vmatpush.bf16.msra.mxu1 %v12040_v6 }
 0x38d   : > { %v12549_v15 = vld [vmem:[#allocation8 + $0xee8] sm:$0xf0] }
 0x38e   : > { %v15104_v22 = vld [vmem:[#allocation8 + $0x88c] sm:$0xf]  ;;  %v12552_v8 = vor.u32 %v15304_v9, %v12549_v15  ;;  %6706 = vmatpush.bf16.msra.mxu2 %v12296_v32 }
 0x38f   : > { %v11749_v13 = vld [vmem:[#allocation8 + $0x8a8] sm:$0xf0] }
 0x390   : > { %v15168_v18 = vld [vmem:[#allocation8 + $0xa8c] sm:$0xf]  ;;  %v11752_v16 = vor.u32 %v15104_v22, %v11749_v13  ;;  %6720 = vmatpush.bf16.msra.mxu3 %v12552_v8 }
 0x391   : > { %v12005_v37 = vld [vmem:[#allocation8 + $0xaa8] sm:$0xf0] }
 0x392   : > { %v15232_v25 = vld [vmem:[#allocation8 + $0xc8c] sm:$0xf]  ;;  %v12008_v57 = vor.u32 %v15168_v18, %v12005_v37  ;;  %6679 = vmatpush.bf16.msra.mxu0 %v11752_v16 }
 0x393   : > { %v12261_v34 = vld [vmem:[#allocation8 + $0xca8] sm:$0xf0] }
 0x394   : > { %v15296_v53 = vld [vmem:[#allocation8 + $0xe8c] sm:$0xf]  ;;  %v12264_v44 = vor.u32 %v15232_v25, %v12261_v34  ;;  %6693 = vmatpush.bf16.msra.mxu1 %v12008_v57 }
 0x395   : > { %v12517_v54 = vld [vmem:[#allocation8 + $0xea8] sm:$0xf0] }
 0x396   : > { %v15096_v30 = vld [vmem:[#allocation8 + $0x84c] sm:$0xf]  ;;  %v12520_v45 = vor.u32 %v15296_v53, %v12517_v54  ;;  %6707 = vmatpush.bf16.msra.mxu2 %v12264_v44 }
 0x397   : > { %v11717_v36 = vld [vmem:[#allocation8 + $0x868] sm:$0xf0] }
 0x398   : > { %v15160_v61 = vld [vmem:[#allocation8 + $0xa4c] sm:$0xf]  ;;  %v11720_v15 = vor.u32 %v15096_v30, %v11717_v36  ;;  %6721 = vmatpush.bf16.msra.mxu3 %v12520_v45 }
 0x399   : > { %v11973_v40 = vld [vmem:[#allocation8 + $0xa68] sm:$0xf0] }
 0x39a   : > { %v15224_v31 = vld [vmem:[#allocation8 + $0xc4c] sm:$0xf]  ;;  %v11976_v41 = vor.u32 %v15160_v61, %v11973_v40  ;;  %6680 = vmatpush.bf16.msra.mxu0 %v11720_v15 }
 0x39b   : > { %v12229_v47 = vld [vmem:[#allocation8 + $0xc68] sm:$0xf0] }
 0x39c   : > { %v15288_v51 = vld [vmem:[#allocation8 + $0xe4c] sm:$0xf]  ;;  %v12232_v32 = vor.u32 %v15224_v31, %v12229_v47  ;;  %6694 = vmatpush.bf16.msra.mxu1 %v11976_v41 }
 0x39d   : > { %v12485_v9 = vld [vmem:[#allocation8 + $0xe68] sm:$0xf0] }
 0x39e   : > { %v15088_v2 = vld [vmem:[#allocation8 + $0x80c] sm:$0xf]  ;;  %v12488_v8 = vor.u32 %v15288_v51, %v12485_v9  ;;  %6708 = vmatpush.bf16.msra.mxu2 %v12232_v32 }
 0x39f   : > { %v11685_v6 = vld [vmem:[#allocation8 + $0x828] sm:$0xf0] }
 0x3a0   : > { %v15152_v22 = vld [vmem:[#allocation8 + $0xa0c] sm:$0xf]  ;;  %v11688_v16 = vor.u32 %v15088_v2, %v11685_v6  ;;  %6722 = vmatpush.bf16.msra.mxu3 %v12488_v8  ;;  %v17171_v6 = vpop.f32.mrf.mxu0 }
 0x3a1   : > { %v11941_v13 = vld [vmem:[#allocation8 + $0xa28] sm:$0xf0]  ;;  %17735 = vst [vmem:[#allocation41_spill] sm:$0xff] %v17171_v6  ;;  %v11115_v6 = vld [vmem:[#allocation8 + $0x390] sm:$0xf] }
 0x3a2   : > { %v15216_v18 = vld [vmem:[#allocation8 + $0xc0c] sm:$0xf]  ;;  %v11944_v57 = vor.u32 %v15152_v22, %v11941_v13  ;;  %6681 = vmatpush.bf16.msra.mxu0 %v11688_v16  ;;  %v13160_v13 = vor.u32 %v15456_v14, %v13157_v24 }
 0x3a3   : > { %v12197_v37 = vld [vmem:[#allocation8 + $0xc28] sm:$0xf0] }
 0x3a4   : > { %v15280_v25 = vld [vmem:[#allocation8 + $0xe0c] sm:$0xf]  ;;  %v12200_v44 = vor.u32 %v15216_v18, %v12197_v37  ;;  %6695 = vmatpush.bf16.msra.mxu1 %v11944_v57  ;;  %v17173_v18 = vpop.f32.mrf.mxu1 }
 0x3a5   : > { %v12453_v3 = vld [vmem:[#allocation8 + $0xe28] sm:$0xf0]  ;;  %17736 = vst [vmem:[#allocation42_spill] sm:$0xff] %v17173_v18  ;;  %6682 = vmatmul.bf16.vlgmr.msra.gmra.mxu0 %v16989_v58 }
 0x3a6   : > { %v15400_v34 = vld [vmem:[#allocation8 + $0x11cc] sm:$0xf]  ;;  %v12456_v45 = vor.u32 %v15280_v25, %v12453_v3  ;;  %6709 = vmatpush.bf16.msra.mxu2 %v12200_v44 }
 0x3a7   : > { %v12933_v53 = vld [vmem:[#allocation8 + $0x11e8] sm:$0xf0]  ;;  %6696 = vmatmul.bf16.vlgmr.msra.gmra.mxu1 %v16991_v46 }
 0x3a8   : > { %v15464_v54 = vld [vmem:[#allocation8 + $0x13cc] sm:$0xf]  ;;  %v12936_v40 = vor.u32 %v15400_v34, %v12933_v53  ;;  %6723 = vmatpush.bf16.msra.mxu3 %v12456_v45 }
 0x3a9   : > { %v13189_v42 = vld [vmem:[#allocation8 + $0x13e8] sm:$0xf0]  ;;  %6710 = vmatmul.bf16.vlgmr.msra.gmra.mxu2 %v16993_v11 }
 0x3aa   : > { %v15528_v43 = vld [vmem:[#allocation8 + $0x15cc] sm:$0xf]  ;;  %v13192_v31 = vor.u32 %v15464_v54, %v13189_v42  ;;  %6730 = vmatpush.bf16.msrb.mxu0 %v12936_v40  ;;  %v17182_v40 = vpop.f32.mrf.mxu2 }
 0x3ab   : > { %v13445_v30 = vld [vmem:[#allocation8 + $0x15e8] sm:$0xf0]  ;;  %6724 = vmatmul.bf16.vlgmr.msra.gmra.mxu3 %v16995_v12  ;;  %17737 = vst [vmem:[#allocation43_spill] sm:$0xff] %v17182_v40  ;;  %v11403_v40 = vld [vmem:[#allocation8 + $0x5d0] sm:$0xf] }
 0x3ac   : > { %v15592_v36 = vld [vmem:[#allocation8 + $0x17cc] sm:$0xf]  ;;  %v13448_v9 = vor.u32 %v15528_v43, %v13445_v30  ;;  %6744 = vmatpush.bf16.msrb.mxu1 %v13192_v31 }
 0x3ad   : > { %v13701_v61 = vld [vmem:[#allocation8 + $0x17e8] sm:$0xf0] }
 0x3ae   : > { %v15392_v47 = vld [vmem:[#allocation8 + $0x118c] sm:$0xf]  ;;  %v13704_v17 = vor.u32 %v15592_v36, %v13701_v61  ;;  %6758 = vmatpush.bf16.msrb.mxu2 %v13448_v9  ;;  %v6459_v9 = vpop.f32.mrf.mxu0 }
 0x3af   : > { %v12901_v51 = vld [vmem:[#allocation8 + $0x11a8] sm:$0xf0] }
 0x3b0   : > { %v13413_v2 = vld [vmem:[#allocation8 + $0x15a8] sm:$0xf0]  ;;  %v12904_v22 = vor.u32 %v15392_v47, %v12901_v51  ;;  %6772 = vmatpush.bf16.msrb.mxu3 %v13704_v17  ;;  %6745 = vmatpush.bf16.msrb.mxu1 %v13160_v13 }
 0x3b1   : > { %v15584_v15 = vld [vmem:[#allocation8 + $0x178c] sm:$0xf]  ;;  %v13416_v37 = vor.u32 %v15520_v20, %v13413_v2  ;;  %v17179_v20 = vld [vmem:[#allocation9] sm:$0xff]  ;;  %v17184_v2 = vpop.f32.mrf.mxu3 }
 0x3b2   : > { %v13669_v41 = vld [vmem:[#allocation8 + $0x17a8] sm:$0xf0]  ;;  %6731 = vmatpush.bf16.msrb.mxu0 %v12904_v22  ;;  %v17693_v17 = vperm.slane %v17179_v20, 2  ;;  %17738 = vst [vmem:[#allocation44_spill] sm:$0xff] %v17184_v2 }
 0x3b3   : > { %v15384_v32 = vld [vmem:[#allocation8 + $0x114c] sm:$0xf]  ;;  %v13672_v25 = vor.u32 %v15584_v15, %v13669_v41  ;;  %6759 = vmatpush.bf16.msrb.mxu2 %v13416_v37 }
 0x3b4   : > { %v12869_v8 = vld [vmem:[#allocation8 + $0x1168] sm:$0xf0]  ;;  %v6460_v15 = vadd.f32 %v6459_v9, %v17693_v17 }
 0x3b5   : > { %v15448_v3 = vld [vmem:[#allocation8 + $0x134c] sm:$0xf]  ;;  %v12872_v24 = vor.u32 %v15384_v32, %v12869_v8  ;;  %6773 = vmatpush.bf16.msrb.mxu3 %v13672_v25  ;;  %v6473_v8 = vpop.f32.mrf.mxu1 }
 0x3b6   : > { %v13125_v34 = vld [vmem:[#allocation8 + $0x1368] sm:$0xf0] }
 0x3b7   : > { %v15512_v53 = vld [vmem:[#allocation8 + $0x154c] sm:$0xf]  ;;  %v13128_v14 = vor.u32 %v15448_v3, %v13125_v34  ;;  %6732 = vmatpush.bf16.msrb.mxu0 %v12872_v24 }
 0x3b8   : > { %v13381_v54 = vld [vmem:[#allocation8 + $0x1568] sm:$0xf0] }
 0x3b9   : > { %v15576_v42 = vld [vmem:[#allocation8 + $0x174c] sm:$0xf]  ;;  %v13384_v30 = vor.u32 %v15512_v53, %v13381_v54  ;;  %6746 = vmatpush.bf16.msrb.mxu1 %v13128_v14  ;;  %v6474_v54 = vadd.f32 %v6473_v8, %v6460_v15 }
 0x3ba   : > { %v13637_v43 = vld [vmem:[#allocation8 + $0x1768] sm:$0xf0] }
 0x3bb   : > { %v15376_v16 = vld [vmem:[#allocation8 + $0x110c] sm:$0xf]  ;;  %v13640_v36 = vor.u32 %v15576_v42, %v13637_v43  ;;  %6760 = vmatpush.bf16.msrb.mxu2 %v13384_v30 }
 0x3bc   : > { %v12837_v57 = vld [vmem:[#allocation8 + $0x1128] sm:$0xf0] }
 0x3bd   : > { %v15440_v61 = vld [vmem:[#allocation8 + $0x130c] sm:$0xf]  ;;  %v12840_v41 = vor.u32 %v15376_v16, %v12837_v57  ;;  %6774 = vmatpush.bf16.msrb.mxu3 %v13640_v36 }
 0x3be   : > { %v13093_v44 = vld [vmem:[#allocation8 + $0x1328] sm:$0xf0] }
 0x3bf   : > { %v15504_v45 = vld [vmem:[#allocation8 + $0x150c] sm:$0xf]  ;;  %v13096_v22 = vor.u32 %v15440_v61, %v13093_v44  ;;  %6733 = vmatpush.bf16.msrb.mxu0 %v12840_v41  ;;  %v6501_v41 = vpop.f32.mrf.mxu3 }
 0x3c0   : > { %v13349_v31 = vld [vmem:[#allocation8 + $0x1528] sm:$0xf0] }
 0x3c1   : > { %v15568_v47 = vld [vmem:[#allocation8 + $0x170c] sm:$0xf]  ;;  %v13352_v37 = vor.u32 %v15504_v45, %v13349_v31  ;;  %6747 = vmatpush.bf16.msrb.mxu1 %v13096_v22  ;;  %v6487_v31 = vpop.f32.mrf.mxu2 }
 0x3c2   : > { %v13605_v51 = vld [vmem:[#allocation8 + $0x1728] sm:$0xf0]  ;;  %v6488_v8 = vadd.f32 %v6487_v31, %v6474_v54 }
 0x3c3   : > { %v15368_v13 = vld [vmem:[#allocation8 + $0x10cc] sm:$0xf]  ;;  %v13608_v25 = vor.u32 %v15568_v47, %v13605_v51  ;;  %6761 = vmatpush.bf16.msrb.mxu2 %v13352_v37 }
 0x3c4   : > { %v12805_v32 = vld [vmem:[#allocation8 + $0x10e8] sm:$0xf0]  ;;  %v17188_v37 = vadd.f32 %v6501_v41, %v6488_v8  ;;  %v11147_v8 = vld [vmem:[#allocation8 + $0x3d0] sm:$0xf] }
 0x3c5   : > { %v15432_v3 = vld [vmem:[#allocation8 + $0x12cc] sm:$0xf]  ;;  %v12808_v14 = vor.u32 %v15368_v13, %v12805_v32  ;;  %6775 = vmatpush.bf16.msrb.mxu3 %v13608_v25  ;;  %v14957_v41 = vld [vmem:[#allocation8 + $0x3ec] sm:$0xf0] }
 0x3c6   : > { %v13061_v34 = vld [vmem:[#allocation8 + $0x12e8] sm:$0xf0] }
 0x3c7   : > { %v15496_v53 = vld [vmem:[#allocation8 + $0x14cc] sm:$0xf]  ;;  %v13064_v9 = vor.u32 %v15432_v3, %v13061_v34  ;;  %6734 = vmatpush.bf16.msrb.mxu0 %v12808_v14 }
 0x3c8   : > { %v13317_v42 = vld [vmem:[#allocation8 + $0x14e8] sm:$0xf0] }
 0x3c9   : > { %v15560_v43 = vld [vmem:[#allocation8 + $0x16cc] sm:$0xf]  ;;  %v13320_v30 = vor.u32 %v15496_v53, %v13317_v42  ;;  %6748 = vmatpush.bf16.msrb.mxu1 %v13064_v9 }
 0x3ca   : > { %v13573_v24 = vld [vmem:[#allocation8 + $0x16e8] sm:$0xf0] }
 0x3cb   : > { %v15360_v16 = vld [vmem:[#allocation8 + $0x108c] sm:$0xf]  ;;  %v13576_v36 = vor.u32 %v15560_v43, %v13573_v24  ;;  %6762 = vmatpush.bf16.msrb.mxu2 %v13320_v30 }
 0x3cc   : > { %v12773_v57 = vld [vmem:[#allocation8 + $0x10a8] sm:$0xf0] }
 0x3cd   : > { %v15424_v61 = vld [vmem:[#allocation8 + $0x128c] sm:$0xf]  ;;  %v12776_v22 = vor.u32 %v15360_v16, %v12773_v57  ;;  %6776 = vmatpush.bf16.msrb.mxu3 %v13576_v36 }
 0x3ce   : > { %v13029_v44 = vld [vmem:[#allocation8 + $0x12a8] sm:$0xf0] }
 0x3cf   : > { %v15488_v45 = vld [vmem:[#allocation8 + $0x148c] sm:$0xf]  ;;  %v13032_v13 = vor.u32 %v15424_v61, %v13029_v44  ;;  %6735 = vmatpush.bf16.msrb.mxu0 %v12776_v22 }
 0x3d0   : > { %v13285_v47 = vld [vmem:[#allocation8 + $0x14a8] sm:$0xf0] }
 0x3d1   : > { %v15552_v51 = vld [vmem:[#allocation8 + $0x168c] sm:$0xf]  ;;  %v13288_v25 = vor.u32 %v15488_v45, %v13285_v47  ;;  %6749 = vmatpush.bf16.msrb.mxu1 %v13032_v13 }
 0x3d2   : > { %v13541_v15 = vld [vmem:[#allocation8 + $0x16a8] sm:$0xf0] }
 0x3d3   : > { %v15352_v32 = vld [vmem:[#allocation8 + $0x104c] sm:$0xf]  ;;  %v13544_v34 = vor.u32 %v15552_v51, %v13541_v15  ;;  %6763 = vmatpush.bf16.msrb.mxu2 %v13288_v25  ;;  %v10891_v51 = vld [vmem:[#allocation8 + $0x1d0] sm:$0xf] }
 0x3d4   : > { %v12741_v3 = vld [vmem:[#allocation8 + $0x1068] sm:$0xf0]  ;;  %v14893_v15 = vld [vmem:[#allocation8 + $0x1ec] sm:$0xf0] }
 0x3d5   : > { %v15416_v53 = vld [vmem:[#allocation8 + $0x124c] sm:$0xf]  ;;  %v12744_v14 = vor.u32 %v15352_v32, %v12741_v3  ;;  %6777 = vmatpush.bf16.msrb.mxu3 %v13544_v34  ;;  %v15021_v32 = vld [vmem:[#allocation8 + $0x5ec] sm:$0xf0]  ;;  %v11148_v34 = vor.u32 %v14957_v41, %v11147_v8 }
 0x3d6   : > { %v12997_v42 = vld [vmem:[#allocation8 + $0x1268] sm:$0xf0]  ;;  %v11659_v3 = vld [vmem:[#allocation8 + $0x7d0] sm:$0xf] }
 0x3d7   : > { %v15480_v43 = vld [vmem:[#allocation8 + $0x144c] sm:$0xf]  ;;  %v13000_v9 = vor.u32 %v15416_v53, %v12997_v42  ;;  %6736 = vmatpush.bf16.msrb.mxu0 %v12744_v14  ;;  %v15085_v53 = vld [vmem:[#allocation8 + $0x7ec] sm:$0xf0] }
 0x3d8   : > { %v13253_v24 = vld [vmem:[#allocation8 + $0x1468] sm:$0xf0]  ;;  %v10859_v42 = vld [vmem:[#allocation8 + $0x190] sm:$0xf]  ;;  %v11660_v18 = vor.u32 %v15085_v53, %v11659_v3 }
 0x3d9   : > { %v15544_v17 = vld [vmem:[#allocation8 + $0x164c] sm:$0xf]  ;;  %v13256_v30 = vor.u32 %v15480_v43, %v13253_v24  ;;  %6750 = vmatpush.bf16.msrb.mxu1 %v13000_v9  ;;  %v14885_v43 = vld [vmem:[#allocation8 + $0x1ac] sm:$0xf0]  ;;  %v11404_v24 = vor.u32 %v15021_v32, %v11403_v40  ;;  %v17192_v40 = vpop.f32.mrf.mxu1 }
 0x3da   : > { %v13509_v2 = vld [vmem:[#allocation8 + $0x1668] sm:$0xf0]  ;;  %v11627_v14 = vld [vmem:[#allocation8 + $0x790] sm:$0xf]  ;;  %17739 = vst [vmem:[#allocation45_spill] sm:$0xff] %v17192_v40 }
 0x3db   : > { %v15344_v54 = vld [vmem:[#allocation8 + $0x100c] sm:$0xf]  ;;  %v13512_v36 = vor.u32 %v15544_v17, %v13509_v2  ;;  %6764 = vmatpush.bf16.msrb.mxu2 %v13256_v30  ;;  %v10892_v2 = vor.u32 %v14893_v15, %v10891_v51  ;;  %v15077_v9 = vld [vmem:[#allocation8 + $0x7ac] sm:$0xf0] }
 0x3dc   : > { %v12709_v16 = vld [vmem:[#allocation8 + $0x1028] sm:$0xf0]  ;;  %v10827_v30 = vld [vmem:[#allocation8 + $0x150] sm:$0xf] }
 0x3dd   : > { %v15408_v57 = vld [vmem:[#allocation8 + $0x120c] sm:$0xf]  ;;  %v12712_v22 = vor.u32 %v15344_v54, %v12709_v16  ;;  %6778 = vmatpush.bf16.msrb.mxu3 %v13512_v36  ;;  %v15013_v54 = vld [vmem:[#allocation8 + $0x5ac] sm:$0xf0]  ;;  %v17190_v16 = vpop.f32.mrf.mxu0 }
 0x3de   : > { %v12965_v61 = vld [vmem:[#allocation8 + $0x1228] sm:$0xf0]  ;;  %v14877_v36 = vld [vmem:[#allocation8 + $0x16c] sm:$0xf0] }
 0x3df   : > { %v15472_v44 = vld [vmem:[#allocation8 + $0x140c] sm:$0xf]  ;;  %v12968_v13 = vor.u32 %v15408_v57, %v12965_v61  ;;  %6737 = vmatpush.bf16.msrb.mxu0 %v12712_v22  ;;  %v10860_v57 = vor.u32 %v14885_v43, %v10859_v42  ;;  %v11116_v61 = vor.u32 %v14949_v55, %v11115_v6  ;;  %v11339_v51 = vld [vmem:[#allocation8 + $0x550] sm:$0xf]  ;;  %v10828_v55 = vor.u32 %v14877_v36, %v10827_v30  ;;  %v17200_v43 = vpop.f32.mrf.mxu3 }
 0x3e0   : > { %v13221_v45 = vld [vmem:[#allocation8 + $0x1428] sm:$0xf0]  ;;  %v15005_v15 = vld [vmem:[#allocation8 + $0x56c] sm:$0xf0]  ;;  %17741 = vst [vmem:[#allocation47_spill] sm:$0xff] %v17200_v43 }
 0x3e1   : > { %v15536_v31 = vld [vmem:[#allocation8 + $0x160c] sm:$0xf]  ;;  %v13224_v25 = vor.u32 %v15472_v44, %v13221_v45  ;;  %6751 = vmatpush.bf16.msrb.mxu1 %v12968_v13  ;;  %v11372_v44 = vor.u32 %v15013_v54, %v11371_v63  ;;  %v11628_v45 = vor.u32 %v15077_v9, %v11627_v14  ;;  %v11595_v8 = vld [vmem:[#allocation8 + $0x750] sm:$0xf]  ;;  %v11340_v22 = vor.u32 %v15005_v15, %v11339_v51 }
 0x3e2   : > { %v13477_v47 = vld [vmem:[#allocation8 + $0x1628] sm:$0xf0]  ;;  %6738 = vmatmul.bf16.vlgmr.msrb.gmra.mxu0 %v17049_v26  ;;  %v15069_v41 = vld [vmem:[#allocation8 + $0x76c] sm:$0xf0] }
 0x3e3   : > { %v13480_v17 = vor.u32 %v15536_v31, %v13477_v47  ;;  %6765 = vmatpush.bf16.msrb.mxu2 %v13224_v25  ;;  %6786 = vmatpush.bf16.msra.mxu0 %v10892_v2  ;;  %v11083_v31 = vld [vmem:[#allocation8 + $0x350] sm:$0xf]  ;;  %v11596_v13 = vor.u32 %v15069_v41, %v11595_v8  ;;  %v17198_v25 = vpop.f32.mrf.mxu2 }
 0x3e4   : > { %v14941_v47 = vld [vmem:[#allocation8 + $0x36c] sm:$0xf0]  ;;  %6752 = vmatmul.bf16.vlgmr.msrb.gmra.mxu1 %v17051_v33  ;;  %17740 = vst [vmem:[#allocation46_spill] sm:$0xff] %v17198_v25  ;;  %v15265_v25 = vld [vmem:[#allocation8 + $0xd94] sm:$0xf] }
 0x3e5   : > { %6779 = vmatpush.bf16.msrb.mxu3 %v13480_v17  ;;  %6800 = vmatpush.bf16.msra.mxu1 %v11148_v34  ;;  %v11084_v6 = vor.u32 %v14941_v47, %v11083_v31  ;;  %v10795_v63 = vld [vmem:[#allocation8 + $0x110] sm:$0xf]  ;;  %v6515_v42 = vpop.f32.mrf.mxu0 }
 0x3e6   : > { %6766 = vmatmul.bf16.vlgmr.msrb.gmra.mxu2 %v17053_v49  ;;  %v11051_v32 = vld [vmem:[#allocation8 + $0x310] sm:$0xf] }
 0x3e7   : > { %6814 = vmatpush.bf16.msra.mxu2 %v11404_v24  ;;  %6787 = vmatpush.bf16.msra.mxu0 %v10860_v57  ;;  %v14933_v3 = vld [vmem:[#allocation8 + $0x32c] sm:$0xf0]  ;;  %v6516_v24 = vadd.f32 %v6515_v42, %v17188_v37  ;;  %v6557_v42 = vpop.f32.mrf.mxu3 }
 0x3e8   : > { %6780 = vmatmul.bf16.vlgmr.msrb.gmra.mxu3 %v17055_v23  ;;  %v11307_v53 = vld [vmem:[#allocation8 + $0x510] sm:$0xf]  ;;  %v11052_v14 = vor.u32 %v14933_v3, %v11051_v32 }
 0x3e9   : > { %6828 = vmatpush.bf16.msra.mxu3 %v11660_v18  ;;  %6801 = vmatpush.bf16.msra.mxu1 %v11116_v61  ;;  %v14869_v18 = vld [vmem:[#allocation8 + $0x12c] sm:$0xf0]  ;;  %v6529_v61 = vpop.f32.mrf.mxu1 }
 0x3ea   : > { %v14997_v17 = vld [vmem:[#allocation8 + $0x52c] sm:$0xf0]  ;;  %v10796_v54 = vor.u32 %v14869_v18, %v10795_v63  ;;  %v6530_v47 = vadd.f32 %v6529_v61, %v6516_v24 }
 0x3eb   : > { %6815 = vmatpush.bf16.msra.mxu2 %v11372_v44  ;;  %v11563_v2 = vld [vmem:[#allocation8 + $0x710] sm:$0xf]  ;;  %6788 = vmatpush.bf16.msra.mxu0 %v10828_v55  ;;  %v11308_v30 = vor.u32 %v14997_v17, %v11307_v53  ;;  %v6543_v3 = vpop.f32.mrf.mxu2 }
 0x3ec   : > { %v15061_v34 = vld [vmem:[#allocation8 + $0x72c] sm:$0xf0] }
 0x3ed   : > { %6829 = vmatpush.bf16.msra.mxu3 %v11628_v45  ;;  %6802 = vmatpush.bf16.msra.mxu1 %v11084_v6  ;;  %v10763_v9 = vld [vmem:[#allocation8 + $0xd0] sm:$0xf]  ;;  %v11564_v36 = vor.u32 %v15061_v34, %v11563_v2  ;;  %v6544_v34 = vadd.f32 %v6543_v3, %v6530_v47 }
 0x3ee   : > { %v14861_v57 = vld [vmem:[#allocation8 + $0xec] sm:$0xf0] }
 0x3ef   : > { %6816 = vmatpush.bf16.msra.mxu2 %v11340_v22  ;;  %v11019_v44 = vld [vmem:[#allocation8 + $0x2d0] sm:$0xf]  ;;  %6789 = vmatpush.bf16.msra.mxu0 %v10796_v54  ;;  %v10764_v41 = vor.u32 %v14861_v57, %v10763_v9  ;;  %v17203_v57 = vadd.f32 %v6557_v42, %v6544_v34 }
 0x3f0   : > { %v14925_v45 = vld [vmem:[#allocation8 + $0x2ec] sm:$0xf0] }
 0x3f1   : > { %6830 = vmatpush.bf16.msra.mxu3 %v11596_v13  ;;  %v11275_v31 = vld [vmem:[#allocation8 + $0x4d0] sm:$0xf]  ;;  %6803 = vmatpush.bf16.msra.mxu1 %v11052_v14  ;;  %v11020_v37 = vor.u32 %v14925_v45, %v11019_v44 }
 0x3f2   : > { %v14989_v51 = vld [vmem:[#allocation8 + $0x4ec] sm:$0xf0] }
 0x3f3   : > { %v11531_v15 = vld [vmem:[#allocation8 + $0x6d0] sm:$0xf]  ;;  %6817 = vmatpush.bf16.msra.mxu2 %v11308_v30  ;;  %v11276_v63 = vor.u32 %v14989_v51, %v11275_v31  ;;  %6790 = vmatpush.bf16.msra.mxu0 %v10764_v41 }
 0x3f4   : > { %v15053_v8 = vld [vmem:[#allocation8 + $0x6ec] sm:$0xf0] }
 0x3f5   : > { %v10731_v55 = vld [vmem:[#allocation8 + $0x90] sm:$0xf]  ;;  %6831 = vmatpush.bf16.msra.mxu3 %v11564_v36  ;;  %v11532_v18 = vor.u32 %v15053_v8, %v11531_v15  ;;  %6804 = vmatpush.bf16.msra.mxu1 %v11020_v37 }
 0x3f6   : > { %v14853_v6 = vld [vmem:[#allocation8 + $0xac] sm:$0xf0] }
 0x3f7   : > { %v10987_v22 = vld [vmem:[#allocation8 + $0x290] sm:$0xf]  ;;  %v10732_v24 = vor.u32 %v14853_v6, %v10731_v55  ;;  %6818 = vmatpush.bf16.msra.mxu2 %v11276_v63 }
 0x3f8   : > { %v14917_v13 = vld [vmem:[#allocation8 + $0x2ac] sm:$0xf0] }
 0x3f9   : > { %v11243_v32 = vld [vmem:[#allocation8 + $0x490] sm:$0xf]  ;;  %v10988_v54 = vor.u32 %v14917_v13, %v10987_v22  ;;  %6832 = vmatpush.bf16.msra.mxu3 %v11532_v18  ;;  %6791 = vmatpush.bf16.msra.mxu0 %v10732_v24 }
 0x3fa   : > { %v14981_v53 = vld [vmem:[#allocation8 + $0x4ac] sm:$0xf0] }
 0x3fb   : > { %v11499_v17 = vld [vmem:[#allocation8 + $0x690] sm:$0xf]  ;;  %v11244_v61 = vor.u32 %v14981_v53, %v11243_v32  ;;  %6805 = vmatpush.bf16.msra.mxu1 %v10988_v54 }
 0x3fc   : > { %v15045_v2 = vld [vmem:[#allocation8 + $0x6ac] sm:$0xf0] }
 0x3fd   : > { %v10699_v14 = vld [vmem:[#allocation8 + $0x50] sm:$0xf]  ;;  %v11500_v30 = vor.u32 %v15045_v2, %v11499_v17  ;;  %6819 = vmatpush.bf16.msra.mxu2 %v11244_v61 }
 0x3fe   : > { %v14845_v9 = vld [vmem:[#allocation8 + $0x6c] sm:$0xf0] }
 0x3ff   : > { %v10955_v36 = vld [vmem:[#allocation8 + $0x250] sm:$0xf]  ;;  %v10700_v8 = vor.u32 %v14845_v9, %v10699_v14  ;;  %6833 = vmatpush.bf16.msra.mxu3 %v11500_v30 }
 0x400   : > { %v14909_v44 = vld [vmem:[#allocation8 + $0x26c] sm:$0xf0] }
 0x401   : > { %v11211_v45 = vld [vmem:[#allocation8 + $0x450] sm:$0xf]  ;;  %v10956_v41 = vor.u32 %v14909_v44, %v10955_v36  ;;  %6792 = vmatpush.bf16.msra.mxu0 %v10700_v8 }
 0x402   : > { %v14973_v31 = vld [vmem:[#allocation8 + $0x46c] sm:$0xf0] }
 0x403   : > { %v11467_v51 = vld [vmem:[#allocation8 + $0x650] sm:$0xf]  ;;  %v11212_v63 = vor.u32 %v14973_v31, %v11211_v45  ;;  %6806 = vmatpush.bf16.msra.mxu1 %v10956_v41 }
 0x404   : > { %v15037_v15 = vld [vmem:[#allocation8 + $0x66c] sm:$0xf0] }
 0x405   : > { %v10667_v47 = vld [vmem:[#allocation8 + $0x10] sm:$0xf]  ;;  %v11468_v18 = vor.u32 %v15037_v15, %v11467_v51  ;;  %6820 = vmatpush.bf16.msra.mxu2 %v11212_v63 }
 0x406   : > { %v14837_v37 = vld [vmem:[#allocation8 + $0x2c] sm:$0xf0] }
 0x407   : > { %v10923_v55 = vld [vmem:[#allocation8 + $0x210] sm:$0xf]  ;;  %v10668_v24 = vor.u32 %v14837_v37, %v10667_v47  ;;  %6834 = vmatpush.bf16.msra.mxu3 %v11468_v18  ;;  %v17205_v37 = vpop.f32.mrf.mxu0 }
 0x408   : > { %v14901_v6 = vld [vmem:[#allocation8 + $0x22c] sm:$0xf0]  ;;  %17742 = vst [vmem:[#allocation48_spill] sm:$0xff] %v17205_v37 }
 0x409   : > { %v11179_v22 = vld [vmem:[#allocation8 + $0x410] sm:$0xf]  ;;  %v10924_v54 = vor.u32 %v14901_v6, %v10923_v55  ;;  %6793 = vmatpush.bf16.msra.mxu0 %v10668_v24 }
 0x40a   : > { %v14965_v13 = vld [vmem:[#allocation8 + $0x42c] sm:$0xf0] }
 0x40b   : > { %v11435_v32 = vld [vmem:[#allocation8 + $0x610] sm:$0xf]  ;;  %v11180_v61 = vor.u32 %v14965_v13, %v11179_v22  ;;  %6807 = vmatpush.bf16.msra.mxu1 %v10924_v54  ;;  %v17207_v22 = vpop.f32.mrf.mxu1 }
 0x40c   : > { %v15029_v3 = vld [vmem:[#allocation8 + $0x62c] sm:$0xf0]  ;;  %17743 = vst [vmem:[#allocation49_spill] sm:$0xff] %v17207_v22  ;;  %16065 = vmatmul.msk.bf16.vlgmr.msra.gmra.mxu0 %vm16937_vm11, %v16942_v38 }
 0x40d   : > { %v11915_v53 = vld [vmem:[#allocation8 + $0x9d0] sm:$0xf]  ;;  %v11436_v30 = vor.u32 %v15029_v3, %v11435_v32  ;;  %6821 = vmatpush.bf16.msra.mxu2 %v11180_v61  ;;  %v17221_v61 = vpop.f32.mrf.mxu2 }
 0x40e   : > { %v15149_v17 = vld [vmem:[#allocation8 + $0x9ec] sm:$0xf0]  ;;  %16068 = vmatmul.msk.bf16.vlgmr.msra.gmra.mxu1 %vm16937_vm11, %v16948_v4  ;;  %17744 = vst [vmem:[#allocation50_spill] sm:$0xff] %v17221_v61 }
 0x40f   : > { %v12171_v2 = vld [vmem:[#allocation8 + $0xbd0] sm:$0xf]  ;;  %v11916_v44 = vor.u32 %v15149_v17, %v11915_v53  ;;  %6835 = vmatpush.bf16.msra.mxu3 %v11436_v30 }
 0x410   : > { %v15213_v34 = vld [vmem:[#allocation8 + $0xbec] sm:$0xf0]  ;;  %16071 = vmatmul.msk.bf16.vlgmr.msra.gmra.mxu2 %vm16937_vm11, %v16954_v10 }
 0x411   : > { %v12427_v42 = vld [vmem:[#allocation8 + $0xdd0] sm:$0xf]  ;;  %v12172_v45 = vor.u32 %v15213_v34, %v12171_v2  ;;  %6842 = vmatpush.bf16.msrb.mxu0 %v11916_v44 }
 0x412   : > { %v15277_v14 = vld [vmem:[#allocation8 + $0xdec] sm:$0xf0]  ;;  %16074 = vmatmul.msk.bf16.vlgmr.msra.gmra.mxu3 %vm16937_vm11, %v16960_v59 }
 0x413   : > { %v12683_v9 = vld [vmem:[#allocation8 + $0xfd0] sm:$0xf]  ;;  %v12428_v15 = vor.u32 %v15277_v14, %v12427_v42  ;;  %6856 = vmatpush.bf16.msrb.mxu1 %v12172_v45 }
 0x414   : > { %v15341_v36 = vld [vmem:[#allocation8 + $0xfec] sm:$0xf0] }
 0x415   : > { %v11883_v31 = vld [vmem:[#allocation8 + $0x990] sm:$0xf]  ;;  %v12684_v56 = vor.u32 %v15341_v36, %v12683_v9  ;;  %6870 = vmatpush.bf16.msrb.mxu2 %v12428_v15 }
 0x416   : > { %v15141_v51 = vld [vmem:[#allocation8 + $0x9ac] sm:$0xf0] }
 0x417   : > { %v15205_v43 = vld [vmem:[#allocation8 + $0xbac] sm:$0xf0]  ;;  %v11884_v55 = vor.u32 %v15141_v51, %v11883_v31  ;;  %6884 = vmatpush.bf16.msrb.mxu3 %v12684_v56  ;;  %v6571_v31 = vpop.f32.mrf.mxu0  ;;  %v17223_v51 = vpop.f32.mrf.mxu3 }
 0x418   : > { %v15269_v47 = vld [vmem:[#allocation8 + $0xdac] sm:$0xf0]  ;;  %v12140_v6 = vor.u32 %v15205_v43, %v12139_v5  ;;  %17745 = vst [vmem:[#allocation51_spill] sm:$0xff] %v17223_v51  ;;  %v6572_v15 = vadd.f32 %v6571_v31, %v17203_v57 }
 0x419   : > { %v12651_v8 = vld [vmem:[#allocation8 + $0xf90] sm:$0xf]  ;;  %v12396_v13 = vor.u32 %v15269_v47, %v12395_v39  ;;  %6843 = vmatpush.bf16.msrb.mxu0 %v11884_v55 }
 0x41a   : > { %v15333_v41 = vld [vmem:[#allocation8 + $0xfac] sm:$0xf0]  ;;  %6857 = vmatpush.bf16.msrb.mxu1 %v12140_v6  ;;  %v6585_v6 = vpop.f32.mrf.mxu1 }
 0x41b   : > { %v11851_v63 = vld [vmem:[#allocation8 + $0x950] sm:$0xf]  ;;  %v12652_v32 = vor.u32 %v15333_v41, %v12651_v8  ;;  %6871 = vmatpush.bf16.msrb.mxu2 %v12396_v13 }
 0x41c   : > { %v15133_v18 = vld [vmem:[#allocation8 + $0x96c] sm:$0xf0] }
 0x41d   : > { %v12107_v3 = vld [vmem:[#allocation8 + $0xb50] sm:$0xf]  ;;  %v11852_v56 = vor.u32 %v15133_v18, %v11851_v63  ;;  %6885 = vmatpush.bf16.msrb.mxu3 %v12652_v32 }
 0x41e   : > { %v15197_v53 = vld [vmem:[#allocation8 + $0xb6c] sm:$0xf0] }
 0x41f   : > { %v12363_v17 = vld [vmem:[#allocation8 + $0xd50] sm:$0xf]  ;;  %v12108_v39 = vor.u32 %v15197_v53, %v12107_v3  ;;  %6844 = vmatpush.bf16.msrb.mxu0 %v11852_v56  ;;  %v6586_v53 = vadd.f32 %v6585_v6, %v6572_v15  ;;  %v6613_v31 = vpop.f32.mrf.mxu3 }
 0x420   : > { %v15261_v5 = vld [vmem:[#allocation8 + $0xd6c] sm:$0xf0] }
 0x421   : > { %v12619_v43 = vld [vmem:[#allocation8 + $0xf50] sm:$0xf]  ;;  %v12364_v24 = vor.u32 %v15261_v5, %v12363_v17  ;;  %6858 = vmatpush.bf16.msrb.mxu1 %v12108_v39 }
 0x422   : > { %v15325_v2 = vld [vmem:[#allocation8 + $0xf6c] sm:$0xf0] }
 0x423   : > { %v11819_v34 = vld [vmem:[#allocation8 + $0x910] sm:$0xf]  ;;  %v12620_v54 = vor.u32 %v15325_v2, %v12619_v43  ;;  %6872 = vmatpush.bf16.msrb.mxu2 %v12364_v24 }
 0x424   : > { %v15125_v42 = vld [vmem:[#allocation8 + $0x92c] sm:$0xf0] }
 0x425   : > { %v12075_v14 = vld [vmem:[#allocation8 + $0xb10] sm:$0xf]  ;;  %v11820_v47 = vor.u32 %v15125_v42, %v11819_v34  ;;  %6886 = vmatpush.bf16.msrb.mxu3 %v12620_v54 }
 0x426   : > { %v15189_v9 = vld [vmem:[#allocation8 + $0xb2c] sm:$0xf0] }
 0x427   : > { %v12331_v36 = vld [vmem:[#allocation8 + $0xd10] sm:$0xf]  ;;  %v12076_v8 = vor.u32 %v15189_v9, %v12075_v14  ;;  %6845 = vmatpush.bf16.msrb.mxu0 %v11820_v47  ;;  %v6599_v9 = vpop.f32.mrf.mxu2 }
 0x428   : > { %v15253_v30 = vld [vmem:[#allocation8 + $0xd2c] sm:$0xf0] }
 0x429   : > { %v12587_v44 = vld [vmem:[#allocation8 + $0xf10] sm:$0xf]  ;;  %v12332_v63 = vor.u32 %v15253_v30, %v12331_v36  ;;  %6859 = vmatpush.bf16.msrb.mxu1 %v12076_v8 }
 0x42a   : > { %v15317_v45 = vld [vmem:[#allocation8 + $0xf2c] sm:$0xf0] }
 0x42b   : > { %v11787_v41 = vld [vmem:[#allocation8 + $0x8d0] sm:$0xf]  ;;  %v12588_v18 = vor.u32 %v15317_v45, %v12587_v44  ;;  %6873 = vmatpush.bf16.msrb.mxu2 %v12332_v63  ;;  %v6600_v45 = vadd.f32 %v6599_v9, %v6586_v53 }
 0x42c   : > { %v15117_v55 = vld [vmem:[#allocation8 + $0x8ec] sm:$0xf0] }
 0x42d   : > { %v12043_v13 = vld [vmem:[#allocation8 + $0xad0] sm:$0xf]  ;;  %v11788_v2 = vor.u32 %v15117_v55, %v11787_v41  ;;  %6887 = vmatpush.bf16.msrb.mxu3 %v12588_v18  ;;  %v17226_v55 = vadd.f32 %v6613_v31, %v6600_v45 }
 0x42e   : > { %v15181_v32 = vld [vmem:[#allocation8 + $0xaec] sm:$0xf0] }
 0x42f   : > { %v12299_v3 = vld [vmem:[#allocation8 + $0xcd0] sm:$0xf]  ;;  %v12044_v57 = vor.u32 %v15181_v32, %v12043_v13  ;;  %6846 = vmatpush.bf16.msrb.mxu0 %v11788_v2 }
 0x430   : > { %v15245_v17 = vld [vmem:[#allocation8 + $0xcec] sm:$0xf0] }
 0x431   : > { %v12555_v5 = vld [vmem:[#allocation8 + $0xed0] sm:$0xf]  ;;  %v12300_v34 = vor.u32 %v15245_v17, %v12299_v3  ;;  %6860 = vmatpush.bf16.msrb.mxu1 %v12044_v57 }
 0x432   : > { %v15309_v43 = vld [vmem:[#allocation8 + $0xeec] sm:$0xf0] }
 0x433   : > { %v11755_v56 = vld [vmem:[#allocation8 + $0x890] sm:$0xf]  ;;  %v12556_v42 = vor.u32 %v15309_v43, %v12555_v5  ;;  %6874 = vmatpush.bf16.msrb.mxu2 %v12300_v34 }
 0x434   : > { %v15109_v39 = vld [vmem:[#allocation8 + $0x8ac] sm:$0xf0] }
 0x435   : > { %v12011_v24 = vld [vmem:[#allocation8 + $0xa90] sm:$0xf]  ;;  %v11756_v15 = vor.u32 %v15109_v39, %v11755_v56  ;;  %6888 = vmatpush.bf16.msrb.mxu3 %v12556_v42 }
 0x436   : > { %v15173_v54 = vld [vmem:[#allocation8 + $0xaac] sm:$0xf0] }
 0x437   : > { %v12267_v14 = vld [vmem:[#allocation8 + $0xc90] sm:$0xf]  ;;  %v12012_v47 = vor.u32 %v15173_v54, %v12011_v24  ;;  %6847 = vmatpush.bf16.msrb.mxu0 %v11756_v15 }
 0x438   : > { %v15237_v36 = vld [vmem:[#allocation8 + $0xcac] sm:$0xf0] }
 0x439   : > { %v12523_v30 = vld [vmem:[#allocation8 + $0xe90] sm:$0xf]  ;;  %v12268_v6 = vor.u32 %v15237_v36, %v12267_v14  ;;  %6861 = vmatpush.bf16.msrb.mxu1 %v12012_v47 }
 0x43a   : > { %v15301_v44 = vld [vmem:[#allocation8 + $0xeac] sm:$0xf0] }
 0x43b   : > { %v11723_v8 = vld [vmem:[#allocation8 + $0x850] sm:$0xf]  ;;  %v12524_v63 = vor.u32 %v15301_v44, %v12523_v30  ;;  %6875 = vmatpush.bf16.msrb.mxu2 %v12268_v6 }
 0x43c   : > { %v15101_v41 = vld [vmem:[#allocation8 + $0x86c] sm:$0xf0] }
 0x43d   : > { %v11979_v18 = vld [vmem:[#allocation8 + $0xa50] sm:$0xf]  ;;  %v11724_v43 = vor.u32 %v15101_v41, %v11723_v8  ;;  %6889 = vmatpush.bf16.msrb.mxu3 %v12524_v63 }
 0x43e   : > { %v15165_v13 = vld [vmem:[#allocation8 + $0xa6c] sm:$0xf0] }
 0x43f   : > { %v12235_v32 = vld [vmem:[#allocation8 + $0xc50] sm:$0xf]  ;;  %v11980_v2 = vor.u32 %v15165_v13, %v11979_v18  ;;  %6848 = vmatpush.bf16.msrb.mxu0 %v11724_v43 }
 0x440   : > { %v15229_v3 = vld [vmem:[#allocation8 + $0xc6c] sm:$0xf0] }
 0x441   : > { %v12491_v17 = vld [vmem:[#allocation8 + $0xe50] sm:$0xf]  ;;  %v12236_v34 = vor.u32 %v15229_v3, %v12235_v32  ;;  %6862 = vmatpush.bf16.msrb.mxu1 %v11980_v2 }
 0x442   : > { %v15293_v5 = vld [vmem:[#allocation8 + $0xe6c] sm:$0xf0] }
 0x443   : > { %v11691_v53 = vld [vmem:[#allocation8 + $0x810] sm:$0xf]  ;;  %v12492_v42 = vor.u32 %v15293_v5, %v12491_v17  ;;  %6876 = vmatpush.bf16.msrb.mxu2 %v12236_v34 }
 0x444   : > { %v15093_v57 = vld [vmem:[#allocation8 + $0x82c] sm:$0xf0] }
 0x445   : > { %v11947_v56 = vld [vmem:[#allocation8 + $0xa10] sm:$0xf]  ;;  %v11692_v15 = vor.u32 %v15093_v57, %v11691_v53  ;;  %6890 = vmatpush.bf16.msrb.mxu3 %v12492_v42  ;;  %v17228_v57 = vpop.f32.mrf.mxu0 }
 0x446   : > { %v15157_v39 = vld [vmem:[#allocation8 + $0xa2c] sm:$0xf0]  ;;  %17746 = vst [vmem:[#allocation52_spill] sm:$0xff] %v17228_v57  ;;  %v11117_v57 = vld [vmem:[#allocation8 + $0x3b0] sm:$0xf0] }
 0x447   : > { %v12203_v24 = vld [vmem:[#allocation8 + $0xc10] sm:$0xf]  ;;  %v11948_v47 = vor.u32 %v15157_v39, %v11947_v56  ;;  %6849 = vmatpush.bf16.msrb.mxu0 %v11692_v15 }
 0x448   : > { %v15221_v54 = vld [vmem:[#allocation8 + $0xc2c] sm:$0xf0] }
 0x449   : > { %v12459_v14 = vld [vmem:[#allocation8 + $0xe10] sm:$0xf]  ;;  %v12204_v6 = vor.u32 %v15221_v54, %v12203_v24  ;;  %6863 = vmatpush.bf16.msrb.mxu1 %v11948_v47  ;;  %v17230_v24 = vpop.f32.mrf.mxu1 }
 0x44a   : > { %v15285_v9 = vld [vmem:[#allocation8 + $0xe2c] sm:$0xf0]  ;;  %17747 = vst [vmem:[#allocation53_spill] sm:$0xff] %v17230_v24  ;;  %6850 = vmatmul.bf16.vlgmr.msrb.gmra.mxu0 %v16989_v58  ;;  %v14945_v24 = vld [vmem:[#allocation8 + $0x394] sm:$0xf] }
 0x44b   : > { %v12939_v36 = vld [vmem:[#allocation8 + $0x11d0] sm:$0xf]  ;;  %v12460_v63 = vor.u32 %v15285_v9, %v12459_v14  ;;  %6877 = vmatpush.bf16.msrb.mxu2 %v12204_v6 }
 0x44c   : > { %v15405_v30 = vld [vmem:[#allocation8 + $0x11ec] sm:$0xf0]  ;;  %6864 = vmatmul.bf16.vlgmr.msrb.gmra.mxu1 %v16991_v46 }
 0x44d   : > { %v13195_v44 = vld [vmem:[#allocation8 + $0x13d0] sm:$0xf]  ;;  %v12940_v13 = vor.u32 %v15405_v30, %v12939_v36  ;;  %6891 = vmatpush.bf16.msrb.mxu3 %v12460_v63  ;;  %v17237_v63 = vpop.f32.mrf.mxu2 }
 0x44e   : > { %v15469_v45 = vld [vmem:[#allocation8 + $0x13ec] sm:$0xf0]  ;;  %6878 = vmatmul.bf16.vlgmr.msrb.gmra.mxu2 %v16993_v11  ;;  %17748 = vst [vmem:[#allocation54_spill] sm:$0xff] %v17237_v63 }
 0x44f   : > { %v13451_v31 = vld [vmem:[#allocation8 + $0x15d0] sm:$0xf]  ;;  %v13196_v32 = vor.u32 %v15469_v45, %v13195_v44  ;;  %6898 = vmatpush.bf16.msra.mxu0 %v12940_v13 }
 0x450   : > { %v15533_v8 = vld [vmem:[#allocation8 + $0x15ec] sm:$0xf0]  ;;  %6892 = vmatmul.bf16.vlgmr.msrb.gmra.mxu3 %v16995_v12 }
 0x451   : > { %v13707_v41 = vld [vmem:[#allocation8 + $0x17d0] sm:$0xf]  ;;  %v13452_v5 = vor.u32 %v15533_v8, %v13451_v31  ;;  %6912 = vmatpush.bf16.msra.mxu1 %v13196_v32 }
 0x452   : > { %v15597_v18 = vld [vmem:[#allocation8 + $0x17ec] sm:$0xf0] }
 0x453   : > { %v12907_v3 = vld [vmem:[#allocation8 + $0x1190] sm:$0xf]  ;;  %v13708_v51 = vor.u32 %v15597_v18, %v13707_v41  ;;  %6926 = vmatpush.bf16.msra.mxu2 %v13452_v5  ;;  %v17239_v5 = vpop.f32.mrf.mxu3 }
 0x454   : > { %v15397_v17 = vld [vmem:[#allocation8 + $0x11ac] sm:$0xf0]  ;;  %17749 = vst [vmem:[#allocation55_spill] sm:$0xff] %v17239_v5  ;;  %v15017_v5 = vld [vmem:[#allocation8 + $0x5d4] sm:$0xf] }
 0x455   : > { %v13163_v61 = vld [vmem:[#allocation8 + $0x1390] sm:$0xf]  ;;  %v12908_v56 = vor.u32 %v15397_v17, %v12907_v3  ;;  %6940 = vmatpush.bf16.msra.mxu3 %v13708_v51  ;;  %v6627_v17 = vpop.f32.mrf.mxu0 }
 0x456   : > { %v15461_v22 = vld [vmem:[#allocation8 + $0x13ac] sm:$0xf0] }
 0x457   : > { %v13419_v37 = vld [vmem:[#allocation8 + $0x1590] sm:$0xf]  ;;  %v13164_v39 = vor.u32 %v15461_v22, %v13163_v61  ;;  %6899 = vmatpush.bf16.msra.mxu0 %v12908_v56 }
 0x458   : > { %v15525_v53 = vld [vmem:[#allocation8 + $0x15ac] sm:$0xf0] }
 0x459   : > { %v13675_v43 = vld [vmem:[#allocation8 + $0x1790] sm:$0xf]  ;;  %v13420_v54 = vor.u32 %v15525_v53, %v13419_v37  ;;  %6913 = vmatpush.bf16.msra.mxu1 %v13164_v39  ;;  %v17694_v37 = vperm.slane %v17179_v20, 3 }
 0x45a   : > { %v15589_v2 = vld [vmem:[#allocation8 + $0x17ac] sm:$0xf0] }
 0x45b   : > { %v12875_v34 = vld [vmem:[#allocation8 + $0x1150] sm:$0xf]  ;;  %v13676_v14 = vor.u32 %v15589_v2, %v13675_v43  ;;  %6927 = vmatpush.bf16.msra.mxu2 %v13420_v54  ;;  %v6628_v53 = vadd.f32 %v6627_v17, %v17694_v37 }
 0x45c   : > { %v15389_v42 = vld [vmem:[#allocation8 + $0x116c] sm:$0xf0] }
 0x45d   : > { %v13131_v9 = vld [vmem:[#allocation8 + $0x1350] sm:$0xf]  ;;  %v12876_v22 = vor.u32 %v15389_v42, %v12875_v34  ;;  %6941 = vmatpush.bf16.msra.mxu3 %v13676_v14  ;;  %v6641_v34 = vpop.f32.mrf.mxu1 }
 0x45e   : > { %v15453_v36 = vld [vmem:[#allocation8 + $0x136c] sm:$0xf0] }
 0x45f   : > { %v13387_v30 = vld [vmem:[#allocation8 + $0x1550] sm:$0xf]  ;;  %v13132_v61 = vor.u32 %v15453_v36, %v13131_v9  ;;  %6900 = vmatpush.bf16.msra.mxu0 %v12876_v22 }
 0x460   : > { %v15517_v44 = vld [vmem:[#allocation8 + $0x156c] sm:$0xf0] }
 0x461   : > { %v13643_v45 = vld [vmem:[#allocation8 + $0x1750] sm:$0xf]  ;;  %v13388_v47 = vor.u32 %v15517_v44, %v13387_v30  ;;  %6914 = vmatpush.bf16.msra.mxu1 %v13132_v61  ;;  %v6642_v30 = vadd.f32 %v6641_v34, %v6628_v53 }
 0x462   : > { %v15581_v31 = vld [vmem:[#allocation8 + $0x176c] sm:$0xf0] }
 0x463   : > { %v12843_v51 = vld [vmem:[#allocation8 + $0x1110] sm:$0xf]  ;;  %v13644_v8 = vor.u32 %v15581_v31, %v13643_v45  ;;  %6928 = vmatpush.bf16.msra.mxu2 %v13388_v47 }
 0x464   : > { %v15381_v15 = vld [vmem:[#allocation8 + $0x112c] sm:$0xf0] }
 0x465   : > { %v13099_v41 = vld [vmem:[#allocation8 + $0x1310] sm:$0xf]  ;;  %v12844_v43 = vor.u32 %v15381_v15, %v12843_v51  ;;  %6942 = vmatpush.bf16.msra.mxu3 %v13644_v8 }
 0x466   : > { %v15445_v18 = vld [vmem:[#allocation8 + $0x132c] sm:$0xf0] }
 0x467   : > { %v13355_v6 = vld [vmem:[#allocation8 + $0x1510] sm:$0xf]  ;;  %v13100_v2 = vor.u32 %v15445_v18, %v13099_v41  ;;  %6901 = vmatpush.bf16.msra.mxu0 %v12844_v43  ;;  %v6669_v43 = vpop.f32.mrf.mxu3 }
 0x468   : > { %v15509_v13 = vld [vmem:[#allocation8 + $0x152c] sm:$0xf0] }
 0x469   : > { %v13611_v32 = vld [vmem:[#allocation8 + $0x1710] sm:$0xf]  ;;  %v13356_v42 = vor.u32 %v15509_v13, %v13355_v6  ;;  %6915 = vmatpush.bf16.msra.mxu1 %v13100_v2  ;;  %v6655_v13 = vpop.f32.mrf.mxu2 }
 0x46a   : > { %v15573_v3 = vld [vmem:[#allocation8 + $0x172c] sm:$0xf0]  ;;  %v6656_v53 = vadd.f32 %v6655_v13, %v6642_v30 }
 0x46b   : > { %v12811_v56 = vld [vmem:[#allocation8 + $0x10d0] sm:$0xf]  ;;  %v13612_v54 = vor.u32 %v15573_v3, %v13611_v32  ;;  %6929 = vmatpush.bf16.msra.mxu2 %v13356_v42 }
 0x46c   : > { %v15373_v39 = vld [vmem:[#allocation8 + $0x10ec] sm:$0xf0]  ;;  %v17243_v42 = vadd.f32 %v6669_v43, %v6656_v53  ;;  %v14953_v53 = vld [vmem:[#allocation8 + $0x3d4] sm:$0xf] }
 0x46d   : > { %v13067_v14 = vld [vmem:[#allocation8 + $0x12d0] sm:$0xf]  ;;  %v12812_v22 = vor.u32 %v15373_v39, %v12811_v56  ;;  %6943 = vmatpush.bf16.msra.mxu3 %v13612_v54  ;;  %v11149_v43 = vld [vmem:[#allocation8 + $0x3f0] sm:$0xf0] }
 0x46e   : > { %v15437_v9 = vld [vmem:[#allocation8 + $0x12ec] sm:$0xf0] }
 0x46f   : > { %v13323_v36 = vld [vmem:[#allocation8 + $0x14d0] sm:$0xf]  ;;  %v13068_v61 = vor.u32 %v15437_v9, %v13067_v14  ;;  %6902 = vmatpush.bf16.msra.mxu0 %v12812_v22 }
 0x470   : > { %v15501_v44 = vld [vmem:[#allocation8 + $0x14ec] sm:$0xf0] }
 0x471   : > { %v13579_v45 = vld [vmem:[#allocation8 + $0x16d0] sm:$0xf]  ;;  %v13324_v47 = vor.u32 %v15501_v44, %v13323_v36  ;;  %6916 = vmatpush.bf16.msra.mxu1 %v13068_v61 }
 0x472   : > { %v15565_v31 = vld [vmem:[#allocation8 + $0x16ec] sm:$0xf0] }
 0x473   : > { %v12779_v51 = vld [vmem:[#allocation8 + $0x1090] sm:$0xf]  ;;  %v13580_v8 = vor.u32 %v15565_v31, %v13579_v45  ;;  %6930 = vmatpush.bf16.msra.mxu2 %v13324_v47 }
 0x474   : > { %v15365_v15 = vld [vmem:[#allocation8 + $0x10ac] sm:$0xf0] }
 0x475   : > { %v13035_v41 = vld [vmem:[#allocation8 + $0x1290] sm:$0xf]  ;;  %v12780_v2 = vor.u32 %v15365_v15, %v12779_v51  ;;  %6944 = vmatpush.bf16.msra.mxu3 %v13580_v8 }
 0x476   : > { %v15429_v18 = vld [vmem:[#allocation8 + $0x12ac] sm:$0xf0] }
 0x477   : > { %v13291_v6 = vld [vmem:[#allocation8 + $0x1490] sm:$0xf]  ;;  %v13036_v56 = vor.u32 %v15429_v18, %v13035_v41  ;;  %6903 = vmatpush.bf16.msra.mxu0 %v12780_v2 }
 0x478   : > { %v15493_v32 = vld [vmem:[#allocation8 + $0x14ac] sm:$0xf0] }
 0x479   : > { %v13547_v3 = vld [vmem:[#allocation8 + $0x1690] sm:$0xf]  ;;  %v13292_v54 = vor.u32 %v15493_v32, %v13291_v6  ;;  %6917 = vmatpush.bf16.msra.mxu1 %v13036_v56 }
 0x47a   : > { %v15557_v17 = vld [vmem:[#allocation8 + $0x16ac] sm:$0xf0] }
 0x47b   : > { %v12747_v39 = vld [vmem:[#allocation8 + $0x1050] sm:$0xf]  ;;  %v13548_v14 = vor.u32 %v15557_v17, %v13547_v3  ;;  %6931 = vmatpush.bf16.msra.mxu2 %v13292_v54  ;;  %v14889_v3 = vld [vmem:[#allocation8 + $0x1d4] sm:$0xf] }
 0x47c   : > { %v15357_v34 = vld [vmem:[#allocation8 + $0x106c] sm:$0xf0]  ;;  %v10893_v17 = vld [vmem:[#allocation8 + $0x1f0] sm:$0xf0] }
 0x47d   : > { %v13003_v9 = vld [vmem:[#allocation8 + $0x1250] sm:$0xf]  ;;  %v12748_v22 = vor.u32 %v15357_v34, %v12747_v39  ;;  %6945 = vmatpush.bf16.msra.mxu3 %v13548_v14  ;;  %v11405_v39 = vld [vmem:[#allocation8 + $0x5f0] sm:$0xf0]  ;;  %v10896_v14 = vor.u32 %v14889_v3, %v10893_v17 }
 0x47e   : > { %v15421_v36 = vld [vmem:[#allocation8 + $0x126c] sm:$0xf0]  ;;  %v15081_v34 = vld [vmem:[#allocation8 + $0x7d4] sm:$0xf] }
 0x47f   : > { %v13259_v44 = vld [vmem:[#allocation8 + $0x1450] sm:$0xf]  ;;  %v13004_v61 = vor.u32 %v15421_v36, %v13003_v9  ;;  %6904 = vmatpush.bf16.msra.mxu0 %v12748_v22  ;;  %v11661_v9 = vld [vmem:[#allocation8 + $0x7f0] sm:$0xf0]  ;;  %v11152_v36 = vor.u32 %v14953_v53, %v11149_v43 }
 0x480   : > { %v15485_v45 = vld [vmem:[#allocation8 + $0x146c] sm:$0xf0]  ;;  %v11664_v63 = vor.u32 %v15081_v34, %v11661_v9  ;;  %v15073_v22 = vld [vmem:[#allocation8 + $0x794] sm:$0xf] }
 0x481   : > { %v13515_v31 = vld [vmem:[#allocation8 + $0x1650] sm:$0xf]  ;;  %v13260_v47 = vor.u32 %v15485_v45, %v13259_v44  ;;  %6918 = vmatpush.bf16.msra.mxu1 %v13004_v61  ;;  %v14881_v44 = vld [vmem:[#allocation8 + $0x194] sm:$0xf] }
 0x482   : > { %v15549_v37 = vld [vmem:[#allocation8 + $0x166c] sm:$0xf0]  ;;  %v10861_v45 = vld [vmem:[#allocation8 + $0x1b0] sm:$0xf0] }
 0x483   : > { %v12715_v30 = vld [vmem:[#allocation8 + $0x1010] sm:$0xf]  ;;  %v13516_v8 = vor.u32 %v15549_v37, %v13515_v31  ;;  %6932 = vmatpush.bf16.msra.mxu2 %v13260_v47  ;;  %v11408_v31 = vor.u32 %v15017_v5, %v11405_v39  ;;  %v11629_v61 = vld [vmem:[#allocation8 + $0x7b0] sm:$0xf0]  ;;  %v17247_v5 = vpop.f32.mrf.mxu1 }
 0x484   : > { %v15349_v51 = vld [vmem:[#allocation8 + $0x102c] sm:$0xf0]  ;;  %v14873_v47 = vld [vmem:[#allocation8 + $0x154] sm:$0xf]  ;;  %17750 = vst [vmem:[#allocation56_spill] sm:$0xff] %v17247_v5 }
 0x485   : > { %v12971_v15 = vld [vmem:[#allocation8 + $0x1210] sm:$0xf]  ;;  %v12716_v2 = vor.u32 %v15349_v51, %v12715_v30  ;;  %6946 = vmatpush.bf16.msra.mxu3 %v13516_v8  ;;  %v11373_v30 = vld [vmem:[#allocation8 + $0x5b0] sm:$0xf0]  ;;  %v17245_v51 = vpop.f32.mrf.mxu0  ;;  %v12403_v5 = vld [vmem:[#allocation8 + $0xd98] sm:$0xf] }
 0x486   : > { %v15413_v41 = vld [vmem:[#allocation8 + $0x122c] sm:$0xf0]  ;;  %v10829_v8 = vld [vmem:[#allocation8 + $0x170] sm:$0xf0] }
 0x487   : > { %v13227_v18 = vld [vmem:[#allocation8 + $0x1410] sm:$0xf]  ;;  %v12972_v56 = vor.u32 %v15413_v41, %v12971_v15  ;;  %6905 = vmatpush.bf16.msra.mxu0 %v12716_v2  ;;  %v10864_v15 = vor.u32 %v14881_v44, %v10861_v45  ;;  %v11120_v41 = vor.u32 %v14945_v24, %v11117_v57  ;;  %v15001_v3 = vld [vmem:[#allocation8 + $0x554] sm:$0xf]  ;;  %v10832_v57 = vor.u32 %v14873_v47, %v10829_v8  ;;  %v17255_v45 = vpop.f32.mrf.mxu3 }
 0x488   : > { %v15477_v6 = vld [vmem:[#allocation8 + $0x142c] sm:$0xf0]  ;;  %v11341_v17 = vld [vmem:[#allocation8 + $0x570] sm:$0xf0]  ;;  %17752 = vst [vmem:[#allocation58_spill] sm:$0xff] %v17255_v45 }
 0x489   : > { %v13483_v13 = vld [vmem:[#allocation8 + $0x1610] sm:$0xf]  ;;  %v13228_v54 = vor.u32 %v15477_v6, %v13227_v18  ;;  %6919 = vmatpush.bf16.msra.mxu1 %v12972_v56  ;;  %v11376_v18 = vor.u32 %v15009_v19, %v11373_v30  ;;  %v11632_v6 = vor.u32 %v15073_v22, %v11629_v61  ;;  %v15065_v53 = vld [vmem:[#allocation8 + $0x754] sm:$0xf]  ;;  %v11344_v2 = vor.u32 %v15001_v3, %v11341_v17 }
 0x48a   : > { %v15541_v32 = vld [vmem:[#allocation8 + $0x162c] sm:$0xf0]  ;;  %6906 = vmatmul.bf16.vlgmr.msra.gmra.mxu0 %v17049_v26  ;;  %v11597_v43 = vld [vmem:[#allocation8 + $0x770] sm:$0xf0] }
 0x48b   : > { %v13484_v37 = vor.u32 %v15541_v32, %v13483_v13  ;;  %6933 = vmatpush.bf16.msra.mxu2 %v13228_v54  ;;  %6954 = vmatpush.bf16.msrb.mxu0 %v10896_v14  ;;  %v14937_v13 = vld [vmem:[#allocation8 + $0x354] sm:$0xf]  ;;  %v11600_v56 = vor.u32 %v15065_v53, %v11597_v43  ;;  %v17253_v54 = vpop.f32.mrf.mxu2 }
 0x48c   : > { %v11085_v32 = vld [vmem:[#allocation8 + $0x370] sm:$0xf0]  ;;  %6920 = vmatmul.bf16.vlgmr.msra.gmra.mxu1 %v17051_v33  ;;  %17751 = vst [vmem:[#allocation57_spill] sm:$0xff] %v17253_v54 }
 0x48d   : > { %6947 = vmatpush.bf16.msra.mxu3 %v13484_v37  ;;  %6968 = vmatpush.bf16.msrb.mxu1 %v11152_v36  ;;  %v11088_v24 = vor.u32 %v14937_v13, %v11085_v32  ;;  %v14865_v19 = vld [vmem:[#allocation8 + $0x114] sm:$0xf]  ;;  %v6683_v44 = vpop.f32.mrf.mxu0 }
 0x48e   : > { %6934 = vmatmul.bf16.vlgmr.msra.gmra.mxu2 %v17053_v49  ;;  %v14929_v39 = vld [vmem:[#allocation8 + $0x314] sm:$0xf] }
 0x48f   : > { %6982 = vmatpush.bf16.msrb.mxu2 %v11408_v31  ;;  %6955 = vmatpush.bf16.msrb.mxu0 %v10864_v15  ;;  %v11053_v34 = vld [vmem:[#allocation8 + $0x330] sm:$0xf0]  ;;  %v6684_v31 = vadd.f32 %v6683_v44, %v17243_v42  ;;  %v6725_v44 = vpop.f32.mrf.mxu3 }
 0x490   : > { %6948 = vmatmul.bf16.vlgmr.msra.gmra.mxu3 %v17055_v23  ;;  %v14993_v9 = vld [vmem:[#allocation8 + $0x514] sm:$0xf]  ;;  %v11056_v22 = vor.u32 %v14929_v39, %v11053_v34 }
 0x491   : > { %6996 = vmatpush.bf16.msrb.mxu3 %v11664_v63  ;;  %6969 = vmatpush.bf16.msrb.mxu1 %v11120_v41  ;;  %v10797_v63 = vld [vmem:[#allocation8 + $0x130] sm:$0xf0]  ;;  %v6697_v41 = vpop.f32.mrf.mxu1 }
 0x492   : > { %v11309_v37 = vld [vmem:[#allocation8 + $0x530] sm:$0xf0]  ;;  %v10800_v30 = vor.u32 %v14865_v19, %v10797_v63  ;;  %v6698_v32 = vadd.f32 %v6697_v41, %v6684_v31 }
 0x493   : > { %6983 = vmatpush.bf16.msrb.mxu2 %v11376_v18  ;;  %v15057_v14 = vld [vmem:[#allocation8 + $0x714] sm:$0xf]  ;;  %6956 = vmatpush.bf16.msrb.mxu0 %v10832_v57  ;;  %v11312_v47 = vor.u32 %v14993_v9, %v11309_v37  ;;  %v6711_v34 = vpop.f32.mrf.mxu2 }
 0x494   : > { %v11565_v36 = vld [vmem:[#allocation8 + $0x730] sm:$0xf0] }
 0x495   : > { %6997 = vmatpush.bf16.msrb.mxu3 %v11632_v6  ;;  %6970 = vmatpush.bf16.msrb.mxu1 %v11088_v24  ;;  %v14857_v61 = vld [vmem:[#allocation8 + $0xd4] sm:$0xf]  ;;  %v11568_v8 = vor.u32 %v15057_v14, %v11565_v36  ;;  %v6712_v36 = vadd.f32 %v6711_v34, %v6698_v32 }
 0x496   : > { %v10765_v15 = vld [vmem:[#allocation8 + $0xf0] sm:$0xf0] }
 0x497   : > { %6984 = vmatpush.bf16.msrb.mxu2 %v11344_v2  ;;  %v14921_v18 = vld [vmem:[#allocation8 + $0x2d4] sm:$0xf]  ;;  %6957 = vmatpush.bf16.msrb.mxu0 %v10800_v30  ;;  %v10768_v43 = vor.u32 %v14857_v61, %v10765_v15  ;;  %v17258_v15 = vadd.f32 %v6725_v44, %v6712_v36 }
 0x498   : > { %v11021_v6 = vld [vmem:[#allocation8 + $0x2f0] sm:$0xf0] }
 0x499   : > { %6998 = vmatpush.bf16.msrb.mxu3 %v11600_v56  ;;  %v14985_v13 = vld [vmem:[#allocation8 + $0x4d4] sm:$0xf]  ;;  %6971 = vmatpush.bf16.msrb.mxu1 %v11056_v22  ;;  %v11024_v42 = vor.u32 %v14921_v18, %v11021_v6 }
 0x49a   : > { %v11277_v3 = vld [vmem:[#allocation8 + $0x4f0] sm:$0xf0] }
 0x49b   : > { %v15049_v17 = vld [vmem:[#allocation8 + $0x6d4] sm:$0xf]  ;;  %6985 = vmatpush.bf16.msrb.mxu2 %v11312_v47  ;;  %v11280_v19 = vor.u32 %v14985_v13, %v11277_v3  ;;  %6958 = vmatpush.bf16.msrb.mxu0 %v10768_v43 }
 0x49c   : > { %v11533_v53 = vld [vmem:[#allocation8 + $0x6f0] sm:$0xf0] }
 0x49d   : > { %v14849_v57 = vld [vmem:[#allocation8 + $0x94] sm:$0xf]  ;;  %6999 = vmatpush.bf16.msrb.mxu3 %v11568_v8  ;;  %v11536_v63 = vor.u32 %v15049_v17, %v11533_v53  ;;  %6972 = vmatpush.bf16.msrb.mxu1 %v11024_v42 }
 0x49e   : > { %v10733_v24 = vld [vmem:[#allocation8 + $0xb0] sm:$0xf0] }
 0x49f   : > { %v14913_v2 = vld [vmem:[#allocation8 + $0x294] sm:$0xf]  ;;  %v10736_v31 = vor.u32 %v14849_v57, %v10733_v24  ;;  %6986 = vmatpush.bf16.msrb.mxu2 %v11280_v19 }
 0x4a0   : > { %v10989_v56 = vld [vmem:[#allocation8 + $0x2b0] sm:$0xf0] }
 0x4a1   : > { %v14977_v39 = vld [vmem:[#allocation8 + $0x494] sm:$0xf]  ;;  %v10992_v30 = vor.u32 %v14913_v2, %v10989_v56  ;;  %7000 = vmatpush.bf16.msrb.mxu3 %v11536_v63  ;;  %6959 = vmatpush.bf16.msrb.mxu0 %v10736_v31 }
 0x4a2   : > { %v11245_v9 = vld [vmem:[#allocation8 + $0x4b0] sm:$0xf0] }
 0x4a3   : > { %v15041_v37 = vld [vmem:[#allocation8 + $0x694] sm:$0xf]  ;;  %v11248_v41 = vor.u32 %v14977_v39, %v11245_v9  ;;  %6973 = vmatpush.bf16.msrb.mxu1 %v10992_v30 }
 0x4a4   : > { %v11501_v14 = vld [vmem:[#allocation8 + $0x6b0] sm:$0xf0] }
 0x4a5   : > { %v14841_v22 = vld [vmem:[#allocation8 + $0x54] sm:$0xf]  ;;  %v11504_v47 = vor.u32 %v15041_v37, %v11501_v14  ;;  %6987 = vmatpush.bf16.msrb.mxu2 %v11248_v41 }
 0x4a6   : > { %v10701_v61 = vld [vmem:[#allocation8 + $0x70] sm:$0xf0] }
 0x4a7   : > { %v14905_v8 = vld [vmem:[#allocation8 + $0x254] sm:$0xf]  ;;  %v10704_v53 = vor.u32 %v14841_v22, %v10701_v61  ;;  %7001 = vmatpush.bf16.msrb.mxu3 %v11504_v47 }
 0x4a8   : > { %v10957_v18 = vld [vmem:[#allocation8 + $0x270] sm:$0xf0] }
 0x4a9   : > { %v14969_v6 = vld [vmem:[#allocation8 + $0x454] sm:$0xf]  ;;  %v10960_v43 = vor.u32 %v14905_v8, %v10957_v18  ;;  %6960 = vmatpush.bf16.msrb.mxu0 %v10704_v53 }
 0x4aa   : > { %v11213_v13 = vld [vmem:[#allocation8 + $0x470] sm:$0xf0] }
 0x4ab   : > { %v15033_v3 = vld [vmem:[#allocation8 + $0x654] sm:$0xf]  ;;  %v11216_v19 = vor.u32 %v14969_v6, %v11213_v13  ;;  %6974 = vmatpush.bf16.msrb.mxu1 %v10960_v43 }
 0x4ac   : > { %v11469_v17 = vld [vmem:[#allocation8 + $0x670] sm:$0xf0] }
 0x4ad   : > { %v14833_v32 = vld [vmem:[#allocation8 + $0x14] sm:$0xf]  ;;  %v11472_v63 = vor.u32 %v15033_v3, %v11469_v17  ;;  %6988 = vmatpush.bf16.msrb.mxu2 %v11216_v19 }
 0x4ae   : > { %v10669_v42 = vld [vmem:[#allocation8 + $0x30] sm:$0xf0] }
 0x4af   : > { %v14897_v57 = vld [vmem:[#allocation8 + $0x214] sm:$0xf]  ;;  %v10672_v31 = vor.u32 %v14833_v32, %v10669_v42  ;;  %7002 = vmatpush.bf16.msrb.mxu3 %v11472_v63  ;;  %v17260_v42 = vpop.f32.mrf.mxu0 }
 0x4b0   : > { %v10925_v24 = vld [vmem:[#allocation8 + $0x230] sm:$0xf0]  ;;  %17753 = vst [vmem:[#allocation59_spill] sm:$0xff] %v17260_v42  ;;  %v14950_v42 = vld [vmem:[#allocation8 + $0x3b4] sm:$0xf0] }
 0x4b1   : > { %v14961_v2 = vld [vmem:[#allocation8 + $0x414] sm:$0xf]  ;;  %v10928_v30 = vor.u32 %v14897_v57, %v10925_v24  ;;  %6961 = vmatpush.bf16.msrb.mxu0 %v10672_v31 }
 0x4b2   : > { %v11181_v56 = vld [vmem:[#allocation8 + $0x430] sm:$0xf0] }
 0x4b3   : > { %v15025_v39 = vld [vmem:[#allocation8 + $0x614] sm:$0xf]  ;;  %v11184_v41 = vor.u32 %v14961_v2, %v11181_v56  ;;  %6975 = vmatpush.bf16.msrb.mxu1 %v10928_v30  ;;  %v17262_v2 = vpop.f32.mrf.mxu1 }
 0x4b4   : > { %v11437_v34 = vld [vmem:[#allocation8 + $0x630] sm:$0xf0]  ;;  %17754 = vst [vmem:[#allocation60_spill] sm:$0xff] %v17262_v2  ;;  %16077 = vmatmul.msk.bf16.vlgmr.msrb.gmra.mxu0 %vm16937_vm11, %v16942_v38 }
 0x4b5   : > { %v15145_v9 = vld [vmem:[#allocation8 + $0x9d4] sm:$0xf]  ;;  %v11440_v47 = vor.u32 %v15025_v39, %v11437_v34  ;;  %6989 = vmatpush.bf16.msrb.mxu2 %v11184_v41  ;;  %v17276_v41 = vpop.f32.mrf.mxu2 }
 0x4b6   : > { %v11917_v37 = vld [vmem:[#allocation8 + $0x9f0] sm:$0xf0]  ;;  %16080 = vmatmul.msk.bf16.vlgmr.msrb.gmra.mxu1 %vm16937_vm11, %v16948_v4  ;;  %17755 = vst [vmem:[#allocation61_spill] sm:$0xff] %v17276_v41 }
 0x4b7   : > { %v15209_v14 = vld [vmem:[#allocation8 + $0xbd4] sm:$0xf]  ;;  %v11920_v18 = vor.u32 %v15145_v9, %v11917_v37  ;;  %7003 = vmatpush.bf16.msrb.mxu3 %v11440_v47 }
 0x4b8   : > { %v12173_v36 = vld [vmem:[#allocation8 + $0xbf0] sm:$0xf0]  ;;  %16083 = vmatmul.msk.bf16.vlgmr.msrb.gmra.mxu2 %vm16937_vm11, %v16954_v10 }
 0x4b9   : > { %v15273_v44 = vld [vmem:[#allocation8 + $0xdd4] sm:$0xf]  ;;  %v12176_v6 = vor.u32 %v15209_v14, %v12173_v36  ;;  %7010 = vmatpush.bf16.msra.mxu0 %v11920_v18 }
 0x4ba   : > { %v12429_v22 = vld [vmem:[#allocation8 + $0xdf0] sm:$0xf0]  ;;  %16086 = vmatmul.msk.bf16.vlgmr.msrb.gmra.mxu3 %vm16937_vm11, %v16960_v59 }
 0x4bb   : > { %v15337_v61 = vld [vmem:[#allocation8 + $0xfd4] sm:$0xf]  ;;  %v12432_v17 = vor.u32 %v15273_v44, %v12429_v22  ;;  %7024 = vmatpush.bf16.msra.mxu1 %v12176_v6 }
 0x4bc   : > { %v12685_v8 = vld [vmem:[#allocation8 + $0xff0] sm:$0xf0] }
 0x4bd   : > { %v15137_v13 = vld [vmem:[#allocation8 + $0x994] sm:$0xf]  ;;  %v12688_v45 = vor.u32 %v15337_v61, %v12685_v8  ;;  %7038 = vmatpush.bf16.msra.mxu2 %v12432_v17 }
 0x4be   : > { %v11885_v3 = vld [vmem:[#allocation8 + $0x9b0] sm:$0xf0] }
 0x4bf   : > { %v12141_v54 = vld [vmem:[#allocation8 + $0xbb0] sm:$0xf0]  ;;  %v11888_v57 = vor.u32 %v15137_v13, %v11885_v3  ;;  %7052 = vmatpush.bf16.msra.mxu3 %v12688_v45  ;;  %v6739_v13 = vpop.f32.mrf.mxu0  ;;  %v17278_v3 = vpop.f32.mrf.mxu3 }
 0x4c0   : > { %v12397_v32 = vld [vmem:[#allocation8 + $0xdb0] sm:$0xf0]  ;;  %v12144_v24 = vor.u32 %v15201_v35, %v12141_v54  ;;  %17756 = vst [vmem:[#allocation62_spill] sm:$0xff] %v17278_v3  ;;  %v6740_v17 = vadd.f32 %v6739_v13, %v17258_v15 }
 0x4c1   : > { %v15329_v53 = vld [vmem:[#allocation8 + $0xf94] sm:$0xf]  ;;  %v12400_v56 = vor.u32 %v15265_v25, %v12397_v32  ;;  %7011 = vmatpush.bf16.msra.mxu0 %v11888_v57 }
 0x4c2   : > { %v12653_v43 = vld [vmem:[#allocation8 + $0xfb0] sm:$0xf0]  ;;  %7025 = vmatpush.bf16.msra.mxu1 %v12144_v24  ;;  %v6753_v24 = vpop.f32.mrf.mxu1 }
 0x4c3   : > { %v15129_v19 = vld [vmem:[#allocation8 + $0x954] sm:$0xf]  ;;  %v12656_v39 = vor.u32 %v15329_v53, %v12653_v43  ;;  %7039 = vmatpush.bf16.msra.mxu2 %v12400_v56 }
 0x4c4   : > { %v11853_v63 = vld [vmem:[#allocation8 + $0x970] sm:$0xf0] }
 0x4c5   : > { %v15193_v34 = vld [vmem:[#allocation8 + $0xb54] sm:$0xf]  ;;  %v11856_v25 = vor.u32 %v15129_v19, %v11853_v63  ;;  %7053 = vmatpush.bf16.msra.mxu3 %v12656_v39 }
 0x4c6   : > { %v12109_v9 = vld [vmem:[#allocation8 + $0xb70] sm:$0xf0] }
 0x4c7   : > { %v15257_v37 = vld [vmem:[#allocation8 + $0xd54] sm:$0xf]  ;;  %v12112_v45 = vor.u32 %v15193_v34, %v12109_v9  ;;  %7012 = vmatpush.bf16.msra.mxu0 %v11856_v25  ;;  %v6754_v9 = vadd.f32 %v6753_v24, %v6740_v17  ;;  %v6781_v13 = vpop.f32.mrf.mxu3 }
 0x4c8   : > { %v12365_v35 = vld [vmem:[#allocation8 + $0xd70] sm:$0xf0] }
 0x4c9   : > { %v15321_v54 = vld [vmem:[#allocation8 + $0xf54] sm:$0xf]  ;;  %v12368_v31 = vor.u32 %v15257_v37, %v12365_v35  ;;  %7026 = vmatpush.bf16.msra.mxu1 %v12112_v45 }
 0x4ca   : > { %v12621_v14 = vld [vmem:[#allocation8 + $0xf70] sm:$0xf0] }
 0x4cb   : > { %v15121_v36 = vld [vmem:[#allocation8 + $0x914] sm:$0xf]  ;;  %v12624_v30 = vor.u32 %v15321_v54, %v12621_v14  ;;  %7040 = vmatpush.bf16.msra.mxu2 %v12368_v31 }
 0x4cc   : > { %v11821_v44 = vld [vmem:[#allocation8 + $0x930] sm:$0xf0] }
 0x4cd   : > { %v15185_v22 = vld [vmem:[#allocation8 + $0xb14] sm:$0xf]  ;;  %v11824_v32 = vor.u32 %v15121_v36, %v11821_v44  ;;  %7054 = vmatpush.bf16.msra.mxu3 %v12624_v30 }
 0x4ce   : > { %v12077_v61 = vld [vmem:[#allocation8 + $0xb30] sm:$0xf0] }
 0x4cf   : > { %v15249_v8 = vld [vmem:[#allocation8 + $0xd14] sm:$0xf]  ;;  %v12080_v53 = vor.u32 %v15185_v22, %v12077_v61  ;;  %7013 = vmatpush.bf16.msra.mxu0 %v11824_v32  ;;  %v6767_v61 = vpop.f32.mrf.mxu2 }
 0x4d0   : > { %v12333_v47 = vld [vmem:[#allocation8 + $0xd30] sm:$0xf0] }
 0x4d1   : > { %v15313_v18 = vld [vmem:[#allocation8 + $0xf14] sm:$0xf]  ;;  %v12336_v19 = vor.u32 %v15249_v8, %v12333_v47  ;;  %7027 = vmatpush.bf16.msra.mxu1 %v12080_v53 }
 0x4d2   : > { %v12589_v6 = vld [vmem:[#allocation8 + $0xf30] sm:$0xf0] }
 0x4d3   : > { %v15113_v43 = vld [vmem:[#allocation8 + $0x8d4] sm:$0xf]  ;;  %v12592_v63 = vor.u32 %v15313_v18, %v12589_v6  ;;  %7041 = vmatpush.bf16.msra.mxu2 %v12336_v19  ;;  %v6768_v6 = vadd.f32 %v6767_v61, %v6754_v9 }
 0x4d4   : > { %v11789_v57 = vld [vmem:[#allocation8 + $0x8f0] sm:$0xf0] }
 0x4d5   : > { %v15177_v56 = vld [vmem:[#allocation8 + $0xad4] sm:$0xf]  ;;  %v11792_v14 = vor.u32 %v15113_v43, %v11789_v57  ;;  %7055 = vmatpush.bf16.msra.mxu3 %v12592_v63  ;;  %v17281_v57 = vadd.f32 %v6781_v13, %v6768_v6 }
 0x4d6   : > { %v12045_v39 = vld [vmem:[#allocation8 + $0xaf0] sm:$0xf0] }
 0x4d7   : > { %v15241_v34 = vld [vmem:[#allocation8 + $0xcd4] sm:$0xf]  ;;  %v12048_v15 = vor.u32 %v15177_v56, %v12045_v39  ;;  %7014 = vmatpush.bf16.msra.mxu0 %v11792_v14  ;;  %17757 = vst [vmem:[#allocation63_spill] sm:$0xff] %v17281_v57 }
 0x4d8   : > { %v12301_v37 = vld [vmem:[#allocation8 + $0xcf0] sm:$0xf0] }
 0x4d9   : > { %v15305_v35 = vld [vmem:[#allocation8 + $0xed4] sm:$0xf]  ;;  %v12304_v36 = vor.u32 %v15241_v34, %v12301_v37  ;;  %7028 = vmatpush.bf16.msra.mxu1 %v12048_v15 }
 0x4da   : > { %v12557_v54 = vld [vmem:[#allocation8 + $0xef0] sm:$0xf0] }
 0x4db   : > { %v15105_v25 = vld [vmem:[#allocation8 + $0x894] sm:$0xf]  ;;  %v12560_v44 = vor.u32 %v15305_v35, %v12557_v54  ;;  %7042 = vmatpush.bf16.msra.mxu2 %v12304_v36 }
 0x4dc   : > { %v11757_v45 = vld [vmem:[#allocation8 + $0x8b0] sm:$0xf0] }
 0x4dd   : > { %v15169_v31 = vld [vmem:[#allocation8 + $0xa94] sm:$0xf]  ;;  %v11760_v17 = vor.u32 %v15105_v25, %v11757_v45  ;;  %7056 = vmatpush.bf16.msra.mxu3 %v12560_v44 }
 0x4de   : > { %v12013_v30 = vld [vmem:[#allocation8 + $0xab0] sm:$0xf0] }
 0x4df   : > { %v15233_v22 = vld [vmem:[#allocation8 + $0xc94] sm:$0xf]  ;;  %v12016_v32 = vor.u32 %v15169_v31, %v12013_v30  ;;  %7015 = vmatpush.bf16.msra.mxu0 %v11760_v17 }
 0x4e0   : > { %v12269_v8 = vld [vmem:[#allocation8 + $0xcb0] sm:$0xf0] }
 0x4e1   : > { %v15297_v47 = vld [vmem:[#allocation8 + $0xe94] sm:$0xf]  ;;  %v12272_v24 = vor.u32 %v15233_v22, %v12269_v8  ;;  %7029 = vmatpush.bf16.msra.mxu1 %v12016_v32 }
 0x4e2   : > { %v12525_v18 = vld [vmem:[#allocation8 + $0xeb0] sm:$0xf0] }
 0x4e3   : > { %v15097_v53 = vld [vmem:[#allocation8 + $0x854] sm:$0xf]  ;;  %v12528_v19 = vor.u32 %v15297_v47, %v12525_v18  ;;  %7043 = vmatpush.bf16.msra.mxu2 %v12272_v24 }
 0x4e4   : > { %v11725_v43 = vld [vmem:[#allocation8 + $0x870] sm:$0xf0] }
 0x4e5   : > { %v15161_v63 = vld [vmem:[#allocation8 + $0xa54] sm:$0xf]  ;;  %v11728_v54 = vor.u32 %v15097_v53, %v11725_v43  ;;  %7057 = vmatpush.bf16.msra.mxu3 %v12528_v19 }
 0x4e6   : > { %v11981_v56 = vld [vmem:[#allocation8 + $0xa70] sm:$0xf0] }
 0x4e7   : > { %v15225_v39 = vld [vmem:[#allocation8 + $0xc54] sm:$0xf]  ;;  %v11984_v14 = vor.u32 %v15161_v63, %v11981_v56  ;;  %7016 = vmatpush.bf16.msra.mxu0 %v11728_v54 }
 0x4e8   : > { %v12237_v34 = vld [vmem:[#allocation8 + $0xc70] sm:$0xf0] }
 0x4e9   : > { %v15289_v37 = vld [vmem:[#allocation8 + $0xe54] sm:$0xf]  ;;  %v12240_v36 = vor.u32 %v15225_v39, %v12237_v34  ;;  %7030 = vmatpush.bf16.msra.mxu1 %v11984_v14 }
 0x4ea   : > { %v12493_v35 = vld [vmem:[#allocation8 + $0xe70] sm:$0xf0] }
 0x4eb   : > { %v15089_v9 = vld [vmem:[#allocation8 + $0x814] sm:$0xf]  ;;  %v12496_v44 = vor.u32 %v15289_v37, %v12493_v35  ;;  %7044 = vmatpush.bf16.msra.mxu2 %v12240_v36 }
 0x4ec   : > { %v11693_v15 = vld [vmem:[#allocation8 + $0x830] sm:$0xf0] }
 0x4ed   : > { %v15153_v25 = vld [vmem:[#allocation8 + $0xa14] sm:$0xf]  ;;  %v11696_v17 = vor.u32 %v15089_v9, %v11693_v15  ;;  %7058 = vmatpush.bf16.msra.mxu3 %v12496_v44  ;;  %v17283_v15 = vpop.f32.mrf.mxu0 }
 0x4ee   : > { %v11949_v45 = vld [vmem:[#allocation8 + $0xa30] sm:$0xf0]  ;;  %17758 = vst [vmem:[#allocation64_spill] sm:$0xff] %v17283_v15  ;;  %v11123_v15 = vld [vmem:[#allocation8 + $0x398] sm:$0xf] }
 0x4ef   : > { %v15217_v31 = vld [vmem:[#allocation8 + $0xc14] sm:$0xf]  ;;  %v11952_v32 = vor.u32 %v15153_v25, %v11949_v45  ;;  %7017 = vmatpush.bf16.msra.mxu0 %v11696_v17 }
 0x4f0   : > { %v12205_v30 = vld [vmem:[#allocation8 + $0xc30] sm:$0xf0] }
 0x4f1   : > { %v15281_v22 = vld [vmem:[#allocation8 + $0xe14] sm:$0xf]  ;;  %v12208_v24 = vor.u32 %v15217_v31, %v12205_v30  ;;  %7031 = vmatpush.bf16.msra.mxu1 %v11952_v32  ;;  %v17285_v31 = vpop.f32.mrf.mxu1 }
 0x4f2   : > { %v12461_v61 = vld [vmem:[#allocation8 + $0xe30] sm:$0xf0]  ;;  %17759 = vst [vmem:[#allocation65_spill] sm:$0xff] %v17285_v31  ;;  %7018 = vmatmul.bf16.vlgmr.msra.gmra.mxu0 %v16989_v58 }
 0x4f3   : > { %v15401_v8 = vld [vmem:[#allocation8 + $0x11d4] sm:$0xf]  ;;  %v12464_v19 = vor.u32 %v15281_v22, %v12461_v61  ;;  %7045 = vmatpush.bf16.msra.mxu2 %v12208_v24 }
 0x4f4   : > { %v12941_v47 = vld [vmem:[#allocation8 + $0x11f0] sm:$0xf0]  ;;  %7032 = vmatmul.bf16.vlgmr.msra.gmra.mxu1 %v16991_v46 }
 0x4f5   : > { %v15465_v18 = vld [vmem:[#allocation8 + $0x13d4] sm:$0xf]  ;;  %v12944_v56 = vor.u32 %v15401_v8, %v12941_v47  ;;  %7059 = vmatpush.bf16.msra.mxu3 %v12464_v19 }
 0x4f6   : > { %v13197_v6 = vld [vmem:[#allocation8 + $0x13f0] sm:$0xf0]  ;;  %7046 = vmatmul.bf16.vlgmr.msra.gmra.mxu2 %v16993_v11 }
 0x4f7   : > { %v15529_v13 = vld [vmem:[#allocation8 + $0x15d4] sm:$0xf]  ;;  %v13200_v39 = vor.u32 %v15465_v18, %v13197_v6  ;;  %7066 = vmatpush.bf16.msrb.mxu0 %v12944_v56  ;;  %v17294_v56 = vpop.f32.mrf.mxu2 }
 0x4f8   : > { %v13453_v53 = vld [vmem:[#allocation8 + $0x15f0] sm:$0xf0]  ;;  %7060 = vmatmul.bf16.vlgmr.msra.gmra.mxu3 %v16995_v12  ;;  %17760 = vst [vmem:[#allocation66_spill] sm:$0xff] %v17294_v56  ;;  %v11411_v56 = vld [vmem:[#allocation8 + $0x5d8] sm:$0xf] }
 0x4f9   : > { %v15593_v43 = vld [vmem:[#allocation8 + $0x17d4] sm:$0xf]  ;;  %v13456_v35 = vor.u32 %v15529_v13, %v13453_v53  ;;  %7080 = vmatpush.bf16.msrb.mxu1 %v13200_v39 }
 0x4fa   : > { %v13709_v63 = vld [vmem:[#allocation8 + $0x17f0] sm:$0xf0] }
 0x4fb   : > { %v15393_v34 = vld [vmem:[#allocation8 + $0x1194] sm:$0xf]  ;;  %v13712_v57 = vor.u32 %v15593_v43, %v13709_v63  ;;  %7094 = vmatpush.bf16.msrb.mxu2 %v13456_v35  ;;  %v6795_v35 = vpop.f32.mrf.mxu0 }
 0x4fc   : > { %v12909_v37 = vld [vmem:[#allocation8 + $0x11b0] sm:$0xf0] }
 0x4fd   : > { %v15457_v3 = vld [vmem:[#allocation8 + $0x1394] sm:$0xf]  ;;  %v12912_v25 = vor.u32 %v15393_v34, %v12909_v37  ;;  %7108 = vmatpush.bf16.msrb.mxu3 %v13712_v57 }
 0x4fe   : > { %v13165_v41 = vld [vmem:[#allocation8 + $0x13b0] sm:$0xf0] }
 0x4ff   : > { %v15521_v2 = vld [vmem:[#allocation8 + $0x1594] sm:$0xf]  ;;  %v13168_v45 = vor.u32 %v15457_v3, %v13165_v41  ;;  %7067 = vmatpush.bf16.msrb.mxu0 %v12912_v25 }
 0x500   : > { %v13421_v9 = vld [vmem:[#allocation8 + $0x15b0] sm:$0xf0] }
 0x501   : > { %v15585_v54 = vld [vmem:[#allocation8 + $0x1794] sm:$0xf]  ;;  %v13424_v30 = vor.u32 %v15521_v2, %v13421_v9  ;;  %7081 = vmatpush.bf16.msrb.mxu1 %v13168_v45  ;;  %v17291_v2 = vld [vmem:[#allocation9] sm:$0xff]  ;;  %v17296_v9 = vpop.f32.mrf.mxu3 }
 0x502   : > { %v13677_v14 = vld [vmem:[#allocation8 + $0x17b0] sm:$0xf0]  ;;  %v17695_v57 = vperm.slane %v17291_v2, 4  ;;  %17761 = vst [vmem:[#allocation67_spill] sm:$0xff] %v17296_v9 }
 0x503   : > { %v15385_v36 = vld [vmem:[#allocation8 + $0x1154] sm:$0xf]  ;;  %v13680_v22 = vor.u32 %v15585_v54, %v13677_v14  ;;  %7095 = vmatpush.bf16.msrb.mxu2 %v13424_v30 }
 0x504   : > { %v12877_v44 = vld [vmem:[#allocation8 + $0x1170] sm:$0xf0]  ;;  %v6796_v54 = vadd.f32 %v6795_v35, %v17695_v57 }
 0x505   : > { %v15449_v61 = vld [vmem:[#allocation8 + $0x1354] sm:$0xf]  ;;  %v12880_v41 = vor.u32 %v15385_v36, %v12877_v44  ;;  %7109 = vmatpush.bf16.msrb.mxu3 %v13680_v22  ;;  %v6809_v44 = vpop.f32.mrf.mxu1 }
 0x506   : > { %v13133_v8 = vld [vmem:[#allocation8 + $0x1370] sm:$0xf0] }
 0x507   : > { %v15513_v47 = vld [vmem:[#allocation8 + $0x1554] sm:$0xf]  ;;  %v13136_v3 = vor.u32 %v15449_v61, %v13133_v8  ;;  %7068 = vmatpush.bf16.msrb.mxu0 %v12880_v41 }
 0x508   : > { %v13389_v18 = vld [vmem:[#allocation8 + $0x1570] sm:$0xf0] }
 0x509   : > { %v15577_v6 = vld [vmem:[#allocation8 + $0x1754] sm:$0xf]  ;;  %v13392_v53 = vor.u32 %v15513_v47, %v13389_v18  ;;  %7082 = vmatpush.bf16.msrb.mxu1 %v13136_v3  ;;  %v6810_v18 = vadd.f32 %v6809_v44, %v6796_v54 }
 0x50a   : > { %v13645_v13 = vld [vmem:[#allocation8 + $0x1770] sm:$0xf0] }
 0x50b   : > { %v15377_v17 = vld [vmem:[#allocation8 + $0x1114] sm:$0xf]  ;;  %v13648_v43 = vor.u32 %v15577_v6, %v13645_v13  ;;  %7096 = vmatpush.bf16.msrb.mxu2 %v13392_v53 }
 0x50c   : > { %v12845_v32 = vld [vmem:[#allocation8 + $0x1130] sm:$0xf0] }
 0x50d   : > { %v15441_v63 = vld [vmem:[#allocation8 + $0x1314] sm:$0xf]  ;;  %v12848_v14 = vor.u32 %v15377_v17, %v12845_v32  ;;  %7110 = vmatpush.bf16.msrb.mxu3 %v13648_v43 }
 0x50e   : > { %v13101_v24 = vld [vmem:[#allocation8 + $0x1330] sm:$0xf0] }
 0x50f   : > { %v15505_v19 = vld [vmem:[#allocation8 + $0x1514] sm:$0xf]  ;;  %v13104_v25 = vor.u32 %v15441_v63, %v13101_v24  ;;  %7069 = vmatpush.bf16.msrb.mxu0 %v12848_v14  ;;  %v6837_v14 = vpop.f32.mrf.mxu3 }
 0x510   : > { %v13357_v39 = vld [vmem:[#allocation8 + $0x1530] sm:$0xf0] }
 0x511   : > { %v15569_v34 = vld [vmem:[#allocation8 + $0x1714] sm:$0xf]  ;;  %v13360_v30 = vor.u32 %v15505_v19, %v13357_v39  ;;  %7083 = vmatpush.bf16.msrb.mxu1 %v13104_v25  ;;  %v6823_v39 = vpop.f32.mrf.mxu2 }
 0x512   : > { %v13613_v37 = vld [vmem:[#allocation8 + $0x1730] sm:$0xf0]  ;;  %v6824_v44 = vadd.f32 %v6823_v39, %v6810_v18 }
 0x513   : > { %v15369_v45 = vld [vmem:[#allocation8 + $0x10d4] sm:$0xf]  ;;  %v13616_v22 = vor.u32 %v15569_v34, %v13613_v37  ;;  %7097 = vmatpush.bf16.msrb.mxu2 %v13360_v30 }
 0x514   : > { %v12813_v36 = vld [vmem:[#allocation8 + $0x10f0] sm:$0xf0]  ;;  %v17300_v30 = vadd.f32 %v6837_v14, %v6824_v44  ;;  %v11155_v44 = vld [vmem:[#allocation8 + $0x3d8] sm:$0xf] }
 0x515   : > { %v15433_v61 = vld [vmem:[#allocation8 + $0x12d4] sm:$0xf]  ;;  %v12816_v3 = vor.u32 %v15369_v45, %v12813_v36  ;;  %7111 = vmatpush.bf16.msrb.mxu3 %v13616_v22  ;;  %v14958_v14 = vld [vmem:[#allocation8 + $0x3f4] sm:$0xf0] }
 0x516   : > { %v13069_v8 = vld [vmem:[#allocation8 + $0x12f0] sm:$0xf0] }
 0x517   : > { %v15497_v47 = vld [vmem:[#allocation8 + $0x14d4] sm:$0xf]  ;;  %v13072_v35 = vor.u32 %v15433_v61, %v13069_v8  ;;  %7070 = vmatpush.bf16.msrb.mxu0 %v12816_v3 }
 0x518   : > { %v13325_v6 = vld [vmem:[#allocation8 + $0x14f0] sm:$0xf0] }
 0x519   : > { %v15561_v13 = vld [vmem:[#allocation8 + $0x16d4] sm:$0xf]  ;;  %v13328_v53 = vor.u32 %v15497_v47, %v13325_v6  ;;  %7084 = vmatpush.bf16.msrb.mxu1 %v13072_v35 }
 0x51a   : > { %v13581_v41 = vld [vmem:[#allocation8 + $0x16f0] sm:$0xf0] }
 0x51b   : > { %v15361_v17 = vld [vmem:[#allocation8 + $0x1094] sm:$0xf]  ;;  %v13584_v43 = vor.u32 %v15561_v13, %v13581_v41  ;;  %7098 = vmatpush.bf16.msrb.mxu2 %v13328_v53 }
 0x51c   : > { %v12781_v32 = vld [vmem:[#allocation8 + $0x10b0] sm:$0xf0] }
 0x51d   : > { %v15425_v63 = vld [vmem:[#allocation8 + $0x1294] sm:$0xf]  ;;  %v12784_v25 = vor.u32 %v15361_v17, %v12781_v32  ;;  %7112 = vmatpush.bf16.msrb.mxu3 %v13584_v43 }
 0x51e   : > { %v13037_v24 = vld [vmem:[#allocation8 + $0x12b0] sm:$0xf0] }
 0x51f   : > { %v15489_v19 = vld [vmem:[#allocation8 + $0x1494] sm:$0xf]  ;;  %v13040_v45 = vor.u32 %v15425_v63, %v13037_v24  ;;  %7071 = vmatpush.bf16.msrb.mxu0 %v12784_v25 }
 0x520   : > { %v13293_v34 = vld [vmem:[#allocation8 + $0x14b0] sm:$0xf0] }
 0x521   : > { %v15553_v37 = vld [vmem:[#allocation8 + $0x1694] sm:$0xf]  ;;  %v13296_v22 = vor.u32 %v15489_v19, %v13293_v34  ;;  %7085 = vmatpush.bf16.msrb.mxu1 %v13040_v45 }
 0x522   : > { %v13549_v54 = vld [vmem:[#allocation8 + $0x16b0] sm:$0xf0] }
 0x523   : > { %v15353_v36 = vld [vmem:[#allocation8 + $0x1054] sm:$0xf]  ;;  %v13552_v8 = vor.u32 %v15553_v37, %v13549_v54  ;;  %7099 = vmatpush.bf16.msrb.mxu2 %v13296_v22  ;;  %v10899_v37 = vld [vmem:[#allocation8 + $0x1d8] sm:$0xf] }
 0x524   : > { %v12749_v61 = vld [vmem:[#allocation8 + $0x1070] sm:$0xf0]  ;;  %v14894_v54 = vld [vmem:[#allocation8 + $0x1f4] sm:$0xf0] }
 0x525   : > { %v15417_v47 = vld [vmem:[#allocation8 + $0x1254] sm:$0xf]  ;;  %v12752_v3 = vor.u32 %v15353_v36, %v12749_v61  ;;  %7113 = vmatpush.bf16.msrb.mxu3 %v13552_v8  ;;  %v15022_v36 = vld [vmem:[#allocation8 + $0x5f4] sm:$0xf0]  ;;  %v11156_v8 = vor.u32 %v14958_v14, %v11155_v44 }
 0x526   : > { %v13005_v6 = vld [vmem:[#allocation8 + $0x1270] sm:$0xf0]  ;;  %v11667_v61 = vld [vmem:[#allocation8 + $0x7d8] sm:$0xf] }
 0x527   : > { %v15481_v13 = vld [vmem:[#allocation8 + $0x1454] sm:$0xf]  ;;  %v13008_v35 = vor.u32 %v15417_v47, %v13005_v6  ;;  %7072 = vmatpush.bf16.msrb.mxu0 %v12752_v3  ;;  %v15086_v47 = vld [vmem:[#allocation8 + $0x7f4] sm:$0xf0] }
 0x528   : > { %v13261_v41 = vld [vmem:[#allocation8 + $0x1470] sm:$0xf0]  ;;  %v10867_v6 = vld [vmem:[#allocation8 + $0x198] sm:$0xf]  ;;  %v11668_v31 = vor.u32 %v15086_v47, %v11667_v61 }
 0x529   : > { %v15545_v57 = vld [vmem:[#allocation8 + $0x1654] sm:$0xf]  ;;  %v13264_v53 = vor.u32 %v15481_v13, %v13261_v41  ;;  %7086 = vmatpush.bf16.msrb.mxu1 %v13008_v35  ;;  %v14886_v13 = vld [vmem:[#allocation8 + $0x1b4] sm:$0xf0]  ;;  %v11412_v41 = vor.u32 %v15022_v36, %v11411_v56  ;;  %v17304_v56 = vpop.f32.mrf.mxu1 }
 0x52a   : > { %v13517_v9 = vld [vmem:[#allocation8 + $0x1670] sm:$0xf0]  ;;  %v11635_v3 = vld [vmem:[#allocation8 + $0x798] sm:$0xf]  ;;  %17762 = vst [vmem:[#allocation68_spill] sm:$0xff] %v17304_v56 }
 0x52b   : > { %v15345_v18 = vld [vmem:[#allocation8 + $0x1014] sm:$0xf]  ;;  %v13520_v43 = vor.u32 %v15545_v57, %v13517_v9  ;;  %7100 = vmatpush.bf16.msrb.mxu2 %v13264_v53  ;;  %v10900_v9 = vor.u32 %v14894_v54, %v10899_v37  ;;  %v15078_v35 = vld [vmem:[#allocation8 + $0x7b4] sm:$0xf0] }
 0x52c   : > { %v12717_v17 = vld [vmem:[#allocation8 + $0x1030] sm:$0xf0]  ;;  %v10835_v53 = vld [vmem:[#allocation8 + $0x158] sm:$0xf] }
 0x52d   : > { %v15409_v32 = vld [vmem:[#allocation8 + $0x1214] sm:$0xf]  ;;  %v12720_v25 = vor.u32 %v15345_v18, %v12717_v17  ;;  %7114 = vmatpush.bf16.msrb.mxu3 %v13520_v43  ;;  %v15014_v18 = vld [vmem:[#allocation8 + $0x5b4] sm:$0xf0]  ;;  %v17302_v17 = vpop.f32.mrf.mxu0 }
 0x52e   : > { %v12973_v63 = vld [vmem:[#allocation8 + $0x1230] sm:$0xf0]  ;;  %v14878_v43 = vld [vmem:[#allocation8 + $0x174] sm:$0xf0] }
 0x52f   : > { %v15473_v24 = vld [vmem:[#allocation8 + $0x1414] sm:$0xf]  ;;  %v12976_v45 = vor.u32 %v15409_v32, %v12973_v63  ;;  %7073 = vmatpush.bf16.msrb.mxu0 %v12720_v25  ;;  %v10868_v32 = vor.u32 %v14886_v13, %v10867_v6  ;;  %v11124_v63 = vor.u32 %v14950_v42, %v11123_v15  ;;  %v11347_v37 = vld [vmem:[#allocation8 + $0x558] sm:$0xf]  ;;  %v10836_v42 = vor.u32 %v14878_v43, %v10835_v53  ;;  %v17312_v13 = vpop.f32.mrf.mxu3 }
 0x530   : > { %v13229_v19 = vld [vmem:[#allocation8 + $0x1430] sm:$0xf0]  ;;  %v15006_v54 = vld [vmem:[#allocation8 + $0x574] sm:$0xf0]  ;;  %17764 = vst [vmem:[#allocation70_spill] sm:$0xff] %v17312_v13 }
 0x531   : > { %v15537_v39 = vld [vmem:[#allocation8 + $0x1614] sm:$0xf]  ;;  %v13232_v22 = vor.u32 %v15473_v24, %v13229_v19  ;;  %7087 = vmatpush.bf16.msrb.mxu1 %v12976_v45  ;;  %v11380_v24 = vor.u32 %v15014_v18, %v11379_v62  ;;  %v11636_v19 = vor.u32 %v15078_v35, %v11635_v3  ;;  %v11603_v44 = vld [vmem:[#allocation8 + $0x758] sm:$0xf]  ;;  %v11348_v25 = vor.u32 %v15006_v54, %v11347_v37 }
 0x532   : > { %v13485_v34 = vld [vmem:[#allocation8 + $0x1630] sm:$0xf0]  ;;  %7074 = vmatmul.bf16.vlgmr.msrb.gmra.mxu0 %v17049_v26  ;;  %v15070_v14 = vld [vmem:[#allocation8 + $0x774] sm:$0xf0] }
 0x533   : > { %v13488_v57 = vor.u32 %v15537_v39, %v13485_v34  ;;  %7101 = vmatpush.bf16.msrb.mxu2 %v13232_v22  ;;  %7122 = vmatpush.bf16.msra.mxu0 %v10900_v9  ;;  %v11091_v39 = vld [vmem:[#allocation8 + $0x358] sm:$0xf]  ;;  %v11604_v45 = vor.u32 %v15070_v14, %v11603_v44  ;;  %v17310_v22 = vpop.f32.mrf.mxu2 }
 0x534   : > { %v14942_v34 = vld [vmem:[#allocation8 + $0x374] sm:$0xf0]  ;;  %7088 = vmatmul.bf16.vlgmr.msrb.gmra.mxu1 %v17051_v33  ;;  %17763 = vst [vmem:[#allocation69_spill] sm:$0xff] %v17310_v22 }
 0x535   : > { %7115 = vmatpush.bf16.msrb.mxu3 %v13488_v57  ;;  %7136 = vmatpush.bf16.msra.mxu1 %v11156_v8  ;;  %v11092_v15 = vor.u32 %v14942_v34, %v11091_v39  ;;  %v10803_v62 = vld [vmem:[#allocation8 + $0x118] sm:$0xf]  ;;  %v6851_v6 = vpop.f32.mrf.mxu0 }
 0x536   : > { %7102 = vmatmul.bf16.vlgmr.msrb.gmra.mxu2 %v17053_v49  ;;  %v11059_v36 = vld [vmem:[#allocation8 + $0x318] sm:$0xf] }
 0x537   : > { %7150 = vmatpush.bf16.msra.mxu2 %v11412_v41  ;;  %7123 = vmatpush.bf16.msra.mxu0 %v10868_v32  ;;  %v14934_v61 = vld [vmem:[#allocation8 + $0x334] sm:$0xf0]  ;;  %v6852_v41 = vadd.f32 %v6851_v6, %v17300_v30  ;;  %v6893_v6 = vpop.f32.mrf.mxu3 }
 0x538   : > { %7116 = vmatmul.bf16.vlgmr.msrb.gmra.mxu3 %v17055_v23  ;;  %v11315_v47 = vld [vmem:[#allocation8 + $0x518] sm:$0xf]  ;;  %v11060_v3 = vor.u32 %v14934_v61, %v11059_v36 }
 0x539   : > { %7164 = vmatpush.bf16.msra.mxu3 %v11668_v31  ;;  %7137 = vmatpush.bf16.msra.mxu1 %v11124_v63  ;;  %v14870_v31 = vld [vmem:[#allocation8 + $0x134] sm:$0xf0]  ;;  %v6865_v63 = vpop.f32.mrf.mxu1 }
 0x53a   : > { %v14998_v57 = vld [vmem:[#allocation8 + $0x534] sm:$0xf0]  ;;  %v10804_v18 = vor.u32 %v14870_v31, %v10803_v62  ;;  %v6866_v34 = vadd.f32 %v6865_v63, %v6852_v41 }
 0x53b   : > { %7151 = vmatpush.bf16.msra.mxu2 %v11380_v24  ;;  %v11571_v9 = vld [vmem:[#allocation8 + $0x718] sm:$0xf]  ;;  %7124 = vmatpush.bf16.msra.mxu0 %v10836_v42  ;;  %v11316_v53 = vor.u32 %v14998_v57, %v11315_v47  ;;  %v6879_v61 = vpop.f32.mrf.mxu2 }
 0x53c   : > { %v15062_v8 = vld [vmem:[#allocation8 + $0x734] sm:$0xf0] }
 0x53d   : > { %7165 = vmatpush.bf16.msra.mxu3 %v11636_v19  ;;  %7138 = vmatpush.bf16.msra.mxu1 %v11092_v15  ;;  %v10771_v35 = vld [vmem:[#allocation8 + $0xd8] sm:$0xf]  ;;  %v11572_v43 = vor.u32 %v15062_v8, %v11571_v9  ;;  %v6880_v8 = vadd.f32 %v6879_v61, %v6866_v34 }
 0x53e   : > { %v14862_v32 = vld [vmem:[#allocation8 + $0xf4] sm:$0xf0] }
 0x53f   : > { %7152 = vmatpush.bf16.msra.mxu2 %v11348_v25  ;;  %v11027_v24 = vld [vmem:[#allocation8 + $0x2d8] sm:$0xf]  ;;  %7125 = vmatpush.bf16.msra.mxu0 %v10804_v18  ;;  %v10772_v14 = vor.u32 %v14862_v32, %v10771_v35  ;;  %v17315_v32 = vadd.f32 %v6893_v6, %v6880_v8 }
 0x540   : > { %v14926_v19 = vld [vmem:[#allocation8 + $0x2f4] sm:$0xf0] }
 0x541   : > { %7166 = vmatpush.bf16.msra.mxu3 %v11604_v45  ;;  %v11283_v39 = vld [vmem:[#allocation8 + $0x4d8] sm:$0xf]  ;;  %7139 = vmatpush.bf16.msra.mxu1 %v11060_v3  ;;  %v11028_v30 = vor.u32 %v14926_v19, %v11027_v24 }
 0x542   : > { %v14990_v37 = vld [vmem:[#allocation8 + $0x4f4] sm:$0xf0] }
 0x543   : > { %v11539_v54 = vld [vmem:[#allocation8 + $0x6d8] sm:$0xf]  ;;  %7153 = vmatpush.bf16.msra.mxu2 %v11316_v53  ;;  %v11284_v62 = vor.u32 %v14990_v37, %v11283_v39  ;;  %7126 = vmatpush.bf16.msra.mxu0 %v10772_v14 }
 0x544   : > { %v15054_v44 = vld [vmem:[#allocation8 + $0x6f4] sm:$0xf0] }
 0x545   : > { %v10739_v42 = vld [vmem:[#allocation8 + $0x98] sm:$0xf]  ;;  %7167 = vmatpush.bf16.msra.mxu3 %v11572_v43  ;;  %v11540_v31 = vor.u32 %v15054_v44, %v11539_v54  ;;  %7140 = vmatpush.bf16.msra.mxu1 %v11028_v30 }
 0x546   : > { %v14854_v15 = vld [vmem:[#allocation8 + $0xb4] sm:$0xf0] }
 0x547   : > { %v10995_v25 = vld [vmem:[#allocation8 + $0x298] sm:$0xf]  ;;  %v10740_v41 = vor.u32 %v14854_v15, %v10739_v42  ;;  %7154 = vmatpush.bf16.msra.mxu2 %v11284_v62 }
 0x548   : > { %v14918_v45 = vld [vmem:[#allocation8 + $0x2b4] sm:$0xf0] }
 0x549   : > { %v11251_v36 = vld [vmem:[#allocation8 + $0x498] sm:$0xf]  ;;  %v10996_v18 = vor.u32 %v14918_v45, %v10995_v25  ;;  %7168 = vmatpush.bf16.msra.mxu3 %v11540_v31  ;;  %7127 = vmatpush.bf16.msra.mxu0 %v10740_v41 }
 0x54a   : > { %v14982_v47 = vld [vmem:[#allocation8 + $0x4b4] sm:$0xf0] }
 0x54b   : > { %v11507_v57 = vld [vmem:[#allocation8 + $0x698] sm:$0xf]  ;;  %v11252_v63 = vor.u32 %v14982_v47, %v11251_v36  ;;  %7141 = vmatpush.bf16.msra.mxu1 %v10996_v18 }
 0x54c   : > { %v15046_v9 = vld [vmem:[#allocation8 + $0x6b4] sm:$0xf0] }
 0x54d   : > { %v10707_v3 = vld [vmem:[#allocation8 + $0x58] sm:$0xf]  ;;  %v11508_v53 = vor.u32 %v15046_v9, %v11507_v57  ;;  %7155 = vmatpush.bf16.msra.mxu2 %v11252_v63 }
 0x54e   : > { %v14846_v35 = vld [vmem:[#allocation8 + $0x74] sm:$0xf0] }
 0x54f   : > { %v10963_v43 = vld [vmem:[#allocation8 + $0x258] sm:$0xf]  ;;  %v10708_v44 = vor.u32 %v14846_v35, %v10707_v3  ;;  %7169 = vmatpush.bf16.msra.mxu3 %v11508_v53 }
 0x550   : > { %v14910_v24 = vld [vmem:[#allocation8 + $0x274] sm:$0xf0] }
 0x551   : > { %v11219_v19 = vld [vmem:[#allocation8 + $0x458] sm:$0xf]  ;;  %v10964_v14 = vor.u32 %v14910_v24, %v10963_v43  ;;  %7128 = vmatpush.bf16.msra.mxu0 %v10708_v44 }
 0x552   : > { %v14974_v39 = vld [vmem:[#allocation8 + $0x474] sm:$0xf0] }
 0x553   : > { %v11475_v37 = vld [vmem:[#allocation8 + $0x658] sm:$0xf]  ;;  %v11220_v62 = vor.u32 %v14974_v39, %v11219_v19  ;;  %7142 = vmatpush.bf16.msra.mxu1 %v10964_v14 }
 0x554   : > { %v15038_v54 = vld [vmem:[#allocation8 + $0x674] sm:$0xf0] }
 0x555   : > { %v10675_v34 = vld [vmem:[#allocation8 + $0x18] sm:$0xf]  ;;  %v11476_v31 = vor.u32 %v15038_v54, %v11475_v37  ;;  %7156 = vmatpush.bf16.msra.mxu2 %v11220_v62 }
 0x556   : > { %v14838_v30 = vld [vmem:[#allocation8 + $0x34] sm:$0xf0] }
 0x557   : > { %v10931_v42 = vld [vmem:[#allocation8 + $0x218] sm:$0xf]  ;;  %v10676_v41 = vor.u32 %v14838_v30, %v10675_v34  ;;  %7170 = vmatpush.bf16.msra.mxu3 %v11476_v31  ;;  %v17317_v30 = vpop.f32.mrf.mxu0 }
 0x558   : > { %v14902_v15 = vld [vmem:[#allocation8 + $0x234] sm:$0xf0]  ;;  %17765 = vst [vmem:[#allocation71_spill] sm:$0xff] %v17317_v30  ;;  %v15010_v30 = vld [vmem:[#allocation8 + $0x59c] sm:$0xf] }
 0x559   : > { %v11187_v25 = vld [vmem:[#allocation8 + $0x418] sm:$0xf]  ;;  %v10932_v18 = vor.u32 %v14902_v15, %v10931_v42  ;;  %7129 = vmatpush.bf16.msra.mxu0 %v10676_v41 }
 0x55a   : > { %v14966_v45 = vld [vmem:[#allocation8 + $0x434] sm:$0xf0] }
 0x55b   : > { %v11443_v36 = vld [vmem:[#allocation8 + $0x618] sm:$0xf]  ;;  %v11188_v63 = vor.u32 %v14966_v45, %v11187_v25  ;;  %7143 = vmatpush.bf16.msra.mxu1 %v10932_v18  ;;  %v17319_v25 = vpop.f32.mrf.mxu1 }
 0x55c   : > { %v15030_v61 = vld [vmem:[#allocation8 + $0x634] sm:$0xf0]  ;;  %17766 = vst [vmem:[#allocation72_spill] sm:$0xff] %v17319_v25  ;;  %16089 = vmatmul.msk.bf16.vlgmr.msra.gmra.mxu0 %vm16937_vm11, %v16942_v38 }
 0x55d   : > { %v11923_v47 = vld [vmem:[#allocation8 + $0x9d8] sm:$0xf]  ;;  %v11444_v53 = vor.u32 %v15030_v61, %v11443_v36  ;;  %7157 = vmatpush.bf16.msra.mxu2 %v11188_v63  ;;  %v17333_v63 = vpop.f32.mrf.mxu2 }
 0x55e   : > { %v15150_v57 = vld [vmem:[#allocation8 + $0x9f4] sm:$0xf0]  ;;  %16092 = vmatmul.msk.bf16.vlgmr.msra.gmra.mxu1 %vm16937_vm11, %v16948_v4  ;;  %17767 = vst [vmem:[#allocation73_spill] sm:$0xff] %v17333_v63 }
 0x55f   : > { %v12179_v9 = vld [vmem:[#allocation8 + $0xbd8] sm:$0xf]  ;;  %v11924_v24 = vor.u32 %v15150_v57, %v11923_v47  ;;  %7171 = vmatpush.bf16.msra.mxu3 %v11444_v53 }
 0x560   : > { %v15214_v8 = vld [vmem:[#allocation8 + $0xbf4] sm:$0xf0]  ;;  %16095 = vmatmul.msk.bf16.vlgmr.msra.gmra.mxu2 %vm16937_vm11, %v16954_v10 }
 0x561   : > { %v12435_v6 = vld [vmem:[#allocation8 + $0xdd8] sm:$0xf]  ;;  %v12180_v19 = vor.u32 %v15214_v8, %v12179_v9  ;;  %7178 = vmatpush.bf16.msrb.mxu0 %v11924_v24 }
 0x562   : > { %v15278_v3 = vld [vmem:[#allocation8 + $0xdf4] sm:$0xf0]  ;;  %16098 = vmatmul.msk.bf16.vlgmr.msra.gmra.mxu3 %vm16937_vm11, %v16960_v59 }
 0x563   : > { %v12691_v35 = vld [vmem:[#allocation8 + $0xfd8] sm:$0xf]  ;;  %v12436_v54 = vor.u32 %v15278_v3, %v12435_v6  ;;  %7192 = vmatpush.bf16.msrb.mxu1 %v12180_v19 }
 0x564   : > { %v15342_v43 = vld [vmem:[#allocation8 + $0xff4] sm:$0xf0] }
 0x565   : > { %v11891_v39 = vld [vmem:[#allocation8 + $0x998] sm:$0xf]  ;;  %v12692_v13 = vor.u32 %v15342_v43, %v12691_v35  ;;  %7206 = vmatpush.bf16.msrb.mxu2 %v12436_v54 }
 0x566   : > { %v15142_v37 = vld [vmem:[#allocation8 + $0x9b4] sm:$0xf0] }
 0x567   : > { %v12147_v22 = vld [vmem:[#allocation8 + $0xb98] sm:$0xf]  ;;  %v11892_v42 = vor.u32 %v15142_v37, %v11891_v39  ;;  %7220 = vmatpush.bf16.msrb.mxu3 %v12692_v13  ;;  %v6907_v39 = vpop.f32.mrf.mxu0  ;;  %v17335_v37 = vpop.f32.mrf.mxu3 }
 0x568   : > { %v15206_v56 = vld [vmem:[#allocation8 + $0xbb4] sm:$0xf0]  ;;  %17768 = vst [vmem:[#allocation74_spill] sm:$0xff] %v17335_v37  ;;  %v6908_v54 = vadd.f32 %v6907_v39, %v17315_v32 }
 0x569   : > { %v15270_v34 = vld [vmem:[#allocation8 + $0xdb4] sm:$0xf0]  ;;  %v12148_v15 = vor.u32 %v15206_v56, %v12147_v22  ;;  %7179 = vmatpush.bf16.msrb.mxu0 %v11892_v42 }
 0x56a   : > { %v12659_v44 = vld [vmem:[#allocation8 + $0xf98] sm:$0xf]  ;;  %v12404_v45 = vor.u32 %v15270_v34, %v12403_v5 }
 0x56b   : > { %v15334_v14 = vld [vmem:[#allocation8 + $0xfb4] sm:$0xf0]  ;;  %7193 = vmatpush.bf16.msrb.mxu1 %v12148_v15  ;;  %v6921_v15 = vpop.f32.mrf.mxu1 }
 0x56c   : > { %v11859_v62 = vld [vmem:[#allocation8 + $0x958] sm:$0xf]  ;;  %v12660_v36 = vor.u32 %v15334_v14, %v12659_v44  ;;  %7207 = vmatpush.bf16.msrb.mxu2 %v12404_v45 }
 0x56d   : > { %v15134_v31 = vld [vmem:[#allocation8 + $0x974] sm:$0xf0] }
 0x56e   : > { %v12115_v61 = vld [vmem:[#allocation8 + $0xb58] sm:$0xf]  ;;  %v11860_v5 = vor.u32 %v15134_v31, %v11859_v62  ;;  %7221 = vmatpush.bf16.msrb.mxu3 %v12660_v36 }
 0x56f   : > { %v15198_v47 = vld [vmem:[#allocation8 + $0xb74] sm:$0xf0]  ;;  %v6949_v39 = vpop.f32.mrf.mxu3 }
 0x570   : > { %v12371_v57 = vld [vmem:[#allocation8 + $0xd58] sm:$0xf]  ;;  %v12116_v13 = vor.u32 %v15198_v47, %v12115_v61  ;;  %7180 = vmatpush.bf16.msrb.mxu0 %v11860_v5  ;;  %v6922_v47 = vadd.f32 %v6921_v15, %v6908_v54 }
 0x571   : > { %v15262_v56 = vld [vmem:[#allocation8 + $0xd74] sm:$0xf0] }
 0x572   : > { %v12627_v22 = vld [vmem:[#allocation8 + $0xf58] sm:$0xf]  ;;  %v12372_v41 = vor.u32 %v15262_v56, %v12371_v57  ;;  %7194 = vmatpush.bf16.msrb.mxu1 %v12116_v13 }
 0x573   : > { %v15326_v9 = vld [vmem:[#allocation8 + $0xf74] sm:$0xf0] }
 0x574   : > { %v11827_v8 = vld [vmem:[#allocation8 + $0x918] sm:$0xf]  ;;  %v12628_v18 = vor.u32 %v15326_v9, %v12627_v22  ;;  %7208 = vmatpush.bf16.msrb.mxu2 %v12372_v41 }
 0x575   : > { %v15126_v6 = vld [vmem:[#allocation8 + $0x934] sm:$0xf0] }
 0x576   : > { %v12083_v3 = vld [vmem:[#allocation8 + $0xb18] sm:$0xf]  ;;  %v11828_v34 = vor.u32 %v15126_v6, %v11827_v8  ;;  %7222 = vmatpush.bf16.msrb.mxu3 %v12628_v18 }
 0x577   : > { %v15190_v35 = vld [vmem:[#allocation8 + $0xb34] sm:$0xf0] }
 0x578   : > { %v12339_v43 = vld [vmem:[#allocation8 + $0xd18] sm:$0xf]  ;;  %v12084_v44 = vor.u32 %v15190_v35, %v12083_v3  ;;  %7181 = vmatpush.bf16.msrb.mxu0 %v11828_v34  ;;  %v6935_v35 = vpop.f32.mrf.mxu2 }
 0x579   : > { %v15254_v53 = vld [vmem:[#allocation8 + $0xd34] sm:$0xf0] }
 0x57a   : > { %v12595_v24 = vld [vmem:[#allocation8 + $0xf18] sm:$0xf]  ;;  %v12340_v62 = vor.u32 %v15254_v53, %v12339_v43  ;;  %7195 = vmatpush.bf16.msrb.mxu1 %v12084_v44 }
 0x57b   : > { %v15318_v19 = vld [vmem:[#allocation8 + $0xf34] sm:$0xf0] }
 0x57c   : > { %v11795_v14 = vld [vmem:[#allocation8 + $0x8d8] sm:$0xf]  ;;  %v12596_v31 = vor.u32 %v15318_v19, %v12595_v24  ;;  %7209 = vmatpush.bf16.msrb.mxu2 %v12340_v62  ;;  %v6936_v19 = vadd.f32 %v6935_v35, %v6922_v47  ;;  %v7458_v47 = vmax.f32 %v17114_v52, 0.0 }
 0x57d   : > { %v15118_v42 = vld [vmem:[#allocation8 + $0x8f4] sm:$0xf0] }
 0x57e   : > { %v12051_v45 = vld [vmem:[#allocation8 + $0xad8] sm:$0xf]  ;;  %v11796_v9 = vor.u32 %v15118_v42, %v11795_v14  ;;  %7223 = vmatpush.bf16.msrb.mxu3 %v12596_v31  ;;  %v6950_v42 = vadd.f32 %v6949_v39, %v6936_v19 }
 0x57f   : > { %v15182_v36 = vld [vmem:[#allocation8 + $0xaf4] sm:$0xf0] }
 0x580   : > { %v12307_v61 = vld [vmem:[#allocation8 + $0xcd8] sm:$0xf]  ;;  %v12052_v32 = vor.u32 %v15182_v36, %v12051_v45  ;;  %7182 = vmatpush.bf16.msrb.mxu0 %v11796_v9 }
 0x581   : > { %v15246_v57 = vld [vmem:[#allocation8 + $0xcf4] sm:$0xf0] }
 0x582   : > { %v12563_v56 = vld [vmem:[#allocation8 + $0xed8] sm:$0xf]  ;;  %v12308_v8 = vor.u32 %v15246_v57, %v12307_v61  ;;  %7196 = vmatpush.bf16.msrb.mxu1 %v12052_v32 }
 0x583   : > { %v15310_v22 = vld [vmem:[#allocation8 + $0xef4] sm:$0xf0] }
 0x584   : > { %v11763_v5 = vld [vmem:[#allocation8 + $0x898] sm:$0xf]  ;;  %v12564_v6 = vor.u32 %v15310_v22, %v12563_v56  ;;  %7210 = vmatpush.bf16.msrb.mxu2 %v12308_v8  ;;  %v7462_v22 = vmax.f32 %v6950_v42, 0.0 }
 0x585   : > { %v15110_v13 = vld [vmem:[#allocation8 + $0x8b4] sm:$0xf0] }
 0x586   : > { %v12019_v41 = vld [vmem:[#allocation8 + $0xa98] sm:$0xf]  ;;  %v11764_v54 = vor.u32 %v15110_v13, %v11763_v5  ;;  %7224 = vmatpush.bf16.msrb.mxu3 %v12564_v6 }
 0x587   : > { %v15174_v18 = vld [vmem:[#allocation8 + $0xab4] sm:$0xf0] }
 0x588   : > { %v12275_v3 = vld [vmem:[#allocation8 + $0xc98] sm:$0xf]  ;;  %v12020_v34 = vor.u32 %v15174_v18, %v12019_v41  ;;  %7183 = vmatpush.bf16.msrb.mxu0 %v11764_v54  ;;  %v17339_v41 = vmax.f32 %v7458_v47, %v7462_v22 }
 0x589   : > { %v15238_v43 = vld [vmem:[#allocation8 + $0xcb4] sm:$0xf0] }
 0x58a   : > { %v12531_v53 = vld [vmem:[#allocation8 + $0xe98] sm:$0xf]  ;;  %v12276_v15 = vor.u32 %v15238_v43, %v12275_v3  ;;  %7197 = vmatpush.bf16.msrb.mxu1 %v12020_v34 }
 0x58b   : > { %v15302_v24 = vld [vmem:[#allocation8 + $0xeb4] sm:$0xf0] }
 0x58c   : > { %v11731_v44 = vld [vmem:[#allocation8 + $0x858] sm:$0xf]  ;;  %v12532_v62 = vor.u32 %v15302_v24, %v12531_v53  ;;  %7211 = vmatpush.bf16.msrb.mxu2 %v12276_v15 }
 0x58d   : > { %v15102_v14 = vld [vmem:[#allocation8 + $0x874] sm:$0xf0] }
 0x58e   : > { %v11987_v31 = vld [vmem:[#allocation8 + $0xa58] sm:$0xf]  ;;  %v11732_v32 = vor.u32 %v15102_v14, %v11731_v44  ;;  %7225 = vmatpush.bf16.msrb.mxu3 %v12532_v62 }
 0x58f   : > { %v15166_v45 = vld [vmem:[#allocation8 + $0xa74] sm:$0xf0] }
 0x590   : > { %v12243_v36 = vld [vmem:[#allocation8 + $0xc58] sm:$0xf]  ;;  %v11988_v5 = vor.u32 %v15166_v45, %v11987_v31  ;;  %7184 = vmatpush.bf16.msrb.mxu0 %v11732_v32 }
 0x591   : > { %v15230_v61 = vld [vmem:[#allocation8 + $0xc74] sm:$0xf0] }
 0x592   : > { %v12499_v57 = vld [vmem:[#allocation8 + $0xe58] sm:$0xf]  ;;  %v12244_v18 = vor.u32 %v15230_v61, %v12243_v36  ;;  %7198 = vmatpush.bf16.msrb.mxu1 %v11988_v5 }
 0x593   : > { %v15294_v56 = vld [vmem:[#allocation8 + $0xe74] sm:$0xf0] }
 0x594   : > { %v11699_v9 = vld [vmem:[#allocation8 + $0x818] sm:$0xf]  ;;  %v12500_v3 = vor.u32 %v15294_v56, %v12499_v57  ;;  %7212 = vmatpush.bf16.msrb.mxu2 %v12244_v18 }
 0x595   : > { %v15094_v13 = vld [vmem:[#allocation8 + $0x834] sm:$0xf0] }
 0x596   : > { %v11955_v8 = vld [vmem:[#allocation8 + $0xa18] sm:$0xf]  ;;  %v11700_v44 = vor.u32 %v15094_v13, %v11699_v9  ;;  %7226 = vmatpush.bf16.msrb.mxu3 %v12500_v3  ;;  %v17341_v13 = vpop.f32.mrf.mxu0 }
 0x597   : > { %v15158_v6 = vld [vmem:[#allocation8 + $0xa34] sm:$0xf0]  ;;  %17769 = vst [vmem:[#allocation75_spill] sm:$0xff] %v17341_v13  ;;  %v11125_v13 = vld [vmem:[#allocation8 + $0x3b8] sm:$0xf0] }
 0x598   : > { %v12211_v35 = vld [vmem:[#allocation8 + $0xc18] sm:$0xf]  ;;  %v11956_v14 = vor.u32 %v15158_v6, %v11955_v8  ;;  %7185 = vmatpush.bf16.msrb.mxu0 %v11700_v44 }
 0x599   : > { %v15222_v43 = vld [vmem:[#allocation8 + $0xc34] sm:$0xf0] }
 0x59a   : > { %v12467_v53 = vld [vmem:[#allocation8 + $0xe18] sm:$0xf]  ;;  %v12212_v15 = vor.u32 %v15222_v43, %v12211_v35  ;;  %7199 = vmatpush.bf16.msrb.mxu1 %v11956_v14  ;;  %v17343_v35 = vpop.f32.mrf.mxu1 }
 0x59b   : > { %v15286_v24 = vld [vmem:[#allocation8 + $0xe34] sm:$0xf0]  ;;  %17770 = vst [vmem:[#allocation76_spill] sm:$0xff] %v17343_v35  ;;  %7186 = vmatmul.bf16.vlgmr.msrb.gmra.mxu0 %v16989_v58  ;;  %v14946_v35 = vld [vmem:[#allocation8 + $0x39c] sm:$0xf] }
 0x59c   : > { %v12947_v52 = vld [vmem:[#allocation8 + $0x11d8] sm:$0xf]  ;;  %v12468_v62 = vor.u32 %v15286_v24, %v12467_v53  ;;  %7213 = vmatpush.bf16.msrb.mxu2 %v12212_v15 }
 0x59d   : > { %v15406_v19 = vld [vmem:[#allocation8 + $0x11f4] sm:$0xf0]  ;;  %7200 = vmatmul.bf16.vlgmr.msrb.gmra.mxu1 %v16991_v46 }
 0x59e   : > { %v13203_v39 = vld [vmem:[#allocation8 + $0x13d8] sm:$0xf]  ;;  %v12948_v36 = vor.u32 %v15406_v19, %v12947_v52  ;;  %7227 = vmatpush.bf16.msrb.mxu3 %v12468_v62 }
 0x59f   : > { %v15470_v54 = vld [vmem:[#allocation8 + $0x13f4] sm:$0xf0]  ;;  %7214 = vmatmul.bf16.vlgmr.msrb.gmra.mxu2 %v16993_v11 }
 0x5a0   : > { %v13459_v34 = vld [vmem:[#allocation8 + $0x15d8] sm:$0xf]  ;;  %v13204_v61 = vor.u32 %v15470_v54, %v13203_v39  ;;  %7234 = vmatpush.bf16.msra.mxu0 %v12948_v36  ;;  %v17350_v36 = vpop.f32.mrf.mxu2 }
 0x5a1   : > { %v15534_v42 = vld [vmem:[#allocation8 + $0x15f4] sm:$0xf0]  ;;  %7228 = vmatmul.bf16.vlgmr.msrb.gmra.mxu3 %v16995_v12  ;;  %17771 = vst [vmem:[#allocation77_spill] sm:$0xff] %v17350_v36 }
 0x5a2   : > { %v13715_v31 = vld [vmem:[#allocation8 + $0x17d8] sm:$0xf]  ;;  %v13460_v47 = vor.u32 %v15534_v42, %v13459_v34  ;;  %7248 = vmatpush.bf16.msra.mxu1 %v13204_v61 }
 0x5a3   : > { %v15598_v45 = vld [vmem:[#allocation8 + $0x17f4] sm:$0xf0] }
 0x5a4   : > { %v12915_v57 = vld [vmem:[#allocation8 + $0x1198] sm:$0xf]  ;;  %v13716_v22 = vor.u32 %v15598_v45, %v13715_v31  ;;  %7262 = vmatpush.bf16.msra.mxu2 %v13460_v47  ;;  %v6963_v47 = vpop.f32.mrf.mxu0 }
 0x5a5   : > { %v15398_v56 = vld [vmem:[#allocation8 + $0x11b4] sm:$0xf0] }
 0x5a6   : > { %v13171_v37 = vld [vmem:[#allocation8 + $0x1398] sm:$0xf]  ;;  %v12916_v8 = vor.u32 %v15398_v56, %v12915_v57  ;;  %7276 = vmatpush.bf16.msra.mxu3 %v13716_v22  ;;  %v17352_v22 = vpop.f32.mrf.mxu3 }
 0x5a7   : > { %v15462_v63 = vld [vmem:[#allocation8 + $0x13b4] sm:$0xf0]  ;;  %17772 = vst [vmem:[#allocation78_spill] sm:$0xff] %v17352_v22  ;;  %v15018_v22 = vld [vmem:[#allocation8 + $0x5dc] sm:$0xf] }
 0x5a8   : > { %v13427_v25 = vld [vmem:[#allocation8 + $0x1598] sm:$0xf]  ;;  %v13172_v6 = vor.u32 %v15462_v63, %v13171_v37  ;;  %7235 = vmatpush.bf16.msra.mxu0 %v12916_v8 }
 0x5a9   : > { %v15526_v9 = vld [vmem:[#allocation8 + $0x15b4] sm:$0xf0] }
 0x5aa   : > { %v13683_v32 = vld [vmem:[#allocation8 + $0x1798] sm:$0xf]  ;;  %v13428_v43 = vor.u32 %v15526_v9, %v13427_v25  ;;  %7249 = vmatpush.bf16.msra.mxu1 %v13172_v6  ;;  %v17696_v25 = vperm.slane %v17291_v2, 5 }
 0x5ab   : > { %v15590_v5 = vld [vmem:[#allocation8 + $0x17b4] sm:$0xf0] }
 0x5ac   : > { %v12883_v18 = vld [vmem:[#allocation8 + $0x1158] sm:$0xf]  ;;  %v13684_v53 = vor.u32 %v15590_v5, %v13683_v32  ;;  %7263 = vmatpush.bf16.msra.mxu2 %v13428_v43  ;;  %v6964_v9 = vadd.f32 %v6963_v47, %v17696_v25 }
 0x5ad   : > { %v15390_v3 = vld [vmem:[#allocation8 + $0x1174] sm:$0xf0] }
 0x5ae   : > { %v13139_v24 = vld [vmem:[#allocation8 + $0x1358] sm:$0xf]  ;;  %v12884_v63 = vor.u32 %v15390_v3, %v12883_v18  ;;  %7277 = vmatpush.bf16.msra.mxu3 %v13684_v53  ;;  %v6977_v18 = vpop.f32.mrf.mxu1 }
 0x5af   : > { %v15454_v52 = vld [vmem:[#allocation8 + $0x1374] sm:$0xf0] }
 0x5b0   : > { %v13395_v19 = vld [vmem:[#allocation8 + $0x1558] sm:$0xf]  ;;  %v13140_v37 = vor.u32 %v15454_v52, %v13139_v24  ;;  %7236 = vmatpush.bf16.msra.mxu0 %v12884_v63 }
 0x5b1   : > { %v15518_v39 = vld [vmem:[#allocation8 + $0x1574] sm:$0xf0] }
 0x5b2   : > { %v13651_v54 = vld [vmem:[#allocation8 + $0x1758] sm:$0xf]  ;;  %v13396_v42 = vor.u32 %v15518_v39, %v13395_v19  ;;  %7250 = vmatpush.bf16.msra.mxu1 %v13140_v37  ;;  %v6978_v19 = vadd.f32 %v6977_v18, %v6964_v9 }
 0x5b3   : > { %v15582_v34 = vld [vmem:[#allocation8 + $0x1774] sm:$0xf0] }
 0x5b4   : > { %v12851_v44 = vld [vmem:[#allocation8 + $0x1118] sm:$0xf]  ;;  %v13652_v31 = vor.u32 %v15582_v34, %v13651_v54  ;;  %7264 = vmatpush.bf16.msra.mxu2 %v13396_v42 }
 0x5b5   : > { %v15382_v14 = vld [vmem:[#allocation8 + $0x1134] sm:$0xf0] }
 0x5b6   : > { %v13107_v45 = vld [vmem:[#allocation8 + $0x1318] sm:$0xf]  ;;  %v12852_v32 = vor.u32 %v15382_v14, %v12851_v44  ;;  %7278 = vmatpush.bf16.msra.mxu3 %v13652_v31 }
 0x5b7   : > { %v15446_v15 = vld [vmem:[#allocation8 + $0x1334] sm:$0xf0] }
 0x5b8   : > { %v13363_v62 = vld [vmem:[#allocation8 + $0x1518] sm:$0xf]  ;;  %v13108_v5 = vor.u32 %v15446_v15, %v13107_v45  ;;  %7237 = vmatpush.bf16.msra.mxu0 %v12852_v32  ;;  %v7005_v32 = vpop.f32.mrf.mxu3 }
 0x5b9   : > { %v15510_v61 = vld [vmem:[#allocation8 + $0x1534] sm:$0xf0] }
 0x5ba   : > { %v13619_v57 = vld [vmem:[#allocation8 + $0x1718] sm:$0xf]  ;;  %v13364_v3 = vor.u32 %v15510_v61, %v13363_v62  ;;  %7251 = vmatpush.bf16.msra.mxu1 %v13108_v5  ;;  %v6991_v61 = vpop.f32.mrf.mxu2 }
 0x5bb   : > { %v15574_v56 = vld [vmem:[#allocation8 + $0x1734] sm:$0xf0]  ;;  %v6992_v9 = vadd.f32 %v6991_v61, %v6978_v19 }
 0x5bc   : > { %v12819_v8 = vld [vmem:[#allocation8 + $0x10d8] sm:$0xf]  ;;  %v13620_v43 = vor.u32 %v15574_v56, %v13619_v57  ;;  %7265 = vmatpush.bf16.msra.mxu2 %v13364_v3 }
 0x5bd   : > { %v15374_v6 = vld [vmem:[#allocation8 + $0x10f4] sm:$0xf0]  ;;  %v17356_v3 = vadd.f32 %v7005_v32, %v6992_v9  ;;  %v14954_v9 = vld [vmem:[#allocation8 + $0x3dc] sm:$0xf] }
 0x5be   : > { %v13075_v53 = vld [vmem:[#allocation8 + $0x12d8] sm:$0xf]  ;;  %v12820_v63 = vor.u32 %v15374_v6, %v12819_v8  ;;  %7279 = vmatpush.bf16.msra.mxu3 %v13620_v43  ;;  %v11157_v32 = vld [vmem:[#allocation8 + $0x3f8] sm:$0xf0] }
 0x5bf   : > { %v15438_v24 = vld [vmem:[#allocation8 + $0x12f4] sm:$0xf0] }
 0x5c0   : > { %v13331_v52 = vld [vmem:[#allocation8 + $0x14d8] sm:$0xf]  ;;  %v13076_v37 = vor.u32 %v15438_v24, %v13075_v53  ;;  %7238 = vmatpush.bf16.msra.mxu0 %v12820_v63 }
 0x5c1   : > { %v15502_v39 = vld [vmem:[#allocation8 + $0x14f4] sm:$0xf0] }
 0x5c2   : > { %v13587_v54 = vld [vmem:[#allocation8 + $0x16d8] sm:$0xf]  ;;  %v13332_v42 = vor.u32 %v15502_v39, %v13331_v52  ;;  %7252 = vmatpush.bf16.msra.mxu1 %v13076_v37 }
 0x5c3   : > { %v15566_v34 = vld [vmem:[#allocation8 + $0x16f4] sm:$0xf0] }
 0x5c4   : > { %v12787_v44 = vld [vmem:[#allocation8 + $0x1098] sm:$0xf]  ;;  %v13588_v31 = vor.u32 %v15566_v34, %v13587_v54  ;;  %7266 = vmatpush.bf16.msra.mxu2 %v13332_v42 }
 0x5c5   : > { %v15366_v14 = vld [vmem:[#allocation8 + $0x10b4] sm:$0xf0] }
 0x5c6   : > { %v13043_v45 = vld [vmem:[#allocation8 + $0x1298] sm:$0xf]  ;;  %v12788_v5 = vor.u32 %v15366_v14, %v12787_v44  ;;  %7280 = vmatpush.bf16.msra.mxu3 %v13588_v31 }
 0x5c7   : > { %v15430_v15 = vld [vmem:[#allocation8 + $0x12b4] sm:$0xf0] }
 0x5c8   : > { %v13299_v62 = vld [vmem:[#allocation8 + $0x1498] sm:$0xf]  ;;  %v13044_v8 = vor.u32 %v15430_v15, %v13043_v45  ;;  %7239 = vmatpush.bf16.msra.mxu0 %v12788_v5 }
 0x5c9   : > { %v15494_v57 = vld [vmem:[#allocation8 + $0x14b4] sm:$0xf0] }
 0x5ca   : > { %v13555_v56 = vld [vmem:[#allocation8 + $0x1698] sm:$0xf]  ;;  %v13300_v43 = vor.u32 %v15494_v57, %v13299_v62  ;;  %7253 = vmatpush.bf16.msra.mxu1 %v13044_v8 }
 0x5cb   : > { %v15558_v47 = vld [vmem:[#allocation8 + $0x16b4] sm:$0xf0] }
 0x5cc   : > { %v12755_v6 = vld [vmem:[#allocation8 + $0x1058] sm:$0xf]  ;;  %v13556_v53 = vor.u32 %v15558_v47, %v13555_v56  ;;  %7267 = vmatpush.bf16.msra.mxu2 %v13300_v43  ;;  %v14890_v56 = vld [vmem:[#allocation8 + $0x1dc] sm:$0xf] }
 0x5cd   : > { %v15358_v18 = vld [vmem:[#allocation8 + $0x1074] sm:$0xf0]  ;;  %v10901_v47 = vld [vmem:[#allocation8 + $0x1f8] sm:$0xf0] }
 0x5ce   : > { %v13011_v24 = vld [vmem:[#allocation8 + $0x1258] sm:$0xf]  ;;  %v12756_v63 = vor.u32 %v15358_v18, %v12755_v6  ;;  %7281 = vmatpush.bf16.msra.mxu3 %v13556_v53  ;;  %v11413_v6 = vld [vmem:[#allocation8 + $0x5f8] sm:$0xf0]  ;;  %v10904_v53 = vor.u32 %v14890_v56, %v10901_v47 }
 0x5cf   : > { %v15422_v52 = vld [vmem:[#allocation8 + $0x1274] sm:$0xf0]  ;;  %v15082_v18 = vld [vmem:[#allocation8 + $0x7dc] sm:$0xf] }
 0x5d0   : > { %v13267_v39 = vld [vmem:[#allocation8 + $0x1458] sm:$0xf]  ;;  %v13012_v37 = vor.u32 %v15422_v52, %v13011_v24  ;;  %7240 = vmatpush.bf16.msra.mxu0 %v12756_v63  ;;  %v11669_v24 = vld [vmem:[#allocation8 + $0x7f8] sm:$0xf0]  ;;  %v11160_v52 = vor.u32 %v14954_v9, %v11157_v32 }
 0x5d1   : > { %v15486_v54 = vld [vmem:[#allocation8 + $0x1474] sm:$0xf0]  ;;  %v11672_v36 = vor.u32 %v15082_v18, %v11669_v24  ;;  %v15074_v63 = vld [vmem:[#allocation8 + $0x79c] sm:$0xf] }
 0x5d2   : > { %v13523_v34 = vld [vmem:[#allocation8 + $0x1658] sm:$0xf]  ;;  %v13268_v42 = vor.u32 %v15486_v54, %v13267_v39  ;;  %7254 = vmatpush.bf16.msra.mxu1 %v13012_v37  ;;  %v14882_v39 = vld [vmem:[#allocation8 + $0x19c] sm:$0xf] }
 0x5d3   : > { %v15550_v25 = vld [vmem:[#allocation8 + $0x1674] sm:$0xf0]  ;;  %v10869_v54 = vld [vmem:[#allocation8 + $0x1b8] sm:$0xf0] }
 0x5d4   : > { %v12723_v19 = vld [vmem:[#allocation8 + $0x1018] sm:$0xf]  ;;  %v13524_v31 = vor.u32 %v15550_v25, %v13523_v34  ;;  %7268 = vmatpush.bf16.msra.mxu2 %v13268_v42  ;;  %v11416_v34 = vor.u32 %v15018_v22, %v11413_v6  ;;  %v11637_v37 = vld [vmem:[#allocation8 + $0x7b8] sm:$0xf0]  ;;  %v17360_v22 = vpop.f32.mrf.mxu1 }
 0x5d5   : > { %v15350_v44 = vld [vmem:[#allocation8 + $0x1034] sm:$0xf0]  ;;  %v14874_v42 = vld [vmem:[#allocation8 + $0x15c] sm:$0xf] }
 0x5d6   : > { %v12979_v14 = vld [vmem:[#allocation8 + $0x1218] sm:$0xf]  ;;  %v12724_v5 = vor.u32 %v15350_v44, %v12723_v19  ;;  %7282 = vmatpush.bf16.msra.mxu3 %v13524_v31  ;;  %v11381_v19 = vld [vmem:[#allocation8 + $0x5b8] sm:$0xf0]  ;;  %v17358_v44 = vpop.f32.mrf.mxu0 }
 0x5d7   : > { %v15414_v45 = vld [vmem:[#allocation8 + $0x1234] sm:$0xf0]  ;;  %v10837_v31 = vld [vmem:[#allocation8 + $0x178] sm:$0xf0] }
 0x5d8   : > { %v13235_v15 = vld [vmem:[#allocation8 + $0x1418] sm:$0xf]  ;;  %v12980_v8 = vor.u32 %v15414_v45, %v12979_v14  ;;  %7241 = vmatpush.bf16.msra.mxu0 %v12724_v5  ;;  %v10872_v14 = vor.u32 %v14882_v39, %v10869_v54  ;;  %v11128_v45 = vor.u32 %v14946_v35, %v11125_v13  ;;  %v15002_v56 = vld [vmem:[#allocation8 + $0x55c] sm:$0xf]  ;;  %v10840_v13 = vor.u32 %v14874_v42, %v10837_v31  ;;  %v17368_v54 = vpop.f32.mrf.mxu3 }
 0x5d9   : > { %v15478_v62 = vld [vmem:[#allocation8 + $0x1434] sm:$0xf0]  ;;  %v11349_v47 = vld [vmem:[#allocation8 + $0x578] sm:$0xf0]  ;;  %17773 = vst [vmem:[#allocation79_spill] sm:$0xff] %v17368_v54 }
 0x5da   : > { %v13491_v61 = vld [vmem:[#allocation8 + $0x1618] sm:$0xf]  ;;  %v13236_v43 = vor.u32 %v15478_v62, %v13235_v15  ;;  %7255 = vmatpush.bf16.msra.mxu1 %v12980_v8  ;;  %v11384_v15 = vor.u32 %v15010_v30, %v11381_v19  ;;  %v11640_v62 = vor.u32 %v15074_v63, %v11637_v37  ;;  %v15066_v9 = vld [vmem:[#allocation8 + $0x75c] sm:$0xf]  ;;  %v11352_v5 = vor.u32 %v15002_v56, %v11349_v47 }
 0x5db   : > { %v15542_v57 = vld [vmem:[#allocation8 + $0x1634] sm:$0xf0]  ;;  %7242 = vmatmul.bf16.vlgmr.msra.gmra.mxu0 %v17049_v26  ;;  %v11605_v32 = vld [vmem:[#allocation8 + $0x778] sm:$0xf0] }
 0x5dc   : > { %v13492_v25 = vor.u32 %v15542_v57, %v13491_v61  ;;  %7269 = vmatpush.bf16.msra.mxu2 %v13236_v43  ;;  %7290 = vmatpush.bf16.msrb.mxu0 %v10904_v53  ;;  %v14938_v61 = vld [vmem:[#allocation8 + $0x35c] sm:$0xf]  ;;  %v11608_v8 = vor.u32 %v15066_v9, %v11605_v32  ;;  %v17366_v43 = vpop.f32.mrf.mxu2 }
 0x5dd   : > { %v11093_v57 = vld [vmem:[#allocation8 + $0x378] sm:$0xf0]  ;;  %7256 = vmatmul.bf16.vlgmr.msra.gmra.mxu1 %v17051_v33 }
 0x5de   : > { %7283 = vmatpush.bf16.msra.mxu3 %v13492_v25  ;;  %7304 = vmatpush.bf16.msrb.mxu1 %v11160_v52  ;;  %v11096_v35 = vor.u32 %v14938_v61, %v11093_v57  ;;  %v14866_v30 = vld [vmem:[#allocation8 + $0x11c] sm:$0xf]  ;;  %v7019_v39 = vpop.f32.mrf.mxu0 }
 0x5df   : > { %7270 = vmatmul.bf16.vlgmr.msra.gmra.mxu2 %v17053_v49  ;;  %v14930_v6 = vld [vmem:[#allocation8 + $0x31c] sm:$0xf] }
 0x5e0   : > { %7318 = vmatpush.bf16.msrb.mxu2 %v11416_v34  ;;  %7291 = vmatpush.bf16.msrb.mxu0 %v10872_v14  ;;  %v11061_v18 = vld [vmem:[#allocation8 + $0x338] sm:$0xf0]  ;;  %v7020_v34 = vadd.f32 %v7019_v39, %v17356_v3  ;;  %v7061_v39 = vpop.f32.mrf.mxu3 }
 0x5e1   : > { %7284 = vmatmul.bf16.vlgmr.msra.gmra.mxu3 %v17055_v23  ;;  %v14994_v24 = vld [vmem:[#allocation8 + $0x51c] sm:$0xf]  ;;  %v11064_v63 = vor.u32 %v14930_v6, %v11061_v18 }
 0x5e2   : > { %7332 = vmatpush.bf16.msrb.mxu3 %v11672_v36  ;;  %7305 = vmatpush.bf16.msrb.mxu1 %v11128_v45  ;;  %v10805_v36 = vld [vmem:[#allocation8 + $0x138] sm:$0xf0]  ;;  %v7033_v45 = vpop.f32.mrf.mxu1 }
 0x5e3   : > { %v11317_v25 = vld [vmem:[#allocation8 + $0x538] sm:$0xf0]  ;;  %v10808_v19 = vor.u32 %v14866_v30, %v10805_v36  ;;  %v7034_v57 = vadd.f32 %v7033_v45, %v7020_v34 }
 0x5e4   : > { %7319 = vmatpush.bf16.msrb.mxu2 %v11384_v15  ;;  %v15058_v53 = vld [vmem:[#allocation8 + $0x71c] sm:$0xf]  ;;  %7292 = vmatpush.bf16.msrb.mxu0 %v10840_v13  ;;  %v11320_v42 = vor.u32 %v14994_v24, %v11317_v25  ;;  %v7047_v18 = vpop.f32.mrf.mxu2 }
 0x5e5   : > { %v11573_v52 = vld [vmem:[#allocation8 + $0x738] sm:$0xf0] }
 0x5e6   : > { %7333 = vmatpush.bf16.msrb.mxu3 %v11640_v62  ;;  %7306 = vmatpush.bf16.msrb.mxu1 %v11096_v35  ;;  %v14858_v37 = vld [vmem:[#allocation8 + $0xdc] sm:$0xf]  ;;  %v11576_v31 = vor.u32 %v15058_v53, %v11573_v52  ;;  %v7048_v52 = vadd.f32 %v7047_v18, %v7034_v57 }
 0x5e7   : > { %v10773_v14 = vld [vmem:[#allocation8 + $0xf8] sm:$0xf0] }
 0x5e8   : > { %7320 = vmatpush.bf16.msrb.mxu2 %v11352_v5  ;;  %v14922_v15 = vld [vmem:[#allocation8 + $0x2dc] sm:$0xf]  ;;  %7293 = vmatpush.bf16.msrb.mxu0 %v10808_v19  ;;  %v10776_v32 = vor.u32 %v14858_v37, %v10773_v14  ;;  %v17371_v14 = vadd.f32 %v7061_v39, %v7048_v52 }
 0x5e9   : > { %v11029_v62 = vld [vmem:[#allocation8 + $0x2f8] sm:$0xf0] }
 0x5ea   : > { %7334 = vmatpush.bf16.msrb.mxu3 %v11608_v8  ;;  %v14986_v61 = vld [vmem:[#allocation8 + $0x4dc] sm:$0xf]  ;;  %7307 = vmatpush.bf16.msrb.mxu1 %v11064_v63  ;;  %v11032_v3 = vor.u32 %v14922_v15, %v11029_v62 }
 0x5eb   : > { %v11285_v56 = vld [vmem:[#allocation8 + $0x4f8] sm:$0xf0] }
 0x5ec   : > { %v15050_v47 = vld [vmem:[#allocation8 + $0x6dc] sm:$0xf]  ;;  %7321 = vmatpush.bf16.msrb.mxu2 %v11320_v42  ;;  %v11288_v30 = vor.u32 %v14986_v61, %v11285_v56  ;;  %7294 = vmatpush.bf16.msrb.mxu0 %v10776_v32 }
 0x5ed   : > { %v11541_v9 = vld [vmem:[#allocation8 + $0x6f8] sm:$0xf0] }
 0x5ee   : > { %v14850_v13 = vld [vmem:[#allocation8 + $0x9c] sm:$0xf]  ;;  %7335 = vmatpush.bf16.msrb.mxu3 %v11576_v31  ;;  %v11544_v36 = vor.u32 %v15050_v47, %v11541_v9  ;;  %7308 = vmatpush.bf16.msrb.mxu1 %v11032_v3 }
 0x5ef   : > { %v10741_v35 = vld [vmem:[#allocation8 + $0xb8] sm:$0xf0] }
 0x5f0   : > { %v14914_v5 = vld [vmem:[#allocation8 + $0x29c] sm:$0xf]  ;;  %v10744_v34 = vor.u32 %v14850_v13, %v10741_v35  ;;  %7322 = vmatpush.bf16.msrb.mxu2 %v11288_v30 }
 0x5f1   : > { %v10997_v8 = vld [vmem:[#allocation8 + $0x2b8] sm:$0xf0] }
 0x5f2   : > { %v14978_v6 = vld [vmem:[#allocation8 + $0x49c] sm:$0xf]  ;;  %v11000_v19 = vor.u32 %v14914_v5, %v10997_v8  ;;  %7336 = vmatpush.bf16.msrb.mxu3 %v11544_v36  ;;  %7295 = vmatpush.bf16.msrb.mxu0 %v10744_v34 }
 0x5f3   : > { %v11253_v24 = vld [vmem:[#allocation8 + $0x4b8] sm:$0xf0] }
 0x5f4   : > { %v15042_v25 = vld [vmem:[#allocation8 + $0x69c] sm:$0xf]  ;;  %v11256_v45 = vor.u32 %v14978_v6, %v11253_v24  ;;  %7309 = vmatpush.bf16.msrb.mxu1 %v11000_v19 }
 0x5f5   : > { %v11509_v53 = vld [vmem:[#allocation8 + $0x6b8] sm:$0xf0] }
 0x5f6   : > { %v14842_v63 = vld [vmem:[#allocation8 + $0x5c] sm:$0xf]  ;;  %v11512_v42 = vor.u32 %v15042_v25, %v11509_v53  ;;  %7323 = vmatpush.bf16.msrb.mxu2 %v11256_v45 }
 0x5f7   : > { %v10709_v37 = vld [vmem:[#allocation8 + $0x78] sm:$0xf0] }
 0x5f8   : > { %v14906_v31 = vld [vmem:[#allocation8 + $0x25c] sm:$0xf]  ;;  %v10712_v9 = vor.u32 %v14842_v63, %v10709_v37  ;;  %7337 = vmatpush.bf16.msrb.mxu3 %v11512_v42 }
 0x5f9   : > { %v10965_v15 = vld [vmem:[#allocation8 + $0x278] sm:$0xf0] }
 0x5fa   : > { %v14970_v62 = vld [vmem:[#allocation8 + $0x45c] sm:$0xf]  ;;  %v10968_v32 = vor.u32 %v14906_v31, %v10965_v15  ;;  %7296 = vmatpush.bf16.msrb.mxu0 %v10712_v9 }
 0x5fb   : > { %v11221_v61 = vld [vmem:[#allocation8 + $0x478] sm:$0xf0] }
 0x5fc   : > { %v15034_v56 = vld [vmem:[#allocation8 + $0x65c] sm:$0xf]  ;;  %v11224_v30 = vor.u32 %v14970_v62, %v11221_v61  ;;  %7310 = vmatpush.bf16.msrb.mxu1 %v10968_v32 }
 0x5fd   : > { %v11477_v47 = vld [vmem:[#allocation8 + $0x678] sm:$0xf0] }
 0x5fe   : > { %v14834_v57 = vld [vmem:[#allocation8 + $0x1c] sm:$0xf]  ;;  %v11480_v36 = vor.u32 %v15034_v56, %v11477_v47  ;;  %7324 = vmatpush.bf16.msrb.mxu2 %v11224_v30 }
 0x5ff   : > { %v10677_v3 = vld [vmem:[#allocation8 + $0x38] sm:$0xf0] }
 0x600   : > { %v14898_v13 = vld [vmem:[#allocation8 + $0x21c] sm:$0xf]  ;;  %v10680_v34 = vor.u32 %v14834_v57, %v10677_v3  ;;  %7338 = vmatpush.bf16.msrb.mxu3 %v11480_v36  ;;  %v17373_v3 = vpop.f32.mrf.mxu0 }
 0x601   : > { %v10933_v35 = vld [vmem:[#allocation8 + $0x238] sm:$0xf0] }
 0x602   : > { %v14962_v5 = vld [vmem:[#allocation8 + $0x41c] sm:$0xf]  ;;  %v10936_v19 = vor.u32 %v14898_v13, %v10933_v35  ;;  %7297 = vmatpush.bf16.msrb.mxu0 %v10680_v34  ;;  %v12152_v35 = vor.u32 %v15202_v48, %v12149_v27 }
 0x603   : > { %v11189_v8 = vld [vmem:[#allocation8 + $0x438] sm:$0xf0] }
 0x604   : > { %v15026_v6 = vld [vmem:[#allocation8 + $0x61c] sm:$0xf]  ;;  %v11192_v45 = vor.u32 %v14962_v5, %v11189_v8  ;;  %7311 = vmatpush.bf16.msrb.mxu1 %v10936_v19  ;;  %v17375_v5 = vpop.f32.mrf.mxu1 }
 0x605   : > { %v11445_v18 = vld [vmem:[#allocation8 + $0x638] sm:$0xf0]  ;;  %16101 = vmatmul.msk.bf16.vlgmr.msrb.gmra.mxu0 %vm16937_vm11, %v16942_v38 }
 0x606   : > { %v15146_v24 = vld [vmem:[#allocation8 + $0x9dc] sm:$0xf]  ;;  %v11448_v42 = vor.u32 %v15026_v6, %v11445_v18  ;;  %7325 = vmatpush.bf16.msrb.mxu2 %v11192_v45 }
 0x607   : > { %v11925_v25 = vld [vmem:[#allocation8 + $0x9f8] sm:$0xf0]  ;;  %16104 = vmatmul.msk.bf16.vlgmr.msrb.gmra.mxu1 %vm16937_vm11, %v16948_v4 }
 0x608   : > { %v15210_v53 = vld [vmem:[#allocation8 + $0xbdc] sm:$0xf]  ;;  %v11928_v15 = vor.u32 %v15146_v24, %v11925_v25  ;;  %7339 = vmatpush.bf16.msrb.mxu3 %v11448_v42  ;;  %v7075_v50 = vpop.f32.mrf.mxu0 }
 0x609   : > { %v12181_v52 = vld [vmem:[#allocation8 + $0xbf8] sm:$0xf0]  ;;  %16107 = vmatmul.msk.bf16.vlgmr.msrb.gmra.mxu2 %vm16937_vm11, %v16954_v10  ;;  %v7076_v42 = vadd.f32 %v7075_v50, %v17371_v14 }
 0x60a   : > { %v15274_v39 = vld [vmem:[#allocation8 + $0xddc] sm:$0xf]  ;;  %v12184_v62 = vor.u32 %v15210_v53, %v12181_v52  ;;  %7346 = vmatpush.bf16.msra.mxu0 %v11928_v15 }
 0x60b   : > { %v12437_v63 = vld [vmem:[#allocation8 + $0xdf8] sm:$0xf0]  ;;  %16110 = vmatmul.msk.bf16.vlgmr.msrb.gmra.mxu3 %vm16937_vm11, %v16960_v59  ;;  %v17391_v59 = vpop.f32.mrf.mxu3 }
 0x60c   : > { %v15338_v37 = vld [vmem:[#allocation8 + $0xfdc] sm:$0xf]  ;;  %v12440_v47 = vor.u32 %v15274_v39, %v12437_v63  ;;  %7360 = vmatpush.bf16.msra.mxu1 %v12184_v62 }
 0x60d   : > { %v12693_v31 = vld [vmem:[#allocation8 + $0xff8] sm:$0xf0] }
 0x60e   : > { %v15138_v61 = vld [vmem:[#allocation8 + $0x99c] sm:$0xf]  ;;  %v12696_v40 = vor.u32 %v15338_v37, %v12693_v31  ;;  %7374 = vmatpush.bf16.msra.mxu2 %v12440_v47  ;;  %v17389_v37 = vpop.f32.mrf.mxu2  ;;  %v7089_v47 = vpop.f32.mrf.mxu1 }
 0x60f   : > { %v11893_v56 = vld [vmem:[#allocation8 + $0x9b8] sm:$0xf0] }
 0x610   : > { %v15266_v54 = vld [vmem:[#allocation8 + $0xd9c] sm:$0xf]  ;;  %v11896_v13 = vor.u32 %v15138_v61, %v11893_v56  ;;  %7388 = vmatpush.bf16.msra.mxu3 %v12696_v40  ;;  %7361 = vmatpush.bf16.msra.mxu1 %v12152_v35 }
 0x611   : > { %v12405_v57 = vld [vmem:[#allocation8 + $0xdb8] sm:$0xf0] }
 0x612   : > { %v15330_v9 = vld [vmem:[#allocation8 + $0xf9c] sm:$0xf]  ;;  %v12408_v8 = vor.u32 %v15266_v54, %v12405_v57  ;;  %7347 = vmatpush.bf16.msra.mxu0 %v11896_v13 }
 0x613   : > { %v12661_v32 = vld [vmem:[#allocation8 + $0xfb8] sm:$0xf0] }
 0x614   : > { %v15130_v30 = vld [vmem:[#allocation8 + $0x95c] sm:$0xf]  ;;  %v12664_v6 = vor.u32 %v15330_v9, %v12661_v32  ;;  %7375 = vmatpush.bf16.msra.mxu2 %v12408_v8 }
 0x615   : > { %v11861_v36 = vld [vmem:[#allocation8 + $0x978] sm:$0xf0] }
 0x616   : > { %v15194_v18 = vld [vmem:[#allocation8 + $0xb5c] sm:$0xf]  ;;  %v11864_v40 = vor.u32 %v15130_v30, %v11861_v36  ;;  %7389 = vmatpush.bf16.msra.mxu3 %v12664_v6  ;;  %v7090_v30 = vadd.f32 %v7089_v47, %v7076_v42 }
 0x617   : > { %v12117_v24 = vld [vmem:[#allocation8 + $0xb78] sm:$0xf0] }
 0x618   : > { %v15258_v25 = vld [vmem:[#allocation8 + $0xd5c] sm:$0xf]  ;;  %v12120_v54 = vor.u32 %v15194_v18, %v12117_v24  ;;  %7348 = vmatpush.bf16.msra.mxu0 %v11864_v40 }
 0x619   : > { %v12373_v27 = vld [vmem:[#allocation8 + $0xd78] sm:$0xf0] }
 0x61a   : > { %v15322_v48 = vld [vmem:[#allocation8 + $0xf5c] sm:$0xf]  ;;  %v12376_v4 = vor.u32 %v15258_v25, %v12373_v27  ;;  %7362 = vmatpush.bf16.msra.mxu1 %v12120_v54 }
 0x61b   : > { %v12629_v53 = vld [vmem:[#allocation8 + $0xf78] sm:$0xf0] }
 0x61c   : > { %v15122_v38 = vld [vmem:[#allocation8 + $0x91c] sm:$0xf]  ;;  %v12632_v39 = vor.u32 %v15322_v48, %v12629_v53  ;;  %7376 = vmatpush.bf16.msra.mxu2 %v12376_v4 }
 0x61d   : > { %v11829_v52 = vld [vmem:[#allocation8 + $0x938] sm:$0xf0] }
 0x61e   : > { %v15186_v34 = vld [vmem:[#allocation8 + $0xb1c] sm:$0xf]  ;;  %v11832_v15 = vor.u32 %v15122_v38, %v11829_v52  ;;  %7390 = vmatpush.bf16.msra.mxu3 %v12632_v39  ;;  %v7103_v38 = vpop.f32.mrf.mxu2 }
 0x61f   : > { %v12085_v19 = vld [vmem:[#allocation8 + $0xb38] sm:$0xf0] }
 0x620   : > { %v15250_v63 = vld [vmem:[#allocation8 + $0xd1c] sm:$0xf]  ;;  %v12088_v62 = vor.u32 %v15186_v34, %v12085_v19  ;;  %7349 = vmatpush.bf16.msra.mxu0 %v11832_v15  ;;  %v7104_v34 = vadd.f32 %v7103_v38, %v7090_v30  ;;  %v7117_v19 = vpop.f32.mrf.mxu3 }
 0x621   : > { %v12341_v10 = vld [vmem:[#allocation8 + $0xd38] sm:$0xf0] }
 0x622   : > { %v15314_v31 = vld [vmem:[#allocation8 + $0xf1c] sm:$0xf]  ;;  %v12344_v57 = vor.u32 %v15250_v63, %v12341_v10  ;;  %7363 = vmatpush.bf16.msra.mxu1 %v12088_v62  ;;  %v7118_v50 = vadd.f32 %v7117_v19, %v7104_v34 }
 0x623   : > { %v12597_v45 = vld [vmem:[#allocation8 + $0xf38] sm:$0xf0] }
 0x624   : > { %v15114_v61 = vld [vmem:[#allocation8 + $0x8dc] sm:$0xf]  ;;  %v12600_v9 = vor.u32 %v15314_v31, %v12597_v45  ;;  %7377 = vmatpush.bf16.msra.mxu2 %v12344_v57 }
 0x625   : > { %v11797_v56 = vld [vmem:[#allocation8 + $0x8f8] sm:$0xf0] }
 0x626   : > { %v15178_v32 = vld [vmem:[#allocation8 + $0xadc] sm:$0xf]  ;;  %v11800_v18 = vor.u32 %v15114_v61, %v11797_v56  ;;  %7391 = vmatpush.bf16.msra.mxu3 %v12600_v9 }
 0x627   : > { %v12053_v13 = vld [vmem:[#allocation8 + $0xaf8] sm:$0xf0] }
 0x628   : > { %v15242_v35 = vld [vmem:[#allocation8 + $0xcdc] sm:$0xf]  ;;  %v12056_v14 = vor.u32 %v15178_v32, %v12053_v13  ;;  %7350 = vmatpush.bf16.msra.mxu0 %v11800_v18  ;;  %v7459_v32 = vmax.f32 %v17169_v60, 0.0  ;;  %v7463_v13 = vmax.f32 %v7118_v50, 0.0 }
 0x629   : > { %v12309_v36 = vld [vmem:[#allocation8 + $0xcf8] sm:$0xf0] }
 0x62a   : > { %v15306_v8 = vld [vmem:[#allocation8 + $0xedc] sm:$0xf]  ;;  %v12312_v27 = vor.u32 %v15242_v35, %v12309_v36  ;;  %7364 = vmatpush.bf16.msra.mxu1 %v12056_v14 }
 0x62b   : > { %v12565_v6 = vld [vmem:[#allocation8 + $0xef8] sm:$0xf0] }
 0x62c   : > { %v15106_v24 = vld [vmem:[#allocation8 + $0x89c] sm:$0xf]  ;;  %v12568_v48 = vor.u32 %v15306_v8, %v12565_v6  ;;  %7378 = vmatpush.bf16.msra.mxu2 %v12312_v27 }
 0x62d   : > { %v11765_v25 = vld [vmem:[#allocation8 + $0x8b8] sm:$0xf0] }
 0x62e   : > { %v15170_v53 = vld [vmem:[#allocation8 + $0xa9c] sm:$0xf]  ;;  %v11768_v63 = vor.u32 %v15106_v24, %v11765_v25  ;;  %7392 = vmatpush.bf16.msra.mxu3 %v12568_v48  ;;  %v7475_v24 = vmax.f32 %v7459_v32, %v7463_v13 }
 0x62f   : > { %v12021_v40 = vld [vmem:[#allocation8 + $0xab8] sm:$0xf0] }
 0x630   : > { %v15234_v54 = vld [vmem:[#allocation8 + $0xc9c] sm:$0xf]  ;;  %v12024_v10 = vor.u32 %v15170_v53, %v12021_v40  ;;  %7351 = vmatpush.bf16.msra.mxu0 %v11768_v63 }
 0x631   : > { %v12277_v52 = vld [vmem:[#allocation8 + $0xcb8] sm:$0xf0] }
 0x632   : > { %v15298_v4 = vld [vmem:[#allocation8 + $0xe9c] sm:$0xf]  ;;  %v12280_v42 = vor.u32 %v15234_v54, %v12277_v52  ;;  %7365 = vmatpush.bf16.msra.mxu1 %v12024_v10  ;;  %v7490_v52 = vrot.slane %v7475_v24, 6  ;;  %v17413_v24 = vpop.f32.mrf.mxu1 }
 0x633   : > { %v12533_v39 = vld [vmem:[#allocation8 + $0xeb8] sm:$0xf0] }
 0x634   : > { %v15098_v31 = vld [vmem:[#allocation8 + $0x85c] sm:$0xf]  ;;  %v12536_v15 = vor.u32 %v15298_v4, %v12533_v39  ;;  %7379 = vmatpush.bf16.msra.mxu2 %v12280_v42  ;;  %v17397_v42 = vsel %vm1053_vm3, %v17339_v41, %v7490_v52 }
 0x635   : > { %v11733_v45 = vld [vmem:[#allocation8 + $0x878] sm:$0xf0] }
 0x636   : > { %v15162_v62 = vld [vmem:[#allocation8 + $0xa5c] sm:$0xf]  ;;  %v11736_v36 = vor.u32 %v15098_v31, %v11733_v45  ;;  %7393 = vmatpush.bf16.msra.mxu3 %v12536_v15  ;;  %v17401_v15 = vsel %vm1059_vm5, %v17339_v41, %v7490_v52 }
 0x637   : > { %v11989_v61 = vld [vmem:[#allocation8 + $0xa78] sm:$0xf0] }
 0x638   : > { %v15226_v56 = vld [vmem:[#allocation8 + $0xc5c] sm:$0xf]  ;;  %v11992_v8 = vor.u32 %v15162_v62, %v11989_v61  ;;  %7352 = vmatpush.bf16.msra.mxu0 %v11736_v36  ;;  %v17405_v62 = vsel %vm1055_vm4, %v17339_v41, %v7490_v52  ;;  %v17409_v61 = vsel %vm1061_vm6, %v7490_v52, %v17339_v41 }
 0x639   : > { %v12245_v47 = vld [vmem:[#allocation8 + $0xc78] sm:$0xf0] }
 0x63a   : > { %v15290_v57 = vld [vmem:[#allocation8 + $0xe5c] sm:$0xf]  ;;  %v12248_v25 = vor.u32 %v15226_v56, %v12245_v47  ;;  %7366 = vmatpush.bf16.msra.mxu1 %v11992_v8 }
 0x63b   : > { %v12501_v9 = vld [vmem:[#allocation8 + $0xe78] sm:$0xf0] }
 0x63c   : > { %v15090_v35 = vld [vmem:[#allocation8 + $0x81c] sm:$0xf]  ;;  %v12504_v40 = vor.u32 %v15290_v57, %v12501_v9  ;;  %7380 = vmatpush.bf16.msra.mxu2 %v12248_v25 }
 0x63d   : > { %v11701_v30 = vld [vmem:[#allocation8 + $0x838] sm:$0xf0] }
 0x63e   : > { %v15154_v6 = vld [vmem:[#allocation8 + $0xa1c] sm:$0xf]  ;;  %v11704_v4 = vor.u32 %v15090_v35, %v11701_v30  ;;  %7394 = vmatpush.bf16.msra.mxu3 %v12504_v40 }
 0x63f   : > { %v11957_v18 = vld [vmem:[#allocation8 + $0xa38] sm:$0xf0] }
 0x640   : > { %v15218_v14 = vld [vmem:[#allocation8 + $0xc1c] sm:$0xf]  ;;  %v11960_v19 = vor.u32 %v15154_v6, %v11957_v18  ;;  %7353 = vmatpush.bf16.msra.mxu0 %v11704_v4  ;;  %v17411_v6 = vpop.f32.mrf.mxu0 }
 0x641   : > { %v12213_v27 = vld [vmem:[#allocation8 + $0xc38] sm:$0xf0] }
 0x642   : > { %v15402_v48 = vld [vmem:[#allocation8 + $0x11dc] sm:$0xf]  ;;  %v12216_v63 = vor.u32 %v15218_v14, %v12213_v27  ;;  %7367 = vmatpush.bf16.msra.mxu1 %v11960_v19  ;;  %v17419_v19 = vld [vmem:[#allocation9] sm:$0xff] }
 0x643   : > { %v12949_v53 = vld [vmem:[#allocation8 + $0x11f8] sm:$0xf0]  ;;  %7354 = vmatmul.bf16.vlgmr.msra.gmra.mxu0 %v16989_v58 }
 0x644   : > { %v15282_v54 = vld [vmem:[#allocation8 + $0xe1c] sm:$0xf]  ;;  %v12952_v10 = vor.u32 %v15402_v48, %v12949_v53  ;;  %7381 = vmatpush.bf16.msra.mxu2 %v12216_v63  ;;  %v2264_v63 = vperm.slane %v17419_v19, 6 }
 0x645   : > { %v12469_v60 = vld [vmem:[#allocation8 + $0xe38] sm:$0xf0]  ;;  %7368 = vmatmul.bf16.vlgmr.msra.gmra.mxu1 %v16991_v46 }
 0x646   : > { %v15466_v38 = vld [vmem:[#allocation8 + $0x13dc] sm:$0xf]  ;;  %v12472_v56 = vor.u32 %v15282_v54, %v12469_v60  ;;  %7402 = vmatpush.bf16.msrb.mxu0 %v12952_v10 }
 0x647   : > { %v13205_v39 = vld [vmem:[#allocation8 + $0x13f8] sm:$0xf0]  ;;  %7382 = vmatmul.bf16.vlgmr.msra.gmra.mxu2 %v16993_v11 }
 0x648   : > { %v15530_v34 = vld [vmem:[#allocation8 + $0x15dc] sm:$0xf]  ;;  %v13208_v47 = vor.u32 %v15466_v38, %v13205_v39  ;;  %7395 = vmatpush.bf16.msra.mxu3 %v12472_v56 }
 0x649   : > { %v13461_v31 = vld [vmem:[#allocation8 + $0x15f8] sm:$0xf0] }
 0x64a   : > { %v15594_v45 = vld [vmem:[#allocation8 + $0x17dc] sm:$0xf]  ;;  %v13464_v57 = vor.u32 %v15530_v34, %v13461_v31  ;;  %7416 = vmatpush.bf16.msrb.mxu1 %v13208_v47 }
 0x64b   : > { %v13717_v50 = vld [vmem:[#allocation8 + $0x17f8] sm:$0xf0]  ;;  %7396 = vmatmul.bf16.vlgmr.msra.gmra.mxu3 %v16995_v12 }
 0x64c   : > { %v13720_v9 = vor.u32 %v15594_v45, %v13717_v50  ;;  %v15394_v32 = vld [vmem:[#allocation8 + $0x119c] sm:$0xf]  ;;  %7430 = vmatpush.bf16.msrb.mxu2 %v13464_v57  ;;  %v17422_v50 = vpop.f32.mrf.mxu2  ;;  %v7131_v57 = vpop.f32.mrf.mxu0 }
 0x64d   : > { %v12917_v13 = vld [vmem:[#allocation8 + $0x11b8] sm:$0xf0] }
 0x64e   : > { %v15458_v35 = vld [vmem:[#allocation8 + $0x139c] sm:$0xf]  ;;  %v12920_v14 = vor.u32 %v15394_v32, %v12917_v13  ;;  %7444 = vmatpush.bf16.msrb.mxu3 %v13720_v9  ;;  %v17424_v13 = vpop.f32.mrf.mxu3 }
 0x64f   : > { %v13173_v30 = vld [vmem:[#allocation8 + $0x13b8] sm:$0xf0] }
 0x650   : > { %v15522_v36 = vld [vmem:[#allocation8 + $0x159c] sm:$0xf]  ;;  %v13176_v25 = vor.u32 %v15458_v35, %v13173_v30  ;;  %7403 = vmatpush.bf16.msrb.mxu0 %v12920_v14  ;;  %v7132_v35 = vadd.f32 %v7131_v57, %v2264_v63 }
 0x651   : > { %v13429_v8 = vld [vmem:[#allocation8 + $0x15b8] sm:$0xf0] }
 0x652   : > { %v15586_v41 = vld [vmem:[#allocation8 + $0x179c] sm:$0xf]  ;;  %v13432_v27 = vor.u32 %v15522_v36, %v13429_v8  ;;  %7417 = vmatpush.bf16.msrb.mxu1 %v13176_v25  ;;  %v7145_v36 = vpop.f32.mrf.mxu1 }
 0x653   : > { %v13685_v18 = vld [vmem:[#allocation8 + $0x17b8] sm:$0xf0] }
 0x654   : > { %v15386_v48 = vld [vmem:[#allocation8 + $0x115c] sm:$0xf]  ;;  %v13688_v54 = vor.u32 %v15586_v41, %v13685_v18  ;;  %7431 = vmatpush.bf16.msrb.mxu2 %v13432_v27  ;;  %v7146_v27 = vadd.f32 %v7145_v36, %v7132_v35 }
 0x655   : > { %v12885_v53 = vld [vmem:[#allocation8 + $0x1178] sm:$0xf0] }
 0x656   : > { %v15450_v40 = vld [vmem:[#allocation8 + $0x135c] sm:$0xf]  ;;  %v12888_v34 = vor.u32 %v15386_v48, %v12885_v53  ;;  %7445 = vmatpush.bf16.msrb.mxu3 %v13688_v54 }
 0x657   : > { %v13141_v60 = vld [vmem:[#allocation8 + $0x1378] sm:$0xf0] }
 0x658   : > { %v15514_v38 = vld [vmem:[#allocation8 + $0x155c] sm:$0xf]  ;;  %v13144_v58 = vor.u32 %v15450_v40, %v13141_v60  ;;  %7404 = vmatpush.bf16.msrb.mxu0 %v12888_v34 }
 0x659   : > { %v13397_v52 = vld [vmem:[#allocation8 + $0x1578] sm:$0xf0] }
 0x65a   : > { %v15578_v4 = vld [vmem:[#allocation8 + $0x175c] sm:$0xf]  ;;  %v13400_v46 = vor.u32 %v15514_v38, %v13397_v52  ;;  %7418 = vmatpush.bf16.msrb.mxu1 %v13144_v58 }
 0x65b   : > { %v13653_v39 = vld [vmem:[#allocation8 + $0x1778] sm:$0xf0] }
 0x65c   : > { %v15378_v10 = vld [vmem:[#allocation8 + $0x111c] sm:$0xf]  ;;  %v13656_v11 = vor.u32 %v15578_v4, %v13653_v39  ;;  %7432 = vmatpush.bf16.msrb.mxu2 %v13400_v46 }
 0x65d   : > { %v12853_v31 = vld [vmem:[#allocation8 + $0x1138] sm:$0xf0] }
 0x65e   : > { %v15442_v45 = vld [vmem:[#allocation8 + $0x131c] sm:$0xf]  ;;  %v12856_v30 = vor.u32 %v15378_v10, %v12853_v31  ;;  %7446 = vmatpush.bf16.msrb.mxu3 %v13656_v11  ;;  %v7159_v31 = vpop.f32.mrf.mxu2 }
 0x65f   : > { %v13109_v12 = vld [vmem:[#allocation8 + $0x1338] sm:$0xf0] }
 0x660   : > { %v15506_v56 = vld [vmem:[#allocation8 + $0x151c] sm:$0xf]  ;;  %v13112_v8 = vor.u32 %v15442_v45, %v13109_v12  ;;  %7405 = vmatpush.bf16.msrb.mxu0 %v12856_v30 }
 0x661   : > { %v13365_v47 = vld [vmem:[#allocation8 + $0x1538] sm:$0xf0] }
 0x662   : > { %v15570_v9 = vld [vmem:[#allocation8 + $0x171c] sm:$0xf]  ;;  %v13368_v41 = vor.u32 %v15506_v56, %v13365_v47  ;;  %7419 = vmatpush.bf16.msrb.mxu1 %v13112_v8  ;;  %v7160_v56 = vadd.f32 %v7159_v31, %v7146_v27 }
 0x663   : > { %v13621_v32 = vld [vmem:[#allocation8 + $0x1738] sm:$0xf0] }
 0x664   : > { %v15370_v18 = vld [vmem:[#allocation8 + $0x10dc] sm:$0xf]  ;;  %v13624_v48 = vor.u32 %v15570_v9, %v13621_v32  ;;  %7433 = vmatpush.bf16.msrb.mxu2 %v13368_v41  ;;  %v7173_v9 = vpop.f32.mrf.mxu3 }
 0x665   : > { %v12821_v14 = vld [vmem:[#allocation8 + $0x10f8] sm:$0xf0]  ;;  %v7174_v35 = vadd.f32 %v7173_v9, %v7160_v56  ;;  %v17432_v9 = vpop.f32.mrf.mxu1 }
 0x666   : > { %v15434_v25 = vld [vmem:[#allocation8 + $0x12dc] sm:$0xf]  ;;  %v12824_v52 = vor.u32 %v15370_v18, %v12821_v14  ;;  %7447 = vmatpush.bf16.msrb.mxu3 %v13624_v48 }
 0x667   : > { %v13077_v53 = vld [vmem:[#allocation8 + $0x12f8] sm:$0xf0] }
 0x668   : > { %v15498_v40 = vld [vmem:[#allocation8 + $0x14dc] sm:$0xf]  ;;  %v13080_v4 = vor.u32 %v15434_v25, %v13077_v53  ;;  %7406 = vmatpush.bf16.msrb.mxu0 %v12824_v52 }
 0x669   : > { %v13333_v54 = vld [vmem:[#allocation8 + $0x14f8] sm:$0xf0] }
 0x66a   : > { %v15562_v60 = vld [vmem:[#allocation8 + $0x16dc] sm:$0xf]  ;;  %v13336_v39 = vor.u32 %v15498_v40, %v13333_v54  ;;  %7420 = vmatpush.bf16.msrb.mxu1 %v13080_v4 }
 0x66b   : > { %v13589_v38 = vld [vmem:[#allocation8 + $0x16f8] sm:$0xf0] }
 0x66c   : > { %v15362_v34 = vld [vmem:[#allocation8 + $0x109c] sm:$0xf]  ;;  %v13592_v10 = vor.u32 %v15562_v60, %v13589_v38  ;;  %7434 = vmatpush.bf16.msrb.mxu2 %v13336_v39 }
 0x66d   : > { %v12789_v58 = vld [vmem:[#allocation8 + $0x10b8] sm:$0xf0] }
 0x66e   : > { %v15426_v46 = vld [vmem:[#allocation8 + $0x129c] sm:$0xf]  ;;  %v12792_v32 = vor.u32 %v15362_v34, %v12789_v58  ;;  %7448 = vmatpush.bf16.msrb.mxu3 %v13592_v10 }
 0x66f   : > { %v13045_v45 = vld [vmem:[#allocation8 + $0x12b8] sm:$0xf0] }
 0x670   : > { %v15490_v11 = vld [vmem:[#allocation8 + $0x149c] sm:$0xf]  ;;  %v13048_v30 = vor.u32 %v15426_v46, %v13045_v45  ;;  %7407 = vmatpush.bf16.msrb.mxu0 %v12792_v32  ;;  %v17434_v32 = vpop.f32.mrf.mxu2 }
 0x671   : > { %v13301_v12 = vld [vmem:[#allocation8 + $0x14b8] sm:$0xf0] }
 0x672   : > { %v15554_v47 = vld [vmem:[#allocation8 + $0x169c] sm:$0xf]  ;;  %v13304_v36 = vor.u32 %v15490_v11, %v13301_v12  ;;  %7421 = vmatpush.bf16.msrb.mxu1 %v13048_v30 }
 0x673   : > { %v13557_v57 = vld [vmem:[#allocation8 + $0x16b8] sm:$0xf0] }
 0x674   : > { %v15354_v8 = vld [vmem:[#allocation8 + $0x105c] sm:$0xf]  ;;  %v13560_v14 = vor.u32 %v15554_v47, %v13557_v57  ;;  %7435 = vmatpush.bf16.msrb.mxu2 %v13304_v36  ;;  %v7133_v57 = vpop.f32.mrf.mxu0  ;;  %v17436_v36 = vpop.f32.mrf.mxu3 }
 0x675   : > { %v12757_v41 = vld [vmem:[#allocation8 + $0x1078] sm:$0xf0] }
 0x676   : > { %v15418_v18 = vld [vmem:[#allocation8 + $0x125c] sm:$0xf]  ;;  %v12760_v54 = vor.u32 %v15354_v8, %v12757_v41  ;;  %7449 = vmatpush.bf16.msrb.mxu3 %v13560_v14  ;;  %v7201_v8 = vpop.f32.mrf.mxu1 }
 0x677   : > { %v13013_v25 = vld [vmem:[#allocation8 + $0x1278] sm:$0xf0] }
 0x678   : > { %v15482_v48 = vld [vmem:[#allocation8 + $0x145c] sm:$0xf]  ;;  %v13016_v60 = vor.u32 %v15418_v18, %v13013_v25  ;;  %7408 = vmatpush.bf16.msrb.mxu0 %v12760_v54  ;;  %v7215_v41 = vpop.f32.mrf.mxu2 }
 0x679   : > { %v13269_v53 = vld [vmem:[#allocation8 + $0x1478] sm:$0xf0] }
 0x67a   : > { %v15546_v40 = vld [vmem:[#allocation8 + $0x165c] sm:$0xf]  ;;  %v13272_v38 = vor.u32 %v15482_v48, %v13269_v53  ;;  %7422 = vmatpush.bf16.msrb.mxu1 %v13016_v60 }
 0x67b   : > { %v13525_v27 = vld [vmem:[#allocation8 + $0x1678] sm:$0xf0] }
 0x67c   : > { %v15346_v52 = vld [vmem:[#allocation8 + $0x101c] sm:$0xf]  ;;  %v13528_v34 = vor.u32 %v15546_v40, %v13525_v27  ;;  %7436 = vmatpush.bf16.msrb.mxu2 %v13272_v38  ;;  %v7187_v30 = vpop.f32.mrf.mxu0  ;;  %v7229_v14 = vpop.f32.mrf.mxu3 }
 0x67d   : > { %v12725_v4 = vld [vmem:[#allocation8 + $0x1038] sm:$0xf0]  ;;  %v7188_v18 = vadd.f32 %v7187_v30, %v7174_v35 }
 0x67e   : > { %v15410_v39 = vld [vmem:[#allocation8 + $0x121c] sm:$0xf]  ;;  %v12728_v11 = vor.u32 %v15346_v52, %v12725_v4  ;;  %7450 = vmatpush.bf16.msrb.mxu3 %v13528_v34  ;;  %v17440_v48 = vpop.f32.mrf.mxu1 }
 0x67f   : > { %v12981_v58 = vld [vmem:[#allocation8 + $0x1238] sm:$0xf0] }
 0x680   : > { %v15474_v46 = vld [vmem:[#allocation8 + $0x141c] sm:$0xf]  ;;  %v12984_v12 = vor.u32 %v15410_v39, %v12981_v58  ;;  %7409 = vmatpush.bf16.msrb.mxu0 %v12728_v11  ;;  %v7460_v39 = vmax.f32 %v17226_v55, 0.0  ;;  %v15630_v11 = vld [vmem:[#allocation11 + $0xf8] sm:$0xff] }
 0x681   : > { %v13237_v10 = vld [vmem:[#allocation8 + $0x1438] sm:$0xf0] }
 0x682   : > { %v15538_v31 = vld [vmem:[#allocation8 + $0x161c] sm:$0xf]  ;;  %v13240_v56 = vor.u32 %v15474_v46, %v13237_v10  ;;  %7423 = vmatpush.bf16.msrb.mxu1 %v12984_v12  ;;  %v15606_v10 = vld [vmem:[#allocation11 + $0x38] sm:$0xff] }
 0x683   : > { %v13493_v45 = vld [vmem:[#allocation8 + $0x1638] sm:$0xf0]  ;;  %7410 = vmatmul.bf16.vlgmr.msrb.gmra.mxu0 %v17049_v26  ;;  %v7202_v26 = vadd.f32 %v7201_v8, %v7188_v18 }
 0x684   : > { %v13496_v47 = vor.u32 %v15538_v31, %v13493_v45  ;;  %7437 = vmatpush.bf16.msrb.mxu2 %v13240_v56  ;;  %v17438_v25 = vpop.f32.mrf.mxu0  ;;  %v17444_v40 = vpop.f32.mrf.mxu3  ;;  %v15614_v31 = vld [vmem:[#allocation11 + $0x78] sm:$0xff]  ;;  %9776 = vmatpush.bf16.msra.mxu0 %v15606_v10  ;;  %v15613_v18 = vld [vmem:[#allocation11 + $0x70] sm:$0xff] }
 0x685   : > { %7424 = vmatmul.bf16.vlgmr.msrb.gmra.mxu1 %v17051_v33  ;;  %v7216_v33 = vadd.f32 %v7215_v41, %v7202_v26  ;;  %v15622_v45 = vld [vmem:[#allocation11 + $0xb8] sm:$0xff]  ;;  %v15605_v41 = vld [vmem:[#allocation11 + $0x30] sm:$0xff] }
 0x686   : > { %7451 = vmatpush.bf16.msrb.mxu3 %v13496_v47  ;;  %v7257_v54 = vpop.f32.mrf.mxu1  ;;  %9789 = vmatpush.bf16.msra.mxu1 %v15614_v31  ;;  %v15629_v26 = vld [vmem:[#allocation11 + $0xf0] sm:$0xff]  ;;  %v7134_v31 = vadd.f32 %v7133_v57, %v2264_v63 }
 0x687   : > { %7438 = vmatmul.bf16.vlgmr.msrb.gmra.mxu2 %v17053_v49  ;;  %v17442_v49 = vpop.f32.mrf.mxu2 }
 0x688   : > { %9802 = vmatpush.bf16.msra.mxu2 %v15622_v45  ;;  %9777 = vmatpush.bf16.msra.mxu0 %v15605_v41  ;;  %v15628_v45 = vld [vmem:[#allocation11 + $0xe8] sm:$0xff] }
 0x689   : > { %7452 = vmatmul.bf16.vlgmr.msrb.gmra.mxu3 %v17055_v23  ;;  %v7230_v23 = vadd.f32 %v7229_v14, %v7216_v33  ;;  %v15621_v14 = vld [vmem:[#allocation11 + $0xb0] sm:$0xff] }
 0x68a   : > { %9815 = vmatpush.bf16.msra.mxu3 %v15630_v11  ;;  %9790 = vmatpush.bf16.msra.mxu1 %v15613_v18  ;;  %v17776_v11 = vperm.slane %v17077_v1, 0  ;;  %v15603_v18 = vld [vmem:[#allocation11 + $0x20] sm:$0xff] }
 0x68c   : > { %v7243_v53 = vpop.f32.mrf.mxu0  ;;  %v7285_v4 = vpop.f32.mrf.mxu3  ;;  %9803 = vmatpush.bf16.msra.mxu2 %v15621_v14  ;;  %v6126_v41 = vadd.f32 %v17086_v21, %v17776_v11  ;;  %v15611_v14 = vld [vmem:[#allocation11 + $0x60] sm:$0xff] }
 0x68d   : > { %v7244_v27 = vadd.f32 %v7243_v53, %v7230_v23  ;;  %v2265_v23 = vperm.slane %v17419_v19, 7  ;;  %v17777_v19 = vperm.slane %v17179_v20, 2 }
 0x68e   : > { %v17451_v12 = vpop.f32.mrf.mxu1  ;;  %9816 = vmatpush.bf16.msra.mxu3 %v15629_v26  ;;  %v15619_v26 = vld [vmem:[#allocation11 + $0xa0] sm:$0xff] }
 0x68f   : > { %v7258_v60 = vadd.f32 %v7257_v54, %v7244_v27  ;;  %v7271_v38 = vpop.f32.mrf.mxu2  ;;  %v17774_v27 = vperm.slane %v17291_v2, 5  ;;  %v6462_v63 = vadd.f32 %v17190_v16, %v17777_v19  ;;  %v6140_v16 = vadd.f32 %v17088_v0, %v6126_v41  ;;  %v15602_v41 = vld [vmem:[#allocation11 + $0x18] sm:$0xff] }
 0x691   : > { %v7272_v52 = vadd.f32 %v7271_v38, %v7258_v60  ;;  %v6966_v54 = vadd.f32 %v17358_v44, %v17774_v27  ;;  %v17775_v60 = vperm.slane %v17077_v1, 1  ;;  %v17778_v1 = vperm.slane %v17179_v20, 3  ;;  %v17780_v20 = vld [vmem:[#allocation79_spill] sm:$0xff] }
 0x692   : > { %9817 = vmatpush.bf16.msra.mxu3 %v15628_v45  ;;  %v17785_v45 = vld [vmem:[#allocation68_spill] sm:$0xff] }
 0x693   : > { %v7286_v35 = vadd.f32 %v7285_v4, %v7272_v52  ;;  %v6294_v38 = vadd.f32 %v17133_v29, %v17775_v60  ;;  %v6980_v10 = vadd.f32 %v17360_v22, %v6966_v54  ;;  %v6630_v21 = vadd.f32 %v17245_v51, %v17778_v1  ;;  %v15627_v60 = vld [vmem:[#allocation11 + $0xe0] sm:$0xff]  ;;  %v17787_v1 = vld [vmem:[#allocation46_spill] sm:$0xff] }
 0x694   : > { %v17449_v46 = vpop.f32.mrf.mxu0  ;;  %v17455_v30 = vpop.f32.mrf.mxu3  ;;  %v7148_v54 = vadd.f32 %v17432_v9, %v7134_v31 }
 0x695   : > { %v7464_v34 = vmax.f32 %v7286_v35, 0.0  ;;  %v15604_v35 = vld [vmem:[#allocation11 + $0x28] sm:$0xff]  ;;  %v6308_v44 = vadd.f32 %v17135_v28, %v6294_v38  ;;  %v6994_v29 = vadd.f32 %v17366_v43, %v6980_v10  ;;  %v17779_v43 = vperm.slane %v17291_v2, 4 }
 0x696   : > { %v7313_v55 = vpop.f32.mrf.mxu1  ;;  %9778 = vmatpush.bf16.msra.mxu0 %v15604_v35  ;;  %9818 = vmatpush.bf16.msra.mxu3 %v15627_v60  ;;  %v17782_v35 = vld [vmem:[#allocation36_spill] sm:$0xff] }
 0x697   : > { %v17447_v58 = vmax.f32 %v7460_v39, %v7464_v34  ;;  %v17453_v56 = vpop.f32.mrf.mxu2  ;;  %v15612_v39 = vld [vmem:[#allocation11 + $0x68] sm:$0xff]  ;;  %v6322_v22 = vadd.f32 %v17141_v7, %v6308_v44  ;;  %v6798_v27 = vadd.f32 %v17302_v17, %v17779_v43  ;;  %v7008_v51 = vadd.f32 %v17780_v20, %v6994_v29  ;;  %v15610_v44 = vld [vmem:[#allocation11 + $0x58] sm:$0xff] }
 0x698   : > { %v15620_v34 = vld [vmem:[#allocation11 + $0xa8] sm:$0xff]  ;;  %9791 = vmatpush.bf16.msra.mxu1 %v15612_v39  ;;  %v15618_v29 = vld [vmem:[#allocation11 + $0x98] sm:$0xff] }
 0x699   : > { %9804 = vmatpush.bf16.msra.mxu2 %v15620_v34  ;;  %v6336_v17 = vadd.f32 %v17782_v35, %v6322_v22  ;;  %v17783_v39 = vld [vmem:[#allocation45_spill] sm:$0xff]  ;;  %v17784_v34 = vld [vmem:[#allocation56_spill] sm:$0xff]  ;;  %v6812_v0 = vadd.f32 %v17785_v45, %v6798_v27 }
 0x69a   : > { %9779 = vmatpush.bf16.msra.mxu0 %v15603_v18  ;;  %v6476_v9 = vadd.f32 %v17783_v39, %v6462_v63  ;;  %v6644_v10 = vadd.f32 %v17784_v34, %v6630_v21  ;;  %v17788_v18 = vld [vmem:[#allocation57_spill] sm:$0xff]  ;;  %v15625_v34 = vld [vmem:[#allocation11 + $0xd0] sm:$0xff] }
 0x69b   : > { %v17789_v63 = vld [vmem:[#allocation69_spill] sm:$0xff] }
 0x69c   : > { %v7299_v47 = vpop.f32.mrf.mxu0  ;;  %v7341_v33 = vpop.f32.mrf.mxu3  ;;  %9792 = vmatpush.bf16.msra.mxu1 %v15611_v14  ;;  %v6658_v14 = vadd.f32 %v17788_v18, %v6644_v10  ;;  %v6826_v43 = vadd.f32 %v17789_v63, %v6812_v0  ;;  %v17795_v10 = vld [vmem:[#allocation70_spill] sm:$0xff] }
 0x69d   : > { %v7300_v52 = vadd.f32 %v7299_v47, %v2265_v23  ;;  %9805 = vmatpush.bf16.msra.mxu2 %v15619_v26  ;;  %v15626_v26 = vld [vmem:[#allocation11 + $0xd8] sm:$0xff]  ;;  %v15608_v18 = vld [vmem:[#allocation11 + $0x48] sm:$0xff] }
 0x69e   : > { %v7315_v4 = vpop.f32.mrf.mxu1  ;;  %9780 = vmatpush.bf16.msra.mxu0 %v15602_v41  ;;  %9819 = vmatpush.bf16.msra.mxu3 %v15626_v26  ;;  %v6840_v45 = vadd.f32 %v17795_v10, %v6826_v43  ;;  %v15624_v63 = vld [vmem:[#allocation11 + $0xc8] sm:$0xff]  ;;  %v15638_v10 = vld [vmem:[#allocation11 + $0x138] sm:$0xff] }
 0x69f   : > { %v7327_v8 = vpop.f32.mrf.mxu2  ;;  %v7314_v57 = vadd.f32 %v7313_v55, %v7300_v52  ;;  %v7162_v55 = vadd.f32 %v17434_v32, %v7148_v54  ;;  %v17781_v52 = vld [vmem:[#allocation26_spill] sm:$0xff]  ;;  %v17786_v32 = vld [vmem:[#allocation37_spill] sm:$0xff] }
 0x6a0   : > { %v6154_v2 = vadd.f32 %v17781_v52, %v6140_v16  ;;  %v6350_v19 = vadd.f32 %v17786_v32, %v6336_v17  ;;  %9793 = vmatpush.bf16.msra.mxu1 %v15610_v44  ;;  %v17791_v52 = vld [vmem:[#allocation28_spill] sm:$0xff]  ;;  %v17793_v17 = vld [vmem:[#allocation47_spill] sm:$0xff] }
 0x6a1   : > { %v7328_v38 = vadd.f32 %v7327_v8, %v7314_v57  ;;  %v7022_v8 = vadd.f32 %v17373_v3, %v7008_v51  ;;  %v6490_v57 = vadd.f32 %v17787_v1, %v6476_v9  ;;  %v7176_v21 = vadd.f32 %v17436_v36, %v7162_v55  ;;  %v17790_v3 = vld [vmem:[#allocation27_spill] sm:$0xff]  ;;  %9806 = vmatpush.bf16.msra.mxu2 %v15618_v29  ;;  %v17792_v36 = vld [vmem:[#allocation38_spill] sm:$0xff] }
 0x6a2   : > { %v15617_v51 = vld [vmem:[#allocation11 + $0x90] sm:$0xff]  ;;  %v6364_v55 = vadd.f32 %v17792_v36, %v6350_v19  ;;  %9820 = vmatpush.bf16.msra.mxu3 %v15625_v34  ;;  %v15623_v34 = vld [vmem:[#allocation11 + $0xc0] sm:$0xff] }
 0x6a3   : > { %v7342_v22 = vadd.f32 %v7341_v33, %v7328_v38  ;;  %v7036_v27 = vadd.f32 %v17375_v5, %v7022_v8  ;;  %v7190_v60 = vadd.f32 %v17438_v25, %v7176_v21  ;;  %v15601_v33 = vld [vmem:[#allocation11 + $0x10] sm:$0xff]  ;;  %v6504_v39 = vadd.f32 %v17793_v17, %v6490_v57  ;;  %v15600_v57 = vld [vmem:[#allocation11 + $0x8] sm:$0xff] }
 0x6a4   : > { %v7301_v53 = vpop.f32.mrf.mxu0  ;;  %v17485_v7 = vpop.f32.mrf.mxu3  ;;  %v15609_v38 = vld [vmem:[#allocation11 + $0x50] sm:$0xff]  ;;  %9781 = vmatpush.bf16.msra.mxu0 %v15601_v33  ;;  %v17805_v33 = vld [vmem:[#allocation72_spill] sm:$0xff]  ;;  %v17807_v17 = vld [vmem:[#allocation61_spill] sm:$0xff] }
 0x6a5   : > { %v7302_v11 = vadd.f32 %v7301_v53, %v2265_v23  ;;  %v6168_v23 = vadd.f32 %v17790_v3, %v6154_v2  ;;  %v17794_v9 = vld [vmem:[#allocation58_spill] sm:$0xff]  ;;  %v7050_v5 = vadd.f32 %v17389_v37, %v7036_v27  ;;  %9794 = vmatpush.bf16.msra.mxu1 %v15609_v38  ;;  %v17797_v8 = vld [vmem:[#allocation59_spill] sm:$0xff]  ;;  %9807 = vmatpush.bf16.msra.mxu2 %v15617_v51  ;;  %v17803_v27 = vld [vmem:[#allocation60_spill] sm:$0xff] }
 0x6a6   : > { %v6672_v2 = vadd.f32 %v17794_v9, %v6658_v14  ;;  %v17798_v44 = vld [vmem:[#allocation39_spill] sm:$0xff]  ;;  %v7204_v1 = vadd.f32 %v17440_v48, %v7190_v60  ;;  %v15616_v37 = vld [vmem:[#allocation11 + $0x88] sm:$0xff]  ;;  %9821 = vmatpush.bf16.msra.mxu3 %v15624_v63 }
 0x6a7   : > { %v17472_v47 = vpop.f32.mrf.mxu2  ;;  %v7316_v16 = vadd.f32 %v7315_v4, %v7302_v11  ;;  %v6182_v35 = vadd.f32 %v17791_v52, %v6168_v23  ;;  %v17796_v4 = vld [vmem:[#allocation48_spill] sm:$0xff]  ;;  %v6378_v29 = vadd.f32 %v17798_v44, %v6364_v55  ;;  %v17799_v32 = vld [vmem:[#allocation71_spill] sm:$0xff]  ;;  %v17800_v14 = vld [vmem:[#allocation29_spill] sm:$0xff]  ;;  %v7064_v43 = vadd.f32 %v17391_v59, %v7050_v5 }
 0x6a8   : > { %v6518_v0 = vadd.f32 %v17796_v4, %v6504_v39  ;;  %v6686_v11 = vadd.f32 %v17797_v8, %v6672_v2  ;;  %v6854_v19 = vadd.f32 %v17799_v32, %v6840_v45  ;;  %9782 = vmatpush.bf16.msra.mxu0 %v15600_v57  ;;  %v17801_v3 = vld [vmem:[#allocation30_spill] sm:$0xff]  ;;  %v15599_v52 = vld [vmem:[#allocation11] sm:$0xff]  ;;  %v15646_v45 = vld [vmem:[#allocation11 + $0x178] sm:$0xff] }
 0x6a9   : > { %v7330_v25 = vadd.f32 %v17472_v47, %v7316_v16  ;;  %v6196_v47 = vadd.f32 %v17800_v14, %v6182_v35  ;;  %9795 = vmatpush.bf16.msra.mxu1 %v15608_v18  ;;  %9808 = vmatpush.bf16.msra.mxu2 %v15616_v37  ;;  %v17804_v16 = vld [vmem:[#allocation40_spill] sm:$0xff]  ;;  %v7078_v59 = vadd.f32 %v17411_v6, %v7064_v43  ;;  %v17806_v36 = vld [vmem:[#allocation50_spill] sm:$0xff]  ;;  %v17808_v5 = vld [vmem:[#allocation41_spill] sm:$0xff] }
 0x6aa   : > { %v6700_v60 = vadd.f32 %v17803_v27, %v6686_v11  ;;  %v6868_v38 = vadd.f32 %v17805_v33, %v6854_v19  ;;  %v15615_v35 = vld [vmem:[#allocation11 + $0x80] sm:$0xff]  ;;  %v15654_v8 = vld [vmem:[#allocation11 + $0x1b8] sm:$0xff]  ;;  %9822 = vmatpush.bf16.msra.mxu3 %v15623_v34  ;;  %v17813_v37 = vld [vmem:[#allocation62_spill] sm:$0xff] }
 0x6ab   : > { %v7344_v21 = vadd.f32 %v17485_v7, %v7330_v25  ;;  %v6210_v23 = vadd.f32 %v17801_v3, %v6196_v47  ;;  %v15607_v7 = vld [vmem:[#allocation11 + $0x40] sm:$0xff]  ;;  %v15662_v11 = vld [vmem:[#allocation11 + $0x1f8] sm:$0xff]  ;;  %v15645_v63 = vld [vmem:[#allocation11 + $0x170] sm:$0xff] }
 0x6ac   : > { %v6714_v39 = vadd.f32 %v17807_v17, %v6700_v60  ;;  %v17809_v4 = vld [vmem:[#allocation73_spill] sm:$0xff]  ;;  %9783 = vmatpush.bf16.msra.mxu0 %v15599_v52  ;;  %v15653_v43 = vld [vmem:[#allocation11 + $0x1b0] sm:$0xff]  ;;  %v17817_v27 = vld [vmem:[#allocation64_spill] sm:$0xff] }
 0x6ad   : > { %9796 = vmatpush.bf16.msra.mxu1 %v15607_v7  ;;  %9809 = vmatpush.bf16.msra.mxu2 %v15615_v35  ;;  %v17820_v7 = vld [vmem:[#allocation33_spill] sm:$0xff] }
 0x6ae   : > { %v6728_v14 = vadd.f32 %v17813_v37, %v6714_v39  ;;  %9867 = vmatpush.bf16.msrb.mxu3 %v15662_v11  ;;  %v15652_v17 = vld [vmem:[#allocation11 + $0x1a8] sm:$0xff]  ;;  %v15659_v37 = vld [vmem:[#allocation11 + $0x1e0] sm:$0xff] }
 0x6b0   : > { %9828 = vmatpush.bf16.msrb.mxu0 %v15638_v10  ;;  %v6742_v60 = vadd.f32 %v17817_v27, %v6728_v14  ;;  %v15660_v10 = vld [vmem:[#allocation11 + $0x1e8] sm:$0xff]  ;;  %v17832_v27 = vld [vmem:[#allocation67_spill] sm:$0xff] }
 0x6b1   : > { %9841 = vmatpush.bf16.msrb.mxu1 %v15646_v45  ;;  %9854 = vmatpush.bf16.msrb.mxu2 %v15654_v8  ;;  %v17824_v8 = vld [vmem:[#allocation44_spill] sm:$0xff]  ;;  %v17829_v14 = vld [vmem:[#allocation77_spill] sm:$0xff] }
 0x6b5   : > { %9842 = vmatpush.bf16.msrb.mxu1 %v15645_v63  ;;  %9855 = vmatpush.bf16.msrb.mxu2 %v15653_v43 }
 0x6b9   : > { %9856 = vmatpush.bf16.msrb.mxu2 %v15652_v17 }
 0x6c0   : > { %v7355_v28 = vpop.f32.mrf.mxu0 }
 0x6c1   : > { %v7356_v53 = vadd.f32 %v7355_v28, %v7342_v22 }
 0x6c2   : > { %v7369_v31 = vpop.f32.mrf.mxu1 }
 0x6c3   : > { %v7370_v41 = vadd.f32 %v7369_v31, %v7356_v53  ;;  %v7218_v31 = vadd.f32 %v17442_v49, %v7204_v1  ;;  %v17802_v53 = vld [vmem:[#allocation49_spill] sm:$0xff]  ;;  %v17811_v1 = vld [vmem:[#allocation32_spill] sm:$0xff] }
 0x6c4   : > { %v6532_v48 = vadd.f32 %v17802_v53, %v6518_v0  ;;  %v6882_v0 = vadd.f32 %v17809_v4, %v6868_v38  ;;  %v17816_v53 = vld [vmem:[#allocation52_spill] sm:$0xff]  ;;  %v17819_v38 = vld [vmem:[#allocation75_spill] sm:$0xff]  ;;  %v17823_v4 = vld [vmem:[#allocation65_spill] sm:$0xff] }
 0x6c5   : > { %v7232_v6 = vadd.f32 %v17444_v40, %v7218_v31  ;;  %v17812_v40 = vld [vmem:[#allocation51_spill] sm:$0xff]  ;;  %v17814_v31 = vld [vmem:[#allocation42_spill] sm:$0xff] }
 0x6c6   : > { %v6546_v55 = vadd.f32 %v17806_v36, %v6532_v48 }
 0x6c7   : > { %v7246_v32 = vadd.f32 %v17449_v46, %v7232_v6 }
 0x6c8   : > { %v7357_v28 = vpop.f32.mrf.mxu0  ;;  %v6560_v18 = vadd.f32 %v17812_v40, %v6546_v55  ;;  %v15644_v55 = vld [vmem:[#allocation11 + $0x168] sm:$0xff] }
 0x6c9   : > { %v7358_v51 = vadd.f32 %v7357_v28, %v7344_v21  ;;  %9843 = vmatpush.bf16.msrb.mxu1 %v15644_v55 }
 0x6ca   : > { %v7383_v54 = vpop.f32.mrf.mxu2  ;;  %v7371_v26 = vpop.f32.mrf.mxu1  ;;  %v6574_v48 = vadd.f32 %v17816_v53, %v6560_v18  ;;  %v15651_v18 = vld [vmem:[#allocation11 + $0x1a0] sm:$0xff]  ;;  %v17831_v53 = vld [vmem:[#allocation55_spill] sm:$0xff] }
 0x6cb   : > { %v7384_v22 = vadd.f32 %v7383_v54, %v7370_v41  ;;  %v6392_v54 = vadd.f32 %v17804_v16, %v6378_v29  ;;  %v17810_v41 = vld [vmem:[#allocation31_spill] sm:$0xff]  ;;  %v7372_v19 = vadd.f32 %v7371_v26, %v7358_v51  ;;  %v7260_v51 = vadd.f32 %v17451_v12, %v7246_v32  ;;  %v17821_v12 = vld [vmem:[#allocation34_spill] sm:$0xff]  ;;  %9857 = vmatpush.bf16.msrb.mxu2 %v15651_v18 }
 0x6cc   : > { %v6224_v44 = vadd.f32 %v17810_v41, %v6210_v23  ;;  %v15661_v23 = vld [vmem:[#allocation11 + $0x1f0] sm:$0xff]  ;;  %v17825_v41 = vld [vmem:[#allocation76_spill] sm:$0xff]  ;;  %v15648_v18 = vld [vmem:[#allocation11 + $0x188] sm:$0xff] }
 0x6cd   : > { %v6406_v25 = vadd.f32 %v17808_v5, %v6392_v54  ;;  %v17818_v54 = vld [vmem:[#allocation43_spill] sm:$0xff]  ;;  %9868 = vmatpush.bf16.msrb.mxu3 %v15661_v23  ;;  %v17822_v5 = vld [vmem:[#allocation53_spill] sm:$0xff] }
 0x6ce   : > { %v7397_v20 = vpop.f32.mrf.mxu3  ;;  %v6238_v57 = vadd.f32 %v17811_v1, %v6224_v44  ;;  %v17827_v32 = vld [vmem:[#allocation63_spill] sm:$0xff]  ;;  %v17828_v1 = vld [vmem:[#allocation66_spill] sm:$0xff] }
 0x6cf   : > { %v7398_v9 = vadd.f32 %v7397_v20, %v7384_v22  ;;  %v7092_v20 = vadd.f32 %v17413_v24, %v7078_v59  ;;  %v15637_v22 = vld [vmem:[#allocation11 + $0x130] sm:$0xff]  ;;  %v6420_v21 = vadd.f32 %v17814_v31, %v6406_v25  ;;  %v6588_v25 = vadd.f32 %v17822_v5, %v6574_v48  ;;  %v15634_v23 = vld [vmem:[#allocation11 + $0x118] sm:$0xff] }
 0x6d0   : > { %v17815_v24 = vld [vmem:[#allocation74_spill] sm:$0xff]  ;;  %9829 = vmatpush.bf16.msrb.mxu0 %v15637_v22  ;;  %v6252_v35 = vadd.f32 %v17820_v7, %v6238_v57 }
 0x6d1   : > { %v6896_v3 = vadd.f32 %v17815_v24, %v6882_v0  ;;  %v7106_v46 = vadd.f32 %v17422_v50, %v7092_v20  ;;  %v6434_v33 = vadd.f32 %v17818_v54, %v6420_v21  ;;  %v6756_v0 = vadd.f32 %v17823_v4, %v6742_v60  ;;  %v15643_v20 = vld [vmem:[#allocation11 + $0x160] sm:$0xff]  ;;  %9869 = vmatpush.bf16.msrb.mxu3 %v15660_v10  ;;  %v17830_v21 = vld [vmem:[#allocation35_spill] sm:$0xff] }
 0x6d2   : > { %v7385_v49 = vpop.f32.mrf.mxu2  ;;  %v6266_v45 = vadd.f32 %v17821_v12, %v6252_v35  ;;  %9844 = vmatpush.bf16.msrb.mxu1 %v15643_v20  ;;  %v15658_v35 = vld [vmem:[#allocation11 + $0x1d8] sm:$0xff]  ;;  %v15649_v4 = vld [vmem:[#allocation11 + $0x190] sm:$0xff] }
 0x6d3   : > { %v7386_v26 = vadd.f32 %v7385_v49, %v7372_v19  ;;  %v6910_v59 = vadd.f32 %v17819_v38, %v6896_v3  ;;  %v15636_v49 = vld [vmem:[#allocation11 + $0x128] sm:$0xff]  ;;  %v7120_v39 = vadd.f32 %v17424_v13, %v7106_v46  ;;  %v6448_v11 = vadd.f32 %v17824_v8, %v6434_v33  ;;  %v15635_v13 = vld [vmem:[#allocation11 + $0x120] sm:$0xff]  ;;  %v15650_v33 = vld [vmem:[#allocation11 + $0x198] sm:$0xff] }
 0x6d4   : > { %9830 = vmatpush.bf16.msrb.mxu0 %v15636_v49  ;;  %v7461_v19 = vmax.f32 %v17827_v32, 0.0  ;;  %v6770_v57 = vadd.f32 %v17828_v1, %v6756_v0  ;;  %v17559_v24 = vadd.f32 %v17830_v21, %v6266_v45  ;;  %v17833_v38 = vld [vmem:[#allocation78_spill] sm:$0xff]  ;;  %v17834_v45 = vld [vmem:[#allocation25_spill] sm:$0xff]  ;;  %9858 = vmatpush.bf16.msrb.mxu2 %v15650_v33 }
 0x6d5   : > { %v6924_v44 = vadd.f32 %v17825_v41, %v6910_v59  ;;  %v7471_v22 = vmax.f32 %v7120_v39, 0.0  ;;  %v7467_v3 = vmax.f32 %v6448_v11, 0.0  ;;  %9870 = vmatpush.bf16.msrb.mxu3 %v15659_v37  ;;  %v15657_v8 = vld [vmem:[#allocation11 + $0x1d0] sm:$0xff] }
 0x6d6   : > { %v7399_v28 = vpop.f32.mrf.mxu3  ;;  %v6784_v60 = vadd.f32 %v17832_v27, %v6770_v57 }
 0x6d8   : > { %9831 = vmatpush.bf16.msrb.mxu0 %v15635_v13  ;;  %9859 = vmatpush.bf16.msrb.mxu2 %v15649_v4 }
 0x6d9   : > { %9871 = vmatpush.bf16.msrb.mxu3 %v15658_v35 }
 0x6dc   : > { %9832 = vmatpush.bf16.msrb.mxu0 %v15634_v23  ;;  %9860 = vmatpush.bf16.msrb.mxu2 %v15648_v18  ;;  %v15686_v18 = vld [vmem:[#allocation11 + $0x2b8] sm:$0xff] }
 0x6dd   : > { %9872 = vmatpush.bf16.msrb.mxu3 %v15657_v8 }
 0x700   : > { %v7411_v2 = vpop.f32.mrf.mxu0 }
 0x701   : > { %v7412_v29 = vadd.f32 %v7411_v2, %v7398_v9  ;;  %v7274_v9 = vadd.f32 %v17453_v56, %v7260_v51  ;;  %v7400_v2 = vadd.f32 %v7399_v28, %v7386_v26  ;;  %v17826_v56 = vld [vmem:[#allocation54_spill] sm:$0xff]  ;;  %v7479_v51 = vmax.f32 %v7467_v3, %v7471_v22  ;;  %v15631_v3 = vld [vmem:[#allocation11 + $0x100] sm:$0xff] }
 0x702   : > { %v7425_v47 = vpop.f32.mrf.mxu1  ;;  %v6602_v28 = vadd.f32 %v17826_v56, %v6588_v25 }
 0x703   : > { %v7426_v16 = vadd.f32 %v7425_v47, %v7412_v29  ;;  %v6938_v47 = vadd.f32 %v17829_v14, %v6924_v44  ;;  %v7288_v63 = vadd.f32 %v17455_v30, %v7274_v9  ;;  %v15642_v30 = vld [vmem:[#allocation11 + $0x158] sm:$0xff]  ;;  %v7493_v13 = vrot.slane %v7479_v51, 6 }
 0x704   : > { %v6616_v48 = vadd.f32 %v17831_v53, %v6602_v28  ;;  %9845 = vmatpush.bf16.msrb.mxu1 %v15642_v30  ;;  %v15632_v28 = vld [vmem:[#allocation11 + $0x108] sm:$0xff]  ;;  %v15639_v53 = vld [vmem:[#allocation11 + $0x140] sm:$0xff] }
 0x705   : > { %v6952_v59 = vadd.f32 %v17833_v38, %v6938_v47 }
 0x706   : > { %v7468_v0 = vmax.f32 %v6616_v48, 0.0  ;;  %v15647_v48 = vld [vmem:[#allocation11 + $0x180] sm:$0xff] }
 0x707   : > { %9861 = vmatpush.bf16.msrb.mxu2 %v15647_v48 }
 0x708   : > { %v7413_v50 = vpop.f32.mrf.mxu0 }
 0x709   : > { %v7414_v29 = vadd.f32 %v7413_v50, %v7400_v2  ;;  %v15633_v2 = vld [vmem:[#allocation11 + $0x110] sm:$0xff] }
 0x70a   : > { %v7439_v52 = vpop.f32.mrf.mxu2  ;;  %v7427_v31 = vpop.f32.mrf.mxu1  ;;  %9833 = vmatpush.bf16.msrb.mxu0 %v15633_v2 }
 0x70b   : > { %v7440_v36 = vadd.f32 %v7439_v52, %v7426_v16  ;;  %v7428_v46 = vadd.f32 %v7427_v31, %v7414_v29  ;;  %v7491_v16 = vrot.slane %v17447_v58, 4  ;;  %v7472_v52 = vmax.f32 %v7288_v63, 0.0 }
 0x70c   : > { %v7453_v34 = vpop.f32.mrf.mxu3  ;;  %v7469_v29 = vmax.f32 %v6784_v60, 0.0 }
 0x70d   : > { %v7454_v6 = vadd.f32 %v7453_v34, %v7440_v36  ;;  %v7480_v20 = vmax.f32 %v7468_v0, %v7472_v52 }
 0x70e   : > { %9834 = vmatpush.bf16.msrb.mxu0 %v15632_v28 }
 0x70f   : > { %v7465_v40 = vmax.f32 %v7454_v6, 0.0  ;;  %v7470_v6 = vmax.f32 %v6952_v59, 0.0  ;;  %v7494_v31 = vrot.slane %v7480_v20, 4 }
 0x711   : > { %v7477_v43 = vmax.f32 %v7461_v19, %v7465_v40  ;;  %v15640_v40 = vld [vmem:[#allocation11 + $0x148] sm:$0xff] }
 0x712   : > { %v7441_v26 = vpop.f32.mrf.mxu2  ;;  %9835 = vmatpush.bf16.msrb.mxu0 %v15631_v3  ;;  %v15667_v3 = vld [vmem:[#allocation11 + $0x220] sm:$0xff] }
 0x713   : > { %v7492_v54 = vrot.slane %v7477_v43, 2  ;;  %v7442_v7 = vadd.f32 %v7441_v26, %v7428_v46 }
 0x714   : > { %v7455_v25 = vpop.f32.mrf.mxu3 }
 0x715   : > { %v7497_v36 = vsel %vm1055_vm4, %v7491_v16, %v7492_v54  ;;  %v7500_v50 = vsel %vm1061_vm6, %v7492_v54, %v7491_v16  ;;  %v7504_v49 = vsel %vm1053_vm3, %v7491_v16, %v7492_v54  ;;  %v7508_v55 = vsel %vm1059_vm5, %v7491_v16, %v7492_v54 }
 0x716   : > { %v7498_v58 = vsel %vm1057_vm7, %v17397_v42, %v7497_v36  ;;  %v7501_v17 = vsel %vm1063_vm8, %v17401_v15, %v7500_v50  ;;  %v7505_v39 = vsel %vm1057_vm7, %v7504_v49, %v17405_v62  ;;  %v7509_v9 = vsel %vm1063_vm8, %v7508_v55, %v17409_v61  ;;  %v15641_v42 = vld [vmem:[#allocation11 + $0x150] sm:$0xff]  ;;  %v15655_v36 = vld [vmem:[#allocation11 + $0x1c0] sm:$0xff] }
 0x717   : > { %v7502_v34 = vrot.slane %v7501_v17, 2  ;;  %v7506_v10 = vrot.slane %v7505_v39, 4  ;;  %v7510_v12 = vrot.slane %v7509_v9, 6  ;;  %v7537_v5 = vperm.slane %v7498_v58, %v17834_v45  ;;  %9846 = vmatpush.bf16.msrb.mxu1 %v15641_v42 }
 0x718   : > { %v7466_v15 = vmax.f32 %v17559_v24, 0.0  ;;  %v7456_v62 = vadd.f32 %v7455_v25, %v7442_v7  ;;  %v15656_v24 = vld [vmem:[#allocation11 + $0x1c8] sm:$0xff] }
 0x719   : > { %v7541_v61 = vperm.slane %v7502_v34, %v17834_v45  ;;  %v7545_v11 = vperm.slane %v7506_v10, %v17834_v45  ;;  %v7549_v41 = vperm.slane %v7510_v12, %v17834_v45  ;;  %v7574_v44 = vrot.slane %v7537_v5, 4  ;;  %9873 = vmatpush.bf16.msrb.mxu3 %v15656_v24  ;;  %v15692_v24 = vld [vmem:[#allocation11 + $0x2e8] sm:$0xff] }
 0x71a   : > { %v7473_v56 = vmax.f32 %v7456_v62, 0.0  ;;  %v7478_v37 = vmax.f32 %v7466_v15, %v7470_v6 }
 0x71b   : > { %v7575_v32 = vrot.slane %v7541_v61, 4  ;;  %v7576_v19 = vrot.slane %v7545_v11, 4  ;;  %v7577_v1 = vrot.slane %v7549_v41, 4  ;;  %v7590_v57 = vmax.f32 %v7537_v5, %v7574_v44  ;;  %9847 = vmatpush.bf16.msrb.mxu1 %v15640_v40  ;;  %v15678_v40 = vld [vmem:[#allocation11 + $0x278] sm:$0xff] }
 0x71c   : > { %v7481_v14 = vmax.f32 %v7469_v29, %v7473_v56  ;;  %v7511_v43 = vsel %vm1053_vm3, %v7478_v37, %v7493_v13  ;;  %v7514_v46 = vsel %vm1059_vm5, %v7478_v37, %v7493_v13  ;;  %v7518_v26 = vsel %vm1055_vm4, %v7478_v37, %v7493_v13 }
 0x71d   : > { %v7591_v47 = vmax.f32 %v7541_v61, %v7575_v32  ;;  %v7592_v22 = vmax.f32 %v7545_v11, %v7576_v19  ;;  %v7593_v63 = vmax.f32 %v7549_v41, %v7577_v1  ;;  %7606 = vst [vmem:[#allocation1] ss:$9 sm:$0xff] %v7590_v57  ;;  %v7522_v23 = vsel %vm1061_vm6, %v7493_v13, %v7478_v37  ;;  %v15670_v57 = vld [vmem:[#allocation11 + $0x238] sm:$0xff] }
 0x71e   : > { %v7495_v21 = vrot.slane %v7481_v14, 2  ;;  %9874 = vmatpush.bf16.msrb.mxu3 %v15655_v36  ;;  %v15694_v37 = vld [vmem:[#allocation11 + $0x2f8] sm:$0xff]  ;;  %v15669_v14 = vld [vmem:[#allocation11 + $0x230] sm:$0xff]  ;;  %v15680_v36 = vld [vmem:[#allocation11 + $0x288] sm:$0xff] }
 0x71f   : > { %7608 = vst [vmem:[#allocation1 + $0x1] ss:$9 sm:$0xff] %v7591_v47  ;;  %9848 = vmatpush.bf16.msrb.mxu1 %v15639_v53  ;;  %v15677_v47 = vld [vmem:[#allocation11 + $0x270] sm:$0xff] }
 0x720   : > { %7610 = vst [vmem:[#allocation1 + $0x2] ss:$9 sm:$0xff] %v7592_v22  ;;  %v7512_v27 = vsel %vm1055_vm4, %v7494_v31, %v7495_v21  ;;  %v7515_v60 = vsel %vm1061_vm6, %v7495_v21, %v7494_v31  ;;  %v7519_v16 = vsel %vm1053_vm3, %v7494_v31, %v7495_v21  ;;  %v7523_v54 = vsel %vm1059_vm5, %v7494_v31, %v7495_v21  ;;  %v15685_v22 = vld [vmem:[#allocation11 + $0x2b0] sm:$0xff]  ;;  %v15676_v31 = vld [vmem:[#allocation11 + $0x268] sm:$0xff] }
 0x721   : > { %7612 = vst [vmem:[#allocation1 + $0x3] ss:$9 sm:$0xff] %v7593_v63  ;;  %v7513_v30 = vsel %vm1057_vm7, %v7511_v43, %v7512_v27  ;;  %v7516_v33 = vsel %vm1063_vm8, %v7514_v46, %v7515_v60  ;;  %v7520_v38 = vsel %vm1057_vm7, %v7519_v16, %v7518_v26  ;;  %v7524_v59 = vsel %vm1063_vm8, %v7523_v54, %v7522_v23  ;;  %v15693_v63 = vld [vmem:[#allocation11 + $0x2f0] sm:$0xff]  ;;  %v15668_v43 = vld [vmem:[#allocation11 + $0x228] sm:$0xff]  ;;  %v15675_v46 = vld [vmem:[#allocation11 + $0x260] sm:$0xff] }
 0x722   : > { %v7517_v51 = vrot.slane %v7516_v33, 2  ;;  %v7521_v52 = vrot.slane %v7520_v38, 4  ;;  %v7525_v7 = vrot.slane %v7524_v59, 6  ;;  %v7553_v35 = vperm.slane %v7513_v30, %v17834_v45  ;;  %v15684_v21 = vld [vmem:[#allocation11 + $0x2a8] sm:$0xff]  ;;  %v15683_v26 = vld [vmem:[#allocation11 + $0x2a0] sm:$0xff]  ;;  %v15666_v27 = vld [vmem:[#allocation11 + $0x218] sm:$0xff] }
 0x723   : > { %v15691_v23 = vld [vmem:[#allocation11 + $0x2e0] sm:$0xff]  ;;  %v15674_v60 = vld [vmem:[#allocation11 + $0x258] sm:$0xff]  ;;  %v15665_v38 = vld [vmem:[#allocation11 + $0x210] sm:$0xff] }
 0x724   : > { %v7557_v50 = vperm.slane %v7517_v51, %v17834_v45  ;;  %v7561_v49 = vperm.slane %v7521_v52, %v17834_v45  ;;  %v7565_v55 = vperm.slane %v7525_v7, %v17834_v45  ;;  %v7578_v58 = vrot.slane %v7553_v35, 4  ;;  %v15682_v30 = vld [vmem:[#allocation11 + $0x298] sm:$0xff]  ;;  %v15673_v59 = vld [vmem:[#allocation11 + $0x250] sm:$0xff]  ;;  %v15664_v7 = vld [vmem:[#allocation11 + $0x208] sm:$0xff] }
 0x725   : > { %v15690_v33 = vld [vmem:[#allocation11 + $0x2d8] sm:$0xff]  ;;  %v15681_v51 = vld [vmem:[#allocation11 + $0x290] sm:$0xff] }
 0x726   : > { %v7579_v17 = vrot.slane %v7557_v50, 4  ;;  %v7580_v39 = vrot.slane %v7561_v49, 4  ;;  %v7581_v9 = vrot.slane %v7565_v55, 4  ;;  %v7594_v2 = vmax.f32 %v7553_v35, %v7578_v58  ;;  %v15689_v52 = vld [vmem:[#allocation11 + $0x2d0] sm:$0xff]  ;;  %v15672_v35 = vld [vmem:[#allocation11 + $0x248] sm:$0xff]  ;;  %v15671_v58 = vld [vmem:[#allocation11 + $0x240] sm:$0xff] }
 0x728   : > { %v7595_v34 = vmax.f32 %v7557_v50, %v7579_v17  ;;  %v7596_v10 = vmax.f32 %v7561_v49, %v7580_v39  ;;  %v7597_v12 = vmax.f32 %v7565_v55, %v7581_v9  ;;  %7614 = vst [vmem:[#allocation1 + $0x4] ss:$9 sm:$0xff] %v7594_v2  ;;  %v15688_v50 = vld [vmem:[#allocation11 + $0x2c8] sm:$0xff]  ;;  %v15663_v55 = vld [vmem:[#allocation11 + $0x200] sm:$0xff]  ;;  %v15702_v9 = vld [vmem:[#allocation11 + $0x338] sm:$0xff] }
 0x729   : > { %v15679_v17 = vld [vmem:[#allocation11 + $0x280] sm:$0xff]  ;;  %v15710_v2 = vld [vmem:[#allocation11 + $0x378] sm:$0xff] }
 0x72a   : > { %7616 = vst [vmem:[#allocation1 + $0x5] ss:$9 sm:$0xff] %v7595_v34  ;;  %v15687_v39 = vld [vmem:[#allocation11 + $0x2c0] sm:$0xff] }
 0x72b   : > { %7618 = vst [vmem:[#allocation1 + $0x6] ss:$9 sm:$0xff] %v7596_v10  ;;  %v15718_v10 = vld [vmem:[#allocation11 + $0x3b8] sm:$0xff] }
 0x72c   : > { %7620 = vst [vmem:[#allocation1 + $0x7] ss:$9 sm:$0xff] %v7597_v12  ;;  %v15726_v12 = vld [vmem:[#allocation11 + $0x3f8] sm:$0xff] }
 0x733   : > { %v7621_v5 = vld [vmem:[#allocation1] sm:$0xff]  ;;  %v7622_v25 = vld [vmem:[#allocation1 + $0x9] sm:$0xff]  ;;  %v7623_v42 = vld [vmem:[#allocation1 + $0x12] sm:$0xff] }
 0x734   : > { %v7624_v4 = vld [vmem:[#allocation1 + $0x1b] sm:$0xff]  ;;  %v7629_v15 = vpack.c.bf16 %v7622_v25, %v7621_v5 }
 0x735   : > { %v7630_v0 = vpack.c.bf16 %v7624_v4, %v7623_v42  ;;  %v15701_v42 = vld [vmem:[#allocation11 + $0x330] sm:$0xff] }
 0x736   : > { %v7633_v45 = vrot.slane %v7629_v15, 2  ;;  %v15709_v4 = vld [vmem:[#allocation11 + $0x370] sm:$0xff] }
 0x737   : > { %v7634_v6 = vrot.slane %v7630_v0, 4  ;;  %v7635_v62 = vrot.slane %v7630_v0, 6 }
 0x738   : > { %v7638_v8 = vsel %vm1053_vm3, %v7629_v15, %v7633_v45  ;;  %v7644_v61 = vsel %vm1059_vm5, %v7629_v15, %v7633_v45  ;;  %v15717_v45 = vld [vmem:[#allocation11 + $0x3b0] sm:$0xff] }
 0x739   : > { %v7641_v11 = vsel %vm1055_vm4, %v7634_v6, %v7635_v62  ;;  %v7645_v41 = vsel %vm1061_vm6, %v7635_v62, %v7634_v6  ;;  %v15725_v6 = vld [vmem:[#allocation11 + $0x3f0] sm:$0xff]  ;;  %v15700_v62 = vld [vmem:[#allocation11 + $0x328] sm:$0xff] }
 0x73a   : > { %v7642_v44 = vsel %vm1057_vm7, %v7638_v8, %v7641_v11  ;;  %v17604_v29 = vsel %vm1063_vm8, %v7644_v61, %v7645_v41  ;;  %v15708_v8 = vld [vmem:[#allocation11 + $0x368] sm:$0xff]  ;;  %v15699_v41 = vld [vmem:[#allocation11 + $0x320] sm:$0xff] }
 0x73b   : > { %v7650_v13 = vunpack.i.h.s16 %v7642_v44  ;;  %v15716_v61 = vld [vmem:[#allocation11 + $0x3a8] sm:$0xff] }
 0x73c   : > { %v15724_v11 = vld [vmem:[#allocation11 + $0x3e8] sm:$0xff] }
 0x73d   : > { %v17606_v20 = vpack.c.b16 %v7650_v13, %v7642_v44  ;;  %v15707_v44 = vld [vmem:[#allocation11 + $0x360] sm:$0xff] }
 0x73e   : > { %v15715_v13 = vld [vmem:[#allocation11 + $0x3a0] sm:$0xff] }
 0x73f   : > { %v13723_v56 = vpack.i.b16 %v17606_v20, %v17606_v20  ;;  %v7653_v49 = vunpack.i.h.s16 %v17606_v20  ;;  %v15723_v20 = vld [vmem:[#allocation11 + $0x3e0] sm:$0xff] }
 0x741   : > { %v8176_v28 = vperm.slane %v13723_v56, 0  ;;  %v8177_v32 = vperm.slane %v13723_v56, 1  ;;  %v8178_v19 = vperm.slane %v13723_v56, 2  ;;  %v8179_v1 = vperm.slane %v13723_v56, 3 }
 0x742   : > { %v8180_v53 = vperm.slane %v13723_v56, 4  ;;  %v8181_v48 = vperm.slane %v13723_v56, 5  ;;  %v8182_v16 = vperm.slane %v13723_v56, 6  ;;  %v8183_v54 = vperm.slane %v13723_v56, 7  ;;  %v15698_v56 = vld [vmem:[#allocation11 + $0x318] sm:$0xff] }
 0x743   : > { %9784 = vmatmul.bf16.vlgmr.msra.gmra.mxu0 %v8176_v28  ;;  %9797 = vmatmul.bf16.vlgmr.msra.gmra.mxu1 %v8177_v32  ;;  %v17611_v34 = vpack.i.b16 %v7653_v49, %v7653_v49  ;;  %v15706_v28 = vld [vmem:[#allocation11 + $0x358] sm:$0xff] }
 0x744   : > { %9810 = vmatmul.bf16.vlgmr.msra.gmra.mxu2 %v8178_v19  ;;  %9823 = vmatmul.bf16.vlgmr.msra.gmra.mxu3 %v8179_v1  ;;  %v15714_v32 = vld [vmem:[#allocation11 + $0x398] sm:$0xff]  ;;  %v15697_v1 = vld [vmem:[#allocation11 + $0x310] sm:$0xff] }
 0x745   : > { %9880 = vmatpush.bf16.msra.mxu0 %v15670_v57  ;;  %9893 = vmatpush.bf16.msra.mxu1 %v15678_v40  ;;  %v8184_v5 = vperm.slane %v17611_v34, 0  ;;  %v8185_v25 = vperm.slane %v17611_v34, 1  ;;  %v8186_v15 = vperm.slane %v17611_v34, 2  ;;  %v8187_v0 = vperm.slane %v17611_v34, 3  ;;  %v15722_v19 = vld [vmem:[#allocation11 + $0x3d8] sm:$0xff]  ;;  %v15705_v57 = vld [vmem:[#allocation11 + $0x350] sm:$0xff] }
 0x746   : > { %9906 = vmatpush.bf16.msra.mxu2 %v15686_v18  ;;  %9919 = vmatpush.bf16.msra.mxu3 %v15694_v37  ;;  %v15713_v40 = vld [vmem:[#allocation11 + $0x390] sm:$0xff]  ;;  %v15696_v37 = vld [vmem:[#allocation11 + $0x308] sm:$0xff]  ;;  %v15738_v49 = vld [vmem:[#allocation11 + $0x458] sm:$0xff] }
 0x747   : > { %v15721_v18 = vld [vmem:[#allocation11 + $0x3d0] sm:$0xff] }
 0x749   : > { %9881 = vmatpush.bf16.msra.mxu0 %v15669_v14  ;;  %9894 = vmatpush.bf16.msra.mxu1 %v15677_v47  ;;  %v15704_v14 = vld [vmem:[#allocation11 + $0x348] sm:$0xff] }
 0x74a   : > { %9907 = vmatpush.bf16.msra.mxu2 %v15685_v22  ;;  %9920 = vmatpush.bf16.msra.mxu3 %v15693_v63  ;;  %v15712_v47 = vld [vmem:[#allocation11 + $0x388] sm:$0xff]  ;;  %v15695_v63 = vld [vmem:[#allocation11 + $0x300] sm:$0xff] }
 0x74b   : > { %v15720_v22 = vld [vmem:[#allocation11 + $0x3c8] sm:$0xff] }
 0x74d   : > { %9882 = vmatpush.bf16.msra.mxu0 %v15668_v43  ;;  %9895 = vmatpush.bf16.msra.mxu1 %v15676_v31  ;;  %v15703_v43 = vld [vmem:[#allocation11 + $0x340] sm:$0xff] }
 0x74e   : > { %9908 = vmatpush.bf16.msra.mxu2 %v15684_v21  ;;  %9921 = vmatpush.bf16.msra.mxu3 %v15692_v24  ;;  %v15711_v31 = vld [vmem:[#allocation11 + $0x380] sm:$0xff]  ;;  %v15734_v24 = vld [vmem:[#allocation11 + $0x438] sm:$0xff] }
 0x74f   : > { %v15719_v21 = vld [vmem:[#allocation11 + $0x3c0] sm:$0xff] }
 0x751   : > { %9883 = vmatpush.bf16.msra.mxu0 %v15667_v3  ;;  %9896 = vmatpush.bf16.msra.mxu1 %v15675_v46  ;;  %v15742_v3 = vld [vmem:[#allocation11 + $0x478] sm:$0xff] }
 0x752   : > { %9909 = vmatpush.bf16.msra.mxu2 %v15683_v26  ;;  %9922 = vmatpush.bf16.msra.mxu3 %v15691_v23  ;;  %v15750_v46 = vld [vmem:[#allocation11 + $0x4b8] sm:$0xff]  ;;  %v8188_v23 = vperm.slane %v17611_v34, 4 }
 0x753   : > { %9836 = vmatmul.bf16.vlgmr.msrb.gmra.mxu0 %v8180_v53  ;;  %9849 = vmatmul.bf16.vlgmr.msrb.gmra.mxu1 %v8181_v48  ;;  %v15758_v26 = vld [vmem:[#allocation11 + $0x4f8] sm:$0xff]  ;;  %v8189_v53 = vperm.slane %v17611_v34, 5  ;;  %v15733_v48 = vld [vmem:[#allocation11 + $0x430] sm:$0xff] }
 0x754   : > { %9862 = vmatmul.bf16.vlgmr.msrb.gmra.mxu2 %v8182_v16  ;;  %9875 = vmatmul.bf16.vlgmr.msrb.gmra.mxu3 %v8183_v54  ;;  %v8191_v16 = vperm.slane %v17611_v34, 7  ;;  %v15749_v54 = vld [vmem:[#allocation11 + $0x4b0] sm:$0xff] }
 0x755   : > { %9884 = vmatpush.bf16.msra.mxu0 %v15666_v27  ;;  %9897 = vmatpush.bf16.msra.mxu1 %v15674_v60  ;;  %v15741_v27 = vld [vmem:[#allocation11 + $0x470] sm:$0xff]  ;;  %v8190_v60 = vperm.slane %v17611_v34, 6 }
 0x756   : > { %9910 = vmatpush.bf16.msra.mxu2 %v15682_v30  ;;  %9923 = vmatpush.bf16.msra.mxu3 %v15690_v33  ;;  %v15757_v30 = vld [vmem:[#allocation11 + $0x4f0] sm:$0xff]  ;;  %v15732_v33 = vld [vmem:[#allocation11 + $0x428] sm:$0xff] }
 0x757   : > { %v15753_v34 = vld [vmem:[#allocation11 + $0x4d0] sm:$0xff] }
 0x759   : > { %9885 = vmatpush.bf16.msra.mxu0 %v15665_v38  ;;  %9898 = vmatpush.bf16.msra.mxu1 %v15673_v59  ;;  %v15740_v38 = vld [vmem:[#allocation11 + $0x468] sm:$0xff] }
 0x75a   : > { %9911 = vmatpush.bf16.msra.mxu2 %v15681_v51  ;;  %9924 = vmatpush.bf16.msra.mxu3 %v15689_v52  ;;  %v15748_v59 = vld [vmem:[#allocation11 + $0x4a8] sm:$0xff]  ;;  %v15731_v52 = vld [vmem:[#allocation11 + $0x420] sm:$0xff] }
 0x75b   : > { %v15756_v51 = vld [vmem:[#allocation11 + $0x4e8] sm:$0xff] }
 0x75d   : > { %9886 = vmatpush.bf16.msra.mxu0 %v15664_v7  ;;  %9899 = vmatpush.bf16.msra.mxu1 %v15672_v35  ;;  %v15739_v7 = vld [vmem:[#allocation11 + $0x460] sm:$0xff] }
 0x75e   : > { %9912 = vmatpush.bf16.msra.mxu2 %v15680_v36  ;;  %9925 = vmatpush.bf16.msra.mxu3 %v15688_v50  ;;  %v15747_v35 = vld [vmem:[#allocation11 + $0x4a0] sm:$0xff]  ;;  %v15730_v50 = vld [vmem:[#allocation11 + $0x418] sm:$0xff] }
 0x75f   : > { %v15755_v36 = vld [vmem:[#allocation11 + $0x4e0] sm:$0xff] }
 0x761   : > { %9887 = vmatpush.bf16.msra.mxu0 %v15663_v55  ;;  %9900 = vmatpush.bf16.msra.mxu1 %v15671_v58  ;;  %v15746_v55 = vld [vmem:[#allocation11 + $0x498] sm:$0xff] }
 0x762   : > { %9913 = vmatpush.bf16.msra.mxu2 %v15679_v17  ;;  %9926 = vmatpush.bf16.msra.mxu3 %v15687_v39  ;;  %v15754_v58 = vld [vmem:[#allocation11 + $0x4d8] sm:$0xff]  ;;  %v7648_v17 = vrot.slane %v17604_v29, 2  ;;  %v15729_v39 = vld [vmem:[#allocation11 + $0x410] sm:$0xff]  ;;  %v15727_v29 = vld [vmem:[#allocation11 + $0x400] sm:$0xff] }
 0x764   : > { %9888 = vmatmul.bf16.vlgmr.msra.gmra.mxu0 %v8184_v5  ;;  %9901 = vmatmul.bf16.vlgmr.msra.gmra.mxu1 %v8185_v25  ;;  %v15736_v5 = vld [vmem:[#allocation11 + $0x448] sm:$0xff] }
 0x765   : > { %9932 = vmatpush.bf16.msrb.mxu0 %v15702_v9  ;;  %9945 = vmatpush.bf16.msrb.mxu1 %v15710_v2  ;;  %v15737_v9 = vld [vmem:[#allocation11 + $0x450] sm:$0xff]  ;;  %v15744_v25 = vld [vmem:[#allocation11 + $0x488] sm:$0xff] }
 0x766   : > { %9958 = vmatpush.bf16.msrb.mxu2 %v15718_v10  ;;  %9971 = vmatpush.bf16.msrb.mxu3 %v15726_v12  ;;  %v15745_v2 = vld [vmem:[#allocation11 + $0x490] sm:$0xff]  ;;  %v7655_v10 = vunpack.i.h.s16 %v7648_v17  ;;  %v15728_v12 = vld [vmem:[#allocation11 + $0x408] sm:$0xff] }
 0x767   : > { %9914 = vmatmul.bf16.vlgmr.msra.gmra.mxu2 %v8186_v15  ;;  %9927 = vmatmul.bf16.vlgmr.msra.gmra.mxu3 %v8187_v0  ;;  %v15735_v15 = vld [vmem:[#allocation11 + $0x440] sm:$0xff] }
 0x768   : > { %v15743_v0 = vld [vmem:[#allocation11 + $0x480] sm:$0xff] }
 0x769   : > { %9933 = vmatpush.bf16.msrb.mxu0 %v15701_v42  ;;  %9946 = vmatpush.bf16.msrb.mxu1 %v15709_v4  ;;  %v15752_v42 = vld [vmem:[#allocation11 + $0x4c8] sm:$0xff]  ;;  %v17622_v4 = vpack.c.b16 %v7655_v10, %v7648_v17  ;;  %v8171_v17 = vld [vmem:[#allocation12] sm:$0x1] }
 0x76a   : > { %9959 = vmatpush.bf16.msrb.mxu2 %v15717_v45  ;;  %9972 = vmatpush.bf16.msrb.mxu3 %v15725_v6  ;;  %v15751_v45 = vld [vmem:[#allocation11 + $0x4c0] sm:$0xff]  ;;  %v15766_v6 = vld [vmem:[#allocation11 + $0x538] sm:$0xff] }
 0x76d   : > { %9934 = vmatpush.bf16.msrb.mxu0 %v15700_v62  ;;  %9947 = vmatpush.bf16.msrb.mxu1 %v15708_v8  ;;  %v15774_v62 = vld [vmem:[#allocation11 + $0x578] sm:$0xff]  ;;  %v17626_v8 = vpack.i.b16 %v17622_v4, %v17622_v4 }
 0x76e   : > { %9960 = vmatpush.bf16.msrb.mxu2 %v15716_v61  ;;  %9973 = vmatpush.bf16.msrb.mxu3 %v15724_v11  ;;  %v15782_v61 = vld [vmem:[#allocation11 + $0x5b8] sm:$0xff] }
 0x76f   : > { %v15790_v11 = vld [vmem:[#allocation11 + $0x5f8] sm:$0xff] }
 0x771   : > { %9935 = vmatpush.bf16.msrb.mxu0 %v15699_v41  ;;  %9948 = vmatpush.bf16.msrb.mxu1 %v15707_v44  ;;  %v8192_v41 = vperm.slane %v17626_v8, 0  ;;  %v8193_v44 = vperm.slane %v17626_v8, 1 }
 0x772   : > { %9961 = vmatpush.bf16.msrb.mxu2 %v15715_v13  ;;  %9974 = vmatpush.bf16.msrb.mxu3 %v15723_v20  ;;  %v15765_v13 = vld [vmem:[#allocation11 + $0x530] sm:$0xff] }
 0x773   : > { %v15773_v20 = vld [vmem:[#allocation11 + $0x570] sm:$0xff] }
 0x775   : > { %9936 = vmatpush.bf16.msrb.mxu0 %v15698_v56  ;;  %9949 = vmatpush.bf16.msrb.mxu1 %v15706_v28  ;;  %v8194_v56 = vperm.slane %v17626_v8, 2  ;;  %v8195_v28 = vperm.slane %v17626_v8, 3 }
 0x776   : > { %9962 = vmatpush.bf16.msrb.mxu2 %v15714_v32  ;;  %9975 = vmatpush.bf16.msrb.mxu3 %v15722_v19  ;;  %v15781_v32 = vld [vmem:[#allocation11 + $0x5b0] sm:$0xff] }
 0x777   : > { %v15789_v19 = vld [vmem:[#allocation11 + $0x5f0] sm:$0xff] }
 0x779   : > { %9937 = vmatpush.bf16.msrb.mxu0 %v15697_v1  ;;  %9950 = vmatpush.bf16.msrb.mxu1 %v15705_v57  ;;  %v15764_v1 = vld [vmem:[#allocation11 + $0x528] sm:$0xff] }
 0x77a   : > { %9963 = vmatpush.bf16.msrb.mxu2 %v15713_v40  ;;  %9976 = vmatpush.bf16.msrb.mxu3 %v15721_v18  ;;  %v15772_v57 = vld [vmem:[#allocation11 + $0x568] sm:$0xff] }
 0x77b   : > { %v15780_v40 = vld [vmem:[#allocation11 + $0x5a8] sm:$0xff] }
 0x77c   : > { %v15788_v18 = vld [vmem:[#allocation11 + $0x5e8] sm:$0xff] }
 0x77d   : > { %9938 = vmatpush.bf16.msrb.mxu0 %v15696_v37  ;;  %9951 = vmatpush.bf16.msrb.mxu1 %v15704_v14  ;;  %v15763_v37 = vld [vmem:[#allocation11 + $0x520] sm:$0xff] }
 0x77e   : > { %9964 = vmatpush.bf16.msrb.mxu2 %v15712_v47  ;;  %9977 = vmatpush.bf16.msrb.mxu3 %v15720_v22  ;;  %v15771_v14 = vld [vmem:[#allocation11 + $0x560] sm:$0xff] }
 0x77f   : > { %v15779_v47 = vld [vmem:[#allocation11 + $0x5a0] sm:$0xff] }
 0x780   : > { %v15787_v22 = vld [vmem:[#allocation11 + $0x5e0] sm:$0xff] }
 0x781   : > { %9939 = vmatpush.bf16.msrb.mxu0 %v15695_v63  ;;  %9952 = vmatpush.bf16.msrb.mxu1 %v15703_v43  ;;  %v15762_v63 = vld [vmem:[#allocation11 + $0x518] sm:$0xff] }
 0x782   : > { %9965 = vmatpush.bf16.msrb.mxu2 %v15711_v31  ;;  %9978 = vmatpush.bf16.msrb.mxu3 %v15719_v21  ;;  %v15770_v43 = vld [vmem:[#allocation11 + $0x558] sm:$0xff] }
 0x783   : > { %v15778_v31 = vld [vmem:[#allocation11 + $0x598] sm:$0xff] }
 0x784   : > { %9940 = vmatmul.bf16.vlgmr.msrb.gmra.mxu0 %v8188_v23  ;;  %9953 = vmatmul.bf16.vlgmr.msrb.gmra.mxu1 %v8189_v53  ;;  %v15786_v21 = vld [vmem:[#allocation11 + $0x5d8] sm:$0xff]  ;;  %v15760_v23 = vld [vmem:[#allocation11 + $0x508] sm:$0xff] }
 0x785   : > { %9984 = vmatpush.bf16.msra.mxu0 %v15734_v24  ;;  %9997 = vmatpush.bf16.msra.mxu1 %v15742_v3  ;;  %v15761_v24 = vld [vmem:[#allocation11 + $0x510] sm:$0xff]  ;;  %v15768_v53 = vld [vmem:[#allocation11 + $0x548] sm:$0xff] }
 0x786   : > { %10010 = vmatpush.bf16.msra.mxu2 %v15750_v46  ;;  %10023 = vmatpush.bf16.msra.mxu3 %v15758_v26  ;;  %v15769_v3 = vld [vmem:[#allocation11 + $0x550] sm:$0xff] }
 0x787   : > { %9966 = vmatmul.bf16.vlgmr.msrb.gmra.mxu2 %v8190_v60  ;;  %9979 = vmatmul.bf16.vlgmr.msrb.gmra.mxu3 %v8191_v16  ;;  %v15777_v46 = vld [vmem:[#allocation11 + $0x590] sm:$0xff]  ;;  %v15759_v60 = vld [vmem:[#allocation11 + $0x500] sm:$0xff] }
 0x788   : > { %v15785_v26 = vld [vmem:[#allocation11 + $0x5d0] sm:$0xff]  ;;  %v15767_v16 = vld [vmem:[#allocation11 + $0x540] sm:$0xff] }
 0x789   : > { %9985 = vmatpush.bf16.msra.mxu0 %v15733_v48  ;;  %9998 = vmatpush.bf16.msra.mxu1 %v15741_v27  ;;  %v15776_v48 = vld [vmem:[#allocation11 + $0x588] sm:$0xff] }
 0x78a   : > { %10011 = vmatpush.bf16.msra.mxu2 %v15749_v54  ;;  %10024 = vmatpush.bf16.msra.mxu3 %v15757_v30  ;;  %v15784_v27 = vld [vmem:[#allocation11 + $0x5c8] sm:$0xff]  ;;  %v15775_v54 = vld [vmem:[#allocation11 + $0x580] sm:$0xff] }
 0x78b   : > { %v15783_v30 = vld [vmem:[#allocation11 + $0x5c0] sm:$0xff] }
 0x78d   : > { %9986 = vmatpush.bf16.msra.mxu0 %v15732_v33  ;;  %9999 = vmatpush.bf16.msra.mxu1 %v15740_v38  ;;  %v15798_v33 = vld [vmem:[#allocation11 + $0x638] sm:$0xff] }
 0x78e   : > { %10012 = vmatpush.bf16.msra.mxu2 %v15748_v59  ;;  %10025 = vmatpush.bf16.msra.mxu3 %v15756_v51  ;;  %v15806_v38 = vld [vmem:[#allocation11 + $0x678] sm:$0xff] }
 0x78f   : > { %v15814_v59 = vld [vmem:[#allocation11 + $0x6b8] sm:$0xff] }
 0x790   : > { %v15822_v51 = vld [vmem:[#allocation11 + $0x6f8] sm:$0xff] }
 0x791   : > { %9987 = vmatpush.bf16.msra.mxu0 %v15731_v52  ;;  %10000 = vmatpush.bf16.msra.mxu1 %v15739_v7  ;;  %v8196_v52 = vperm.slane %v17626_v8, 4  ;;  %v8197_v7 = vperm.slane %v17626_v8, 5 }
 0x792   : > { %10013 = vmatpush.bf16.msra.mxu2 %v15747_v35  ;;  %10026 = vmatpush.bf16.msra.mxu3 %v15755_v36  ;;  %v15797_v35 = vld [vmem:[#allocation11 + $0x630] sm:$0xff] }
 0x793   : > { %v15805_v36 = vld [vmem:[#allocation11 + $0x670] sm:$0xff] }
 0x795   : > { %9988 = vmatpush.bf16.msra.mxu0 %v15730_v50  ;;  %10001 = vmatpush.bf16.msra.mxu1 %v15738_v49  ;;  %v8198_v50 = vperm.slane %v17626_v8, 6  ;;  %v8199_v49 = vperm.slane %v17626_v8, 7 }
 0x796   : > { %10014 = vmatpush.bf16.msra.mxu2 %v15746_v55  ;;  %10027 = vmatpush.bf16.msra.mxu3 %v15754_v58  ;;  %v15813_v55 = vld [vmem:[#allocation11 + $0x6b0] sm:$0xff] }
 0x797   : > { %v15821_v58 = vld [vmem:[#allocation11 + $0x6f0] sm:$0xff] }
 0x799   : > { %9989 = vmatpush.bf16.msra.mxu0 %v15729_v39  ;;  %10002 = vmatpush.bf16.msra.mxu1 %v15737_v9 }
 0x79a   : > { %10015 = vmatpush.bf16.msra.mxu2 %v15745_v2  ;;  %10028 = vmatpush.bf16.msra.mxu3 %v15753_v34  ;;  %v15796_v2 = vld [vmem:[#allocation11 + $0x628] sm:$0xff] }
 0x79b   : > { %v15804_v34 = vld [vmem:[#allocation11 + $0x668] sm:$0xff] }
 0x79d   : > { %9990 = vmatpush.bf16.msra.mxu0 %v15728_v12  ;;  %10003 = vmatpush.bf16.msra.mxu1 %v15736_v5  ;;  %v15812_v12 = vld [vmem:[#allocation11 + $0x6a8] sm:$0xff] }
 0x79e   : > { %10016 = vmatpush.bf16.msra.mxu2 %v15744_v25  ;;  %10029 = vmatpush.bf16.msra.mxu3 %v15752_v42  ;;  %v15820_v5 = vld [vmem:[#allocation11 + $0x6e8] sm:$0xff]  ;;  %v15795_v42 = vld [vmem:[#allocation11 + $0x620] sm:$0xff] }
 0x7a1   : > { %9991 = vmatpush.bf16.msra.mxu0 %v15727_v29  ;;  %10004 = vmatpush.bf16.msra.mxu1 %v15735_v15  ;;  %v15803_v29 = vld [vmem:[#allocation11 + $0x660] sm:$0xff] }
 0x7a2   : > { %10017 = vmatpush.bf16.msra.mxu2 %v15743_v0  ;;  %10030 = vmatpush.bf16.msra.mxu3 %v15751_v45  ;;  %v15811_v15 = vld [vmem:[#allocation11 + $0x6a0] sm:$0xff] }
 0x7a3   : > { %v15819_v0 = vld [vmem:[#allocation11 + $0x6e0] sm:$0xff] }
 0x7a4   : > { %9992 = vmatmul.bf16.vlgmr.msra.gmra.mxu0 %v8192_v41  ;;  %10005 = vmatmul.bf16.vlgmr.msra.gmra.mxu1 %v8193_v44  ;;  %v15802_v41 = vld [vmem:[#allocation11 + $0x658] sm:$0xff] }
 0x7a5   : > { %10036 = vmatpush.bf16.msrb.mxu0 %v15766_v6  ;;  %10049 = vmatpush.bf16.msrb.mxu1 %v15774_v62 }
 0x7a6   : > { %10062 = vmatpush.bf16.msrb.mxu2 %v15782_v61  ;;  %10075 = vmatpush.bf16.msrb.mxu3 %v15790_v11  ;;  %v15794_v11 = vld [vmem:[#allocation11 + $0x618] sm:$0xff] }
 0x7a7   : > { %10018 = vmatmul.bf16.vlgmr.msra.gmra.mxu2 %v8194_v56  ;;  %10031 = vmatmul.bf16.vlgmr.msra.gmra.mxu3 %v8195_v28  ;;  %v15793_v56 = vld [vmem:[#allocation11 + $0x610] sm:$0xff] }
 0x7a8   : > { %v15801_v28 = vld [vmem:[#allocation11 + $0x650] sm:$0xff] }
 0x7a9   : > { %10037 = vmatpush.bf16.msrb.mxu0 %v15765_v13  ;;  %10050 = vmatpush.bf16.msrb.mxu1 %v15773_v20  ;;  %v15810_v13 = vld [vmem:[#allocation11 + $0x698] sm:$0xff] }
 0x7aa   : > { %10063 = vmatpush.bf16.msrb.mxu2 %v15781_v32  ;;  %10076 = vmatpush.bf16.msrb.mxu3 %v15789_v19  ;;  %v15818_v20 = vld [vmem:[#allocation11 + $0x6d8] sm:$0xff]  ;;  %v15809_v32 = vld [vmem:[#allocation11 + $0x690] sm:$0xff] }
 0x7ab   : > { %v15817_v19 = vld [vmem:[#allocation11 + $0x6d0] sm:$0xff] }
 0x7ad   : > { %10038 = vmatpush.bf16.msrb.mxu0 %v15764_v1  ;;  %10051 = vmatpush.bf16.msrb.mxu1 %v15772_v57 }
 0x7ae   : > { %10064 = vmatpush.bf16.msrb.mxu2 %v15780_v40  ;;  %10077 = vmatpush.bf16.msrb.mxu3 %v15788_v18 }
 0x7b1   : > { %10039 = vmatpush.bf16.msrb.mxu0 %v15763_v37  ;;  %10052 = vmatpush.bf16.msrb.mxu1 %v15771_v14  ;;  %v15792_v37 = vld [vmem:[#allocation11 + $0x608] sm:$0xff] }
 0x7b2   : > { %10065 = vmatpush.bf16.msrb.mxu2 %v15779_v47  ;;  %10078 = vmatpush.bf16.msrb.mxu3 %v15787_v22  ;;  %v15800_v14 = vld [vmem:[#allocation11 + $0x648] sm:$0xff] }
 0x7b3   : > { %v15808_v22 = vld [vmem:[#allocation11 + $0x688] sm:$0xff] }
 0x7b5   : > { %10040 = vmatpush.bf16.msrb.mxu0 %v15762_v63  ;;  %10053 = vmatpush.bf16.msrb.mxu1 %v15770_v43  ;;  %v15816_v63 = vld [vmem:[#allocation11 + $0x6c8] sm:$0xff] }
 0x7b6   : > { %10066 = vmatpush.bf16.msrb.mxu2 %v15778_v31  ;;  %10079 = vmatpush.bf16.msrb.mxu3 %v15786_v21  ;;  %v7658_v31 = vunpack.i.h.s16 %v17622_v4  ;;  %v15791_v21 = vld [vmem:[#allocation11 + $0x600] sm:$0xff] }
 0x7b9   : > { %10041 = vmatpush.bf16.msrb.mxu0 %v15761_v24  ;;  %10054 = vmatpush.bf16.msrb.mxu1 %v15769_v3  ;;  %v15799_v24 = vld [vmem:[#allocation11 + $0x640] sm:$0xff] }
 0x7ba   : > { %10067 = vmatpush.bf16.msrb.mxu2 %v15777_v46  ;;  %10080 = vmatpush.bf16.msrb.mxu3 %v15785_v26  ;;  %v15807_v3 = vld [vmem:[#allocation11 + $0x680] sm:$0xff]  ;;  %v15830_v26 = vld [vmem:[#allocation11 + $0x738] sm:$0xff] }
 0x7bb   : > { %v15815_v46 = vld [vmem:[#allocation11 + $0x6c0] sm:$0xff] }
 0x7bd   : > { %10042 = vmatpush.bf16.msrb.mxu0 %v15760_v23  ;;  %10055 = vmatpush.bf16.msrb.mxu1 %v15768_v53  ;;  %v15838_v23 = vld [vmem:[#allocation11 + $0x778] sm:$0xff] }
 0x7be   : > { %10068 = vmatpush.bf16.msrb.mxu2 %v15776_v48  ;;  %10081 = vmatpush.bf16.msrb.mxu3 %v15784_v27  ;;  %v17637_v27 = vpack.i.b16 %v7658_v31, %v7658_v31 }
 0x7c0   : > { %v9785_v39 = vpop.f32.mrf.mxu0  ;;  %v9798_v9 = vpop.f32.mrf.mxu1  ;;  %v8206_v31 = vperm.slane %v17637_v27, 6 }
 0x7c1   : > { %10043 = vmatpush.bf16.msrb.mxu0 %v15759_v60  ;;  %10056 = vmatpush.bf16.msrb.mxu1 %v15767_v16  ;;  %v9786_v10 = vadd.f32 %v9785_v39, %v8171_v17  ;;  %v15846_v60 = vld [vmem:[#allocation11 + $0x7b8] sm:$0xff]  ;;  %v15844_v39 = vld [vmem:[#allocation11 + $0x7a8] sm:$0xff] }
 0x7c2   : > { %10069 = vmatpush.bf16.msrb.mxu2 %v15775_v54  ;;  %10082 = vmatpush.bf16.msrb.mxu3 %v15783_v30  ;;  %v15854_v16 = vld [vmem:[#allocation11 + $0x7f8] sm:$0xff] }
 0x7c3   : > { %v9799_v25 = vadd.f32 %v9798_v9, %v9786_v10  ;;  %v15852_v9 = vld [vmem:[#allocation11 + $0x7e8] sm:$0xff] }
 0x7c4   : > { %10044 = vmatmul.bf16.vlgmr.msrb.gmra.mxu0 %v8196_v52  ;;  %10057 = vmatmul.bf16.vlgmr.msrb.gmra.mxu1 %v8197_v7  ;;  %v15837_v52 = vld [vmem:[#allocation11 + $0x770] sm:$0xff]  ;;  %v8202_v7 = vperm.slane %v17637_v27, 2 }
 0x7c5   : > { %10088 = vmatpush.bf16.msra.mxu0 %v15798_v33  ;;  %10101 = vmatpush.bf16.msra.mxu1 %v15806_v38  ;;  %v8200_v38 = vperm.slane %v17637_v27, 0 }
 0x7c6   : > { %10114 = vmatpush.bf16.msra.mxu2 %v15814_v59  ;;  %10127 = vmatpush.bf16.msra.mxu3 %v15822_v51  ;;  %v8201_v59 = vperm.slane %v17637_v27, 1  ;;  %v15829_v51 = vld [vmem:[#allocation11 + $0x730] sm:$0xff] }
 0x7c7   : > { %10070 = vmatmul.bf16.vlgmr.msrb.gmra.mxu2 %v8198_v50  ;;  %10083 = vmatmul.bf16.vlgmr.msrb.gmra.mxu3 %v8199_v49  ;;  %v9811_v45 = vpop.f32.mrf.mxu2  ;;  %v9824_v6 = vpop.f32.mrf.mxu3  ;;  %v15853_v50 = vld [vmem:[#allocation11 + $0x7f0] sm:$0xff]  ;;  %v15828_v49 = vld [vmem:[#allocation11 + $0x728] sm:$0xff] }
 0x7c8   : > { %v9812_v62 = vadd.f32 %v9811_v45, %v9799_v25  ;;  %v9787_v8 = vpop.f32.mrf.mxu0  ;;  %v9800_v61 = vpop.f32.mrf.mxu1  ;;  %v15843_v25 = vld [vmem:[#allocation11 + $0x7a0] sm:$0xff]  ;;  %v15842_v45 = vld [vmem:[#allocation11 + $0x798] sm:$0xff] }
 0x7c9   : > { %10089 = vmatpush.bf16.msra.mxu0 %v15797_v35  ;;  %10102 = vmatpush.bf16.msra.mxu1 %v15805_v36  ;;  %v8203_v35 = vperm.slane %v17637_v27, 3  ;;  %v15845_v36 = vld [vmem:[#allocation11 + $0x7b0] sm:$0xff] }
 0x7ca   : > { %10115 = vmatpush.bf16.msra.mxu2 %v15813_v55  ;;  %10128 = vmatpush.bf16.msra.mxu3 %v15821_v58  ;;  %v9825_v44 = vadd.f32 %v9824_v6, %v9812_v62  ;;  %v15836_v55 = vld [vmem:[#allocation11 + $0x768] sm:$0xff]  ;;  %v15850_v6 = vld [vmem:[#allocation11 + $0x7d8] sm:$0xff] }
 0x7cd   : > { %10090 = vmatpush.bf16.msra.mxu0 %v15796_v2  ;;  %10103 = vmatpush.bf16.msra.mxu1 %v15804_v34 }
 0x7ce   : > { %10116 = vmatpush.bf16.msra.mxu2 %v15812_v12  ;;  %10129 = vmatpush.bf16.msra.mxu3 %v15820_v5  ;;  %v15827_v12 = vld [vmem:[#allocation11 + $0x720] sm:$0xff] }
 0x7cf   : > { %v9813_v1 = vpop.f32.mrf.mxu2  ;;  %v9826_v57 = vpop.f32.mrf.mxu3  ;;  %v15835_v5 = vld [vmem:[#allocation11 + $0x760] sm:$0xff] }
 0x7d0   : > { %v9837_v40 = vpop.f32.mrf.mxu0  ;;  %v9850_v18 = vpop.f32.mrf.mxu1  ;;  %v15840_v1 = vld [vmem:[#allocation11 + $0x788] sm:$0xff] }
 0x7d1   : > { %10091 = vmatpush.bf16.msra.mxu0 %v15795_v42  ;;  %10104 = vmatpush.bf16.msra.mxu1 %v15803_v29  ;;  %v9838_v47 = vadd.f32 %v9837_v40, %v9825_v44  ;;  %v15851_v42 = vld [vmem:[#allocation11 + $0x7e0] sm:$0xff]  ;;  %v15825_v44 = vld [vmem:[#allocation11 + $0x710] sm:$0xff]  ;;  %v15848_v57 = vld [vmem:[#allocation11 + $0x7c8] sm:$0xff] }
 0x7d2   : > { %10117 = vmatpush.bf16.msra.mxu2 %v15811_v15  ;;  %10130 = vmatpush.bf16.msra.mxu3 %v15819_v0  ;;  %v15826_v15 = vld [vmem:[#allocation11 + $0x718] sm:$0xff] }
 0x7d3   : > { %v9851_v43 = vadd.f32 %v9850_v18, %v9838_v47  ;;  %v15834_v0 = vld [vmem:[#allocation11 + $0x758] sm:$0xff]  ;;  %v15839_v47 = vld [vmem:[#allocation11 + $0x780] sm:$0xff] }
 0x7d5   : > { %10092 = vmatpush.bf16.msra.mxu0 %v15794_v11  ;;  %10105 = vmatpush.bf16.msra.mxu1 %v15802_v41 }
 0x7d6   : > { %10118 = vmatpush.bf16.msra.mxu2 %v15810_v13  ;;  %10131 = vmatpush.bf16.msra.mxu3 %v15818_v20  ;;  %v15833_v13 = vld [vmem:[#allocation11 + $0x750] sm:$0xff] }
 0x7d7   : > { %v9863_v53 = vpop.f32.mrf.mxu2  ;;  %v9876_v48 = vpop.f32.mrf.mxu3 }
 0x7d8   : > { %v9864_v54 = vadd.f32 %v9863_v53, %v9851_v43  ;;  %v9839_v30 = vpop.f32.mrf.mxu0  ;;  %v9852_v33 = vpop.f32.mrf.mxu1  ;;  %v8205_v43 = vperm.slane %v17637_v27, 5 }
 0x7d9   : > { %10093 = vmatpush.bf16.msra.mxu0 %v15793_v56  ;;  %10106 = vmatpush.bf16.msra.mxu1 %v15801_v28  ;;  %v15841_v56 = vld [vmem:[#allocation11 + $0x790] sm:$0xff] }
 0x7da   : > { %10119 = vmatpush.bf16.msra.mxu2 %v15809_v32  ;;  %10132 = vmatpush.bf16.msra.mxu3 %v15817_v19  ;;  %v9877_v4 = vadd.f32 %v9876_v48, %v9864_v54  ;;  %v15849_v28 = vld [vmem:[#allocation11 + $0x7d0] sm:$0xff]  ;;  %v15824_v32 = vld [vmem:[#allocation11 + $0x708] sm:$0xff] }
 0x7db   : > { %v15832_v19 = vld [vmem:[#allocation11 + $0x748] sm:$0xff] }
 0x7dd   : > { %10094 = vmatpush.bf16.msra.mxu0 %v15792_v37  ;;  %10107 = vmatpush.bf16.msra.mxu1 %v15800_v14  ;;  %v15823_v37 = vld [vmem:[#allocation11 + $0x700] sm:$0xff] }
 0x7de   : > { %10120 = vmatpush.bf16.msra.mxu2 %v15808_v22  ;;  %10133 = vmatpush.bf16.msra.mxu3 %v15816_v63  ;;  %v15831_v14 = vld [vmem:[#allocation11 + $0x740] sm:$0xff]  ;;  %v8204_v63 = vperm.slane %v17637_v27, 4 }
 0x7df   : > { %v9865_v58 = vpop.f32.mrf.mxu2  ;;  %v9878_v17 = vpop.f32.mrf.mxu3  ;;  %v15847_v22 = vld [vmem:[#allocation11 + $0x7c0] sm:$0xff] }
 0x7e1   : > { %10095 = vmatpush.bf16.msra.mxu0 %v15791_v21  ;;  %10108 = vmatpush.bf16.msra.mxu1 %v15799_v24  ;;  %v9889_v2 = vpop.f32.mrf.mxu0  ;;  %v9902_v34 = vpop.f32.mrf.mxu1  ;;  %v8207_v21 = vperm.slane %v17637_v27, 7 }
 0x7e2   : > { %10121 = vmatpush.bf16.msra.mxu2 %v15807_v3  ;;  %10134 = vmatpush.bf16.msra.mxu3 %v15815_v46  ;;  %v9890_v10 = vadd.f32 %v9889_v2, %v9877_v4 }
 0x7e4   : > { %10096 = vmatmul.bf16.vlgmr.msra.gmra.mxu0 %v8200_v38  ;;  %10109 = vmatmul.bf16.vlgmr.msra.gmra.mxu1 %v8201_v59  ;;  %v9903_v29 = vadd.f32 %v9902_v34, %v9890_v10  ;;  %v15862_v10 = vld [vmem:[#allocation14 + $0x38] sm:$0xff] }
 0x7e5   : > { %10140 = vmatpush.bf16.msrb.mxu0 %v15830_v26  ;;  %10153 = vmatpush.bf16.msrb.mxu1 %v15838_v23 }
 0x7e6   : > { %10166 = vmatpush.bf16.msrb.mxu2 %v15846_v60  ;;  %10179 = vmatpush.bf16.msrb.mxu3 %v15854_v16 }
 0x7e7   : > { %10122 = vmatmul.bf16.vlgmr.msra.gmra.mxu2 %v8202_v7  ;;  %10135 = vmatmul.bf16.vlgmr.msra.gmra.mxu3 %v8203_v35 }
 0x7e9   : > { %10141 = vmatpush.bf16.msrb.mxu0 %v15829_v51  ;;  %10154 = vmatpush.bf16.msrb.mxu1 %v15837_v52  ;;  %v9891_v11 = vpop.f32.mrf.mxu0  ;;  %v9904_v41 = vpop.f32.mrf.mxu1 }
 0x7ea   : > { %10167 = vmatpush.bf16.msrb.mxu2 %v15845_v36  ;;  %10180 = vmatpush.bf16.msrb.mxu3 %v15853_v50  ;;  %v9915_v62 = vpop.f32.mrf.mxu2  ;;  %v9928_v8 = vpop.f32.mrf.mxu3 }
 0x7eb   : > { %v9916_v61 = vadd.f32 %v9915_v62, %v9903_v29  ;;  %v15859_v29 = vld [vmem:[#allocation14 + $0x20] sm:$0xff]  ;;  %v15856_v62 = vld [vmem:[#allocation14 + $0x8] sm:$0xff] }
 0x7ed   : > { %10142 = vmatpush.bf16.msrb.mxu0 %v15828_v49  ;;  %10155 = vmatpush.bf16.msrb.mxu1 %v15836_v55  ;;  %v9929_v20 = vadd.f32 %v9928_v8, %v9916_v61 }
 0x7ee   : > { %10168 = vmatpush.bf16.msrb.mxu2 %v15844_v39  ;;  %10181 = vmatpush.bf16.msrb.mxu3 %v15852_v9 }
 0x7f1   : > { %10143 = vmatpush.bf16.msrb.mxu0 %v15827_v12  ;;  %10156 = vmatpush.bf16.msrb.mxu1 %v15835_v5  ;;  %v15861_v12 = vld [vmem:[#allocation14 + $0x30] sm:$0xff] }
 0x7f2   : > { %10169 = vmatpush.bf16.msrb.mxu2 %v15843_v25  ;;  %10182 = vmatpush.bf16.msrb.mxu3 %v15851_v42  ;;  %v9917_v40 = vpop.f32.mrf.mxu2  ;;  %v9930_v18 = vpop.f32.mrf.mxu3  ;;  %v15860_v42 = vld [vmem:[#allocation14 + $0x28] sm:$0xff] }
 0x7f5   : > { %10144 = vmatpush.bf16.msrb.mxu0 %v15826_v15  ;;  %10157 = vmatpush.bf16.msrb.mxu1 %v15834_v0  ;;  %v15858_v15 = vld [vmem:[#allocation14 + $0x18] sm:$0xff] }
 0x7f6   : > { %10170 = vmatpush.bf16.msrb.mxu2 %v15842_v45  ;;  %10183 = vmatpush.bf16.msrb.mxu3 %v15850_v6  ;;  %v15857_v6 = vld [vmem:[#allocation14 + $0x10] sm:$0xff] }
 0x7f9   : > { %10145 = vmatpush.bf16.msrb.mxu0 %v15825_v44  ;;  %10158 = vmatpush.bf16.msrb.mxu1 %v15833_v13  ;;  %v15855_v13 = vld [vmem:[#allocation14] sm:$0xff] }
 0x7fa   : > { %10171 = vmatpush.bf16.msrb.mxu2 %v15841_v56  ;;  %10184 = vmatpush.bf16.msrb.mxu3 %v15849_v28 }
 0x7fd   : > { %10146 = vmatpush.bf16.msrb.mxu0 %v15824_v32  ;;  %10159 = vmatpush.bf16.msrb.mxu1 %v15832_v19 }
 0x7fe   : > { %10172 = vmatpush.bf16.msrb.mxu2 %v15840_v1  ;;  %10185 = vmatpush.bf16.msrb.mxu3 %v15848_v57 }
 0x801   : > { %10147 = vmatpush.bf16.msrb.mxu0 %v15823_v37  ;;  %10160 = vmatpush.bf16.msrb.mxu1 %v15831_v14  ;;  %v9941_v24 = vpop.f32.mrf.mxu0  ;;  %v9954_v3 = vpop.f32.mrf.mxu1 }
 0x802   : > { %10173 = vmatpush.bf16.msrb.mxu2 %v15839_v47  ;;  %10186 = vmatpush.bf16.msrb.mxu3 %v15847_v22  ;;  %v9942_v46 = vadd.f32 %v9941_v24, %v9929_v20 }
 0x804   : > { %10148 = vmatmul.bf16.vlgmr.msrb.gmra.mxu0 %v8204_v63  ;;  %10161 = vmatmul.bf16.vlgmr.msrb.gmra.mxu1 %v8205_v43  ;;  %v9955_v26 = vadd.f32 %v9954_v3, %v9942_v46 }
 0x805   : > { %10174 = vmatmul.bf16.vlgmr.msrb.gmra.mxu2 %v8206_v31  ;;  %10187 = vmatmul.bf16.vlgmr.msrb.gmra.mxu3 %v8207_v21 }
 0x806   : > { %10259 = vmatpush.bf16.msra.mxu0 %v15862_v10 }
 0x809   : > { %v9943_v60 = vpop.f32.mrf.mxu0  ;;  %v9956_v16 = vpop.f32.mrf.mxu1 }
 0x80a   : > { %v9967_v23 = vpop.f32.mrf.mxu2  ;;  %v9980_v53 = vpop.f32.mrf.mxu3  ;;  %10260 = vmatpush.bf16.msra.mxu0 %v15861_v12 }
 0x80b   : > { %v9968_v48 = vadd.f32 %v9967_v23, %v9955_v26 }
 0x80d   : > { %v9981_v54 = vadd.f32 %v9980_v53, %v9968_v48  ;;  %v10210_v48 = vld [vmem:[#allocation15] sm:$0x1] }
 0x80e   : > { %10261 = vmatpush.bf16.msra.mxu0 %v15860_v42 }
 0x812   : > { %v9969_v30 = vpop.f32.mrf.mxu2  ;;  %v9982_v33 = vpop.f32.mrf.mxu3  ;;  %10262 = vmatpush.bf16.msra.mxu0 %v15859_v29 }
 0x816   : > { %10263 = vmatpush.bf16.msra.mxu0 %v15858_v15 }
 0x81a   : > { %10264 = vmatpush.bf16.msra.mxu0 %v15857_v6 }
 0x81e   : > { %10265 = vmatpush.bf16.msra.mxu0 %v15856_v62 }
 0x821   : > { %v9993_v4 = vpop.f32.mrf.mxu0  ;;  %v10006_v38 = vpop.f32.mrf.mxu1 }
 0x822   : > { %v9994_v59 = vadd.f32 %v9993_v4, %v9981_v54  ;;  %10266 = vmatpush.bf16.msra.mxu0 %v15855_v13 }
 0x824   : > { %v10007_v27 = vadd.f32 %v10006_v38, %v9994_v59 }
 0x829   : > { %v9995_v35 = vpop.f32.mrf.mxu0  ;;  %v10008_v36 = vpop.f32.mrf.mxu1 }
 0x82a   : > { %v10019_v51 = vpop.f32.mrf.mxu2  ;;  %v10032_v52 = vpop.f32.mrf.mxu3 }
 0x82b   : > { %v10020_v7 = vadd.f32 %v10019_v51, %v10007_v27 }
 0x82d   : > { %v10033_v50 = vadd.f32 %v10032_v52, %v10020_v7 }
 0x832   : > { %v10021_v49 = vpop.f32.mrf.mxu2  ;;  %v10034_v55 = vpop.f32.mrf.mxu3 }
 0x841   : > { %v10045_v58 = vpop.f32.mrf.mxu0  ;;  %v10058_v17 = vpop.f32.mrf.mxu1 }
 0x842   : > { %v10046_v8 = vadd.f32 %v10045_v58, %v10033_v50 }
 0x844   : > { %v10059_v20 = vadd.f32 %v10058_v17, %v10046_v8 }
 0x849   : > { %v10047_v2 = vpop.f32.mrf.mxu0  ;;  %v10060_v34 = vpop.f32.mrf.mxu1 }
 0x84a   : > { %v10071_v39 = vpop.f32.mrf.mxu2  ;;  %v10084_v9 = vpop.f32.mrf.mxu3 }
 0x84b   : > { %v10072_v56 = vadd.f32 %v10071_v39, %v10059_v20 }
 0x84d   : > { %v10085_v19 = vadd.f32 %v10084_v9, %v10072_v56 }
 0x852   : > { %v10073_v5 = vpop.f32.mrf.mxu2  ;;  %v10086_v25 = vpop.f32.mrf.mxu3 }
 0x861   : > { %v10097_v0 = vpop.f32.mrf.mxu0  ;;  %v10110_v45 = vpop.f32.mrf.mxu1 }
 0x862   : > { %v10098_v1 = vadd.f32 %v10097_v0, %v10085_v19 }
 0x864   : > { %v10111_v57 = vadd.f32 %v10110_v45, %v10098_v1 }
 0x869   : > { %v10099_v41 = vpop.f32.mrf.mxu0  ;;  %v10112_v44 = vpop.f32.mrf.mxu1 }
 0x86a   : > { %v10123_v61 = vpop.f32.mrf.mxu2  ;;  %v10136_v11 = vpop.f32.mrf.mxu3 }
 0x86b   : > { %v10124_v40 = vadd.f32 %v10123_v61, %v10111_v57 }
 0x86d   : > { %v10137_v18 = vadd.f32 %v10136_v11, %v10124_v40 }
 0x872   : > { %v10125_v28 = vpop.f32.mrf.mxu2  ;;  %v10138_v32 = vpop.f32.mrf.mxu3 }
 0x881   : > { %v10149_v37 = vpop.f32.mrf.mxu0  ;;  %v10162_v14 = vpop.f32.mrf.mxu1 }
 0x882   : > { %v10150_v47 = vadd.f32 %v10149_v37, %v10137_v18 }
 0x884   : > { %v10163_v22 = vadd.f32 %v10162_v14, %v10150_v47 }
 0x888   : > { %v10175_v63 = vpop.f32.mrf.mxu2  ;;  %v10188_v43 = vpop.f32.mrf.mxu3 }
 0x889   : > { %v10176_v31 = vadd.f32 %v10175_v63, %v10163_v22  ;;  %v10151_v21 = vpop.f32.mrf.mxu0  ;;  %v10164_v24 = vpop.f32.mrf.mxu1 }
 0x88b   : > { %v10189_v3 = vadd.f32 %v10188_v43, %v10176_v31 }
 0x88d   : > { %v10192_v46 = vmax.f32 %v10189_v3, 0.0 }
 0x88f   : > { %v10193_v26 = vpack.c.bf16 %v10192_v46, %v10192_v46 }
 0x890   : > { %v10177_v23 = vpop.f32.mrf.mxu2  ;;  %v10190_v53 = vpop.f32.mrf.mxu3 }
 0x891   : > { %10267 = vmatmul.bf16.vlgmr.msra.gmra.mxu0 %v10193_v26 }
 0x90e   : > { %v10268_v60 = vpop.f32.mrf.mxu0 }
 0x90f   : > { %v10269_v16 = vadd.f32 %v10268_v60, %v10210_v48 }
 0x911   : > { %10272 = vst [vmem:[%s449_s29] sm:$0x1] %v10269_v16 }
 0x912   : > { %16378 = shalt.err (!%p16375_p8)
}
 0x913   : > { %15896 = dma.vmem_to_hbm [thread:$0]  (%p16539_p5), %s10285_s27, 16, %s10287_s1, %s10274_s28  }
 0x916   : > { %v10270_v54 = vpop.f32.mrf.mxu0 }
 0x917 PF: > { %p15943_p9 = scmp.ge.s32.totalorder %s16433_s12, 2  ;;  %s10298_s14 = sand.u32 1, %s16421_s30  }
 0x918   : > { %s10299_s4 = scalar_lea.sflag [#allocation5], %s10298_s14 }
 0x919   : > { %p15924_p10 = pnand %p15943_p9, %p16543_p6 }
 0x91b   : > { %p15925_p11 = pneg %p15924_p10 }
 0x91d   : > { %16416 = dma.done.wait (%p15925_p11), %s10299_s4, 16  }
 0x91e   : > { %16418 = vsyncadd (%p15925_p11), %s10299_s4, 4294967280  ;;  %s17835_s18 = sld [smem:[#allocation24_spill]]  ;;  %p24_p12 = scmp.ge.s32.totalorder %s16526_s15, 4  }
 0x91f   : > { %s17836_s30 = smov %s16425_s10  ;;  %s17837_s10 = smov %s16429_s11 }
 0x920   : > { %s17839_s12 = smov %s16526_s15  ;;  %26 = sbr.rel (!%p24_p12) target bundleno = 14 (0xe), region = 138 }
 0x924   : > { %s17838_s11 = smov %s17835_s18 }
 0x925   :  { %10304 = vsyncpa [#allocation4], 1 }
 0x926   :  { %10306 = vsyncpa [#allocation4 + $0x1], 1 }
 0x927   :  { %10307 = vsyncpa [#allocation7], 1 }
 0x928   :  { %10308 = vsyncpa [#allocation10], 1 }
 0x929   :  { %10309 = vsyncpa [#allocation13], 1 }
 0x92a   :  { %10310 = vsyncpa [#allocation16], 1 }
 0x92b   :  { %10311 = vsyncpa [#allocation5], 1 }
 0x92c   :  { %10313 = vsyncpa [#allocation5 + $0x1], 1 }

</bundles_post_ra>
